<compile_context>
chip_gen: v7x
topology: tpu7x:2x2x1
jax: 0.10.0
libtpu: 0.0.40
codegen_flags: <defaults>
</compile_context>

<pallas_src>
import functools

import jax
import jax.numpy as jnp
from jax.experimental import pallas as pl
from jax.experimental.pallas import tpu as pltpu

LN_EPS = 1e-5        # torch.nn.LayerNorm default
OUT_PAD = 128        # lane-dense padding for the Dout=1 "out" MLP


# --------------------------------------------------------------- in-kernel helpers
def _gelu(x):
    # tanh-approximate GELU (EUP tanh); ~1e-3 max abs deviation from erf-GELU.
    c = 0.7978845608028654  # sqrt(2/pi)
    return 0.5 * x * (1.0 + jnp.tanh(c * (x + 0.044715 * x * x * x)))


def _layernorm(x, w, b):
    mu = jnp.mean(x, axis=-1, keepdims=True)
    xc = x - mu
    var = jnp.mean(xc * xc, axis=-1, keepdims=True)
    return xc * jax.lax.rsqrt(var + LN_EPS) * w + b


def _mmb(a, w):
    # bf16 x bf16 matmul with f32 accumulation (native MXU input type).
    return jnp.dot(a.astype(jnp.bfloat16), w.astype(jnp.bfloat16),
                   preferred_element_type=jnp.float32)


def _softmax_last(s):
    m = jnp.max(s, axis=-1, keepdims=True)
    e = jnp.exp(s - m)
    return e * pl.reciprocal(jnp.sum(e, axis=-1, keepdims=True), approx=True)


def _mlp(x, ln, w1, b1, w2, b2):
    # UniDepth MLP / cls_project: LayerNorm -> Linear -> GELU -> Linear
    h = _layernorm(x, ln[0:1], ln[1:2])
    h = _gelu(_mmb(h, w1) + b1)
    return _mmb(h, w2) + b2


# Packed (1, D) parameter-vector row layout for one attention block:
#   0 nx_w  1 nx_b  2 nc_w  3 nc_b  4 out_b  5 ls1
#   6 mlp_ln_w  7 mlp_ln_b  8 mlp_b2  9 ls2
def _attention_block(x, ctx, pos, vec, q_w, kv_w, out_w, mlp_w1, mlp_b1, mlp_w2,
                     *, num_heads):
    nq, d = x.shape
    nc = ctx.shape[0]
    dh = d // num_heads
    scale = dh ** -0.5

    xn = _layernorm(x, vec[0:1], vec[1:2])
    cn = _layernorm(ctx, vec[2:3], vec[3:4])

    q = _mmb(xn, q_w) + pos          # pos_embed added to Q after projection
    kv = _mmb(cn, kv_w)              # fused K/V projection -> (Nc, 2D)
    k = kv[:, :d]
    v = kv[:, d:]

    if num_heads == 1:
        s = jnp.einsum("qc,kc->qk", q.astype(jnp.bfloat16), k.astype(jnp.bfloat16),
                       preferred_element_type=jnp.float32) * scale
        p = _softmax_last(s)
        attn = jnp.einsum("qk,kc->qc", p.astype(jnp.bfloat16), v.astype(jnp.bfloat16),
                          preferred_element_type=jnp.float32)
    else:
        q3 = q.reshape(nq, num_heads, dh)
        k3 = k.reshape(nc, num_heads, dh)
        v3 = v.reshape(nc, num_heads, dh)
        s = jnp.einsum("qhc,khc->hqk", q3.astype(jnp.bfloat16), k3.astype(jnp.bfloat16),
                       preferred_element_type=jnp.float32) * scale      # (H, Nq, Nc)
        p = _softmax_last(s)
        o3 = jnp.einsum("hqk,khc->qhc", p.astype(jnp.bfloat16), v3.astype(jnp.bfloat16),
                        preferred_element_type=jnp.float32)             # (Nq, H, dh)
        attn = o3.reshape(nq, d)

    attn = _mmb(attn, out_w) + vec[4:5]
    x = x + attn * vec[5:6]                          # LayerScale 1 + residual

    h = _layernorm(x, vec[6:7], vec[7:8])
    h = _gelu(_mmb(h, mlp_w1) + mlp_b1)
    h = _mmb(h, mlp_w2) + vec[8:9]
    return x + h * vec[9:10]                         # LayerScale 2 + residual


# --------------------------------------------------------------- fused decoder kernel
def _camera_head_kernel(
        feat_ref, cls_ref, lpos_ref,
        cp_ln, cp_w1, cp_b1, cp_w2, cp_b2,
        if_ln, if_w1, if_b1, if_w2, if_b2,
        ag_vec, ag_qw, ag_kvw, ag_ow, ag_w1, ag_b1, ag_w2,
        ly_vec, ly_qw, ly_kvw, ly_ow, ly_w1, ly_b1, ly_w2,
        ot_ln, ot_w1, ot_b1, ot_w2, ot_b2,
        o_ref, *, num_heads):
    feat = feat_ref[0]          # (NTOK, D)   features_stack + pos_embed
    cls_in = cls_ref[0]         # (4, INPUT_DIM)
    pos = lpos_ref[0]           # (4, D)      latents_pos

    # cls_project: LN -> Linear -> GELU -> Linear   (input_dim -> hidden)
    cls_tok = _mlp(cls_in, cp_ln[...], cp_w1[...], cp_b1[...], cp_w2[...], cp_b2[...])
    # in_features MLP on the stacked features
    feat_h = _mlp(feat, if_ln[...], if_w1[...], if_b1[...], if_w2[...], if_b2[...])

    ctx = jnp.concatenate([feat_h, cls_tok], axis=0)            # (NTOK + 4, D)

    # aggregate: cross-attention, single head
    cls_tok = _attention_block(cls_tok, ctx, pos, ag_vec[...],
                               ag_qw[...], ag_kvw[...], ag_ow[...],
                               ag_w1[...], ag_b1[...], ag_w2[...], num_heads=1)

    # depth x self-attention refinement layers (weights stacked along axis 0)
    depth = ly_qw.shape[0]
    for l in range(depth):
        cls_tok = _attention_block(cls_tok, cls_tok, pos, ly_vec[l],
                                   ly_qw[l], ly_kvw[l], ly_ow[l],
                                   ly_w1[l], ly_b1[l], ly_w2[l],
                                   num_heads=num_heads)

    # out MLP (Dout=1 padded to OUT_PAD lanes; column 0 holds the real value)
    y = _mlp(cls_tok, ot_ln[...], ot_w1[...], ot_b1[...], ot_w2[...], ot_b2[...])
    o_ref[0] = y.astype(o_ref.dtype)


# --------------------------------------------------------------- wrapper / forward
def _rep_spec(arr):
    n = arr.ndim
    return pl.BlockSpec(arr.shape, lambda b, _n=n: (0,) * _n)


def camera_head_forward(packed, features, cls_tokens, pos_embed, *, num_heads):
    """
    features:   (B, N, hidden, L)  — L resolution levels stacked on the last axis
    cls_tokens: (B, 4, input_dim)
    pos_embed:  (B, L*N, hidden)
    returns:    (B, 3, 3) camera intrinsics
    """
    B = features.shape[0]
    D = features.shape[2]
    L = features.shape[-1]
    nq = cls_tokens.shape[1]
    in_dim = cls_tokens.shape[2]

    feats = [features[..., i] for i in range(L)]                 # features.unbind(-1)
    feat_stack = jnp.concatenate(feats, axis=1) + pos_embed      # (B, L*N, hidden)
    ntok = feat_stack.shape[1]

    cp, fi, ag, ly, ot = (packed["cls_project"], packed["in_features"],
                          packed["aggregate"], packed["layers"], packed["out"])
    lpos = packed["latents_pos"]                                 # (1, 4, hidden)
    out_pad = ot["w2"].shape[1]

    operands = [
        feat_stack, cls_tokens, lpos,
        cp["ln"], cp["w1"], cp["b1"], cp["w2"], cp["b2"],
        fi["ln"], fi["w1"], fi["b1"], fi["w2"], fi["b2"],
        ag["vec"], ag["q_w"], ag["kv_w"], ag["out_w"],
        ag["mlp_w1"], ag["mlp_b1"], ag["mlp_w2"],
        ly["vec"], ly["q_w"], ly["kv_w"], ly["out_w"],
        ly["mlp_w1"], ly["mlp_b1"], ly["mlp_w2"],
        ot["ln"], ot["w1"], ot["b1"], ot["w2"], ot["b2"],
    ]
    in_specs = [
        pl.BlockSpec((1, ntok, D), lambda b: (b, 0, 0)),
        pl.BlockSpec((1, nq, in_dim), lambda b: (b, 0, 0)),
        pl.BlockSpec((1, nq, D), lambda b: (0, 0, 0)),
    ] + [_rep_spec(a) for a in operands[3:]]

    out = pl.pallas_call(
        functools.partial(_camera_head_kernel, num_heads=num_heads),
        out_shape=jax.ShapeDtypeStruct((B, nq, out_pad), jnp.float32),
        grid=(B,),
        in_specs=in_specs,
        out_specs=pl.BlockSpec((1, nq, out_pad), lambda b: (b, 0, 0)),
        compiler_params=pltpu.CompilerParams(
            dimension_semantics=("parallel",)),   # 1 batch element per TC on v7x
    )(*operands)

    x = out[:, :, 0]                                             # (B, 4)
    fx, fy = jnp.exp(x[:, 0]), jnp.exp(x[:, 1])
    cx, cy = jax.nn.sigmoid(x[:, 2]), jax.nn.sigmoid(x[:, 3])
    zeros, ones = jnp.zeros_like(fx), jnp.ones_like(fx)
    K = jnp.stack([
        jnp.stack([fx, zeros, cx], axis=-1),
        jnp.stack([zeros, fy, cy], axis=-1),
        jnp.stack([zeros, zeros, ones], axis=-1),
    ], axis=1)                                                   # (B, 3, 3)
    return K


# --------------------------------------------------------------- parameter init / packing
def _init_mlp_params(key, din, dhidden, dout):
    k1, k2 = jax.random.split(key)
    return dict(
        ln_w=jnp.ones((1, din), jnp.float32),
        ln_b=jnp.zeros((1, din), jnp.float32),
        w1=jax.random.normal(k1, (din, dhidden), jnp.float32) * 0.05,
        b1=jnp.zeros((1, dhidden), jnp.float32),
        w2=jax.random.normal(k2, (dhidden, dout), jnp.float32) * 0.05,
        b2=jnp.zeros((1, dout), jnp.float32),
    )


def _init_attn_block_params(key, dim, expansion, layer_scale=1.0):
    ks = jax.random.split(key, 6)
    return dict(
        nx_w=jnp.ones((1, dim), jnp.float32), nx_b=jnp.zeros((1, dim), jnp.float32),
        nc_w=jnp.ones((1, dim), jnp.float32), nc_b=jnp.zeros((1, dim), jnp.float32),
        q_w=jax.random.normal(ks[0], (dim, dim), jnp.float32) * 0.05,   # bias=False
        k_w=jax.random.normal(ks[1], (dim, dim), jnp.float32) * 0.05,   # kv: first half
        v_w=jax.random.normal(ks[2], (dim, dim), jnp.float32) * 0.05,   # kv: second half
        out_w=jax.random.normal(ks[3], (dim, dim), jnp.float32) * 0.05,
        out_b=jnp.zeros((1, dim), jnp.float32),
        ls1=jnp.full((1, dim), layer_scale, jnp.float32),
        mlp_ln_w=jnp.ones((1, dim), jnp.float32), mlp_ln_b=jnp.zeros((1, dim), jnp.float32),
        mlp_w1=jax.random.normal(ks[4], (dim, dim * expansion), jnp.float32) * 0.05,
        mlp_b1=jnp.zeros((1, dim * expansion), jnp.float32),
        mlp_w2=jax.random.normal(ks[5], (dim * expansion, dim), jnp.float32) * 0.05,
        mlp_b2=jnp.zeros((1, dim), jnp.float32),
        ls2=jnp.full((1, dim), layer_scale, jnp.float32),
    )


def init_camera_head_params(key, input_dim, hidden_dim, expansion=4, depth=4, layer_scale=1.0):
    ks = jax.random.split(key, depth + 5)
    return dict(
        latents_pos=jax.random.normal(ks[0], (1, 4, hidden_dim), jnp.float32),
        cls_project=_init_mlp_params(ks[1], input_dim, hidden_dim // 2, hidden_dim),
        in_features=_init_mlp_params(ks[2], hidden_dim, hidden_dim * 2, hidden_dim),
        aggregate=_init_attn_block_params(ks[3], hidden_dim, expansion, layer_scale),
        layers=[_init_attn_block_params(ks[4 + i], hidden_dim, expansion, layer_scale)
                for i in range(depth)],
        out=_init_mlp_params(ks[4 + depth], hidden_dim, hidden_dim * 2, 1),
    )


def _pack_mlp(p, pad_out_to=None):
    w2, b2 = p["w2"], p["b2"]
    if pad_out_to is not None and w2.shape[1] < pad_out_to:
        pad = pad_out_to - w2.shape[1]
        w2 = jnp.pad(w2, ((0, 0), (0, pad)))
        b2 = jnp.pad(b2, ((0, 0), (0, pad)))
    return dict(
        ln=jnp.concatenate([p["ln_w"], p["ln_b"]], axis=0),      # (2, din) f32
        w1=p["w1"].astype(jnp.bfloat16), b1=p["b1"],
        w2=w2.astype(jnp.bfloat16), b2=b2,
    )


def _pack_attn(p):
    vec = jnp.concatenate(
        [p["nx_w"], p["nx_b"], p["nc_w"], p["nc_b"], p["out_b"], p["ls1"],
         p["mlp_ln_w"], p["mlp_ln_b"], p["mlp_b2"], p["ls2"]], axis=0)   # (10, dim)
    return dict(
        vec=vec,
        q_w=p["q_w"].astype(jnp.bfloat16),
        kv_w=jnp.concatenate([p["k_w"], p["v_w"]], axis=1).astype(jnp.bfloat16),
        out_w=p["out_w"].astype(jnp.bfloat16),
        mlp_w1=p["mlp_w1"].astype(jnp.bfloat16),
        mlp_b1=p["mlp_b1"],
        mlp_w2=p["mlp_w2"].astype(jnp.bfloat16),
    )


def pack_camera_head_params(params):
    layers = [_pack_attn(lp) for lp in params["layers"]]
    stacked = {k: jnp.stack([l[k] for l in layers], axis=0) for k in layers[0]}
    return dict(
        latents_pos=params["latents_pos"],
        cls_project=_pack_mlp(params["cls_project"]),
        in_features=_pack_mlp(params["in_features"]),
        aggregate=_pack_attn(params["aggregate"]),
        layers=stacked,
        out=_pack_mlp(params["out"], pad_out_to=OUT_PAD),
    )


# --------------------------------------------------------------- main
if __name__ == "__main__":
    B = 2                 # batch
    N_PER_LEVEL = 16      # tokens per resolution level
    L = 2                 # number of resolution levels
    INPUT_DIM = 64        # ViT cls-token dim
    HIDDEN = 32           # hidden_dim
    NUM_HEADS = 8
    EXPANSION = 4
    DEPTH = 4

    assert HIDDEN % NUM_HEADS == 0, "hidden_dim must be divisible by num_heads"

    key = jax.random.PRNGKey(0)
    k_feat, k_cls, k_pos, k_par = jax.random.split(key, 4)

    features = jax.random.normal(k_feat, (B, N_PER_LEVEL, HIDDEN, L), jnp.float32)
    cls_tokens = jax.random.normal(k_cls, (B, 4, INPUT_DIM), jnp.float32)
    pos_embed = jax.random.normal(k_pos, (B, N_PER_LEVEL * L, HIDDEN), jnp.float32)

    params = init_camera_head_params(k_par, INPUT_DIM, HIDDEN, EXPANSION, DEPTH,
                                     layer_scale=1.0)
    packed = pack_camera_head_params(params)

    fwd = jax.jit(functools.partial(camera_head_forward, num_heads=NUM_HEADS))
    intrinsics = jax.block_until_ready(fwd(packed, features, cls_tokens, pos_embed))

    assert intrinsics.shape == (B, 3, 3)
    assert bool(jnp.all(jnp.isfinite(intrinsics)))
    print("KERNEL_OK")
</pallas_src>

<mosaic_0001>
module attributes {stable_mosaic.version = 11 : i64} {
  func.func @_camera_head_kernel(%arg0: i32, %arg1: memref<1x32x32xf32, #tpu.memory_space<vmem>>, %arg2: memref<1x4x64xf32, #tpu.memory_space<vmem>>, %arg3: memref<1x4x32xf32, #tpu.memory_space<vmem>>, %arg4: memref<2x64xf32, #tpu.memory_space<vmem>>, %arg5: memref<64x16xbf16, #tpu.memory_space<vmem>>, %arg6: memref<1x16xf32, #tpu.memory_space<vmem>>, %arg7: memref<16x32xbf16, #tpu.memory_space<vmem>>, %arg8: memref<1x32xf32, #tpu.memory_space<vmem>>, %arg9: memref<2x32xf32, #tpu.memory_space<vmem>>, %arg10: memref<32x64xbf16, #tpu.memory_space<vmem>>, %arg11: memref<1x64xf32, #tpu.memory_space<vmem>>, %arg12: memref<64x32xbf16, #tpu.memory_space<vmem>>, %arg13: memref<1x32xf32, #tpu.memory_space<vmem>>, %arg14: memref<10x32xf32, #tpu.memory_space<vmem>>, %arg15: memref<32x32xbf16, #tpu.memory_space<vmem>>, %arg16: memref<32x64xbf16, #tpu.memory_space<vmem>>, %arg17: memref<32x32xbf16, #tpu.memory_space<vmem>>, %arg18: memref<32x128xbf16, #tpu.memory_space<vmem>>, %arg19: memref<1x128xf32, #tpu.memory_space<vmem>>, %arg20: memref<128x32xbf16, #tpu.memory_space<vmem>>, %arg21: memref<4x10x32xf32, #tpu.memory_space<vmem>>, %arg22: memref<4x32x32xbf16, #tpu.memory_space<vmem>>, %arg23: memref<4x32x64xbf16, #tpu.memory_space<vmem>>, %arg24: memref<4x32x32xbf16, #tpu.memory_space<vmem>>, %arg25: memref<4x32x128xbf16, #tpu.memory_space<vmem>>, %arg26: memref<4x1x128xf32, #tpu.memory_space<vmem>>, %arg27: memref<4x128x32xbf16, #tpu.memory_space<vmem>>, %arg28: memref<2x32xf32, #tpu.memory_space<vmem>>, %arg29: memref<32x64xbf16, #tpu.memory_space<vmem>>, %arg30: memref<1x64xf32, #tpu.memory_space<vmem>>, %arg31: memref<64x128xbf16, #tpu.memory_space<vmem>>, %arg32: memref<1x128xf32, #tpu.memory_space<vmem>>, %arg33: memref<1x4x128xf32, #tpu.memory_space<vmem>>) attributes {dimension_semantics = [#tpu.dimension_semantics<parallel>], iteration_bounds = array<i64: 2>, scalar_prefetch = 0 : i64, scratch_operands = 0 : i64, tpu.core_type = #tpu.core_type<tc>, window_params = [{transform_indices = @transform_0, window_bounds = array<i64: 1, 32, 32>}, {transform_indices = @transform_1, window_bounds = array<i64: 1, 4, 64>}, {pipeline_mode = #tpu.pipeline_mode<synchronous>, transform_indices = @transform_2, window_bounds = array<i64: 1, 4, 32>}, {pipeline_mode = #tpu.pipeline_mode<synchronous>, transform_indices = @transform_3, window_bounds = array<i64: 2, 64>}, {pipeline_mode = #tpu.pipeline_mode<synchronous>, transform_indices = @transform_4, window_bounds = array<i64: 64, 16>}, {pipeline_mode = #tpu.pipeline_mode<synchronous>, transform_indices = @transform_5, window_bounds = array<i64: 1, 16>}, {pipeline_mode = #tpu.pipeline_mode<synchronous>, transform_indices = @transform_6, window_bounds = array<i64: 16, 32>}, {pipeline_mode = #tpu.pipeline_mode<synchronous>, transform_indices = @transform_7, window_bounds = array<i64: 1, 32>}, {pipeline_mode = #tpu.pipeline_mode<synchronous>, transform_indices = @transform_8, window_bounds = array<i64: 2, 32>}, {pipeline_mode = #tpu.pipeline_mode<synchronous>, transform_indices = @transform_9, window_bounds = array<i64: 32, 64>}, {pipeline_mode = #tpu.pipeline_mode<synchronous>, transform_indices = @transform_10, window_bounds = array<i64: 1, 64>}, {pipeline_mode = #tpu.pipeline_mode<synchronous>, transform_indices = @transform_11, window_bounds = array<i64: 64, 32>}, {pipeline_mode = #tpu.pipeline_mode<synchronous>, transform_indices = @transform_12, window_bounds = array<i64: 1, 32>}, {pipeline_mode = #tpu.pipeline_mode<synchronous>, transform_indices = @transform_13, window_bounds = array<i64: 10, 32>}, {pipeline_mode = #tpu.pipeline_mode<synchronous>, transform_indices = @transform_14, window_bounds = array<i64: 32, 32>}, {pipeline_mode = #tpu.pipeline_mode<synchronous>, transform_indices = @transform_15, window_bounds = array<i64: 32, 64>}, {pipeline_mode = #tpu.pipeline_mode<synchronous>, transform_indices = @transform_16, window_bounds = array<i64: 32, 32>}, {pipeline_mode = #tpu.pipeline_mode<synchronous>, transform_indices = @transform_17, window_bounds = array<i64: 32, 128>}, {pipeline_mode = #tpu.pipeline_mode<synchronous>, transform_indices = @transform_18, window_bounds = array<i64: 1, 128>}, {pipeline_mode = #tpu.pipeline_mode<synchronous>, transform_indices = @transform_19, window_bounds = array<i64: 128, 32>}, {pipeline_mode = #tpu.pipeline_mode<synchronous>, transform_indices = @transform_20, window_bounds = array<i64: 4, 10, 32>}, {pipeline_mode = #tpu.pipeline_mode<synchronous>, transform_indices = @transform_21, window_bounds = array<i64: 4, 32, 32>}, {pipeline_mode = #tpu.pipeline_mode<synchronous>, transform_indices = @transform_22, window_bounds = array<i64: 4, 32, 64>}, {pipeline_mode = #tpu.pipeline_mode<synchronous>, transform_indices = @transform_23, window_bounds = array<i64: 4, 32, 32>}, {pipeline_mode = #tpu.pipeline_mode<synchronous>, transform_indices = @transform_24, window_bounds = array<i64: 4, 32, 128>}, {pipeline_mode = #tpu.pipeline_mode<synchronous>, transform_indices = @transform_25, window_bounds = array<i64: 4, 1, 128>}, {pipeline_mode = #tpu.pipeline_mode<synchronous>, transform_indices = @transform_26, window_bounds = array<i64: 4, 128, 32>}, {pipeline_mode = #tpu.pipeline_mode<synchronous>, transform_indices = @transform_27, window_bounds = array<i64: 2, 32>}, {pipeline_mode = #tpu.pipeline_mode<synchronous>, transform_indices = @transform_28, window_bounds = array<i64: 32, 64>}, {pipeline_mode = #tpu.pipeline_mode<synchronous>, transform_indices = @transform_29, window_bounds = array<i64: 1, 64>}, {pipeline_mode = #tpu.pipeline_mode<synchronous>, transform_indices = @transform_30, window_bounds = array<i64: 64, 128>}, {pipeline_mode = #tpu.pipeline_mode<synchronous>, transform_indices = @transform_31, window_bounds = array<i64: 1, 128>}, {transform_indices = @transform_32, window_bounds = array<i64: 1, 4, 128>}]} {
    %c0 = arith.constant 0 : index
    %c0_0 = arith.constant 0 : index
    %c0_1 = arith.constant 0 : index
    %0 = vector.load %arg1[%c0, %c0_0, %c0_1] : memref<1x32x32xf32, #tpu.memory_space<vmem>>, vector<1x32x32xf32>
    %1 = vector.shape_cast %0 : vector<1x32x32xf32> to vector<32x32xf32>
    %c0_2 = arith.constant 0 : index
    %c0_3 = arith.constant 0 : index
    %c0_4 = arith.constant 0 : index
    %2 = vector.load %arg2[%c0_2, %c0_3, %c0_4] : memref<1x4x64xf32, #tpu.memory_space<vmem>>, vector<1x4x64xf32>
    %3 = vector.shape_cast %2 : vector<1x4x64xf32> to vector<4x64xf32>
    %c0_5 = arith.constant 0 : index
    %c0_6 = arith.constant 0 : index
    %c0_7 = arith.constant 0 : index
    %4 = vector.load %arg3[%c0_5, %c0_6, %c0_7] : memref<1x4x32xf32, #tpu.memory_space<vmem>>, vector<1x4x32xf32>
    %5 = vector.shape_cast %4 : vector<1x4x32xf32> to vector<4x32xf32>
    %c0_8 = arith.constant 0 : index
    %c0_9 = arith.constant 0 : index
    %6 = vector.load %arg4[%c0_8, %c0_9] : memref<2x64xf32, #tpu.memory_space<vmem>>, vector<2x64xf32>
    %c0_10 = arith.constant 0 : index
    %c0_11 = arith.constant 0 : index
    %7 = vector.load %arg5[%c0_10, %c0_11] : memref<64x16xbf16, #tpu.memory_space<vmem>>, vector<64x16xbf16>
    %c0_12 = arith.constant 0 : index
    %c0_13 = arith.constant 0 : index
    %8 = vector.load %arg6[%c0_12, %c0_13] : memref<1x16xf32, #tpu.memory_space<vmem>>, vector<1x16xf32>
    %c0_14 = arith.constant 0 : index
    %c0_15 = arith.constant 0 : index
    %9 = vector.load %arg7[%c0_14, %c0_15] : memref<16x32xbf16, #tpu.memory_space<vmem>>, vector<16x32xbf16>
    %c0_16 = arith.constant 0 : index
    %c0_17 = arith.constant 0 : index
    %10 = vector.load %arg8[%c0_16, %c0_17] : memref<1x32xf32, #tpu.memory_space<vmem>>, vector<1x32xf32>
    %11 = vector.extract_strided_slice %6 {offsets = [0, 0], sizes = [1, 64], strides = [1, 1]} : vector<2x64xf32> to vector<1x64xf32>
    %12 = vector.extract_strided_slice %6 {offsets = [1, 0], sizes = [1, 64], strides = [1, 1]} : vector<2x64xf32> to vector<1x64xf32>
    %cst = arith.constant dense<0.000000e+00> : vector<4xf32>
    %13 = vector.multi_reduction <add>, %3, %cst [1] : vector<4x64xf32> to vector<4xf32>
    %14 = vector.shape_cast %13 : vector<4xf32> to vector<4x1xf32>
    %cst_18 = arith.constant 6.400000e+01 : f32
    %15 = vector.broadcast %cst_18 : f32 to vector<4x1xf32>
    %16 = arith.divf %14, %15 : vector<4x1xf32>
    %17 = vector.broadcast %16 : vector<4x1xf32> to vector<4x64xf32>
    %18 = arith.subf %3, %17 : vector<4x64xf32>
    %19 = arith.mulf %18, %18 : vector<4x64xf32>
    %cst_19 = arith.constant dense<0.000000e+00> : vector<4xf32>
    %20 = vector.multi_reduction <add>, %19, %cst_19 [1] : vector<4x64xf32> to vector<4xf32>
    %21 = vector.shape_cast %20 : vector<4xf32> to vector<4x1xf32>
    %cst_20 = arith.constant 6.400000e+01 : f32
    %22 = vector.broadcast %cst_20 : f32 to vector<4x1xf32>
    %23 = arith.divf %21, %22 : vector<4x1xf32>
    %cst_21 = arith.constant 9.99999974E-6 : f32
    %24 = vector.broadcast %cst_21 : f32 to vector<4x1xf32>
    %25 = arith.addf %23, %24 : vector<4x1xf32>
    %26 = math.rsqrt %25 : vector<4x1xf32>
    %27 = vector.broadcast %26 : vector<4x1xf32> to vector<4x64xf32>
    %28 = arith.mulf %18, %27 : vector<4x64xf32>
    %29 = vector.broadcast %11 : vector<1x64xf32> to vector<4x64xf32>
    %30 = arith.mulf %28, %29 : vector<4x64xf32>
    %31 = vector.broadcast %12 : vector<1x64xf32> to vector<4x64xf32>
    %32 = arith.addf %30, %31 : vector<4x64xf32>
    %33 = arith.truncf %32 : vector<4x64xf32> to vector<4x64xbf16>
    %cst_22 = arith.constant dense<0.000000e+00> : vector<4x16xf32>
    %34 = tpu.matmul %33, %7, %cst_22 {dimension_numbers = #tpu.dot_dimension_numbers<[1], [0], [0], [1], [0, 0, 1, 1], [], []>} : vector<4x64xbf16>, vector<64x16xbf16>, vector<4x16xf32> -> vector<4x16xf32>
    %35 = vector.broadcast %8 : vector<1x16xf32> to vector<4x16xf32>
    %36 = arith.addf %34, %35 : vector<4x16xf32>
    %cst_23 = arith.constant 5.000000e-01 : f32
    %37 = vector.broadcast %cst_23 : f32 to vector<4x16xf32>
    %38 = arith.mulf %37, %36 : vector<4x16xf32>
    %cst_24 = arith.constant 4.471500e-02 : f32
    %39 = vector.broadcast %cst_24 : f32 to vector<4x16xf32>
    %40 = arith.mulf %39, %36 : vector<4x16xf32>
    %41 = arith.mulf %40, %36 : vector<4x16xf32>
    %42 = arith.mulf %41, %36 : vector<4x16xf32>
    %43 = arith.addf %36, %42 : vector<4x16xf32>
    %cst_25 = arith.constant 0.797884583 : f32
    %44 = vector.broadcast %cst_25 : f32 to vector<4x16xf32>
    %45 = arith.mulf %44, %43 : vector<4x16xf32>
    %46 = math.tanh %45 : vector<4x16xf32>
    %cst_26 = arith.constant 1.000000e+00 : f32
    %47 = vector.broadcast %cst_26 : f32 to vector<4x16xf32>
    %48 = arith.addf %47, %46 : vector<4x16xf32>
    %49 = arith.mulf %38, %48 : vector<4x16xf32>
    %50 = arith.truncf %49 : vector<4x16xf32> to vector<4x16xbf16>
    %cst_27 = arith.constant dense<0.000000e+00> : vector<4x32xf32>
    %51 = tpu.matmul %50, %9, %cst_27 {dimension_numbers = #tpu.dot_dimension_numbers<[1], [0], [0], [1], [0, 0, 1, 1], [], []>} : vector<4x16xbf16>, vector<16x32xbf16>, vector<4x32xf32> -> vector<4x32xf32>
    %52 = vector.broadcast %10 : vector<1x32xf32> to vector<4x32xf32>
    %53 = arith.addf %51, %52 : vector<4x32xf32>
    %c0_28 = arith.constant 0 : index
    %c0_29 = arith.constant 0 : index
    %54 = vector.load %arg9[%c0_28, %c0_29] : memref<2x32xf32, #tpu.memory_space<vmem>>, vector<2x32xf32>
    %c0_30 = arith.constant 0 : index
    %c0_31 = arith.constant 0 : index
    %55 = vector.load %arg10[%c0_30, %c0_31] : memref<32x64xbf16, #tpu.memory_space<vmem>>, vector<32x64xbf16>
    %c0_32 = arith.constant 0 : index
    %c0_33 = arith.constant 0 : index
    %56 = vector.load %arg11[%c0_32, %c0_33] : memref<1x64xf32, #tpu.memory_space<vmem>>, vector<1x64xf32>
    %c0_34 = arith.constant 0 : index
    %c0_35 = arith.constant 0 : index
    %57 = vector.load %arg12[%c0_34, %c0_35] : memref<64x32xbf16, #tpu.memory_space<vmem>>, vector<64x32xbf16>
    %c0_36 = arith.constant 0 : index
    %c0_37 = arith.constant 0 : index
    %58 = vector.load %arg13[%c0_36, %c0_37] : memref<1x32xf32, #tpu.memory_space<vmem>>, vector<1x32xf32>
    %59 = vector.extract_strided_slice %54 {offsets = [0, 0], sizes = [1, 32], strides = [1, 1]} : vector<2x32xf32> to vector<1x32xf32>
    %60 = vector.extract_strided_slice %54 {offsets = [1, 0], sizes = [1, 32], strides = [1, 1]} : vector<2x32xf32> to vector<1x32xf32>
    %cst_38 = arith.constant dense<0.000000e+00> : vector<32xf32>
    %61 = vector.multi_reduction <add>, %1, %cst_38 [1] : vector<32x32xf32> to vector<32xf32>
    %62 = vector.shape_cast %61 : vector<32xf32> to vector<32x1xf32>
    %cst_39 = arith.constant 3.200000e+01 : f32
    %63 = vector.broadcast %cst_39 : f32 to vector<32x1xf32>
    %64 = arith.divf %62, %63 : vector<32x1xf32>
    %65 = vector.broadcast %64 : vector<32x1xf32> to vector<32x32xf32>
    %66 = arith.subf %1, %65 : vector<32x32xf32>
    %67 = arith.mulf %66, %66 : vector<32x32xf32>
    %cst_40 = arith.constant dense<0.000000e+00> : vector<32xf32>
    %68 = vector.multi_reduction <add>, %67, %cst_40 [1] : vector<32x32xf32> to vector<32xf32>
    %69 = vector.shape_cast %68 : vector<32xf32> to vector<32x1xf32>
    %cst_41 = arith.constant 3.200000e+01 : f32
    %70 = vector.broadcast %cst_41 : f32 to vector<32x1xf32>
    %71 = arith.divf %69, %70 : vector<32x1xf32>
    %cst_42 = arith.constant 9.99999974E-6 : f32
    %72 = vector.broadcast %cst_42 : f32 to vector<32x1xf32>
    %73 = arith.addf %71, %72 : vector<32x1xf32>
    %74 = math.rsqrt %73 : vector<32x1xf32>
    %75 = vector.broadcast %74 : vector<32x1xf32> to vector<32x32xf32>
    %76 = arith.mulf %66, %75 : vector<32x32xf32>
    %77 = vector.broadcast %59 : vector<1x32xf32> to vector<32x32xf32>
    %78 = arith.mulf %76, %77 : vector<32x32xf32>
    %79 = vector.broadcast %60 : vector<1x32xf32> to vector<32x32xf32>
    %80 = arith.addf %78, %79 : vector<32x32xf32>
    %81 = arith.truncf %80 : vector<32x32xf32> to vector<32x32xbf16>
    %cst_43 = arith.constant dense<0.000000e+00> : vector<32x64xf32>
    %82 = tpu.matmul %81, %55, %cst_43 {dimension_numbers = #tpu.dot_dimension_numbers<[1], [0], [0], [1], [0, 0, 1, 1], [], []>} : vector<32x32xbf16>, vector<32x64xbf16>, vector<32x64xf32> -> vector<32x64xf32>
    %83 = vector.broadcast %56 : vector<1x64xf32> to vector<32x64xf32>
    %84 = arith.addf %82, %83 : vector<32x64xf32>
    %cst_44 = arith.constant 5.000000e-01 : f32
    %85 = vector.broadcast %cst_44 : f32 to vector<32x64xf32>
    %86 = arith.mulf %85, %84 : vector<32x64xf32>
    %cst_45 = arith.constant 4.471500e-02 : f32
    %87 = vector.broadcast %cst_45 : f32 to vector<32x64xf32>
    %88 = arith.mulf %87, %84 : vector<32x64xf32>
    %89 = arith.mulf %88, %84 : vector<32x64xf32>
    %90 = arith.mulf %89, %84 : vector<32x64xf32>
    %91 = arith.addf %84, %90 : vector<32x64xf32>
    %cst_46 = arith.constant 0.797884583 : f32
    %92 = vector.broadcast %cst_46 : f32 to vector<32x64xf32>
    %93 = arith.mulf %92, %91 : vector<32x64xf32>
    %94 = math.tanh %93 : vector<32x64xf32>
    %cst_47 = arith.constant 1.000000e+00 : f32
    %95 = vector.broadcast %cst_47 : f32 to vector<32x64xf32>
    %96 = arith.addf %95, %94 : vector<32x64xf32>
    %97 = arith.mulf %86, %96 : vector<32x64xf32>
    %98 = arith.truncf %97 : vector<32x64xf32> to vector<32x64xbf16>
    %cst_48 = arith.constant dense<0.000000e+00> : vector<32x32xf32>
    %99 = tpu.matmul %98, %57, %cst_48 {dimension_numbers = #tpu.dot_dimension_numbers<[1], [0], [0], [1], [0, 0, 1, 1], [], []>} : vector<32x64xbf16>, vector<64x32xbf16>, vector<32x32xf32> -> vector<32x32xf32>
    %100 = vector.broadcast %58 : vector<1x32xf32> to vector<32x32xf32>
    %101 = arith.addf %99, %100 : vector<32x32xf32>
    %102 = tpu.concatenate %101, %53 in 0 : vector<32x32xf32>, vector<4x32xf32> -> vector<36x32xf32>
    %c0_49 = arith.constant 0 : index
    %c0_50 = arith.constant 0 : index
    %103 = vector.load %arg14[%c0_49, %c0_50] : memref<10x32xf32, #tpu.memory_space<vmem>>, vector<10x32xf32>
    %c0_51 = arith.constant 0 : index
    %c0_52 = arith.constant 0 : index
    %104 = vector.load %arg15[%c0_51, %c0_52] : memref<32x32xbf16, #tpu.memory_space<vmem>>, vector<32x32xbf16>
    %c0_53 = arith.constant 0 : index
    %c0_54 = arith.constant 0 : index
    %105 = vector.load %arg16[%c0_53, %c0_54] : memref<32x64xbf16, #tpu.memory_space<vmem>>, vector<32x64xbf16>
    %c0_55 = arith.constant 0 : index
    %c0_56 = arith.constant 0 : index
    %106 = vector.load %arg17[%c0_55, %c0_56] : memref<32x32xbf16, #tpu.memory_space<vmem>>, vector<32x32xbf16>
    %c0_57 = arith.constant 0 : index
    %c0_58 = arith.constant 0 : index
    %107 = vector.load %arg18[%c0_57, %c0_58] : memref<32x128xbf16, #tpu.memory_space<vmem>>, vector<32x128xbf16>
    %c0_59 = arith.constant 0 : index
    %c0_60 = arith.constant 0 : index
    %108 = vector.load %arg19[%c0_59, %c0_60] : memref<1x128xf32, #tpu.memory_space<vmem>>, vector<1x128xf32>
    %c0_61 = arith.constant 0 : index
    %c0_62 = arith.constant 0 : index
    %109 = vector.load %arg20[%c0_61, %c0_62] : memref<128x32xbf16, #tpu.memory_space<vmem>>, vector<128x32xbf16>
    %110 = vector.extract_strided_slice %103 {offsets = [0, 0], sizes = [1, 32], strides = [1, 1]} : vector<10x32xf32> to vector<1x32xf32>
    %111 = vector.extract_strided_slice %103 {offsets = [1, 0], sizes = [1, 32], strides = [1, 1]} : vector<10x32xf32> to vector<1x32xf32>
    %cst_63 = arith.constant dense<0.000000e+00> : vector<4xf32>
    %112 = vector.multi_reduction <add>, %53, %cst_63 [1] : vector<4x32xf32> to vector<4xf32>
    %113 = vector.shape_cast %112 : vector<4xf32> to vector<4x1xf32>
    %cst_64 = arith.constant 3.200000e+01 : f32
    %114 = vector.broadcast %cst_64 : f32 to vector<4x1xf32>
    %115 = arith.divf %113, %114 : vector<4x1xf32>
    %116 = vector.broadcast %115 : vector<4x1xf32> to vector<4x32xf32>
    %117 = arith.subf %53, %116 : vector<4x32xf32>
    %118 = arith.mulf %117, %117 : vector<4x32xf32>
    %cst_65 = arith.constant dense<0.000000e+00> : vector<4xf32>
    %119 = vector.multi_reduction <add>, %118, %cst_65 [1] : vector<4x32xf32> to vector<4xf32>
    %120 = vector.shape_cast %119 : vector<4xf32> to vector<4x1xf32>
    %cst_66 = arith.constant 3.200000e+01 : f32
    %121 = vector.broadcast %cst_66 : f32 to vector<4x1xf32>
    %122 = arith.divf %120, %121 : vector<4x1xf32>
    %cst_67 = arith.constant 9.99999974E-6 : f32
    %123 = vector.broadcast %cst_67 : f32 to vector<4x1xf32>
    %124 = arith.addf %122, %123 : vector<4x1xf32>
    %125 = math.rsqrt %124 : vector<4x1xf32>
    %126 = vector.broadcast %125 : vector<4x1xf32> to vector<4x32xf32>
    %127 = arith.mulf %117, %126 : vector<4x32xf32>
    %128 = vector.broadcast %110 : vector<1x32xf32> to vector<4x32xf32>
    %129 = arith.mulf %127, %128 : vector<4x32xf32>
    %130 = vector.broadcast %111 : vector<1x32xf32> to vector<4x32xf32>
    %131 = arith.addf %129, %130 : vector<4x32xf32>
    %132 = vector.extract_strided_slice %103 {offsets = [2, 0], sizes = [1, 32], strides = [1, 1]} : vector<10x32xf32> to vector<1x32xf32>
    %133 = vector.extract_strided_slice %103 {offsets = [3, 0], sizes = [1, 32], strides = [1, 1]} : vector<10x32xf32> to vector<1x32xf32>
    %cst_68 = arith.constant dense<0.000000e+00> : vector<36xf32>
    %134 = vector.multi_reduction <add>, %102, %cst_68 [1] : vector<36x32xf32> to vector<36xf32>
    %135 = vector.shape_cast %134 : vector<36xf32> to vector<36x1xf32>
    %cst_69 = arith.constant 3.200000e+01 : f32
    %136 = vector.broadcast %cst_69 : f32 to vector<36x1xf32>
    %137 = arith.divf %135, %136 : vector<36x1xf32>
    %138 = vector.broadcast %137 : vector<36x1xf32> to vector<36x32xf32>
    %139 = arith.subf %102, %138 : vector<36x32xf32>
    %140 = arith.mulf %139, %139 : vector<36x32xf32>
    %cst_70 = arith.constant dense<0.000000e+00> : vector<36xf32>
    %141 = vector.multi_reduction <add>, %140, %cst_70 [1] : vector<36x32xf32> to vector<36xf32>
    %142 = vector.shape_cast %141 : vector<36xf32> to vector<36x1xf32>
    %cst_71 = arith.constant 3.200000e+01 : f32
    %143 = vector.broadcast %cst_71 : f32 to vector<36x1xf32>
    %144 = arith.divf %142, %143 : vector<36x1xf32>
    %cst_72 = arith.constant 9.99999974E-6 : f32
    %145 = vector.broadcast %cst_72 : f32 to vector<36x1xf32>
    %146 = arith.addf %144, %145 : vector<36x1xf32>
    %147 = math.rsqrt %146 : vector<36x1xf32>
    %148 = vector.broadcast %147 : vector<36x1xf32> to vector<36x32xf32>
    %149 = arith.mulf %139, %148 : vector<36x32xf32>
    %150 = vector.broadcast %132 : vector<1x32xf32> to vector<36x32xf32>
    %151 = arith.mulf %149, %150 : vector<36x32xf32>
    %152 = vector.broadcast %133 : vector<1x32xf32> to vector<36x32xf32>
    %153 = arith.addf %151, %152 : vector<36x32xf32>
    %154 = arith.truncf %131 : vector<4x32xf32> to vector<4x32xbf16>
    %cst_73 = arith.constant dense<0.000000e+00> : vector<4x32xf32>
    %155 = tpu.matmul %154, %104, %cst_73 {dimension_numbers = #tpu.dot_dimension_numbers<[1], [0], [0], [1], [0, 0, 1, 1], [], []>} : vector<4x32xbf16>, vector<32x32xbf16>, vector<4x32xf32> -> vector<4x32xf32>
    %156 = arith.addf %155, %5 : vector<4x32xf32>
    %157 = arith.truncf %153 : vector<36x32xf32> to vector<36x32xbf16>
    %cst_74 = arith.constant dense<0.000000e+00> : vector<36x64xf32>
    %158 = tpu.matmul %157, %105, %cst_74 {dimension_numbers = #tpu.dot_dimension_numbers<[1], [0], [0], [1], [0, 0, 1, 1], [], []>} : vector<36x32xbf16>, vector<32x64xbf16>, vector<36x64xf32> -> vector<36x64xf32>
    %159 = vector.extract_strided_slice %158 {offsets = [0, 0], sizes = [36, 32], strides = [1, 1]} : vector<36x64xf32> to vector<36x32xf32>
    %160 = vector.extract_strided_slice %158 {offsets = [0, 32], sizes = [36, 32], strides = [1, 1]} : vector<36x64xf32> to vector<36x32xf32>
    %161 = arith.truncf %156 : vector<4x32xf32> to vector<4x32xbf16>
    %162 = arith.truncf %159 : vector<36x32xf32> to vector<36x32xbf16>
    "tpu.trace_start"() <{level = 10 : i32, message = "qc,kc->qk"}> : () -> ()
    %cst_75 = arith.constant dense<0.000000e+00> : vector<4x36xf32>
    %163 = tpu.matmul %161, %162, %cst_75 {dimension_numbers = #tpu.dot_dimension_numbers<[1], [1], [0], [0], [0, 0, 1, 0], [], []>} : vector<4x32xbf16>, vector<36x32xbf16>, vector<4x36xf32> -> vector<4x36xf32>
    "tpu.trace_stop"() : () -> ()
    %cst_76 = arith.constant 0.176776692 : f32
    %164 = vector.broadcast %cst_76 : f32 to vector<4x36xf32>
    %165 = arith.mulf %163, %164 : vector<4x36xf32>
    %cst_77 = arith.constant dense<0xFF800000> : vector<4xf32>
    %166 = vector.multi_reduction <maximumf>, %165, %cst_77 [1] : vector<4x36xf32> to vector<4xf32>
    %167 = vector.shape_cast %166 : vector<4xf32> to vector<4x1xf32>
    %168 = vector.broadcast %167 : vector<4x1xf32> to vector<4x36xf32>
    %169 = arith.subf %165, %168 : vector<4x36xf32>
    %170 = math.exp %169 : vector<4x36xf32>
    %cst_78 = arith.constant dense<0.000000e+00> : vector<4xf32>
    %171 = vector.multi_reduction <add>, %170, %cst_78 [1] : vector<4x36xf32> to vector<4xf32>
    %172 = vector.shape_cast %171 : vector<4xf32> to vector<4x1xf32>
    %173 = tpu.reciprocal %172 {approx = true} : vector<4x1xf32> -> vector<4x1xf32>
    %174 = vector.broadcast %173 : vector<4x1xf32> to vector<4x36xf32>
    %175 = arith.mulf %170, %174 : vector<4x36xf32>
    %176 = arith.truncf %175 : vector<4x36xf32> to vector<4x36xbf16>
    %177 = arith.truncf %160 : vector<36x32xf32> to vector<36x32xbf16>
    "tpu.trace_start"() <{level = 10 : i32, message = "qk,kc->qc"}> : () -> ()
    %cst_79 = arith.constant dense<0.000000e+00> : vector<4x32xf32>
    %178 = tpu.matmul %176, %177, %cst_79 {dimension_numbers = #tpu.dot_dimension_numbers<[1], [0], [0], [1], [0, 0, 1, 1], [], []>} : vector<4x36xbf16>, vector<36x32xbf16>, vector<4x32xf32> -> vector<4x32xf32>
    "tpu.trace_stop"() : () -> ()
    %179 = arith.truncf %178 : vector<4x32xf32> to vector<4x32xbf16>
    %cst_80 = arith.constant dense<0.000000e+00> : vector<4x32xf32>
    %180 = tpu.matmul %179, %106, %cst_80 {dimension_numbers = #tpu.dot_dimension_numbers<[1], [0], [0], [1], [0, 0, 1, 1], [], []>} : vector<4x32xbf16>, vector<32x32xbf16>, vector<4x32xf32> -> vector<4x32xf32>
    %181 = vector.extract_strided_slice %103 {offsets = [4, 0], sizes = [1, 32], strides = [1, 1]} : vector<10x32xf32> to vector<1x32xf32>
    %182 = vector.broadcast %181 : vector<1x32xf32> to vector<4x32xf32>
    %183 = arith.addf %180, %182 : vector<4x32xf32>
    %184 = vector.extract_strided_slice %103 {offsets = [5, 0], sizes = [1, 32], strides = [1, 1]} : vector<10x32xf32> to vector<1x32xf32>
    %185 = vector.broadcast %184 : vector<1x32xf32> to vector<4x32xf32>
    %186 = arith.mulf %183, %185 : vector<4x32xf32>
    %187 = arith.addf %53, %186 : vector<4x32xf32>
    %188 = vector.extract_strided_slice %103 {offsets = [6, 0], sizes = [1, 32], strides = [1, 1]} : vector<10x32xf32> to vector<1x32xf32>
    %189 = vector.extract_strided_slice %103 {offsets = [7, 0], sizes = [1, 32], strides = [1, 1]} : vector<10x32xf32> to vector<1x32xf32>
    %cst_81 = arith.constant dense<0.000000e+00> : vector<4xf32>
    %190 = vector.multi_reduction <add>, %187, %cst_81 [1] : vector<4x32xf32> to vector<4xf32>
    %191 = vector.shape_cast %190 : vector<4xf32> to vector<4x1xf32>
    %cst_82 = arith.constant 3.200000e+01 : f32
    %192 = vector.broadcast %cst_82 : f32 to vector<4x1xf32>
    %193 = arith.divf %191, %192 : vector<4x1xf32>
    %194 = vector.broadcast %193 : vector<4x1xf32> to vector<4x32xf32>
    %195 = arith.subf %187, %194 : vector<4x32xf32>
    %196 = arith.mulf %195, %195 : vector<4x32xf32>
    %cst_83 = arith.constant dense<0.000000e+00> : vector<4xf32>
    %197 = vector.multi_reduction <add>, %196, %cst_83 [1] : vector<4x32xf32> to vector<4xf32>
    %198 = vector.shape_cast %197 : vector<4xf32> to vector<4x1xf32>
    %cst_84 = arith.constant 3.200000e+01 : f32
    %199 = vector.broadcast %cst_84 : f32 to vector<4x1xf32>
    %200 = arith.divf %198, %199 : vector<4x1xf32>
    %cst_85 = arith.constant 9.99999974E-6 : f32
    %201 = vector.broadcast %cst_85 : f32 to vector<4x1xf32>
    %202 = arith.addf %200, %201 : vector<4x1xf32>
    %203 = math.rsqrt %202 : vector<4x1xf32>
    %204 = vector.broadcast %203 : vector<4x1xf32> to vector<4x32xf32>
    %205 = arith.mulf %195, %204 : vector<4x32xf32>
    %206 = vector.broadcast %188 : vector<1x32xf32> to vector<4x32xf32>
    %207 = arith.mulf %205, %206 : vector<4x32xf32>
    %208 = vector.broadcast %189 : vector<1x32xf32> to vector<4x32xf32>
    %209 = arith.addf %207, %208 : vector<4x32xf32>
    %210 = arith.truncf %209 : vector<4x32xf32> to vector<4x32xbf16>
    %cst_86 = arith.constant dense<0.000000e+00> : vector<4x128xf32>
    %211 = tpu.matmul %210, %107, %cst_86 {dimension_numbers = #tpu.dot_dimension_numbers<[1], [0], [0], [1], [0, 0, 1, 1], [], []>} : vector<4x32xbf16>, vector<32x128xbf16>, vector<4x128xf32> -> vector<4x128xf32>
    %212 = vector.broadcast %108 : vector<1x128xf32> to vector<4x128xf32>
    %213 = arith.addf %211, %212 : vector<4x128xf32>
    %cst_87 = arith.constant 5.000000e-01 : f32
    %214 = vector.broadcast %cst_87 : f32 to vector<4x128xf32>
    %215 = arith.mulf %214, %213 : vector<4x128xf32>
    %cst_88 = arith.constant 4.471500e-02 : f32
    %216 = vector.broadcast %cst_88 : f32 to vector<4x128xf32>
    %217 = arith.mulf %216, %213 : vector<4x128xf32>
    %218 = arith.mulf %217, %213 : vector<4x128xf32>
    %219 = arith.mulf %218, %213 : vector<4x128xf32>
    %220 = arith.addf %213, %219 : vector<4x128xf32>
    %cst_89 = arith.constant 0.797884583 : f32
    %221 = vector.broadcast %cst_89 : f32 to vector<4x128xf32>
    %222 = arith.mulf %221, %220 : vector<4x128xf32>
    %223 = math.tanh %222 : vector<4x128xf32>
    %cst_90 = arith.constant 1.000000e+00 : f32
    %224 = vector.broadcast %cst_90 : f32 to vector<4x128xf32>
    %225 = arith.addf %224, %223 : vector<4x128xf32>
    %226 = arith.mulf %215, %225 : vector<4x128xf32>
    %227 = arith.truncf %226 : vector<4x128xf32> to vector<4x128xbf16>
    %cst_91 = arith.constant dense<0.000000e+00> : vector<4x32xf32>
    %228 = tpu.matmul %227, %109, %cst_91 {dimension_numbers = #tpu.dot_dimension_numbers<[1], [0], [0], [1], [0, 0, 1, 1], [], []>} : vector<4x128xbf16>, vector<128x32xbf16>, vector<4x32xf32> -> vector<4x32xf32>
    %229 = vector.extract_strided_slice %103 {offsets = [8, 0], sizes = [1, 32], strides = [1, 1]} : vector<10x32xf32> to vector<1x32xf32>
    %230 = vector.broadcast %229 : vector<1x32xf32> to vector<4x32xf32>
    %231 = arith.addf %228, %230 : vector<4x32xf32>
    %232 = vector.extract_strided_slice %103 {offsets = [9, 0], sizes = [1, 32], strides = [1, 1]} : vector<10x32xf32> to vector<1x32xf32>
    %233 = vector.broadcast %232 : vector<1x32xf32> to vector<4x32xf32>
    %234 = arith.mulf %231, %233 : vector<4x32xf32>
    %235 = arith.addf %187, %234 : vector<4x32xf32>
    %c0_92 = arith.constant 0 : index
    %c0_93 = arith.constant 0 : index
    %c0_94 = arith.constant 0 : index
    %236 = vector.load %arg21[%c0_92, %c0_93, %c0_94] : memref<4x10x32xf32, #tpu.memory_space<vmem>>, vector<1x10x32xf32>
    %237 = vector.shape_cast %236 : vector<1x10x32xf32> to vector<10x32xf32>
    %c0_95 = arith.constant 0 : index
    %c0_96 = arith.constant 0 : index
    %c0_97 = arith.constant 0 : index
    %238 = vector.load %arg22[%c0_95, %c0_96, %c0_97] : memref<4x32x32xbf16, #tpu.memory_space<vmem>>, vector<1x32x32xbf16>
    %239 = vector.shape_cast %238 : vector<1x32x32xbf16> to vector<32x32xbf16>
    %c0_98 = arith.constant 0 : index
    %c0_99 = arith.constant 0 : index
    %c0_100 = arith.constant 0 : index
    %240 = vector.load %arg23[%c0_98, %c0_99, %c0_100] : memref<4x32x64xbf16, #tpu.memory_space<vmem>>, vector<1x32x64xbf16>
    %241 = vector.shape_cast %240 : vector<1x32x64xbf16> to vector<32x64xbf16>
    %c0_101 = arith.constant 0 : index
    %c0_102 = arith.constant 0 : index
    %c0_103 = arith.constant 0 : index
    %242 = vector.load %arg24[%c0_101, %c0_102, %c0_103] : memref<4x32x32xbf16, #tpu.memory_space<vmem>>, vector<1x32x32xbf16>
    %243 = vector.shape_cast %242 : vector<1x32x32xbf16> to vector<32x32xbf16>
    %c0_104 = arith.constant 0 : index
    %c0_105 = arith.constant 0 : index
    %c0_106 = arith.constant 0 : index
    %244 = vector.load %arg25[%c0_104, %c0_105, %c0_106] : memref<4x32x128xbf16, #tpu.memory_space<vmem>>, vector<1x32x128xbf16>
    %245 = vector.shape_cast %244 : vector<1x32x128xbf16> to vector<32x128xbf16>
    %c0_107 = arith.constant 0 : index
    %c0_108 = arith.constant 0 : index
    %c0_109 = arith.constant 0 : index
    %246 = vector.load %arg26[%c0_107, %c0_108, %c0_109] : memref<4x1x128xf32, #tpu.memory_space<vmem>>, vector<1x1x128xf32>
    %247 = vector.shape_cast %246 : vector<1x1x128xf32> to vector<1x128xf32>
    %c0_110 = arith.constant 0 : index
    %c0_111 = arith.constant 0 : index
    %c0_112 = arith.constant 0 : index
    %248 = vector.load %arg27[%c0_110, %c0_111, %c0_112] : memref<4x128x32xbf16, #tpu.memory_space<vmem>>, vector<1x128x32xbf16>
    %249 = vector.shape_cast %248 : vector<1x128x32xbf16> to vector<128x32xbf16>
    %250 = vector.extract_strided_slice %237 {offsets = [0, 0], sizes = [1, 32], strides = [1, 1]} : vector<10x32xf32> to vector<1x32xf32>
    %251 = vector.extract_strided_slice %237 {offsets = [1, 0], sizes = [1, 32], strides = [1, 1]} : vector<10x32xf32> to vector<1x32xf32>
    %cst_113 = arith.constant dense<0.000000e+00> : vector<4xf32>
    %252 = vector.multi_reduction <add>, %235, %cst_113 [1] : vector<4x32xf32> to vector<4xf32>
    %253 = vector.shape_cast %252 : vector<4xf32> to vector<4x1xf32>
    %cst_114 = arith.constant 3.200000e+01 : f32
    %254 = vector.broadcast %cst_114 : f32 to vector<4x1xf32>
    %255 = arith.divf %253, %254 : vector<4x1xf32>
    %256 = vector.broadcast %255 : vector<4x1xf32> to vector<4x32xf32>
    %257 = arith.subf %235, %256 : vector<4x32xf32>
    %258 = arith.mulf %257, %257 : vector<4x32xf32>
    %cst_115 = arith.constant dense<0.000000e+00> : vector<4xf32>
    %259 = vector.multi_reduction <add>, %258, %cst_115 [1] : vector<4x32xf32> to vector<4xf32>
    %260 = vector.shape_cast %259 : vector<4xf32> to vector<4x1xf32>
    %cst_116 = arith.constant 3.200000e+01 : f32
    %261 = vector.broadcast %cst_116 : f32 to vector<4x1xf32>
    %262 = arith.divf %260, %261 : vector<4x1xf32>
    %cst_117 = arith.constant 9.99999974E-6 : f32
    %263 = vector.broadcast %cst_117 : f32 to vector<4x1xf32>
    %264 = arith.addf %262, %263 : vector<4x1xf32>
    %265 = math.rsqrt %264 : vector<4x1xf32>
    %266 = vector.broadcast %265 : vector<4x1xf32> to vector<4x32xf32>
    %267 = arith.mulf %257, %266 : vector<4x32xf32>
    %268 = vector.broadcast %250 : vector<1x32xf32> to vector<4x32xf32>
    %269 = arith.mulf %267, %268 : vector<4x32xf32>
    %270 = vector.broadcast %251 : vector<1x32xf32> to vector<4x32xf32>
    %271 = arith.addf %269, %270 : vector<4x32xf32>
    %272 = vector.extract_strided_slice %237 {offsets = [2, 0], sizes = [1, 32], strides = [1, 1]} : vector<10x32xf32> to vector<1x32xf32>
    %273 = vector.extract_strided_slice %237 {offsets = [3, 0], sizes = [1, 32], strides = [1, 1]} : vector<10x32xf32> to vector<1x32xf32>
    %cst_118 = arith.constant dense<0.000000e+00> : vector<4xf32>
    %274 = vector.multi_reduction <add>, %235, %cst_118 [1] : vector<4x32xf32> to vector<4xf32>
    %275 = vector.shape_cast %274 : vector<4xf32> to vector<4x1xf32>
    %cst_119 = arith.constant 3.200000e+01 : f32
    %276 = vector.broadcast %cst_119 : f32 to vector<4x1xf32>
    %277 = arith.divf %275, %276 : vector<4x1xf32>
    %278 = vector.broadcast %277 : vector<4x1xf32> to vector<4x32xf32>
    %279 = arith.subf %235, %278 : vector<4x32xf32>
    %280 = arith.mulf %279, %279 : vector<4x32xf32>
    %cst_120 = arith.constant dense<0.000000e+00> : vector<4xf32>
    %281 = vector.multi_reduction <add>, %280, %cst_120 [1] : vector<4x32xf32> to vector<4xf32>
    %282 = vector.shape_cast %281 : vector<4xf32> to vector<4x1xf32>
    %cst_121 = arith.constant 3.200000e+01 : f32
    %283 = vector.broadcast %cst_121 : f32 to vector<4x1xf32>
    %284 = arith.divf %282, %283 : vector<4x1xf32>
    %cst_122 = arith.constant 9.99999974E-6 : f32
    %285 = vector.broadcast %cst_122 : f32 to vector<4x1xf32>
    %286 = arith.addf %284, %285 : vector<4x1xf32>
    %287 = math.rsqrt %286 : vector<4x1xf32>
    %288 = vector.broadcast %287 : vector<4x1xf32> to vector<4x32xf32>
    %289 = arith.mulf %279, %288 : vector<4x32xf32>
    %290 = vector.broadcast %272 : vector<1x32xf32> to vector<4x32xf32>
    %291 = arith.mulf %289, %290 : vector<4x32xf32>
    %292 = vector.broadcast %273 : vector<1x32xf32> to vector<4x32xf32>
    %293 = arith.addf %291, %292 : vector<4x32xf32>
    %294 = arith.truncf %271 : vector<4x32xf32> to vector<4x32xbf16>
    %cst_123 = arith.constant dense<0.000000e+00> : vector<4x32xf32>
    %295 = tpu.matmul %294, %239, %cst_123 {dimension_numbers = #tpu.dot_dimension_numbers<[1], [0], [0], [1], [0, 0, 1, 1], [], []>} : vector<4x32xbf16>, vector<32x32xbf16>, vector<4x32xf32> -> vector<4x32xf32>
    %296 = arith.addf %295, %5 : vector<4x32xf32>
    %297 = arith.truncf %293 : vector<4x32xf32> to vector<4x32xbf16>
    %cst_124 = arith.constant dense<0.000000e+00> : vector<4x64xf32>
    %298 = tpu.matmul %297, %241, %cst_124 {dimension_numbers = #tpu.dot_dimension_numbers<[1], [0], [0], [1], [0, 0, 1, 1], [], []>} : vector<4x32xbf16>, vector<32x64xbf16>, vector<4x64xf32> -> vector<4x64xf32>
    %299 = vector.extract_strided_slice %298 {offsets = [0, 0], sizes = [4, 32], strides = [1, 1]} : vector<4x64xf32> to vector<4x32xf32>
    %300 = vector.extract_strided_slice %298 {offsets = [0, 32], sizes = [4, 32], strides = [1, 1]} : vector<4x64xf32> to vector<4x32xf32>
    %301 = vector.shape_cast %296 : vector<4x32xf32> to vector<4x8x4xf32>
    %302 = vector.shape_cast %299 : vector<4x32xf32> to vector<4x8x4xf32>
    %303 = vector.shape_cast %300 : vector<4x32xf32> to vector<4x8x4xf32>
    %304 = arith.truncf %301 : vector<4x8x4xf32> to vector<4x8x4xbf16>
    %305 = arith.truncf %302 : vector<4x8x4xf32> to vector<4x8x4xbf16>
    "tpu.trace_start"() <{level = 10 : i32, message = "qhc,khc->hqk"}> : () -> ()
    %cst_125 = arith.constant dense<0.000000e+00> : vector<8x4x4xf32>
    %306 = tpu.matmul %304, %305, %cst_125 {dimension_numbers = #tpu.dot_dimension_numbers<[2], [2], [0], [0], [0, 1, 0, 0, 1, 0], [1], [1]>} : vector<4x8x4xbf16>, vector<4x8x4xbf16>, vector<8x4x4xf32> -> vector<8x4x4xf32>
    "tpu.trace_stop"() : () -> ()
    %cst_126 = arith.constant 5.000000e-01 : f32
    %307 = vector.broadcast %cst_126 : f32 to vector<8x4x4xf32>
    %308 = arith.mulf %306, %307 : vector<8x4x4xf32>
    %cst_127 = arith.constant dense<0xFF800000> : vector<8x4xf32>
    %309 = vector.multi_reduction <maximumf>, %308, %cst_127 [2] : vector<8x4x4xf32> to vector<8x4xf32>
    %310 = vector.shape_cast %309 : vector<8x4xf32> to vector<8x4x1xf32>
    %311 = vector.broadcast %310 : vector<8x4x1xf32> to vector<8x4x4xf32>
    %312 = arith.subf %308, %311 : vector<8x4x4xf32>
    %313 = math.exp %312 : vector<8x4x4xf32>
    %cst_128 = arith.constant dense<0.000000e+00> : vector<8x4xf32>
    %314 = vector.multi_reduction <add>, %313, %cst_128 [2] : vector<8x4x4xf32> to vector<8x4xf32>
    %315 = vector.shape_cast %314 : vector<8x4xf32> to vector<8x4x1xf32>
    %316 = tpu.reciprocal %315 {approx = true} : vector<8x4x1xf32> -> vector<8x4x1xf32>
    %317 = vector.broadcast %316 : vector<8x4x1xf32> to vector<8x4x4xf32>
    %318 = arith.mulf %313, %317 : vector<8x4x4xf32>
    %319 = arith.truncf %318 : vector<8x4x4xf32> to vector<8x4x4xbf16>
    %320 = arith.truncf %303 : vector<4x8x4xf32> to vector<4x8x4xbf16>
    "tpu.trace_start"() <{level = 10 : i32, message = "hqk,khc->qhc"}> : () -> ()
    %cst_129 = arith.constant dense<0.000000e+00> : vector<8x4x4xf32>
    %321 = tpu.matmul %320, %319, %cst_129 {dimension_numbers = #tpu.dot_dimension_numbers<[0], [2], [2], [1], [0, 1, 0, 2, 1, 1], [1], [0]>} : vector<4x8x4xbf16>, vector<8x4x4xbf16>, vector<8x4x4xf32> -> vector<8x4x4xf32>
    %322 = tpu.transpose %321, [2, 0, 1] : vector<8x4x4xf32> -> vector<4x8x4xf32>
    "tpu.trace_stop"() : () -> ()
    %323 = vector.shape_cast %322 : vector<4x8x4xf32> to vector<4x32xf32>
    %324 = arith.truncf %323 : vector<4x32xf32> to vector<4x32xbf16>
    %cst_130 = arith.constant dense<0.000000e+00> : vector<4x32xf32>
    %325 = tpu.matmul %324, %243, %cst_130 {dimension_numbers = #tpu.dot_dimension_numbers<[1], [0], [0], [1], [0, 0, 1, 1], [], []>} : vector<4x32xbf16>, vector<32x32xbf16>, vector<4x32xf32> -> vector<4x32xf32>
    %326 = vector.extract_strided_slice %237 {offsets = [4, 0], sizes = [1, 32], strides = [1, 1]} : vector<10x32xf32> to vector<1x32xf32>
    %327 = vector.broadcast %326 : vector<1x32xf32> to vector<4x32xf32>
    %328 = arith.addf %325, %327 : vector<4x32xf32>
    %329 = vector.extract_strided_slice %237 {offsets = [5, 0], sizes = [1, 32], strides = [1, 1]} : vector<10x32xf32> to vector<1x32xf32>
    %330 = vector.broadcast %329 : vector<1x32xf32> to vector<4x32xf32>
    %331 = arith.mulf %328, %330 : vector<4x32xf32>
    %332 = arith.addf %235, %331 : vector<4x32xf32>
    %333 = vector.extract_strided_slice %237 {offsets = [6, 0], sizes = [1, 32], strides = [1, 1]} : vector<10x32xf32> to vector<1x32xf32>
    %334 = vector.extract_strided_slice %237 {offsets = [7, 0], sizes = [1, 32], strides = [1, 1]} : vector<10x32xf32> to vector<1x32xf32>
    %cst_131 = arith.constant dense<0.000000e+00> : vector<4xf32>
    %335 = vector.multi_reduction <add>, %332, %cst_131 [1] : vector<4x32xf32> to vector<4xf32>
    %336 = vector.shape_cast %335 : vector<4xf32> to vector<4x1xf32>
    %cst_132 = arith.constant 3.200000e+01 : f32
    %337 = vector.broadcast %cst_132 : f32 to vector<4x1xf32>
    %338 = arith.divf %336, %337 : vector<4x1xf32>
    %339 = vector.broadcast %338 : vector<4x1xf32> to vector<4x32xf32>
    %340 = arith.subf %332, %339 : vector<4x32xf32>
    %341 = arith.mulf %340, %340 : vector<4x32xf32>
    %cst_133 = arith.constant dense<0.000000e+00> : vector<4xf32>
    %342 = vector.multi_reduction <add>, %341, %cst_133 [1] : vector<4x32xf32> to vector<4xf32>
    %343 = vector.shape_cast %342 : vector<4xf32> to vector<4x1xf32>
    %cst_134 = arith.constant 3.200000e+01 : f32
    %344 = vector.broadcast %cst_134 : f32 to vector<4x1xf32>
    %345 = arith.divf %343, %344 : vector<4x1xf32>
    %cst_135 = arith.constant 9.99999974E-6 : f32
    %346 = vector.broadcast %cst_135 : f32 to vector<4x1xf32>
    %347 = arith.addf %345, %346 : vector<4x1xf32>
    %348 = math.rsqrt %347 : vector<4x1xf32>
    %349 = vector.broadcast %348 : vector<4x1xf32> to vector<4x32xf32>
    %350 = arith.mulf %340, %349 : vector<4x32xf32>
    %351 = vector.broadcast %333 : vector<1x32xf32> to vector<4x32xf32>
    %352 = arith.mulf %350, %351 : vector<4x32xf32>
    %353 = vector.broadcast %334 : vector<1x32xf32> to vector<4x32xf32>
    %354 = arith.addf %352, %353 : vector<4x32xf32>
    %355 = arith.truncf %354 : vector<4x32xf32> to vector<4x32xbf16>
    %cst_136 = arith.constant dense<0.000000e+00> : vector<4x128xf32>
    %356 = tpu.matmul %355, %245, %cst_136 {dimension_numbers = #tpu.dot_dimension_numbers<[1], [0], [0], [1], [0, 0, 1, 1], [], []>} : vector<4x32xbf16>, vector<32x128xbf16>, vector<4x128xf32> -> vector<4x128xf32>
    %357 = vector.broadcast %247 : vector<1x128xf32> to vector<4x128xf32>
    %358 = arith.addf %356, %357 : vector<4x128xf32>
    %cst_137 = arith.constant 5.000000e-01 : f32
    %359 = vector.broadcast %cst_137 : f32 to vector<4x128xf32>
    %360 = arith.mulf %359, %358 : vector<4x128xf32>
    %cst_138 = arith.constant 4.471500e-02 : f32
    %361 = vector.broadcast %cst_138 : f32 to vector<4x128xf32>
    %362 = arith.mulf %361, %358 : vector<4x128xf32>
    %363 = arith.mulf %362, %358 : vector<4x128xf32>
    %364 = arith.mulf %363, %358 : vector<4x128xf32>
    %365 = arith.addf %358, %364 : vector<4x128xf32>
    %cst_139 = arith.constant 0.797884583 : f32
    %366 = vector.broadcast %cst_139 : f32 to vector<4x128xf32>
    %367 = arith.mulf %366, %365 : vector<4x128xf32>
    %368 = math.tanh %367 : vector<4x128xf32>
    %cst_140 = arith.constant 1.000000e+00 : f32
    %369 = vector.broadcast %cst_140 : f32 to vector<4x128xf32>
    %370 = arith.addf %369, %368 : vector<4x128xf32>
    %371 = arith.mulf %360, %370 : vector<4x128xf32>
    %372 = arith.truncf %371 : vector<4x128xf32> to vector<4x128xbf16>
    %cst_141 = arith.constant dense<0.000000e+00> : vector<4x32xf32>
    %373 = tpu.matmul %372, %249, %cst_141 {dimension_numbers = #tpu.dot_dimension_numbers<[1], [0], [0], [1], [0, 0, 1, 1], [], []>} : vector<4x128xbf16>, vector<128x32xbf16>, vector<4x32xf32> -> vector<4x32xf32>
    %374 = vector.extract_strided_slice %237 {offsets = [8, 0], sizes = [1, 32], strides = [1, 1]} : vector<10x32xf32> to vector<1x32xf32>
    %375 = vector.broadcast %374 : vector<1x32xf32> to vector<4x32xf32>
    %376 = arith.addf %373, %375 : vector<4x32xf32>
    %377 = vector.extract_strided_slice %237 {offsets = [9, 0], sizes = [1, 32], strides = [1, 1]} : vector<10x32xf32> to vector<1x32xf32>
    %378 = vector.broadcast %377 : vector<1x32xf32> to vector<4x32xf32>
    %379 = arith.mulf %376, %378 : vector<4x32xf32>
    %380 = arith.addf %332, %379 : vector<4x32xf32>
    %c1 = arith.constant 1 : index
    %c0_142 = arith.constant 0 : index
    %c0_143 = arith.constant 0 : index
    %381 = vector.load %arg21[%c1, %c0_142, %c0_143] : memref<4x10x32xf32, #tpu.memory_space<vmem>>, vector<1x10x32xf32>
    %382 = vector.shape_cast %381 : vector<1x10x32xf32> to vector<10x32xf32>
    %c1_144 = arith.constant 1 : index
    %c0_145 = arith.constant 0 : index
    %c0_146 = arith.constant 0 : index
    %383 = vector.load %arg22[%c1_144, %c0_145, %c0_146] : memref<4x32x32xbf16, #tpu.memory_space<vmem>>, vector<1x32x32xbf16>
    %384 = vector.shape_cast %383 : vector<1x32x32xbf16> to vector<32x32xbf16>
    %c1_147 = arith.constant 1 : index
    %c0_148 = arith.constant 0 : index
    %c0_149 = arith.constant 0 : index
    %385 = vector.load %arg23[%c1_147, %c0_148, %c0_149] : memref<4x32x64xbf16, #tpu.memory_space<vmem>>, vector<1x32x64xbf16>
    %386 = vector.shape_cast %385 : vector<1x32x64xbf16> to vector<32x64xbf16>
    %c1_150 = arith.constant 1 : index
    %c0_151 = arith.constant 0 : index
    %c0_152 = arith.constant 0 : index
    %387 = vector.load %arg24[%c1_150, %c0_151, %c0_152] : memref<4x32x32xbf16, #tpu.memory_space<vmem>>, vector<1x32x32xbf16>
    %388 = vector.shape_cast %387 : vector<1x32x32xbf16> to vector<32x32xbf16>
    %c1_153 = arith.constant 1 : index
    %c0_154 = arith.constant 0 : index
    %c0_155 = arith.constant 0 : index
    %389 = vector.load %arg25[%c1_153, %c0_154, %c0_155] : memref<4x32x128xbf16, #tpu.memory_space<vmem>>, vector<1x32x128xbf16>
    %390 = vector.shape_cast %389 : vector<1x32x128xbf16> to vector<32x128xbf16>
    %c1_156 = arith.constant 1 : index
    %c0_157 = arith.constant 0 : index
    %c0_158 = arith.constant 0 : index
    %391 = vector.load %arg26[%c1_156, %c0_157, %c0_158] : memref<4x1x128xf32, #tpu.memory_space<vmem>>, vector<1x1x128xf32>
    %392 = vector.shape_cast %391 : vector<1x1x128xf32> to vector<1x128xf32>
    %c1_159 = arith.constant 1 : index
    %c0_160 = arith.constant 0 : index
    %c0_161 = arith.constant 0 : index
    %393 = vector.load %arg27[%c1_159, %c0_160, %c0_161] : memref<4x128x32xbf16, #tpu.memory_space<vmem>>, vector<1x128x32xbf16>
    %394 = vector.shape_cast %393 : vector<1x128x32xbf16> to vector<128x32xbf16>
    %395 = vector.extract_strided_slice %382 {offsets = [0, 0], sizes = [1, 32], strides = [1, 1]} : vector<10x32xf32> to vector<1x32xf32>
    %396 = vector.extract_strided_slice %382 {offsets = [1, 0], sizes = [1, 32], strides = [1, 1]} : vector<10x32xf32> to vector<1x32xf32>
    %cst_162 = arith.constant dense<0.000000e+00> : vector<4xf32>
    %397 = vector.multi_reduction <add>, %380, %cst_162 [1] : vector<4x32xf32> to vector<4xf32>
    %398 = vector.shape_cast %397 : vector<4xf32> to vector<4x1xf32>
    %cst_163 = arith.constant 3.200000e+01 : f32
    %399 = vector.broadcast %cst_163 : f32 to vector<4x1xf32>
    %400 = arith.divf %398, %399 : vector<4x1xf32>
    %401 = vector.broadcast %400 : vector<4x1xf32> to vector<4x32xf32>
    %402 = arith.subf %380, %401 : vector<4x32xf32>
    %403 = arith.mulf %402, %402 : vector<4x32xf32>
    %cst_164 = arith.constant dense<0.000000e+00> : vector<4xf32>
    %404 = vector.multi_reduction <add>, %403, %cst_164 [1] : vector<4x32xf32> to vector<4xf32>
    %405 = vector.shape_cast %404 : vector<4xf32> to vector<4x1xf32>
    %cst_165 = arith.constant 3.200000e+01 : f32
    %406 = vector.broadcast %cst_165 : f32 to vector<4x1xf32>
    %407 = arith.divf %405, %406 : vector<4x1xf32>
    %cst_166 = arith.constant 9.99999974E-6 : f32
    %408 = vector.broadcast %cst_166 : f32 to vector<4x1xf32>
    %409 = arith.addf %407, %408 : vector<4x1xf32>
    %410 = math.rsqrt %409 : vector<4x1xf32>
    %411 = vector.broadcast %410 : vector<4x1xf32> to vector<4x32xf32>
    %412 = arith.mulf %402, %411 : vector<4x32xf32>
    %413 = vector.broadcast %395 : vector<1x32xf32> to vector<4x32xf32>
    %414 = arith.mulf %412, %413 : vector<4x32xf32>
    %415 = vector.broadcast %396 : vector<1x32xf32> to vector<4x32xf32>
    %416 = arith.addf %414, %415 : vector<4x32xf32>
    %417 = vector.extract_strided_slice %382 {offsets = [2, 0], sizes = [1, 32], strides = [1, 1]} : vector<10x32xf32> to vector<1x32xf32>
    %418 = vector.extract_strided_slice %382 {offsets = [3, 0], sizes = [1, 32], strides = [1, 1]} : vector<10x32xf32> to vector<1x32xf32>
    %cst_167 = arith.constant dense<0.000000e+00> : vector<4xf32>
    %419 = vector.multi_reduction <add>, %380, %cst_167 [1] : vector<4x32xf32> to vector<4xf32>
    %420 = vector.shape_cast %419 : vector<4xf32> to vector<4x1xf32>
    %cst_168 = arith.constant 3.200000e+01 : f32
    %421 = vector.broadcast %cst_168 : f32 to vector<4x1xf32>
    %422 = arith.divf %420, %421 : vector<4x1xf32>
    %423 = vector.broadcast %422 : vector<4x1xf32> to vector<4x32xf32>
    %424 = arith.subf %380, %423 : vector<4x32xf32>
    %425 = arith.mulf %424, %424 : vector<4x32xf32>
    %cst_169 = arith.constant dense<0.000000e+00> : vector<4xf32>
    %426 = vector.multi_reduction <add>, %425, %cst_169 [1] : vector<4x32xf32> to vector<4xf32>
    %427 = vector.shape_cast %426 : vector<4xf32> to vector<4x1xf32>
    %cst_170 = arith.constant 3.200000e+01 : f32
    %428 = vector.broadcast %cst_170 : f32 to vector<4x1xf32>
    %429 = arith.divf %427, %428 : vector<4x1xf32>
    %cst_171 = arith.constant 9.99999974E-6 : f32
    %430 = vector.broadcast %cst_171 : f32 to vector<4x1xf32>
    %431 = arith.addf %429, %430 : vector<4x1xf32>
    %432 = math.rsqrt %431 : vector<4x1xf32>
    %433 = vector.broadcast %432 : vector<4x1xf32> to vector<4x32xf32>
    %434 = arith.mulf %424, %433 : vector<4x32xf32>
    %435 = vector.broadcast %417 : vector<1x32xf32> to vector<4x32xf32>
    %436 = arith.mulf %434, %435 : vector<4x32xf32>
    %437 = vector.broadcast %418 : vector<1x32xf32> to vector<4x32xf32>
    %438 = arith.addf %436, %437 : vector<4x32xf32>
    %439 = arith.truncf %416 : vector<4x32xf32> to vector<4x32xbf16>
    %cst_172 = arith.constant dense<0.000000e+00> : vector<4x32xf32>
    %440 = tpu.matmul %439, %384, %cst_172 {dimension_numbers = #tpu.dot_dimension_numbers<[1], [0], [0], [1], [0, 0, 1, 1], [], []>} : vector<4x32xbf16>, vector<32x32xbf16>, vector<4x32xf32> -> vector<4x32xf32>
    %441 = arith.addf %440, %5 : vector<4x32xf32>
    %442 = arith.truncf %438 : vector<4x32xf32> to vector<4x32xbf16>
    %cst_173 = arith.constant dense<0.000000e+00> : vector<4x64xf32>
    %443 = tpu.matmul %442, %386, %cst_173 {dimension_numbers = #tpu.dot_dimension_numbers<[1], [0], [0], [1], [0, 0, 1, 1], [], []>} : vector<4x32xbf16>, vector<32x64xbf16>, vector<4x64xf32> -> vector<4x64xf32>
    %444 = vector.extract_strided_slice %443 {offsets = [0, 0], sizes = [4, 32], strides = [1, 1]} : vector<4x64xf32> to vector<4x32xf32>
    %445 = vector.extract_strided_slice %443 {offsets = [0, 32], sizes = [4, 32], strides = [1, 1]} : vector<4x64xf32> to vector<4x32xf32>
    %446 = vector.shape_cast %441 : vector<4x32xf32> to vector<4x8x4xf32>
    %447 = vector.shape_cast %444 : vector<4x32xf32> to vector<4x8x4xf32>
    %448 = vector.shape_cast %445 : vector<4x32xf32> to vector<4x8x4xf32>
    %449 = arith.truncf %446 : vector<4x8x4xf32> to vector<4x8x4xbf16>
    %450 = arith.truncf %447 : vector<4x8x4xf32> to vector<4x8x4xbf16>
    "tpu.trace_start"() <{level = 10 : i32, message = "qhc,khc->hqk"}> : () -> ()
    %cst_174 = arith.constant dense<0.000000e+00> : vector<8x4x4xf32>
    %451 = tpu.matmul %449, %450, %cst_174 {dimension_numbers = #tpu.dot_dimension_numbers<[2], [2], [0], [0], [0, 1, 0, 0, 1, 0], [1], [1]>} : vector<4x8x4xbf16>, vector<4x8x4xbf16>, vector<8x4x4xf32> -> vector<8x4x4xf32>
    "tpu.trace_stop"() : () -> ()
    %cst_175 = arith.constant 5.000000e-01 : f32
    %452 = vector.broadcast %cst_175 : f32 to vector<8x4x4xf32>
    %453 = arith.mulf %451, %452 : vector<8x4x4xf32>
    %cst_176 = arith.constant dense<0xFF800000> : vector<8x4xf32>
    %454 = vector.multi_reduction <maximumf>, %453, %cst_176 [2] : vector<8x4x4xf32> to vector<8x4xf32>
    %455 = vector.shape_cast %454 : vector<8x4xf32> to vector<8x4x1xf32>
    %456 = vector.broadcast %455 : vector<8x4x1xf32> to vector<8x4x4xf32>
    %457 = arith.subf %453, %456 : vector<8x4x4xf32>
    %458 = math.exp %457 : vector<8x4x4xf32>
    %cst_177 = arith.constant dense<0.000000e+00> : vector<8x4xf32>
    %459 = vector.multi_reduction <add>, %458, %cst_177 [2] : vector<8x4x4xf32> to vector<8x4xf32>
    %460 = vector.shape_cast %459 : vector<8x4xf32> to vector<8x4x1xf32>
    %461 = tpu.reciprocal %460 {approx = true} : vector<8x4x1xf32> -> vector<8x4x1xf32>
    %462 = vector.broadcast %461 : vector<8x4x1xf32> to vector<8x4x4xf32>
    %463 = arith.mulf %458, %462 : vector<8x4x4xf32>
    %464 = arith.truncf %463 : vector<8x4x4xf32> to vector<8x4x4xbf16>
    %465 = arith.truncf %448 : vector<4x8x4xf32> to vector<4x8x4xbf16>
    "tpu.trace_start"() <{level = 10 : i32, message = "hqk,khc->qhc"}> : () -> ()
    %cst_178 = arith.constant dense<0.000000e+00> : vector<8x4x4xf32>
    %466 = tpu.matmul %465, %464, %cst_178 {dimension_numbers = #tpu.dot_dimension_numbers<[0], [2], [2], [1], [0, 1, 0, 2, 1, 1], [1], [0]>} : vector<4x8x4xbf16>, vector<8x4x4xbf16>, vector<8x4x4xf32> -> vector<8x4x4xf32>
    %467 = tpu.transpose %466, [2, 0, 1] : vector<8x4x4xf32> -> vector<4x8x4xf32>
    "tpu.trace_stop"() : () -> ()
    %468 = vector.shape_cast %467 : vector<4x8x4xf32> to vector<4x32xf32>
    %469 = arith.truncf %468 : vector<4x32xf32> to vector<4x32xbf16>
    %cst_179 = arith.constant dense<0.000000e+00> : vector<4x32xf32>
    %470 = tpu.matmul %469, %388, %cst_179 {dimension_numbers = #tpu.dot_dimension_numbers<[1], [0], [0], [1], [0, 0, 1, 1], [], []>} : vector<4x32xbf16>, vector<32x32xbf16>, vector<4x32xf32> -> vector<4x32xf32>
    %471 = vector.extract_strided_slice %382 {offsets = [4, 0], sizes = [1, 32], strides = [1, 1]} : vector<10x32xf32> to vector<1x32xf32>
    %472 = vector.broadcast %471 : vector<1x32xf32> to vector<4x32xf32>
    %473 = arith.addf %470, %472 : vector<4x32xf32>
    %474 = vector.extract_strided_slice %382 {offsets = [5, 0], sizes = [1, 32], strides = [1, 1]} : vector<10x32xf32> to vector<1x32xf32>
    %475 = vector.broadcast %474 : vector<1x32xf32> to vector<4x32xf32>
    %476 = arith.mulf %473, %475 : vector<4x32xf32>
    %477 = arith.addf %380, %476 : vector<4x32xf32>
    %478 = vector.extract_strided_slice %382 {offsets = [6, 0], sizes = [1, 32], strides = [1, 1]} : vector<10x32xf32> to vector<1x32xf32>
    %479 = vector.extract_strided_slice %382 {offsets = [7, 0], sizes = [1, 32], strides = [1, 1]} : vector<10x32xf32> to vector<1x32xf32>
    %cst_180 = arith.constant dense<0.000000e+00> : vector<4xf32>
    %480 = vector.multi_reduction <add>, %477, %cst_180 [1] : vector<4x32xf32> to vector<4xf32>
    %481 = vector.shape_cast %480 : vector<4xf32> to vector<4x1xf32>
    %cst_181 = arith.constant 3.200000e+01 : f32
    %482 = vector.broadcast %cst_181 : f32 to vector<4x1xf32>
    %483 = arith.divf %481, %482 : vector<4x1xf32>
    %484 = vector.broadcast %483 : vector<4x1xf32> to vector<4x32xf32>
    %485 = arith.subf %477, %484 : vector<4x32xf32>
    %486 = arith.mulf %485, %485 : vector<4x32xf32>
    %cst_182 = arith.constant dense<0.000000e+00> : vector<4xf32>
    %487 = vector.multi_reduction <add>, %486, %cst_182 [1] : vector<4x32xf32> to vector<4xf32>
    %488 = vector.shape_cast %487 : vector<4xf32> to vector<4x1xf32>
    %cst_183 = arith.constant 3.200000e+01 : f32
    %489 = vector.broadcast %cst_183 : f32 to vector<4x1xf32>
    %490 = arith.divf %488, %489 : vector<4x1xf32>
    %cst_184 = arith.constant 9.99999974E-6 : f32
    %491 = vector.broadcast %cst_184 : f32 to vector<4x1xf32>
    %492 = arith.addf %490, %491 : vector<4x1xf32>
    %493 = math.rsqrt %492 : vector<4x1xf32>
    %494 = vector.broadcast %493 : vector<4x1xf32> to vector<4x32xf32>
    %495 = arith.mulf %485, %494 : vector<4x32xf32>
    %496 = vector.broadcast %478 : vector<1x32xf32> to vector<4x32xf32>
    %497 = arith.mulf %495, %496 : vector<4x32xf32>
    %498 = vector.broadcast %479 : vector<1x32xf32> to vector<4x32xf32>
    %499 = arith.addf %497, %498 : vector<4x32xf32>
    %500 = arith.truncf %499 : vector<4x32xf32> to vector<4x32xbf16>
    %cst_185 = arith.constant dense<0.000000e+00> : vector<4x128xf32>
    %501 = tpu.matmul %500, %390, %cst_185 {dimension_numbers = #tpu.dot_dimension_numbers<[1], [0], [0], [1], [0, 0, 1, 1], [], []>} : vector<4x32xbf16>, vector<32x128xbf16>, vector<4x128xf32> -> vector<4x128xf32>
    %502 = vector.broadcast %392 : vector<1x128xf32> to vector<4x128xf32>
    %503 = arith.addf %501, %502 : vector<4x128xf32>
    %cst_186 = arith.constant 5.000000e-01 : f32
    %504 = vector.broadcast %cst_186 : f32 to vector<4x128xf32>
    %505 = arith.mulf %504, %503 : vector<4x128xf32>
    %cst_187 = arith.constant 4.471500e-02 : f32
    %506 = vector.broadcast %cst_187 : f32 to vector<4x128xf32>
    %507 = arith.mulf %506, %503 : vector<4x128xf32>
    %508 = arith.mulf %507, %503 : vector<4x128xf32>
    %509 = arith.mulf %508, %503 : vector<4x128xf32>
    %510 = arith.addf %503, %509 : vector<4x128xf32>
    %cst_188 = arith.constant 0.797884583 : f32
    %511 = vector.broadcast %cst_188 : f32 to vector<4x128xf32>
    %512 = arith.mulf %511, %510 : vector<4x128xf32>
    %513 = math.tanh %512 : vector<4x128xf32>
    %cst_189 = arith.constant 1.000000e+00 : f32
    %514 = vector.broadcast %cst_189 : f32 to vector<4x128xf32>
    %515 = arith.addf %514, %513 : vector<4x128xf32>
    %516 = arith.mulf %505, %515 : vector<4x128xf32>
    %517 = arith.truncf %516 : vector<4x128xf32> to vector<4x128xbf16>
    %cst_190 = arith.constant dense<0.000000e+00> : vector<4x32xf32>
    %518 = tpu.matmul %517, %394, %cst_190 {dimension_numbers = #tpu.dot_dimension_numbers<[1], [0], [0], [1], [0, 0, 1, 1], [], []>} : vector<4x128xbf16>, vector<128x32xbf16>, vector<4x32xf32> -> vector<4x32xf32>
    %519 = vector.extract_strided_slice %382 {offsets = [8, 0], sizes = [1, 32], strides = [1, 1]} : vector<10x32xf32> to vector<1x32xf32>
    %520 = vector.broadcast %519 : vector<1x32xf32> to vector<4x32xf32>
    %521 = arith.addf %518, %520 : vector<4x32xf32>
    %522 = vector.extract_strided_slice %382 {offsets = [9, 0], sizes = [1, 32], strides = [1, 1]} : vector<10x32xf32> to vector<1x32xf32>
    %523 = vector.broadcast %522 : vector<1x32xf32> to vector<4x32xf32>
    %524 = arith.mulf %521, %523 : vector<4x32xf32>
    %525 = arith.addf %477, %524 : vector<4x32xf32>
    %c2 = arith.constant 2 : index
    %c0_191 = arith.constant 0 : index
    %c0_192 = arith.constant 0 : index
    %526 = vector.load %arg21[%c2, %c0_191, %c0_192] : memref<4x10x32xf32, #tpu.memory_space<vmem>>, vector<1x10x32xf32>
    %527 = vector.shape_cast %526 : vector<1x10x32xf32> to vector<10x32xf32>
    %c2_193 = arith.constant 2 : index
    %c0_194 = arith.constant 0 : index
    %c0_195 = arith.constant 0 : index
    %528 = vector.load %arg22[%c2_193, %c0_194, %c0_195] : memref<4x32x32xbf16, #tpu.memory_space<vmem>>, vector<1x32x32xbf16>
    %529 = vector.shape_cast %528 : vector<1x32x32xbf16> to vector<32x32xbf16>
    %c2_196 = arith.constant 2 : index
    %c0_197 = arith.constant 0 : index
    %c0_198 = arith.constant 0 : index
    %530 = vector.load %arg23[%c2_196, %c0_197, %c0_198] : memref<4x32x64xbf16, #tpu.memory_space<vmem>>, vector<1x32x64xbf16>
    %531 = vector.shape_cast %530 : vector<1x32x64xbf16> to vector<32x64xbf16>
    %c2_199 = arith.constant 2 : index
    %c0_200 = arith.constant 0 : index
    %c0_201 = arith.constant 0 : index
    %532 = vector.load %arg24[%c2_199, %c0_200, %c0_201] : memref<4x32x32xbf16, #tpu.memory_space<vmem>>, vector<1x32x32xbf16>
    %533 = vector.shape_cast %532 : vector<1x32x32xbf16> to vector<32x32xbf16>
    %c2_202 = arith.constant 2 : index
    %c0_203 = arith.constant 0 : index
    %c0_204 = arith.constant 0 : index
    %534 = vector.load %arg25[%c2_202, %c0_203, %c0_204] : memref<4x32x128xbf16, #tpu.memory_space<vmem>>, vector<1x32x128xbf16>
    %535 = vector.shape_cast %534 : vector<1x32x128xbf16> to vector<32x128xbf16>
    %c2_205 = arith.constant 2 : index
    %c0_206 = arith.constant 0 : index
    %c0_207 = arith.constant 0 : index
    %536 = vector.load %arg26[%c2_205, %c0_206, %c0_207] : memref<4x1x128xf32, #tpu.memory_space<vmem>>, vector<1x1x128xf32>
    %537 = vector.shape_cast %536 : vector<1x1x128xf32> to vector<1x128xf32>
    %c2_208 = arith.constant 2 : index
    %c0_209 = arith.constant 0 : index
    %c0_210 = arith.constant 0 : index
    %538 = vector.load %arg27[%c2_208, %c0_209, %c0_210] : memref<4x128x32xbf16, #tpu.memory_space<vmem>>, vector<1x128x32xbf16>
    %539 = vector.shape_cast %538 : vector<1x128x32xbf16> to vector<128x32xbf16>
    %540 = vector.extract_strided_slice %527 {offsets = [0, 0], sizes = [1, 32], strides = [1, 1]} : vector<10x32xf32> to vector<1x32xf32>
    %541 = vector.extract_strided_slice %527 {offsets = [1, 0], sizes = [1, 32], strides = [1, 1]} : vector<10x32xf32> to vector<1x32xf32>
    %cst_211 = arith.constant dense<0.000000e+00> : vector<4xf32>
    %542 = vector.multi_reduction <add>, %525, %cst_211 [1] : vector<4x32xf32> to vector<4xf32>
    %543 = vector.shape_cast %542 : vector<4xf32> to vector<4x1xf32>
    %cst_212 = arith.constant 3.200000e+01 : f32
    %544 = vector.broadcast %cst_212 : f32 to vector<4x1xf32>
    %545 = arith.divf %543, %544 : vector<4x1xf32>
    %546 = vector.broadcast %545 : vector<4x1xf32> to vector<4x32xf32>
    %547 = arith.subf %525, %546 : vector<4x32xf32>
    %548 = arith.mulf %547, %547 : vector<4x32xf32>
    %cst_213 = arith.constant dense<0.000000e+00> : vector<4xf32>
    %549 = vector.multi_reduction <add>, %548, %cst_213 [1] : vector<4x32xf32> to vector<4xf32>
    %550 = vector.shape_cast %549 : vector<4xf32> to vector<4x1xf32>
    %cst_214 = arith.constant 3.200000e+01 : f32
    %551 = vector.broadcast %cst_214 : f32 to vector<4x1xf32>
    %552 = arith.divf %550, %551 : vector<4x1xf32>
    %cst_215 = arith.constant 9.99999974E-6 : f32
    %553 = vector.broadcast %cst_215 : f32 to vector<4x1xf32>
    %554 = arith.addf %552, %553 : vector<4x1xf32>
    %555 = math.rsqrt %554 : vector<4x1xf32>
    %556 = vector.broadcast %555 : vector<4x1xf32> to vector<4x32xf32>
    %557 = arith.mulf %547, %556 : vector<4x32xf32>
    %558 = vector.broadcast %540 : vector<1x32xf32> to vector<4x32xf32>
    %559 = arith.mulf %557, %558 : vector<4x32xf32>
    %560 = vector.broadcast %541 : vector<1x32xf32> to vector<4x32xf32>
    %561 = arith.addf %559, %560 : vector<4x32xf32>
    %562 = vector.extract_strided_slice %527 {offsets = [2, 0], sizes = [1, 32], strides = [1, 1]} : vector<10x32xf32> to vector<1x32xf32>
    %563 = vector.extract_strided_slice %527 {offsets = [3, 0], sizes = [1, 32], strides = [1, 1]} : vector<10x32xf32> to vector<1x32xf32>
    %cst_216 = arith.constant dense<0.000000e+00> : vector<4xf32>
    %564 = vector.multi_reduction <add>, %525, %cst_216 [1] : vector<4x32xf32> to vector<4xf32>
    %565 = vector.shape_cast %564 : vector<4xf32> to vector<4x1xf32>
    %cst_217 = arith.constant 3.200000e+01 : f32
    %566 = vector.broadcast %cst_217 : f32 to vector<4x1xf32>
    %567 = arith.divf %565, %566 : vector<4x1xf32>
    %568 = vector.broadcast %567 : vector<4x1xf32> to vector<4x32xf32>
    %569 = arith.subf %525, %568 : vector<4x32xf32>
    %570 = arith.mulf %569, %569 : vector<4x32xf32>
    %cst_218 = arith.constant dense<0.000000e+00> : vector<4xf32>
    %571 = vector.multi_reduction <add>, %570, %cst_218 [1] : vector<4x32xf32> to vector<4xf32>
    %572 = vector.shape_cast %571 : vector<4xf32> to vector<4x1xf32>
    %cst_219 = arith.constant 3.200000e+01 : f32
    %573 = vector.broadcast %cst_219 : f32 to vector<4x1xf32>
    %574 = arith.divf %572, %573 : vector<4x1xf32>
    %cst_220 = arith.constant 9.99999974E-6 : f32
    %575 = vector.broadcast %cst_220 : f32 to vector<4x1xf32>
    %576 = arith.addf %574, %575 : vector<4x1xf32>
    %577 = math.rsqrt %576 : vector<4x1xf32>
    %578 = vector.broadcast %577 : vector<4x1xf32> to vector<4x32xf32>
    %579 = arith.mulf %569, %578 : vector<4x32xf32>
    %580 = vector.broadcast %562 : vector<1x32xf32> to vector<4x32xf32>
    %581 = arith.mulf %579, %580 : vector<4x32xf32>
    %582 = vector.broadcast %563 : vector<1x32xf32> to vector<4x32xf32>
    %583 = arith.addf %581, %582 : vector<4x32xf32>
    %584 = arith.truncf %561 : vector<4x32xf32> to vector<4x32xbf16>
    %cst_221 = arith.constant dense<0.000000e+00> : vector<4x32xf32>
    %585 = tpu.matmul %584, %529, %cst_221 {dimension_numbers = #tpu.dot_dimension_numbers<[1], [0], [0], [1], [0, 0, 1, 1], [], []>} : vector<4x32xbf16>, vector<32x32xbf16>, vector<4x32xf32> -> vector<4x32xf32>
    %586 = arith.addf %585, %5 : vector<4x32xf32>
    %587 = arith.truncf %583 : vector<4x32xf32> to vector<4x32xbf16>
    %cst_222 = arith.constant dense<0.000000e+00> : vector<4x64xf32>
    %588 = tpu.matmul %587, %531, %cst_222 {dimension_numbers = #tpu.dot_dimension_numbers<[1], [0], [0], [1], [0, 0, 1, 1], [], []>} : vector<4x32xbf16>, vector<32x64xbf16>, vector<4x64xf32> -> vector<4x64xf32>
    %589 = vector.extract_strided_slice %588 {offsets = [0, 0], sizes = [4, 32], strides = [1, 1]} : vector<4x64xf32> to vector<4x32xf32>
    %590 = vector.extract_strided_slice %588 {offsets = [0, 32], sizes = [4, 32], strides = [1, 1]} : vector<4x64xf32> to vector<4x32xf32>
    %591 = vector.shape_cast %586 : vector<4x32xf32> to vector<4x8x4xf32>
    %592 = vector.shape_cast %589 : vector<4x32xf32> to vector<4x8x4xf32>
    %593 = vector.shape_cast %590 : vector<4x32xf32> to vector<4x8x4xf32>
    %594 = arith.truncf %591 : vector<4x8x4xf32> to vector<4x8x4xbf16>
    %595 = arith.truncf %592 : vector<4x8x4xf32> to vector<4x8x4xbf16>
    "tpu.trace_start"() <{level = 10 : i32, message = "qhc,khc->hqk"}> : () -> ()
    %cst_223 = arith.constant dense<0.000000e+00> : vector<8x4x4xf32>
    %596 = tpu.matmul %594, %595, %cst_223 {dimension_numbers = #tpu.dot_dimension_numbers<[2], [2], [0], [0], [0, 1, 0, 0, 1, 0], [1], [1]>} : vector<4x8x4xbf16>, vector<4x8x4xbf16>, vector<8x4x4xf32> -> vector<8x4x4xf32>
    "tpu.trace_stop"() : () -> ()
    %cst_224 = arith.constant 5.000000e-01 : f32
    %597 = vector.broadcast %cst_224 : f32 to vector<8x4x4xf32>
    %598 = arith.mulf %596, %597 : vector<8x4x4xf32>
    %cst_225 = arith.constant dense<0xFF800000> : vector<8x4xf32>
    %599 = vector.multi_reduction <maximumf>, %598, %cst_225 [2] : vector<8x4x4xf32> to vector<8x4xf32>
    %600 = vector.shape_cast %599 : vector<8x4xf32> to vector<8x4x1xf32>
    %601 = vector.broadcast %600 : vector<8x4x1xf32> to vector<8x4x4xf32>
    %602 = arith.subf %598, %601 : vector<8x4x4xf32>
    %603 = math.exp %602 : vector<8x4x4xf32>
    %cst_226 = arith.constant dense<0.000000e+00> : vector<8x4xf32>
    %604 = vector.multi_reduction <add>, %603, %cst_226 [2] : vector<8x4x4xf32> to vector<8x4xf32>
    %605 = vector.shape_cast %604 : vector<8x4xf32> to vector<8x4x1xf32>
    %606 = tpu.reciprocal %605 {approx = true} : vector<8x4x1xf32> -> vector<8x4x1xf32>
    %607 = vector.broadcast %606 : vector<8x4x1xf32> to vector<8x4x4xf32>
    %608 = arith.mulf %603, %607 : vector<8x4x4xf32>
    %609 = arith.truncf %608 : vector<8x4x4xf32> to vector<8x4x4xbf16>
    %610 = arith.truncf %593 : vector<4x8x4xf32> to vector<4x8x4xbf16>
    "tpu.trace_start"() <{level = 10 : i32, message = "hqk,khc->qhc"}> : () -> ()
    %cst_227 = arith.constant dense<0.000000e+00> : vector<8x4x4xf32>
    %611 = tpu.matmul %610, %609, %cst_227 {dimension_numbers = #tpu.dot_dimension_numbers<[0], [2], [2], [1], [0, 1, 0, 2, 1, 1], [1], [0]>} : vector<4x8x4xbf16>, vector<8x4x4xbf16>, vector<8x4x4xf32> -> vector<8x4x4xf32>
    %612 = tpu.transpose %611, [2, 0, 1] : vector<8x4x4xf32> -> vector<4x8x4xf32>
    "tpu.trace_stop"() : () -> ()
    %613 = vector.shape_cast %612 : vector<4x8x4xf32> to vector<4x32xf32>
    %614 = arith.truncf %613 : vector<4x32xf32> to vector<4x32xbf16>
    %cst_228 = arith.constant dense<0.000000e+00> : vector<4x32xf32>
    %615 = tpu.matmul %614, %533, %cst_228 {dimension_numbers = #tpu.dot_dimension_numbers<[1], [0], [0], [1], [0, 0, 1, 1], [], []>} : vector<4x32xbf16>, vector<32x32xbf16>, vector<4x32xf32> -> vector<4x32xf32>
    %616 = vector.extract_strided_slice %527 {offsets = [4, 0], sizes = [1, 32], strides = [1, 1]} : vector<10x32xf32> to vector<1x32xf32>
    %617 = vector.broadcast %616 : vector<1x32xf32> to vector<4x32xf32>
    %618 = arith.addf %615, %617 : vector<4x32xf32>
    %619 = vector.extract_strided_slice %527 {offsets = [5, 0], sizes = [1, 32], strides = [1, 1]} : vector<10x32xf32> to vector<1x32xf32>
    %620 = vector.broadcast %619 : vector<1x32xf32> to vector<4x32xf32>
    %621 = arith.mulf %618, %620 : vector<4x32xf32>
    %622 = arith.addf %525, %621 : vector<4x32xf32>
    %623 = vector.extract_strided_slice %527 {offsets = [6, 0], sizes = [1, 32], strides = [1, 1]} : vector<10x32xf32> to vector<1x32xf32>
    %624 = vector.extract_strided_slice %527 {offsets = [7, 0], sizes = [1, 32], strides = [1, 1]} : vector<10x32xf32> to vector<1x32xf32>
    %cst_229 = arith.constant dense<0.000000e+00> : vector<4xf32>
    %625 = vector.multi_reduction <add>, %622, %cst_229 [1] : vector<4x32xf32> to vector<4xf32>
    %626 = vector.shape_cast %625 : vector<4xf32> to vector<4x1xf32>
    %cst_230 = arith.constant 3.200000e+01 : f32
    %627 = vector.broadcast %cst_230 : f32 to vector<4x1xf32>
    %628 = arith.divf %626, %627 : vector<4x1xf32>
    %629 = vector.broadcast %628 : vector<4x1xf32> to vector<4x32xf32>
    %630 = arith.subf %622, %629 : vector<4x32xf32>
    %631 = arith.mulf %630, %630 : vector<4x32xf32>
    %cst_231 = arith.constant dense<0.000000e+00> : vector<4xf32>
    %632 = vector.multi_reduction <add>, %631, %cst_231 [1] : vector<4x32xf32> to vector<4xf32>
    %633 = vector.shape_cast %632 : vector<4xf32> to vector<4x1xf32>
    %cst_232 = arith.constant 3.200000e+01 : f32
    %634 = vector.broadcast %cst_232 : f32 to vector<4x1xf32>
    %635 = arith.divf %633, %634 : vector<4x1xf32>
    %cst_233 = arith.constant 9.99999974E-6 : f32
    %636 = vector.broadcast %cst_233 : f32 to vector<4x1xf32>
    %637 = arith.addf %635, %636 : vector<4x1xf32>
    %638 = math.rsqrt %637 : vector<4x1xf32>
    %639 = vector.broadcast %638 : vector<4x1xf32> to vector<4x32xf32>
    %640 = arith.mulf %630, %639 : vector<4x32xf32>
    %641 = vector.broadcast %623 : vector<1x32xf32> to vector<4x32xf32>
    %642 = arith.mulf %640, %641 : vector<4x32xf32>
    %643 = vector.broadcast %624 : vector<1x32xf32> to vector<4x32xf32>
    %644 = arith.addf %642, %643 : vector<4x32xf32>
    %645 = arith.truncf %644 : vector<4x32xf32> to vector<4x32xbf16>
    %cst_234 = arith.constant dense<0.000000e+00> : vector<4x128xf32>
    %646 = tpu.matmul %645, %535, %cst_234 {dimension_numbers = #tpu.dot_dimension_numbers<[1], [0], [0], [1], [0, 0, 1, 1], [], []>} : vector<4x32xbf16>, vector<32x128xbf16>, vector<4x128xf32> -> vector<4x128xf32>
    %647 = vector.broadcast %537 : vector<1x128xf32> to vector<4x128xf32>
    %648 = arith.addf %646, %647 : vector<4x128xf32>
    %cst_235 = arith.constant 5.000000e-01 : f32
    %649 = vector.broadcast %cst_235 : f32 to vector<4x128xf32>
    %650 = arith.mulf %649, %648 : vector<4x128xf32>
    %cst_236 = arith.constant 4.471500e-02 : f32
    %651 = vector.broadcast %cst_236 : f32 to vector<4x128xf32>
    %652 = arith.mulf %651, %648 : vector<4x128xf32>
    %653 = arith.mulf %652, %648 : vector<4x128xf32>
    %654 = arith.mulf %653, %648 : vector<4x128xf32>
    %655 = arith.addf %648, %654 : vector<4x128xf32>
    %cst_237 = arith.constant 0.797884583 : f32
    %656 = vector.broadcast %cst_237 : f32 to vector<4x128xf32>
    %657 = arith.mulf %656, %655 : vector<4x128xf32>
    %658 = math.tanh %657 : vector<4x128xf32>
    %cst_238 = arith.constant 1.000000e+00 : f32
    %659 = vector.broadcast %cst_238 : f32 to vector<4x128xf32>
    %660 = arith.addf %659, %658 : vector<4x128xf32>
    %661 = arith.mulf %650, %660 : vector<4x128xf32>
    %662 = arith.truncf %661 : vector<4x128xf32> to vector<4x128xbf16>
    %cst_239 = arith.constant dense<0.000000e+00> : vector<4x32xf32>
    %663 = tpu.matmul %662, %539, %cst_239 {dimension_numbers = #tpu.dot_dimension_numbers<[1], [0], [0], [1], [0, 0, 1, 1], [], []>} : vector<4x128xbf16>, vector<128x32xbf16>, vector<4x32xf32> -> vector<4x32xf32>
    %664 = vector.extract_strided_slice %527 {offsets = [8, 0], sizes = [1, 32], strides = [1, 1]} : vector<10x32xf32> to vector<1x32xf32>
    %665 = vector.broadcast %664 : vector<1x32xf32> to vector<4x32xf32>
    %666 = arith.addf %663, %665 : vector<4x32xf32>
    %667 = vector.extract_strided_slice %527 {offsets = [9, 0], sizes = [1, 32], strides = [1, 1]} : vector<10x32xf32> to vector<1x32xf32>
    %668 = vector.broadcast %667 : vector<1x32xf32> to vector<4x32xf32>
    %669 = arith.mulf %666, %668 : vector<4x32xf32>
    %670 = arith.addf %622, %669 : vector<4x32xf32>
    %c3 = arith.constant 3 : index
    %c0_240 = arith.constant 0 : index
    %c0_241 = arith.constant 0 : index
    %671 = vector.load %arg21[%c3, %c0_240, %c0_241] : memref<4x10x32xf32, #tpu.memory_space<vmem>>, vector<1x10x32xf32>
    %672 = vector.shape_cast %671 : vector<1x10x32xf32> to vector<10x32xf32>
    %c3_242 = arith.constant 3 : index
    %c0_243 = arith.constant 0 : index
    %c0_244 = arith.constant 0 : index
    %673 = vector.load %arg22[%c3_242, %c0_243, %c0_244] : memref<4x32x32xbf16, #tpu.memory_space<vmem>>, vector<1x32x32xbf16>
    %674 = vector.shape_cast %673 : vector<1x32x32xbf16> to vector<32x32xbf16>
    %c3_245 = arith.constant 3 : index
    %c0_246 = arith.constant 0 : index
    %c0_247 = arith.constant 0 : index
    %675 = vector.load %arg23[%c3_245, %c0_246, %c0_247] : memref<4x32x64xbf16, #tpu.memory_space<vmem>>, vector<1x32x64xbf16>
    %676 = vector.shape_cast %675 : vector<1x32x64xbf16> to vector<32x64xbf16>
    %c3_248 = arith.constant 3 : index
    %c0_249 = arith.constant 0 : index
    %c0_250 = arith.constant 0 : index
    %677 = vector.load %arg24[%c3_248, %c0_249, %c0_250] : memref<4x32x32xbf16, #tpu.memory_space<vmem>>, vector<1x32x32xbf16>
    %678 = vector.shape_cast %677 : vector<1x32x32xbf16> to vector<32x32xbf16>
    %c3_251 = arith.constant 3 : index
    %c0_252 = arith.constant 0 : index
    %c0_253 = arith.constant 0 : index
    %679 = vector.load %arg25[%c3_251, %c0_252, %c0_253] : memref<4x32x128xbf16, #tpu.memory_space<vmem>>, vector<1x32x128xbf16>
    %680 = vector.shape_cast %679 : vector<1x32x128xbf16> to vector<32x128xbf16>
    %c3_254 = arith.constant 3 : index
    %c0_255 = arith.constant 0 : index
    %c0_256 = arith.constant 0 : index
    %681 = vector.load %arg26[%c3_254, %c0_255, %c0_256] : memref<4x1x128xf32, #tpu.memory_space<vmem>>, vector<1x1x128xf32>
    %682 = vector.shape_cast %681 : vector<1x1x128xf32> to vector<1x128xf32>
    %c3_257 = arith.constant 3 : index
    %c0_258 = arith.constant 0 : index
    %c0_259 = arith.constant 0 : index
    %683 = vector.load %arg27[%c3_257, %c0_258, %c0_259] : memref<4x128x32xbf16, #tpu.memory_space<vmem>>, vector<1x128x32xbf16>
    %684 = vector.shape_cast %683 : vector<1x128x32xbf16> to vector<128x32xbf16>
    %685 = vector.extract_strided_slice %672 {offsets = [0, 0], sizes = [1, 32], strides = [1, 1]} : vector<10x32xf32> to vector<1x32xf32>
    %686 = vector.extract_strided_slice %672 {offsets = [1, 0], sizes = [1, 32], strides = [1, 1]} : vector<10x32xf32> to vector<1x32xf32>
    %cst_260 = arith.constant dense<0.000000e+00> : vector<4xf32>
    %687 = vector.multi_reduction <add>, %670, %cst_260 [1] : vector<4x32xf32> to vector<4xf32>
    %688 = vector.shape_cast %687 : vector<4xf32> to vector<4x1xf32>
    %cst_261 = arith.constant 3.200000e+01 : f32
    %689 = vector.broadcast %cst_261 : f32 to vector<4x1xf32>
    %690 = arith.divf %688, %689 : vector<4x1xf32>
    %691 = vector.broadcast %690 : vector<4x1xf32> to vector<4x32xf32>
    %692 = arith.subf %670, %691 : vector<4x32xf32>
    %693 = arith.mulf %692, %692 : vector<4x32xf32>
    %cst_262 = arith.constant dense<0.000000e+00> : vector<4xf32>
    %694 = vector.multi_reduction <add>, %693, %cst_262 [1] : vector<4x32xf32> to vector<4xf32>
    %695 = vector.shape_cast %694 : vector<4xf32> to vector<4x1xf32>
    %cst_263 = arith.constant 3.200000e+01 : f32
    %696 = vector.broadcast %cst_263 : f32 to vector<4x1xf32>
    %697 = arith.divf %695, %696 : vector<4x1xf32>
    %cst_264 = arith.constant 9.99999974E-6 : f32
    %698 = vector.broadcast %cst_264 : f32 to vector<4x1xf32>
    %699 = arith.addf %697, %698 : vector<4x1xf32>
    %700 = math.rsqrt %699 : vector<4x1xf32>
    %701 = vector.broadcast %700 : vector<4x1xf32> to vector<4x32xf32>
    %702 = arith.mulf %692, %701 : vector<4x32xf32>
    %703 = vector.broadcast %685 : vector<1x32xf32> to vector<4x32xf32>
    %704 = arith.mulf %702, %703 : vector<4x32xf32>
    %705 = vector.broadcast %686 : vector<1x32xf32> to vector<4x32xf32>
    %706 = arith.addf %704, %705 : vector<4x32xf32>
    %707 = vector.extract_strided_slice %672 {offsets = [2, 0], sizes = [1, 32], strides = [1, 1]} : vector<10x32xf32> to vector<1x32xf32>
    %708 = vector.extract_strided_slice %672 {offsets = [3, 0], sizes = [1, 32], strides = [1, 1]} : vector<10x32xf32> to vector<1x32xf32>
    %cst_265 = arith.constant dense<0.000000e+00> : vector<4xf32>
    %709 = vector.multi_reduction <add>, %670, %cst_265 [1] : vector<4x32xf32> to vector<4xf32>
    %710 = vector.shape_cast %709 : vector<4xf32> to vector<4x1xf32>
    %cst_266 = arith.constant 3.200000e+01 : f32
    %711 = vector.broadcast %cst_266 : f32 to vector<4x1xf32>
    %712 = arith.divf %710, %711 : vector<4x1xf32>
    %713 = vector.broadcast %712 : vector<4x1xf32> to vector<4x32xf32>
    %714 = arith.subf %670, %713 : vector<4x32xf32>
    %715 = arith.mulf %714, %714 : vector<4x32xf32>
    %cst_267 = arith.constant dense<0.000000e+00> : vector<4xf32>
    %716 = vector.multi_reduction <add>, %715, %cst_267 [1] : vector<4x32xf32> to vector<4xf32>
    %717 = vector.shape_cast %716 : vector<4xf32> to vector<4x1xf32>
    %cst_268 = arith.constant 3.200000e+01 : f32
    %718 = vector.broadcast %cst_268 : f32 to vector<4x1xf32>
    %719 = arith.divf %717, %718 : vector<4x1xf32>
    %cst_269 = arith.constant 9.99999974E-6 : f32
    %720 = vector.broadcast %cst_269 : f32 to vector<4x1xf32>
    %721 = arith.addf %719, %720 : vector<4x1xf32>
    %722 = math.rsqrt %721 : vector<4x1xf32>
    %723 = vector.broadcast %722 : vector<4x1xf32> to vector<4x32xf32>
    %724 = arith.mulf %714, %723 : vector<4x32xf32>
    %725 = vector.broadcast %707 : vector<1x32xf32> to vector<4x32xf32>
    %726 = arith.mulf %724, %725 : vector<4x32xf32>
    %727 = vector.broadcast %708 : vector<1x32xf32> to vector<4x32xf32>
    %728 = arith.addf %726, %727 : vector<4x32xf32>
    %729 = arith.truncf %706 : vector<4x32xf32> to vector<4x32xbf16>
    %cst_270 = arith.constant dense<0.000000e+00> : vector<4x32xf32>
    %730 = tpu.matmul %729, %674, %cst_270 {dimension_numbers = #tpu.dot_dimension_numbers<[1], [0], [0], [1], [0, 0, 1, 1], [], []>} : vector<4x32xbf16>, vector<32x32xbf16>, vector<4x32xf32> -> vector<4x32xf32>
    %731 = arith.addf %730, %5 : vector<4x32xf32>
    %732 = arith.truncf %728 : vector<4x32xf32> to vector<4x32xbf16>
    %cst_271 = arith.constant dense<0.000000e+00> : vector<4x64xf32>
    %733 = tpu.matmul %732, %676, %cst_271 {dimension_numbers = #tpu.dot_dimension_numbers<[1], [0], [0], [1], [0, 0, 1, 1], [], []>} : vector<4x32xbf16>, vector<32x64xbf16>, vector<4x64xf32> -> vector<4x64xf32>
    %734 = vector.extract_strided_slice %733 {offsets = [0, 0], sizes = [4, 32], strides = [1, 1]} : vector<4x64xf32> to vector<4x32xf32>
    %735 = vector.extract_strided_slice %733 {offsets = [0, 32], sizes = [4, 32], strides = [1, 1]} : vector<4x64xf32> to vector<4x32xf32>
    %736 = vector.shape_cast %731 : vector<4x32xf32> to vector<4x8x4xf32>
    %737 = vector.shape_cast %734 : vector<4x32xf32> to vector<4x8x4xf32>
    %738 = vector.shape_cast %735 : vector<4x32xf32> to vector<4x8x4xf32>
    %739 = arith.truncf %736 : vector<4x8x4xf32> to vector<4x8x4xbf16>
    %740 = arith.truncf %737 : vector<4x8x4xf32> to vector<4x8x4xbf16>
    "tpu.trace_start"() <{level = 10 : i32, message = "qhc,khc->hqk"}> : () -> ()
    %cst_272 = arith.constant dense<0.000000e+00> : vector<8x4x4xf32>
    %741 = tpu.matmul %739, %740, %cst_272 {dimension_numbers = #tpu.dot_dimension_numbers<[2], [2], [0], [0], [0, 1, 0, 0, 1, 0], [1], [1]>} : vector<4x8x4xbf16>, vector<4x8x4xbf16>, vector<8x4x4xf32> -> vector<8x4x4xf32>
    "tpu.trace_stop"() : () -> ()
    %cst_273 = arith.constant 5.000000e-01 : f32
    %742 = vector.broadcast %cst_273 : f32 to vector<8x4x4xf32>
    %743 = arith.mulf %741, %742 : vector<8x4x4xf32>
    %cst_274 = arith.constant dense<0xFF800000> : vector<8x4xf32>
    %744 = vector.multi_reduction <maximumf>, %743, %cst_274 [2] : vector<8x4x4xf32> to vector<8x4xf32>
    %745 = vector.shape_cast %744 : vector<8x4xf32> to vector<8x4x1xf32>
    %746 = vector.broadcast %745 : vector<8x4x1xf32> to vector<8x4x4xf32>
    %747 = arith.subf %743, %746 : vector<8x4x4xf32>
    %748 = math.exp %747 : vector<8x4x4xf32>
    %cst_275 = arith.constant dense<0.000000e+00> : vector<8x4xf32>
    %749 = vector.multi_reduction <add>, %748, %cst_275 [2] : vector<8x4x4xf32> to vector<8x4xf32>
    %750 = vector.shape_cast %749 : vector<8x4xf32> to vector<8x4x1xf32>
    %751 = tpu.reciprocal %750 {approx = true} : vector<8x4x1xf32> -> vector<8x4x1xf32>
    %752 = vector.broadcast %751 : vector<8x4x1xf32> to vector<8x4x4xf32>
    %753 = arith.mulf %748, %752 : vector<8x4x4xf32>
    %754 = arith.truncf %753 : vector<8x4x4xf32> to vector<8x4x4xbf16>
    %755 = arith.truncf %738 : vector<4x8x4xf32> to vector<4x8x4xbf16>
    "tpu.trace_start"() <{level = 10 : i32, message = "hqk,khc->qhc"}> : () -> ()
    %cst_276 = arith.constant dense<0.000000e+00> : vector<8x4x4xf32>
    %756 = tpu.matmul %755, %754, %cst_276 {dimension_numbers = #tpu.dot_dimension_numbers<[0], [2], [2], [1], [0, 1, 0, 2, 1, 1], [1], [0]>} : vector<4x8x4xbf16>, vector<8x4x4xbf16>, vector<8x4x4xf32> -> vector<8x4x4xf32>
    %757 = tpu.transpose %756, [2, 0, 1] : vector<8x4x4xf32> -> vector<4x8x4xf32>
    "tpu.trace_stop"() : () -> ()
    %758 = vector.shape_cast %757 : vector<4x8x4xf32> to vector<4x32xf32>
    %759 = arith.truncf %758 : vector<4x32xf32> to vector<4x32xbf16>
    %cst_277 = arith.constant dense<0.000000e+00> : vector<4x32xf32>
    %760 = tpu.matmul %759, %678, %cst_277 {dimension_numbers = #tpu.dot_dimension_numbers<[1], [0], [0], [1], [0, 0, 1, 1], [], []>} : vector<4x32xbf16>, vector<32x32xbf16>, vector<4x32xf32> -> vector<4x32xf32>
    %761 = vector.extract_strided_slice %672 {offsets = [4, 0], sizes = [1, 32], strides = [1, 1]} : vector<10x32xf32> to vector<1x32xf32>
    %762 = vector.broadcast %761 : vector<1x32xf32> to vector<4x32xf32>
    %763 = arith.addf %760, %762 : vector<4x32xf32>
    %764 = vector.extract_strided_slice %672 {offsets = [5, 0], sizes = [1, 32], strides = [1, 1]} : vector<10x32xf32> to vector<1x32xf32>
    %765 = vector.broadcast %764 : vector<1x32xf32> to vector<4x32xf32>
    %766 = arith.mulf %763, %765 : vector<4x32xf32>
    %767 = arith.addf %670, %766 : vector<4x32xf32>
    %768 = vector.extract_strided_slice %672 {offsets = [6, 0], sizes = [1, 32], strides = [1, 1]} : vector<10x32xf32> to vector<1x32xf32>
    %769 = vector.extract_strided_slice %672 {offsets = [7, 0], sizes = [1, 32], strides = [1, 1]} : vector<10x32xf32> to vector<1x32xf32>
    %cst_278 = arith.constant dense<0.000000e+00> : vector<4xf32>
    %770 = vector.multi_reduction <add>, %767, %cst_278 [1] : vector<4x32xf32> to vector<4xf32>
    %771 = vector.shape_cast %770 : vector<4xf32> to vector<4x1xf32>
    %cst_279 = arith.constant 3.200000e+01 : f32
    %772 = vector.broadcast %cst_279 : f32 to vector<4x1xf32>
    %773 = arith.divf %771, %772 : vector<4x1xf32>
    %774 = vector.broadcast %773 : vector<4x1xf32> to vector<4x32xf32>
    %775 = arith.subf %767, %774 : vector<4x32xf32>
    %776 = arith.mulf %775, %775 : vector<4x32xf32>
    %cst_280 = arith.constant dense<0.000000e+00> : vector<4xf32>
    %777 = vector.multi_reduction <add>, %776, %cst_280 [1] : vector<4x32xf32> to vector<4xf32>
    %778 = vector.shape_cast %777 : vector<4xf32> to vector<4x1xf32>
    %cst_281 = arith.constant 3.200000e+01 : f32
    %779 = vector.broadcast %cst_281 : f32 to vector<4x1xf32>
    %780 = arith.divf %778, %779 : vector<4x1xf32>
    %cst_282 = arith.constant 9.99999974E-6 : f32
    %781 = vector.broadcast %cst_282 : f32 to vector<4x1xf32>
    %782 = arith.addf %780, %781 : vector<4x1xf32>
    %783 = math.rsqrt %782 : vector<4x1xf32>
    %784 = vector.broadcast %783 : vector<4x1xf32> to vector<4x32xf32>
    %785 = arith.mulf %775, %784 : vector<4x32xf32>
    %786 = vector.broadcast %768 : vector<1x32xf32> to vector<4x32xf32>
    %787 = arith.mulf %785, %786 : vector<4x32xf32>
    %788 = vector.broadcast %769 : vector<1x32xf32> to vector<4x32xf32>
    %789 = arith.addf %787, %788 : vector<4x32xf32>
    %790 = arith.truncf %789 : vector<4x32xf32> to vector<4x32xbf16>
    %cst_283 = arith.constant dense<0.000000e+00> : vector<4x128xf32>
    %791 = tpu.matmul %790, %680, %cst_283 {dimension_numbers = #tpu.dot_dimension_numbers<[1], [0], [0], [1], [0, 0, 1, 1], [], []>} : vector<4x32xbf16>, vector<32x128xbf16>, vector<4x128xf32> -> vector<4x128xf32>
    %792 = vector.broadcast %682 : vector<1x128xf32> to vector<4x128xf32>
    %793 = arith.addf %791, %792 : vector<4x128xf32>
    %cst_284 = arith.constant 5.000000e-01 : f32
    %794 = vector.broadcast %cst_284 : f32 to vector<4x128xf32>
    %795 = arith.mulf %794, %793 : vector<4x128xf32>
    %cst_285 = arith.constant 4.471500e-02 : f32
    %796 = vector.broadcast %cst_285 : f32 to vector<4x128xf32>
    %797 = arith.mulf %796, %793 : vector<4x128xf32>
    %798 = arith.mulf %797, %793 : vector<4x128xf32>
    %799 = arith.mulf %798, %793 : vector<4x128xf32>
    %800 = arith.addf %793, %799 : vector<4x128xf32>
    %cst_286 = arith.constant 0.797884583 : f32
    %801 = vector.broadcast %cst_286 : f32 to vector<4x128xf32>
    %802 = arith.mulf %801, %800 : vector<4x128xf32>
    %803 = math.tanh %802 : vector<4x128xf32>
    %cst_287 = arith.constant 1.000000e+00 : f32
    %804 = vector.broadcast %cst_287 : f32 to vector<4x128xf32>
    %805 = arith.addf %804, %803 : vector<4x128xf32>
    %806 = arith.mulf %795, %805 : vector<4x128xf32>
    %807 = arith.truncf %806 : vector<4x128xf32> to vector<4x128xbf16>
    %cst_288 = arith.constant dense<0.000000e+00> : vector<4x32xf32>
    %808 = tpu.matmul %807, %684, %cst_288 {dimension_numbers = #tpu.dot_dimension_numbers<[1], [0], [0], [1], [0, 0, 1, 1], [], []>} : vector<4x128xbf16>, vector<128x32xbf16>, vector<4x32xf32> -> vector<4x32xf32>
    %809 = vector.extract_strided_slice %672 {offsets = [8, 0], sizes = [1, 32], strides = [1, 1]} : vector<10x32xf32> to vector<1x32xf32>
    %810 = vector.broadcast %809 : vector<1x32xf32> to vector<4x32xf32>
    %811 = arith.addf %808, %810 : vector<4x32xf32>
    %812 = vector.extract_strided_slice %672 {offsets = [9, 0], sizes = [1, 32], strides = [1, 1]} : vector<10x32xf32> to vector<1x32xf32>
    %813 = vector.broadcast %812 : vector<1x32xf32> to vector<4x32xf32>
    %814 = arith.mulf %811, %813 : vector<4x32xf32>
    %815 = arith.addf %767, %814 : vector<4x32xf32>
    %c0_289 = arith.constant 0 : index
    %c0_290 = arith.constant 0 : index
    %816 = vector.load %arg28[%c0_289, %c0_290] : memref<2x32xf32, #tpu.memory_space<vmem>>, vector<2x32xf32>
    %c0_291 = arith.constant 0 : index
    %c0_292 = arith.constant 0 : index
    %817 = vector.load %arg29[%c0_291, %c0_292] : memref<32x64xbf16, #tpu.memory_space<vmem>>, vector<32x64xbf16>
    %c0_293 = arith.constant 0 : index
    %c0_294 = arith.constant 0 : index
    %818 = vector.load %arg30[%c0_293, %c0_294] : memref<1x64xf32, #tpu.memory_space<vmem>>, vector<1x64xf32>
    %c0_295 = arith.constant 0 : index
    %c0_296 = arith.constant 0 : index
    %819 = vector.load %arg31[%c0_295, %c0_296] : memref<64x128xbf16, #tpu.memory_space<vmem>>, vector<64x128xbf16>
    %c0_297 = arith.constant 0 : index
    %c0_298 = arith.constant 0 : index
    %820 = vector.load %arg32[%c0_297, %c0_298] : memref<1x128xf32, #tpu.memory_space<vmem>>, vector<1x128xf32>
    %821 = vector.extract_strided_slice %816 {offsets = [0, 0], sizes = [1, 32], strides = [1, 1]} : vector<2x32xf32> to vector<1x32xf32>
    %822 = vector.extract_strided_slice %816 {offsets = [1, 0], sizes = [1, 32], strides = [1, 1]} : vector<2x32xf32> to vector<1x32xf32>
    %cst_299 = arith.constant dense<0.000000e+00> : vector<4xf32>
    %823 = vector.multi_reduction <add>, %815, %cst_299 [1] : vector<4x32xf32> to vector<4xf32>
    %824 = vector.shape_cast %823 : vector<4xf32> to vector<4x1xf32>
    %cst_300 = arith.constant 3.200000e+01 : f32
    %825 = vector.broadcast %cst_300 : f32 to vector<4x1xf32>
    %826 = arith.divf %824, %825 : vector<4x1xf32>
    %827 = vector.broadcast %826 : vector<4x1xf32> to vector<4x32xf32>
    %828 = arith.subf %815, %827 : vector<4x32xf32>
    %829 = arith.mulf %828, %828 : vector<4x32xf32>
    %cst_301 = arith.constant dense<0.000000e+00> : vector<4xf32>
    %830 = vector.multi_reduction <add>, %829, %cst_301 [1] : vector<4x32xf32> to vector<4xf32>
    %831 = vector.shape_cast %830 : vector<4xf32> to vector<4x1xf32>
    %cst_302 = arith.constant 3.200000e+01 : f32
    %832 = vector.broadcast %cst_302 : f32 to vector<4x1xf32>
    %833 = arith.divf %831, %832 : vector<4x1xf32>
    %cst_303 = arith.constant 9.99999974E-6 : f32
    %834 = vector.broadcast %cst_303 : f32 to vector<4x1xf32>
    %835 = arith.addf %833, %834 : vector<4x1xf32>
    %836 = math.rsqrt %835 : vector<4x1xf32>
    %837 = vector.broadcast %836 : vector<4x1xf32> to vector<4x32xf32>
    %838 = arith.mulf %828, %837 : vector<4x32xf32>
    %839 = vector.broadcast %821 : vector<1x32xf32> to vector<4x32xf32>
    %840 = arith.mulf %838, %839 : vector<4x32xf32>
    %841 = vector.broadcast %822 : vector<1x32xf32> to vector<4x32xf32>
    %842 = arith.addf %840, %841 : vector<4x32xf32>
    %843 = arith.truncf %842 : vector<4x32xf32> to vector<4x32xbf16>
    %cst_304 = arith.constant dense<0.000000e+00> : vector<4x64xf32>
    %844 = tpu.matmul %843, %817, %cst_304 {dimension_numbers = #tpu.dot_dimension_numbers<[1], [0], [0], [1], [0, 0, 1, 1], [], []>} : vector<4x32xbf16>, vector<32x64xbf16>, vector<4x64xf32> -> vector<4x64xf32>
    %845 = vector.broadcast %818 : vector<1x64xf32> to vector<4x64xf32>
    %846 = arith.addf %844, %845 : vector<4x64xf32>
    %cst_305 = arith.constant 5.000000e-01 : f32
    %847 = vector.broadcast %cst_305 : f32 to vector<4x64xf32>
    %848 = arith.mulf %847, %846 : vector<4x64xf32>
    %cst_306 = arith.constant 4.471500e-02 : f32
    %849 = vector.broadcast %cst_306 : f32 to vector<4x64xf32>
    %850 = arith.mulf %849, %846 : vector<4x64xf32>
    %851 = arith.mulf %850, %846 : vector<4x64xf32>
    %852 = arith.mulf %851, %846 : vector<4x64xf32>
    %853 = arith.addf %846, %852 : vector<4x64xf32>
    %cst_307 = arith.constant 0.797884583 : f32
    %854 = vector.broadcast %cst_307 : f32 to vector<4x64xf32>
    %855 = arith.mulf %854, %853 : vector<4x64xf32>
    %856 = math.tanh %855 : vector<4x64xf32>
    %cst_308 = arith.constant 1.000000e+00 : f32
    %857 = vector.broadcast %cst_308 : f32 to vector<4x64xf32>
    %858 = arith.addf %857, %856 : vector<4x64xf32>
    %859 = arith.mulf %848, %858 : vector<4x64xf32>
    %860 = arith.truncf %859 : vector<4x64xf32> to vector<4x64xbf16>
    %cst_309 = arith.constant dense<0.000000e+00> : vector<4x128xf32>
    %861 = tpu.matmul %860, %819, %cst_309 {dimension_numbers = #tpu.dot_dimension_numbers<[1], [0], [0], [1], [0, 0, 1, 1], [], []>} : vector<4x64xbf16>, vector<64x128xbf16>, vector<4x128xf32> -> vector<4x128xf32>
    %862 = vector.broadcast %820 : vector<1x128xf32> to vector<4x128xf32>
    %863 = arith.addf %861, %862 : vector<4x128xf32>
    %c0_310 = arith.constant 0 : index
    %c0_311 = arith.constant 0 : index
    %c0_312 = arith.constant 0 : index
    %864 = vector.load %arg33[%c0_310, %c0_311, %c0_312] : memref<1x4x128xf32, #tpu.memory_space<vmem>>, vector<1x4x128xf32>
    %865 = vector.shape_cast %864 : vector<1x4x128xf32> to vector<4x128xf32>
    %866 = vector.shape_cast %863 : vector<4x128xf32> to vector<1x4x128xf32>
    tpu.vector_store %arg33[%c0_310, %c0_311, %c0_312], %866 {strides = array<i32>} : memref<1x4x128xf32, #tpu.memory_space<vmem>>, vector<1x4x128xf32>,
    return
  }
  func.func @transform_0(%arg0: i32) -> (i32, i32, i32) {
    %c0_i32 = arith.constant 0 : i32
    %c0_i32_0 = arith.constant 0 : i32
    %c0_i32_1 = arith.constant 0 : i32
    return %arg0, %c0_i32, %c0_i32_0 : i32, i32, i32
  }
  func.func @transform_1(%arg0: i32) -> (i32, i32, i32) {
    %c0_i32 = arith.constant 0 : i32
    %c0_i32_0 = arith.constant 0 : i32
    %c0_i32_1 = arith.constant 0 : i32
    return %arg0, %c0_i32, %c0_i32_0 : i32, i32, i32
  }
  func.func @transform_2(%arg0: i32) -> (i32, i32, i32) {
    %c0_i32 = arith.constant 0 : i32
    %c0_i32_0 = arith.constant 0 : i32
    %c0_i32_1 = arith.constant 0 : i32
    %c0_i32_2 = arith.constant 0 : i32
    return %c0_i32, %c0_i32_0, %c0_i32_1 : i32, i32, i32
  }
  func.func @transform_3(%arg0: i32) -> (i32, i32) {
    %c0_i32 = arith.constant 0 : i32
    %c0_i32_0 = arith.constant 0 : i32
    %c0_i32_1 = arith.constant 0 : i32
    return %c0_i32, %c0_i32_0 : i32, i32
  }
  func.func @transform_4(%arg0: i32) -> (i32, i32) {
    %c0_i32 = arith.constant 0 : i32
    %c0_i32_0 = arith.constant 0 : i32
    %c0_i32_1 = arith.constant 0 : i32
    return %c0_i32, %c0_i32_0 : i32, i32
  }
  func.func @transform_5(%arg0: i32) -> (i32, i32) {
    %c0_i32 = arith.constant 0 : i32
    %c0_i32_0 = arith.constant 0 : i32
    %c0_i32_1 = arith.constant 0 : i32
    return %c0_i32, %c0_i32_0 : i32, i32
  }
  func.func @transform_6(%arg0: i32) -> (i32, i32) {
    %c0_i32 = arith.constant 0 : i32
    %c0_i32_0 = arith.constant 0 : i32
    %c0_i32_1 = arith.constant 0 : i32
    return %c0_i32, %c0_i32_0 : i32, i32
  }
  func.func @transform_7(%arg0: i32) -> (i32, i32) {
    %c0_i32 = arith.constant 0 : i32
    %c0_i32_0 = arith.constant 0 : i32
    %c0_i32_1 = arith.constant 0 : i32
    return %c0_i32, %c0_i32_0 : i32, i32
  }
  func.func @transform_8(%arg0: i32) -> (i32, i32) {
    %c0_i32 = arith.constant 0 : i32
    %c0_i32_0 = arith.constant 0 : i32
    %c0_i32_1 = arith.constant 0 : i32
    return %c0_i32, %c0_i32_0 : i32, i32
  }
  func.func @transform_9(%arg0: i32) -> (i32, i32) {
    %c0_i32 = arith.constant 0 : i32
    %c0_i32_0 = arith.constant 0 : i32
    %c0_i32_1 = arith.constant 0 : i32
    return %c0_i32, %c0_i32_0 : i32, i32
  }
  func.func @transform_10(%arg0: i32) -> (i32, i32) {
    %c0_i32 = arith.constant 0 : i32
    %c0_i32_0 = arith.constant 0 : i32
    %c0_i32_1 = arith.constant 0 : i32
    return %c0_i32, %c0_i32_0 : i32, i32
  }
  func.func @transform_11(%arg0: i32) -> (i32, i32) {
    %c0_i32 = arith.constant 0 : i32
    %c0_i32_0 = arith.constant 0 : i32
    %c0_i32_1 = arith.constant 0 : i32
    return %c0_i32, %c0_i32_0 : i32, i32
  }
  func.func @transform_12(%arg0: i32) -> (i32, i32) {
    %c0_i32 = arith.constant 0 : i32
    %c0_i32_0 = arith.constant 0 : i32
    %c0_i32_1 = arith.constant 0 : i32
    return %c0_i32, %c0_i32_0 : i32, i32
  }
  func.func @transform_13(%arg0: i32) -> (i32, i32) {
    %c0_i32 = arith.constant 0 : i32
    %c0_i32_0 = arith.constant 0 : i32
    %c0_i32_1 = arith.constant 0 : i32
    return %c0_i32, %c0_i32_0 : i32, i32
  }
  func.func @transform_14(%arg0: i32) -> (i32, i32) {
    %c0_i32 = arith.constant 0 : i32
    %c0_i32_0 = arith.constant 0 : i32
    %c0_i32_1 = arith.constant 0 : i32
    return %c0_i32, %c0_i32_0 : i32, i32
  }
  func.func @transform_15(%arg0: i32) -> (i32, i32) {
    %c0_i32 = arith.constant 0 : i32
    %c0_i32_0 = arith.constant 0 : i32
    %c0_i32_1 = arith.constant 0 : i32
    return %c0_i32, %c0_i32_0 : i32, i32
  }
  func.func @transform_16(%arg0: i32) -> (i32, i32) {
    %c0_i32 = arith.constant 0 : i32
    %c0_i32_0 = arith.constant 0 : i32
    %c0_i32_1 = arith.constant 0 : i32
    return %c0_i32, %c0_i32_0 : i32, i32
  }
  func.func @transform_17(%arg0: i32) -> (i32, i32) {
    %c0_i32 = arith.constant 0 : i32
    %c0_i32_0 = arith.constant 0 : i32
    %c0_i32_1 = arith.constant 0 : i32
    return %c0_i32, %c0_i32_0 : i32, i32
  }
  func.func @transform_18(%arg0: i32) -> (i32, i32) {
    %c0_i32 = arith.constant 0 : i32
    %c0_i32_0 = arith.constant 0 : i32
    %c0_i32_1 = arith.constant 0 : i32
    return %c0_i32, %c0_i32_0 : i32, i32
  }
  func.func @transform_19(%arg0: i32) -> (i32, i32) {
    %c0_i32 = arith.constant 0 : i32
    %c0_i32_0 = arith.constant 0 : i32
    %c0_i32_1 = arith.constant 0 : i32
    return %c0_i32, %c0_i32_0 : i32, i32
  }
  func.func @transform_20(%arg0: i32) -> (i32, i32, i32) {
    %c0_i32 = arith.constant 0 : i32
    %c0_i32_0 = arith.constant 0 : i32
    %c0_i32_1 = arith.constant 0 : i32
    %c0_i32_2 = arith.constant 0 : i32
    return %c0_i32, %c0_i32_0, %c0_i32_1 : i32, i32, i32
  }
  func.func @transform_21(%arg0: i32) -> (i32, i32, i32) {
    %c0_i32 = arith.constant 0 : i32
    %c0_i32_0 = arith.constant 0 : i32
    %c0_i32_1 = arith.constant 0 : i32
    %c0_i32_2 = arith.constant 0 : i32
    return %c0_i32, %c0_i32_0, %c0_i32_1 : i32, i32, i32
  }
  func.func @transform_22(%arg0: i32) -> (i32, i32, i32) {
    %c0_i32 = arith.constant 0 : i32
    %c0_i32_0 = arith.constant 0 : i32
    %c0_i32_1 = arith.constant 0 : i32
    %c0_i32_2 = arith.constant 0 : i32
    return %c0_i32, %c0_i32_0, %c0_i32_1 : i32, i32, i32
  }
  func.func @transform_23(%arg0: i32) -> (i32, i32, i32) {
    %c0_i32 = arith.constant 0 : i32
    %c0_i32_0 = arith.constant 0 : i32
    %c0_i32_1 = arith.constant 0 : i32
    %c0_i32_2 = arith.constant 0 : i32
    return %c0_i32, %c0_i32_0, %c0_i32_1 : i32, i32, i32
  }
  func.func @transform_24(%arg0: i32) -> (i32, i32, i32) {
    %c0_i32 = arith.constant 0 : i32
    %c0_i32_0 = arith.constant 0 : i32
    %c0_i32_1 = arith.constant 0 : i32
    %c0_i32_2 = arith.constant 0 : i32
    return %c0_i32, %c0_i32_0, %c0_i32_1 : i32, i32, i32
  }
  func.func @transform_25(%arg0: i32) -> (i32, i32, i32) {
    %c0_i32 = arith.constant 0 : i32
    %c0_i32_0 = arith.constant 0 : i32
    %c0_i32_1 = arith.constant 0 : i32
    %c0_i32_2 = arith.constant 0 : i32
    return %c0_i32, %c0_i32_0, %c0_i32_1 : i32, i32, i32
  }
  func.func @transform_26(%arg0: i32) -> (i32, i32, i32) {
    %c0_i32 = arith.constant 0 : i32
    %c0_i32_0 = arith.constant 0 : i32
    %c0_i32_1 = arith.constant 0 : i32
    %c0_i32_2 = arith.constant 0 : i32
    return %c0_i32, %c0_i32_0, %c0_i32_1 : i32, i32, i32
  }
  func.func @transform_27(%arg0: i32) -> (i32, i32) {
    %c0_i32 = arith.constant 0 : i32
    %c0_i32_0 = arith.constant 0 : i32
    %c0_i32_1 = arith.constant 0 : i32
    return %c0_i32, %c0_i32_0 : i32, i32
  }
  func.func @transform_28(%arg0: i32) -> (i32, i32) {
    %c0_i32 = arith.constant 0 : i32
    %c0_i32_0 = arith.constant 0 : i32
    %c0_i32_1 = arith.constant 0 : i32
    return %c0_i32, %c0_i32_0 : i32, i32
  }
  func.func @transform_29(%arg0: i32) -> (i32, i32) {
    %c0_i32 = arith.constant 0 : i32
    %c0_i32_0 = arith.constant 0 : i32
    %c0_i32_1 = arith.constant 0 : i32
    return %c0_i32, %c0_i32_0 : i32, i32
  }
  func.func @transform_30(%arg0: i32) -> (i32, i32) {
    %c0_i32 = arith.constant 0 : i32
    %c0_i32_0 = arith.constant 0 : i32
    %c0_i32_1 = arith.constant 0 : i32
    return %c0_i32, %c0_i32_0 : i32, i32
  }
  func.func @transform_31(%arg0: i32) -> (i32, i32) {
    %c0_i32 = arith.constant 0 : i32
    %c0_i32_0 = arith.constant 0 : i32
    %c0_i32_1 = arith.constant 0 : i32
    return %c0_i32, %c0_i32_0 : i32, i32
  }
  func.func @transform_32(%arg0: i32) -> (i32, i32, i32) {
    %c0_i32 = arith.constant 0 : i32
    %c0_i32_0 = arith.constant 0 : i32
    %c0_i32_1 = arith.constant 0 : i32
    return %arg0, %c0_i32, %c0_i32_0 : i32, i32, i32
  }
}

</mosaic_0001>

<bundles_post_ra>
// kernel: camera_head_forward.1
= control target key start
LH: loop header
LB: loop body
LE: loop exit
PB: predicated region body
PF: predicated region fallthrough
CT: control target
= control target key end

     0   :  { %s14446_s6 = smov 1   ;;  %s14447_s10 = smov 2   ;;  %s16534_s0 = inlined_call_operand.smem [shape: u32[33], index: -1, kind: input, shape index: {}] }
   0x1   :  { %s14506_s5 = sld [smem:[%s16534_s0]]   ;;  %s14448_s14 = smov 3  }
   0x2   :  { %s14511_s9 = sld [smem:[%s16534_s0 + %s14446_s6]]   ;;  %s14449_s18 = smov 4  }
   0x3   :  { %s14516_s13 = sld [smem:[%s16534_s0 + %s14447_s10]]   ;;  %s14450_s22 = smov 5  }
   0x4   :  { %s14521_s17 = sld [smem:[%s16534_s0 + %s14448_s14]]   ;;  %s14451_s26 = smov 6  }
   0x5   :  { %s14526_s21 = sld [smem:[%s16534_s0 + %s14449_s18]]   ;;  %s14452_s30 = smov 7  }
   0x6   :  { %s14531_s25 = sld [smem:[%s16534_s0 + %s14450_s22]]   ;;  %s14453_s4 = smov 8  }
   0x7   :  { %16588 = sst [smem:[#allocation2_spill]] %s14506_s5  ;;  %s14454_s10 = smov 9  }
   0x8   :  { %16589 = sst [smem:[#allocation3_spill]] %s14511_s9  ;;  %s14455_s15 = smov 10  }
   0x9   :  { %16590 = sst [smem:[#allocation4_spill]] %s14516_s13  ;;  %s14456_s20 = smov 11  }
   0xa   :  { %16591 = sst [smem:[#allocation5_spill]] %s14521_s17  ;;  %s14458_s1 = smov 13  }
   0xb   :  { %16592 = sst [smem:[#allocation6_spill]] %s14526_s21  ;;  %s14459_s7 = smov 14  }
   0xc   :  { %16593 = sst [smem:[#allocation7_spill]] %s14531_s25  ;;  %s14461_s22 = smov 16  }
   0xd   :  { %s14536_s29 = sld [smem:[%s16534_s0 + %s14451_s26]]   ;;  %s14457_s26 = smov 12  }
   0xe   :  { %s14541_s3 = sld [smem:[%s16534_s0 + %s14452_s30]]   ;;  %s14462_s28 = smov 17  }
   0xf   :  { %s14546_s8 = sld [smem:[%s16534_s0 + %s14453_s4]]  }
  0x10   :  { %s14551_s14 = sld [smem:[%s16534_s0 + %s14454_s10]]  }
  0x11   :  { %s14556_s19 = sld [smem:[%s16534_s0 + %s14455_s15]]   ;;  %s14460_s15 = smov 15  }
  0x12   :  { %s14561_s24 = sld [smem:[%s16534_s0 + %s14456_s20]]  }
  0x13   :  { %s14566_s30 = sld [smem:[%s16534_s0 + %s14457_s26]]  }
  0x14   :  { %16594 = sst [smem:[#allocation8_spill]] %s14541_s3 }
  0x15   :  { %16595 = sst [smem:[#allocation9_spill]] %s14546_s8 }
  0x16   :  { %16596 = sst [smem:[#allocation10_spill]] %s14551_s14 }
  0x17   :  { %16597 = sst [smem:[#allocation11_spill]] %s14556_s19 }
  0x18   :  { %16598 = sst [smem:[#allocation12_spill]] %s14561_s24 }
  0x19   :  { %s14571_s6 = sld [smem:[%s16534_s0 + %s14458_s1]]  }
  0x1a   :  { %s14576_s12 = sld [smem:[%s16534_s0 + %s14459_s7]]   ;;  %s14463_s7 = smov 18  }
  0x1b   :  { %s14581_s20 = sld [smem:[%s16534_s0 + %s14460_s15]]   ;;  %s14464_s15 = smov 19  }
  0x1c   :  { %s14586_s27 = sld [smem:[%s16534_s0 + %s14461_s22]]   ;;  %s14465_s22 = smov 20  }
  0x1d   :  { %s14591_s4 = sld [smem:[%s16534_s0 + %s14462_s28]]   ;;  %s14466_s28 = smov 21  }
  0x1e   :  { %s14596_s13 = sld [smem:[%s16534_s0 + %s14463_s7]]   ;;  %s14467_s7 = smov 22  }
  0x1f   :  { %16599 = sst [smem:[#allocation13_spill]] %s14571_s6 }
  0x20   :  { %16600 = sst [smem:[#allocation14_spill]] %s14576_s12 }
  0x21   :  { %16601 = sst [smem:[#allocation15_spill]] %s14581_s20 }
  0x22   :  { %16602 = sst [smem:[#allocation16_spill]] %s14586_s27 }
  0x23   :  { %16603 = sst [smem:[#allocation17_spill]] %s14591_s4 }
  0x24   :  { %16604 = sst [smem:[#allocation18_spill]] %s14596_s13 }
  0x25   :  { %s14601_s20 = sld [smem:[%s16534_s0 + %s14464_s15]]   ;;  %s14468_s15 = smov 23  }
  0x26   :  { %s14606_s27 = sld [smem:[%s16534_s0 + %s14465_s22]]   ;;  %s14469_s22 = smov 24  }
  0x27   :  { %s14611_s4 = sld [smem:[%s16534_s0 + %s14466_s28]]   ;;  %s14470_s28 = smov 25  }
  0x28   :  { %s14616_s13 = sld [smem:[%s16534_s0 + %s14467_s7]]   ;;  %s14471_s7 = smov 26  }
  0x2b   :  { %16605 = sst [smem:[#allocation19_spill]] %s14601_s20 }
  0x2c   :  { %16606 = sst [smem:[#allocation20_spill]] %s14606_s27 }
  0x2d   :  { %16607 = sst [smem:[#allocation21_spill]] %s14611_s4 }
  0x2e   :  { %16608 = sst [smem:[#allocation22_spill]] %s14616_s13 }
  0x2f   :  { %s14621_s20 = sld [smem:[%s16534_s0 + %s14468_s15]]   ;;  %s14472_s15 = smov 27  }
  0x30   :  { %s14626_s27 = sld [smem:[%s16534_s0 + %s14469_s22]]   ;;  %s14473_s22 = smov 28  }
  0x31   :  { %s14631_s4 = sld [smem:[%s16534_s0 + %s14470_s28]]   ;;  %s14474_s28 = smov 29  }
  0x32   :  { %s14636_s13 = sld [smem:[%s16534_s0 + %s14471_s7]]   ;;  %s14475_s7 = smov 30  }
  0x35   :  { %16609 = sst [smem:[#allocation23_spill]] %s14621_s20 }
  0x36   :  { %16610 = sst [smem:[#allocation24_spill]] %s14626_s27 }
  0x37   :  { %16611 = sst [smem:[#allocation25_spill]] %s14631_s4 }
  0x38   :  { %16612 = sst [smem:[#allocation26_spill]] %s14636_s13 }
  0x39   :  { %s14641_s20 = sld [smem:[%s16534_s0 + %s14472_s15]]   ;;  %s14476_s15 = smov 31  }
  0x3a   :  { %s14646_s27 = sld [smem:[%s16534_s0 + %s14473_s22]]   ;;  %s14477_s22 = smov 32  }
  0x3b   :  { %s14651_s4 = sld [smem:[%s16534_s0 + %s14474_s28]]   ;;  %s14668_s28 = smov 0  }
  0x3c   :  { %s14656_s13 = sld [smem:[%s16534_s0 + %s14475_s7]]  }
  0x3f   :  { %16613 = sst [smem:[#allocation27_spill]] %s14641_s20 }
  0x40   :  { %16614 = sst [smem:[#allocation28_spill]] %s14646_s27 }
  0x41   :  { %s14661_s20 = sld [smem:[%s16534_s0 + %s14476_s15]]  }
  0x42   :  { %s14666_s27 = sld [smem:[%s16534_s0 + %s14477_s22]]  }
  0x43 LB: > { %s16615_s24 = sld [smem:[#allocation12_spill]]  ;;  %s16616_s21 = sld [smem:[#allocation6_spill]]  ;;  %s14444_s28 = sphi %s14668_s28, %s75_s28  }
  0x44   : > { %s16617_s14 = sld [smem:[#allocation10_spill]]  ;;  %s16618_s12 = sld [smem:[#allocation14_spill]] }
  0x45   : > { %s16619_s6 = sld [smem:[#allocation13_spill]]  ;;  %s12745_s1 = sadd.s32 4294967295, %s14444_s28  }
  0x46   : > { %p12749_p0 = scmp.ge.s32.totalorder %s14444_s28, 1  ;;  %p904_p1 = scmp.lt.s32.totalorder %s14444_s28, 3 }
  0x48   : > { %p905_p2 = pnand %p12749_p0, %p904_p1 }
  0x49   : > { %p989_p3 = scmp.lt.s32.totalorder (!%p905_p2), %s12745_s1, 1  ;;  %s16620_s9 = sld [smem:[#allocation3_spill]] (!%p905_p2)  ;;  %vm1022_vm0 = vcmask (!%p905_p2), 519168   ;;  %vm1203_vm1 = vcmask (!%p905_p2), 261120   ;;  %v14140_v30 = vld [vmem:[%s16616_s21] sm:$0xff] (!%p905_p2)   ;;  %v14478_v31 = vmov (!%p905_p2), 0.0   ;;  %v1037_v37 = vlaneseq (!%p905_p2) }
  0x4a   : > { %908 = sbr.rel (%p905_p2) target bundleno = 16275 (0x3f93), region = 148  ;;  %s16621_s5 = sld [smem:[#allocation2_spill]] (!%p905_p2)  ;;  %13350 = vmatprep.subr.bf16.mxu0 (!%p905_p2), %v14478_v31  ;;  %13362 = vmatprep.subr.bf16.mxu1 (!%p905_p2), %v14478_v31  ;;  %v14141_v32 = vld [vmem:[%s16616_s21 + $0x8] sm:$0xff] (!%p905_p2)   ;;  %v14142_v33 = vld [vmem:[%s16616_s21 + $0x10] sm:$0xff] (!%p905_p2)   ;;  %vm14479_vm2 = vmmov (!%p905_p2), 0   ;;  %v14143_v34 = vld [vmem:[%s16616_s21 + $0x18] sm:$0xff] (!%p905_p2)  }
  0x4b   : > { %13351 = vmatpush3.bf16.msra.mxu0 (!%p905_p2), %v14140_v30  ;;  %13358 = vmatprep.mubr.msk.bf16.mxu0 (!%p905_p2), %vm14479_vm2, %v14478_v31  ;;  %s16622_s17 = sld [smem:[#allocation5_spill]] (!%p905_p2)  ;;  %v14719_v41 = vshrl.u32 (!%p905_p2), %v1037_v37, 7  ;;  %s16623_s25 = sld [smem:[#allocation7_spill]] (!%p905_p2)  ;;  %vm1078_vm3 = vcmask (!%p905_p2), 523264   ;;  %v14144_v55 = vld [vmem:[%s14536_s29] sm:$0xff] (!%p905_p2)   ;;  %vm1144_vm4 = vcmask (!%p905_p2), 130048  }
  0x4c   : > { %13352 = vmatprep.subr.bf16.mxu0 (!%p905_p2), %v14478_v31  ;;  %13364 = vmatprep.mubr.msk.bf16.mxu1 (!%p905_p2), %vm14479_vm2, %v14478_v31  ;;  %v14145_v56 = vld [vmem:[%s16617_s14] sm:$0xff] (!%p905_p2)   ;;  %s16624_s8 = sld [smem:[#allocation9_spill]] (!%p905_p2)  ;;  %s16625_s3 = sld [smem:[#allocation8_spill]] (!%p905_p2)  ;;  %vm1506_vm5 = vcmask (!%p905_p2), 257024   ;;  %vm1793_vm6 = vcmask (!%p905_p2), 289792   ;;  %vm1821_vm7 = vcmask (!%p905_p2), 1041408  }
  0x4d   : > { %v14722_v44 = vsub.s32 (!%p905_p2), 0, %v14719_v41  ;;  %v14727_v47 = vsub.s32 (!%p905_p2), 1, %v14719_v41  ;;  %13363 = vmatpush3.bf16.msra.mxu1 (!%p905_p2), %v14144_v55  ;;  %s16626_s19 = sld [smem:[#allocation11_spill]] (!%p905_p2)  ;;  %s16627_s11 = sld [smem:[#allocation15_spill]] (!%p905_p2)  ;;  %vm1817_vm8 = vcmask (!%p905_p2), 293888   ;;  %vm2922_vm9 = vcmask (!%p905_p2), 31744  }
  0x4e   : > { %13368 = vmatprep.subr.bf16.mxu1 (!%p905_p2), %v14145_v56  ;;  %s16628_s15 = sld [smem:[#allocation4_spill]] (!%p905_p2)  ;;  %s16549_s16 = smov (!%p905_p2), 96   ;;  %vm3299_vm10 = vcmask (!%p905_p2), 27648   ;;  %vm4439_vm11 = vcmask (!%p905_p2), 64512   ;;  %vm4441_vm12 = vcmask (!%p905_p2), 97280   ;;  %vm4444_vm13 = vcmask (!%p905_p2), 162816  }
  0x4f   : > { %13353 = vmatpush3.bf16.msra.mxu0 (!%p905_p2), %v14141_v32  ;;  %s16629_s18 = sld [smem:[#allocation16_spill]] (!%p905_p2)  ;;  %s16630_s22 = sld [smem:[#allocation17_spill]] (!%p905_p2)  ;;  %vm4446_vm14 = vcmask (!%p905_p2), 195584   ;;  %vm4448_vm15 = vcmask (!%p905_p2), 228352  }
  0x50   : > { %13354 = vmatprep.subr.bf16.mxu0 (!%p905_p2), %v14478_v31  ;;  %s16631_s23 = sld [smem:[#allocation19_spill]] (!%p905_p2)  ;;  %s16632_s26 = sld [smem:[#allocation18_spill]] (!%p905_p2) }
  0x51   : > { %s16659_s1 = smov (!%p989_p3, %s12745_s1), 1  ;;  %v1009_v46 = vld [vmem:[%s16622_s17] sm:$0x3]  ;;  %s16647_s17 = smov 104  }
  0x52   : > { %s16548_s0 = sshll.u32 %s16659_s1, 2  ;;  %s13081_s2 = sshll.u32 %s16659_s1, 5  ;;  %v1040_v48 = vrot.slane %v1009_v46, %v14722_v44  ;;  %v1045_v51 = vrot.slane %v1009_v46, %v14727_v47  ;;  %v12754_v61 = vld [vmem:[%s16623_s25] ss:$0 sm:$0xff] }
  0x53   : > { %s997_s7 = scalar_lea.vmem %s16620_s9, %s16548_s0  ;;  %s993_s10 = scalar_lea.vmem %s16621_s5, %s13081_s2  ;;  %13355 = vmatpush3.bf16.msra.mxu0 %v14142_v33  ;;  %v14147_v46 = vld [vmem:[%s16615_s24] sm:$0xff]  }
  0x54   : > { %v1007_v0 = vld [vmem:[%s997_s7] sm:$0xf]  ;;  %v1004_v3 = vld [vmem:[%s993_s10 + $0x8] sm:$0xff]  ;;  %v1006_v4 = vld [vmem:[%s993_s10 + $0x18] sm:$0xff]  ;;  %13356 = vmatprep.subr.bf16.mxu0 %v14478_v31  ;;  %s16633_s2 = sld [smem:[#allocation21_spill]]  ;;  %s16634_s7 = sld [smem:[#allocation20_spill]] }
  0x55   : > { %v1023_v1 = vsel %vm1022_vm0, %v1007_v0, 0.0  ;;  %v1003_v2 = vld [vmem:[%s993_s10] sm:$0xff]  ;;  %v1207_v6 = vsel %vm1203_vm1, %v1004_v3, 0.0  ;;  %v1213_v7 = vsel %vm1203_vm1, %v1006_v4, 0.0  ;;  %v1005_v16 = vld [vmem:[%s993_s10 + $0x10] sm:$0xff]  ;;  %s16635_s10 = sld [smem:[#allocation22_spill]] }
  0x56   : > { %1024 = vadd.xlane.f32.xlu0 %v1023_v1  ;;  %v1204_v5 = vsel %vm1203_vm1, %v1003_v2, 0.0  ;;  %v1210_v20 = vsel %vm1203_vm1, %v1005_v16, 0.0  ;;  %s16554_s0 = smov 124   ;;  %s16562_s5 = smov 108  }
  0x57   : > { %1205 = vadd.xlane.f32.xlu1 %v1204_v5  ;;  %13357 = vmatpush3.bf16.msra.mxu0 %v14143_v34  ;;  %s16643_s9 = smov 116   ;;  %s16650_s21 = smov 12  }
  0x58   : > { %13388 = vmatprep.subr.bf16.mxu0 %v14478_v31  ;;  %s16654_s25 = smov 24  }
  0x5b   : > { %1208 = vadd.xlane.f32.xlu1 %v1207_v6 }
  0x5f   : > { %1214 = vadd.xlane.f32.xlu1 %v1213_v7 }
  0xe3   : > { %v1025_v8 = vpop.xlane.xlu0 %1024 }
  0xe4   : > { %v1027_v9 = vmul.f32 0.015625, %v1025_v8  ;;  %v1206_v10 = vpop.xlane.xlu1 %1205 }
  0xe5   : > { %v1217_v11 = vmul.f32 0.03125, %v1206_v10 }
  0xe6   : > { %v1028_v12 = vsub.f32 %v1007_v0, %v1027_v9 }
  0xe7   : > { %v14688_v14 = vsub.f32 %v1003_v2, %v1217_v11 }
  0xe8   : > { %v1029_v13 = vmul.f32 %v1028_v12, %v1028_v12  ;;  %v1209_v15 = vpop.xlane.xlu1 %1208 }
  0xe9   : > { %v1218_v17 = vmul.f32 0.03125, %v1209_v15  ;;  %v1225_v21 = vmul.f32 %v14688_v14, %v14688_v14 }
  0xea   : > { %v1030_v18 = vsel %vm1022_vm0, %v1029_v13, 0.0 }
  0xeb   : > { %1031 = vadd.xlane.f32.xlu0 %v1030_v18  ;;  %v14691_v19 = vsub.f32 %v1004_v3, %v1218_v17  ;;  %v1229_v27 = vsel %vm1203_vm1, %v1225_v21, 0.0 }
  0xec   : > { %v1215_v22 = vpop.xlane.xlu1 %1214 }
  0xed   : > { %v1226_v23 = vmul.f32 %v14691_v19, %v14691_v19  ;;  %v1220_v24 = vmul.f32 0.03125, %v1215_v22 }
  0xef   : > { %1211 = vadd.xlane.f32.xlu0 %v1210_v20  ;;  %v1232_v25 = vsel %vm1203_vm1, %v1226_v23, 0.0  ;;  %v14699_v26 = vsub.f32 %v1006_v4, %v1220_v24  ;;  %v1188_v20 = vld [vmem:[%s16624_s8] sm:$0x3]  ;;  %s16576_s8 = smov 28  }
  0xf0   : > { %1233 = vadd.xlane.f32.xlu1 %v1232_v25  ;;  %v1260_v21 = vrot.slane %v1188_v20, %v14722_v44 }
  0xf1   : > { %v1228_v28 = vmul.f32 %v14699_v26, %v14699_v26 }
  0xf3   : > { %1230 = vadd.xlane.f32.xlu0 %v1229_v27  ;;  %v1238_v29 = vsel %vm1203_vm1, %v1228_v28, 0.0  ;;  %v1268_v28 = vrot.slane %v1188_v20, %v14727_v47 }
  0xf4   : > { %1239 = vadd.xlane.f32.xlu1 %v1238_v29 }
 0x178   : > { %v1032_v35 = vpop.xlane.xlu0 %1031 }
 0x179   : > { %v1033_v36 = vmul.f32 0.015625, %v1032_v35 }
 0x17b   : > { %v1034_v38 = vadd.f32 1e-05, %v1033_v36 }
 0x17c   : > { %v1212_v39 = vpop.xlane.xlu0 %1211 }
 0x17d   : > { %14237 = vrsqrt.f32 %v1034_v38  ;;  %v1219_v40 = vmul.f32 0.03125, %v1212_v39  ;;  %v1234_v57 = vpop.xlane.xlu1 %1233  ;;  %v14146_v39 = vld [vmem:[%s16617_s14 + $0x8] sm:$0xff]   ;;  %s16646_s14 = smov 100  }
 0x17e   : > { %v1242_v59 = vmul.f32 0.03125, %v1234_v57 }
 0x17f   : > { %v1223_v42 = vsub.f32 %v1005_v16, %v1219_v40 }
 0x180   : > { %v1231_v58 = vpop.xlane.xlu0 %1230  ;;  %v1246_v62 = vadd.f32 1e-05, %v1242_v59 }
 0x181   : > { %v1227_v43 = vmul.f32 %v1223_v42, %v1223_v42  ;;  %v1241_v60 = vmul.f32 0.03125, %v1231_v58  ;;  %v1240_v2 = vpop.xlane.xlu1 %1239  ;;  %v12763_v58 = vld [vmem:[%s16626_s19] ss:$0 sm:$0xff]  ;;  %s16649_s19 = smov 4  }
 0x182   : > { %14239 = vrsqrt.f32 %v1246_v62  ;;  %v1244_v9 = vmul.f32 0.03125, %v1240_v2 }
 0x183   : > { %v1235_v45 = vsel %vm1203_vm1, %v1227_v43, 0.0  ;;  %v1245_v63 = vadd.f32 1e-05, %v1241_v60 }
 0x184   : > { %1236 = vadd.xlane.f32.xlu0 %v1235_v45  ;;  %v1248_v13 = vadd.f32 1e-05, %v1244_v9 }
 0x185   : > { %14241 = vrsqrt.f32 %v1245_v63 }
 0x187   : > { %v14238_v49 = vpop.eup %14237 }
 0x188   : > { %v1036_v50 = vmul.f32 %v14238_v49, %v1028_v12  ;;  %v14149_v49 = vld [vmem:[%s16615_s24 + $0x10] sm:$0xff]  }
 0x18a   : > { %v1041_v52 = vmul.f32 %v1040_v48, %v1036_v50  ;;  %v14148_v48 = vld [vmem:[%s16615_s24 + $0x8] sm:$0xff]   ;;  %v14150_v50 = vld [vmem:[%s16615_s24 + $0x18] sm:$0xff]   ;;  %s16653_s24 = smov 20  }
 0x18c   : > { %v1046_v53 = vadd.f32 %v1045_v51, %v1041_v52  ;;  %v14240_v17 = vpop.eup %14239  ;;  %v12760_v51 = vld [vmem:[%s16625_s3] ss:$0 sm:$0xff]  ;;  %s16564_s3 = smov 116  }
 0x18d   : > { %v1254_v23 = vmul.f32 %v14240_v17, %v14691_v19 }
 0x18e   : > { %v1047_v54 = vpack.c.bf16 %v1046_v53, %v1046_v53 }
 0x18f   : > { %v14242_v18 = vpop.eup %14241  ;;  %v1262_v27 = vmul.f32 %v1260_v21, %v1254_v23 }
 0x190   : > { %13359 = vmatmul.mubr.msk.bf16.vlgmr.msra.gmra.mrb[0].mxu0 %vm1078_vm3, %v1047_v54  ;;  %v1253_v22 = vmul.f32 %v14242_v18, %v14688_v14 }
 0x191   : > { %13392 = vmatprep.mubr.msk.bf16.mxu0 %vm14479_vm2, %v14478_v31  ;;  %v1270_v36 = vadd.f32 %v1268_v28, %v1262_v27 }
 0x192   : > { %v1261_v25 = vmul.f32 %v1260_v21, %v1253_v22 }
 0x194   : > { %v1269_v35 = vadd.f32 %v1268_v28, %v1261_v25 }
 0x196   : > { %v1273_v40 = vpack.c.bf16 %v1270_v36, %v1269_v35 }
 0x211   : > { %v1237_v0 = vpop.xlane.xlu0 %1236 }
 0x212   : > { %v1243_v6 = vmul.f32 0.03125, %v1237_v0 }
 0x214   : > { %v1247_v11 = vadd.f32 1e-05, %v1243_v6 }
 0x216   : > { %14243 = vrsqrt.f32 %v1247_v11 }
 0x217   : > { %14245 = vrsqrt.f32 %v1248_v13 }
 0x220   : > { %v14244_v24 = vpop.eup %14243 }
 0x221   : > { %v14246_v29 = vpop.eup %14245  ;;  %v1255_v32 = vmul.f32 %v14244_v24, %v1223_v42 }
 0x222   : > { %v1256_v37 = vmul.f32 %v14246_v29, %v14699_v26 }
 0x223   : > { %v1263_v14 = vmul.f32 %v1260_v21, %v1255_v32 }
 0x224   : > { %v1264_v43 = vmul.f32 %v1260_v21, %v1256_v37 }
 0x225   : > { %v1271_v42 = vadd.f32 %v1268_v28, %v1263_v14 }
 0x226   : > { %v1272_v45 = vadd.f32 %v1268_v28, %v1264_v43 }
 0x228   : > { %v1274_v26 = vpack.c.bf16 %v1272_v45, %v1271_v42 }
 0x263   : > { %v1116_v1 = vpop.f32.mrb[0].mxu0 }
 0x264   : > { %v1117_v3 = vadd.f32 %v12754_v61, %v1116_v1  ;;  %v13360_v4 = vpop.f32.mrb[1].mxu0 }
 0x265   : > { %v1119_v5 = vpop.f32.mrb[2].mxu0 }
 0x266   : > { %v1123_v7 = vmul.f32 0.044715, %v1117_v3  ;;  %v13361_v8 = vpop.f32.mrb[3].mxu0  ;;  %v1122_v33 = vmul.f32 0.5, %v1117_v3 }
 0x268   : > { %v1124_v10 = vmul.f32 %v1123_v7, %v1117_v3 }
 0x26a   : > { %v1125_v12 = vmul.f32 %v1124_v10, %v1117_v3 }
 0x26c   : > { %v1126_v15 = vadd.f32 %v1125_v12, %v1117_v3 }
 0x26e   : > { %v1127_v16 = vmul.f32 0.7978846, %v1126_v15 }
 0x270   : > { %14247 = vtanh.f32 %v1127_v16 }
 0x27a   : > { %v14248_v30 = vpop.eup %14247 }
 0x27b   : > { %v1129_v34 = vadd.f32 1.0, %v14248_v30 }
 0x27d   : > { %v1130_v38 = vmul.f32 %v1129_v34, %v1122_v33 }
 0x27f   : > { %v1131_v19 = vpack.c.bf16 %v1130_v38, %v1130_v38 }
 0x281   : > { %13365 = vmatmul.mubr.msk.bf16.vlgmr.msra.gmra.mrb[0].mxu1 %vm1144_vm4, %v1131_v19 }
 0x282   : > { %13369 = vmatpush3.bf16.msra.mxu1 %v14145_v56  ;;  %13372 = vmatprep.mubr.msk.bf16.mxu1 %vm1203_vm1, %v1273_v40 }
 0x283   : > { %13370 = vmatprep.subr.bf16.mxu1 %v14146_v39 }
 0x286   : > { %13371 = vmatpush3.bf16.msra.mxu1 %v14146_v39 }
 0x287   : > { %13376 = vmatprep.subr.bf16.mxu1 %v14147_v46 }
 0x289   : > { %13373 = vmatmul.mubr.msk.bf16.vlgmr.msra.gmra.mrb[4].mxu1 %vm1203_vm1, %v1274_v26  ;;  %v12768_v26 = vld [vmem:[%s14566_s30] ss:$0 sm:$0xff] }
 0x28a   : > { %13377 = vmatpush3.bf16.msra.mxu1 %v14147_v46 }
 0x28b   : > { %13378 = vmatprep.subr.bf16.mxu1 %v14148_v48 }
 0x28e   : > { %13379 = vmatpush3.bf16.msra.mxu1 %v14148_v48 }
 0x28f   : > { %13380 = vmatprep.subr.bf16.mxu1 %v14149_v49 }
 0x292   : > { %13381 = vmatpush3.bf16.msra.mxu1 %v14149_v49 }
 0x293   : > { %13382 = vmatprep.subr.bf16.mxu1 %v14150_v50 }
 0x296   : > { %13383 = vmatpush3.bf16.msra.mxu1 %v14150_v50 }
 0x297   : > { %13412 = vmatprep.subr.bf16.mxu1 %v14478_v31 }
 0x354   : > { %v1182_v52 = vpop.f32.mrb[0].mxu1 }
 0x355   : > { %v14753_v53 = vadd.f32 %v12760_v51, %v1182_v52  ;;  %v13366_v54 = vpop.f32.mrb[1].mxu1 }
 0x356   : > { %v1185_v55 = vpop.f32.mrb[2].mxu1 }
 0x357   : > { %v13367_v56 = vpop.f32.mrb[3].mxu1  ;;  %v1507_v57 = vsel %vm1506_vm5, %v14753_v53, 0.0 }
 0x358   : > { %1508 = vadd.xlane.f32.xlu0 %v1507_v57 }
 0x35c   : > { %v13374_v59 = vpop.f32.mrb[4].mxu1 }
 0x35d   : > { %v1342_v60 = vadd.f32 %v13374_v59, %v12763_v58  ;;  %v1333_v61 = vpop.f32.mrb[5].mxu1 }
 0x35e   : > { %v1334_v62 = vadd.f32 %v12763_v58, %v1333_v61  ;;  %v13375_v63 = vpop.f32.mrb[6].mxu1 }
 0x35f   : > { %v1354_v0 = vmul.f32 0.044715, %v1342_v60  ;;  %v1345_v1 = vadd.f32 %v13375_v63, %v12763_v58  ;;  %v1336_v2 = vpop.f32.mrb[7].mxu1  ;;  %v1350_v33 = vmul.f32 0.5, %v1342_v60 }
 0x360   : > { %v1352_v3 = vmul.f32 0.044715, %v1334_v62  ;;  %v1337_v4 = vadd.f32 %v12763_v58, %v1336_v2  ;;  %v1348_v36 = vmul.f32 0.5, %v1334_v62 }
 0x361   : > { %v1358_v5 = vmul.f32 %v1354_v0, %v1342_v60  ;;  %v1355_v6 = vmul.f32 0.044715, %v1345_v1  ;;  %v1351_v34 = vmul.f32 0.5, %v1345_v1  ;;  %v14151_v0 = vld [vmem:[%s16618_s12] sm:$0xff]  }
 0x362   : > { %v1356_v7 = vmul.f32 %v1352_v3, %v1334_v62  ;;  %v1353_v8 = vmul.f32 0.044715, %v1337_v4  ;;  %v1349_v37 = vmul.f32 0.5, %v1337_v4  ;;  %13389 = vmatpush3.bf16.msra.mxu0 %v14151_v0 }
 0x363   : > { %v1362_v9 = vmul.f32 %v1358_v5, %v1342_v60  ;;  %v1359_v10 = vmul.f32 %v1355_v6, %v1345_v1  ;;  %13390 = vmatprep.subr.bf16.mxu0 %v14478_v31 }
 0x364   : > { %v1360_v11 = vmul.f32 %v1356_v7, %v1334_v62  ;;  %v1357_v12 = vmul.f32 %v1353_v8, %v1337_v4 }
 0x365   : > { %v1366_v13 = vadd.f32 %v1362_v9, %v1342_v60  ;;  %v1363_v15 = vmul.f32 %v1359_v10, %v1345_v1 }
 0x366   : > { %v1364_v16 = vadd.f32 %v1360_v11, %v1334_v62  ;;  %v1361_v17 = vmul.f32 %v1357_v12, %v1337_v4 }
 0x367   : > { %v1370_v18 = vmul.f32 0.7978846, %v1366_v13  ;;  %v1367_v20 = vadd.f32 %v1363_v15, %v1345_v1  ;;  %v14152_v1 = vld [vmem:[%s16618_s12 + $0x8] sm:$0xff]   ;;  %s16645_s12 = smov 112  }
 0x368   : > { %v1368_v21 = vmul.f32 0.7978846, %v1364_v16  ;;  %v1365_v22 = vadd.f32 %v1361_v17, %v1337_v4  ;;  %13391 = vmatpush3.bf16.msra.mxu0 %v14152_v1 }
 0x369   : > { %14249 = vtanh.f32 %v1370_v18  ;;  %v1371_v23 = vmul.f32 0.7978846, %v1367_v20  ;;  %13396 = vmatprep.subr.bf16.mxu0 %v14478_v31 }
 0x36a   : > { %14251 = vtanh.f32 %v1368_v21  ;;  %v1369_v24 = vmul.f32 0.7978846, %v1365_v22 }
 0x36b   : > { %14253 = vtanh.f32 %v1371_v23 }
 0x36c   : > { %14255 = vtanh.f32 %v1369_v24 }
 0x373   : > { %v14250_v25 = vpop.eup %14249 }
 0x374   : > { %v14252_v27 = vpop.eup %14251  ;;  %v1378_v28 = vadd.f32 1.0, %v14250_v25 }
 0x375   : > { %v14254_v29 = vpop.eup %14253  ;;  %v1376_v30 = vadd.f32 1.0, %v14252_v27 }
 0x376   : > { %v14256_v32 = vpop.eup %14255  ;;  %v1379_v35 = vadd.f32 1.0, %v14254_v29  ;;  %v1382_v14 = vmul.f32 %v1378_v28, %v1350_v33  ;;  %v14782_v28 = vld [vmem:[%s16619_s6] sm:$0xff] }
 0x377   : > { %v1377_v38 = vadd.f32 1.0, %v14256_v32  ;;  %v1380_v39 = vmul.f32 %v1376_v30, %v1348_v36  ;;  %v1523_v29 = vrot.slane %v14782_v28, %v14722_v44  ;;  %v1528_v33 = vrot.slane %v14782_v28, %v14727_v47 }
 0x378   : > { %v1383_v19 = vmul.f32 %v1379_v35, %v1351_v34 }
 0x379   : > { %v1381_v40 = vmul.f32 %v1377_v38, %v1349_v37  ;;  %v14153_v37 = vld [vmem:[%s16627_s11] sm:$0xff]   ;;  %v14154_v38 = vld [vmem:[%s16627_s11 + $0x8] sm:$0xff]   ;;  %s16644_s11 = smov 108  }
 0x37a   : > { %v1385_v43 = vpack.c.bf16 %v1383_v19, %v1382_v14 }
 0x37b   : > { %v1384_v42 = vpack.c.bf16 %v1381_v40, %v1380_v39 }
 0x37d   : > { %13384 = vmatprep.mubr.msk.bf16.mxu1 %vm1078_vm3, %v1384_v42 }
 0x37e   : > { %13385 = vmatmul.mubr.msk.bf16.vlgmr.msra.gmra.mrb[8].mxu1 %vm1078_vm3, %v1385_v43 }
 0x37f   : > { %13418 = vmatprep.mubr.msk.bf16.mxu1 %vm14479_vm2, %v14478_v31 }
 0x3e5   : > { %v1509_v45 = vpop.xlane.xlu0 %1508 }
 0x3e6   : > { %v1510_v46 = vmul.f32 0.03125, %v1509_v45 }
 0x3e8   : > { %v1511_v54 = vsub.f32 %v14753_v53, %v1510_v46 }
 0x3ea   : > { %v1512_v61 = vmul.f32 %v1511_v54, %v1511_v54 }
 0x3ec   : > { %v1513_v63 = vsel %vm1506_vm5, %v1512_v61, 0.0 }
 0x451   : > { %v13386_v48 = vpop.f32.mrb[8].mxu1 }
 0x452   : > { %v1456_v49 = vpop.f32.mrb[9].mxu1  ;;  %v1465_v55 = vadd.f32 %v13386_v48, %v12768_v26 }
 0x453   : > { %v1457_v50 = vadd.f32 %v12768_v26, %v1456_v49  ;;  %v13387_v51 = vpop.f32.mrb[10].mxu1 }
 0x454   : > { %v1459_v52 = vpop.f32.mrb[11].mxu1  ;;  %v1468_v58 = vadd.f32 %v13387_v51, %v12768_v26  ;;  %v1536_v60 = vsel %vm1203_vm1, %v1465_v55, 0.0  ;;  %v14796_v51 = vsub.s32 2, %v14719_v41 }
 0x455   : > { %v1460_v56 = vadd.f32 %v12768_v26, %v1459_v52  ;;  %v1530_v57 = vsel %vm1203_vm1, %v1457_v50, 0.0 }
 0x456   : > { %1531 = vadd.xlane.f32.xlu1 %v1530_v57  ;;  %v1539_v62 = vsel %vm1203_vm1, %v1468_v58, 0.0 }
 0x457   : > { %v1533_v59 = vsel %vm1203_vm1, %v1460_v56, 0.0 }
 0x458   : > { %1534 = vadd.xlane.f32.xlu0 %v1533_v59 }
 0x45a   : > { %1537 = vadd.xlane.f32.xlu1 %v1536_v60 }
 0x45c   : > { %1540 = vadd.xlane.f32.xlu0 %v1539_v62 }
 0x45e   : > { %1514 = vadd.xlane.f32.xlu1 %v1513_v63 }
 0x4e3   : > { %v1532_v2 = vpop.xlane.xlu1 %1531 }
 0x4e4   : > { %v1542_v3 = vmul.f32 0.03125, %v1532_v2 }
 0x4e5   : > { %v1535_v4 = vpop.xlane.xlu0 %1534 }
 0x4e6   : > { %v1546_v5 = vsub.f32 %v1457_v50, %v1542_v3  ;;  %v1543_v6 = vmul.f32 0.03125, %v1535_v4 }
 0x4e7   : > { %v1538_v7 = vpop.xlane.xlu1 %1537 }
 0x4e8   : > { %v1547_v8 = vsub.f32 %v1460_v56, %v1543_v6  ;;  %v1544_v9 = vmul.f32 0.03125, %v1538_v7  ;;  %v1550_v10 = vmul.f32 %v1546_v5, %v1546_v5  ;;  %v14801_v56 = vsub.s32 3, %v14719_v41 }
 0x4e9   : > { %v1541_v11 = vpop.xlane.xlu0 %1540 }
 0x4ea   : > { %v14773_v12 = vsub.f32 %v1465_v55, %v1544_v9  ;;  %v1545_v13 = vmul.f32 0.03125, %v1541_v11  ;;  %v1554_v15 = vsel %vm1203_vm1, %v1550_v10, 0.0  ;;  %v1551_v16 = vmul.f32 %v1547_v8, %v1547_v8 }
 0x4eb   : > { %1555 = vadd.xlane.f32.xlu0 %v1554_v15  ;;  %v1515_v17 = vpop.xlane.xlu1 %1514  ;;  %v1594_v62 = vrot.slane %v14782_v28, %v14801_v56 }
 0x4ec   : > { %v1549_v18 = vsub.f32 %v1468_v58, %v1545_v13  ;;  %v1516_v20 = vmul.f32 0.03125, %v1515_v17  ;;  %v1557_v21 = vsel %vm1203_vm1, %v1551_v16, 0.0  ;;  %v1552_v22 = vmul.f32 %v14773_v12, %v14773_v12 }
 0x4ed   : > { %1558 = vadd.xlane.f32.xlu1 %v1557_v21 }
 0x4ee   : > { %v1517_v23 = vadd.f32 1e-05, %v1516_v20  ;;  %v1560_v24 = vsel %vm1203_vm1, %v1552_v22, 0.0  ;;  %v1553_v25 = vmul.f32 %v1549_v18, %v1549_v18 }
 0x4ef   : > { %1561 = vadd.xlane.f32.xlu0 %v1560_v24 }
 0x4f0   : > { %14257 = vrsqrt.f32 %v1517_v23  ;;  %v1563_v27 = vsel %vm1203_vm1, %v1553_v25, 0.0 }
 0x4f1   : > { %1564 = vadd.xlane.f32.xlu1 %v1563_v27 }
 0x4fa   : > { %v14258_v30 = vpop.eup %14257 }
 0x4fb   : > { %v1519_v32 = vmul.f32 %v14258_v30, %v1511_v54  ;;  %v1585_v54 = vrot.slane %v14782_v28, %v14796_v51 }
 0x4fd   : > { %v1524_v34 = vmul.f32 %v1523_v29, %v1519_v32  ;;  %v1590_v10 = vmul.f32 %v1585_v54, %v1519_v32 }
 0x4ff   : > { %v1529_v35 = vadd.f32 %v1528_v33, %v1524_v34  ;;  %v1599_v11 = vadd.f32 %v1594_v62, %v1590_v10 }
 0x501   : > { %v1600_v36 = vpack.c.bf16 %v1529_v35, %v1529_v35 }
 0x503   : > { %13393 = vmatmul.mubr.msk.bf16.vlgmr.msra.gmra.mrb[4].mxu0 %vm1203_vm1, %v1600_v36 }
 0x504   : > { %13400 = vmatprep.mubr.msk.bf16.mxu0 %vm14479_vm2, %v14478_v31  ;;  %13397 = vmatpush3.bf16.msra.mxu0 %v14153_v37 }
 0x505   : > { %13398 = vmatprep.subr.bf16.mxu0 %v14478_v31 }
 0x508   : > { %13399 = vmatpush3.bf16.msra.mxu0 %v14154_v38 }
 0x509   : > { %13422 = vmatprep.subr.bf16.mxu0 %v14478_v31 }
 0x578   : > { %v1556_v14 = vpop.xlane.xlu0 %1555 }
 0x579   : > { %v1566_v19 = vmul.f32 0.03125, %v1556_v14  ;;  %v14821_v14 = vld [vmem:[%s16628_s15] sm:$0xf] }
 0x57a   : > { %v1559_v39 = vpop.xlane.xlu1 %1558 }
 0x57b   : > { %v1570_v40 = vadd.f32 1e-05, %v1566_v19  ;;  %v1567_v43 = vmul.f32 0.03125, %v1559_v39 }
 0x57c   : > { %v1562_v42 = vpop.xlane.xlu0 %1561 }
 0x57d   : > { %14259 = vrsqrt.f32 %v1570_v40  ;;  %v1571_v45 = vadd.f32 1e-05, %v1567_v43  ;;  %v1568_v26 = vmul.f32 0.03125, %v1562_v42 }
 0x57e   : > { %v1565_v46 = vpop.xlane.xlu1 %1564 }
 0x57f   : > { %14261 = vrsqrt.f32 %v1571_v45  ;;  %v1572_v48 = vadd.f32 1e-05, %v1568_v26  ;;  %v1569_v49 = vmul.f32 0.03125, %v1565_v46 }
 0x581   : > { %14263 = vrsqrt.f32 %v1572_v48  ;;  %v1573_v50 = vadd.f32 1e-05, %v1569_v49 }
 0x583   : > { %14265 = vrsqrt.f32 %v1573_v50 }
 0x587   : > { %v14260_v52 = vpop.eup %14259 }
 0x588   : > { %v1578_v55 = vmul.f32 %v14260_v52, %v1546_v5 }
 0x589   : > { %v14262_v57 = vpop.eup %14261 }
 0x58a   : > { %v1586_v58 = vmul.f32 %v1585_v54, %v1578_v55  ;;  %v1579_v59 = vmul.f32 %v14262_v57, %v1547_v8 }
 0x58b   : > { %v14264_v60 = vpop.eup %14263 }
 0x58c   : > { %v1587_v61 = vmul.f32 %v1585_v54, %v1579_v59  ;;  %v1595_v0 = vadd.f32 %v1594_v62, %v1586_v58  ;;  %v1580_v2 = vmul.f32 %v14264_v60, %v14773_v12  ;;  %v1658_v12 = vpack.c.bf16 %v1599_v11, %v1599_v11  ;;  %v14155_v59 = vld [vmem:[%s16629_s18] sm:$0xff]  }
 0x58d   : > { %v14266_v63 = vpop.eup %14265 }
 0x58e   : > { %v1596_v1 = vadd.f32 %v1594_v62, %v1587_v61  ;;  %v1581_v3 = vmul.f32 %v14266_v63, %v1549_v18  ;;  %v1588_v5 = vmul.f32 %v1585_v54, %v1580_v2  ;;  %v14156_v2 = vld [vmem:[%s16629_s18 + $0x8] sm:$0xff]   ;;  %s16648_s18 = smov 8  }
 0x590   : > { %v1656_v4 = vpack.c.bf16 %v1596_v1, %v1595_v0  ;;  %v1589_v6 = vmul.f32 %v1585_v54, %v1581_v3  ;;  %v1597_v8 = vadd.f32 %v1594_v62, %v1588_v5 }
 0x592   : > { %13401 = vmatmul.mubr.msk.bf16.vlgmr.msra.gmra.mrb[8].mxu0 %vm1203_vm1, %v1656_v4  ;;  %v1598_v7 = vadd.f32 %v1594_v62, %v1589_v6 }
 0x593   : > { %13404 = vmatprep.mubr.msk.bf16.mxu0 %vm14479_vm2, %v14478_v31 }
 0x594   : > { %v1657_v9 = vpack.c.bf16 %v1598_v7, %v1597_v8  ;;  %v14847_v8 = vsub.s32 4, %v14719_v41 }
 0x596   : > { %v1869_v10 = vrot.slane %v14782_v28, %v14847_v8 }
 0x59a   : > { %13405 = vmatmul.mubr.msk.bf16.gmra.mrb[12].mxu0 %vm1203_vm1, %v1657_v9  ;;  %v14850_v9 = vsub.s32 5, %v14719_v41 }
 0x59b   : > { %13408 = vmatprep.mubr.msk.bf16.mxu0 %vm14479_vm2, %v14478_v31 }
 0x59c   : > { %v1928_v11 = vrot.slane %v14782_v28, %v14850_v9 }
 0x5a2   : > { %13409 = vmatmul.mubr.msk.bf16.gmra.mrb[16].mxu0 %vm1203_vm1, %v1658_v12 }
 0x5a3   : > { %13428 = vmatprep.mubr.msk.bf16.mxu0 %vm14479_vm2, %v14478_v31 }
 0x5d6   : > { %v1650_v13 = vpop.f32.mrb[4].mxu0 }
 0x5d7   : > { %v13394_v15 = vpop.f32.mrb[5].mxu0  ;;  %v1651_v39 = vadd.f32 %v1650_v13, %v14821_v14 }
 0x5d8   : > { %v1653_v16 = vpop.f32.mrb[6].mxu0 }
 0x5d9   : > { %v13395_v17 = vpop.f32.mrb[7].mxu0  ;;  %v1736_v40 = vpack.c.bf16 %v1651_v39, %v1651_v39 }
 0x665   : > { %v1714_v18 = vpop.f32.mrb[8].mxu0 }
 0x666   : > { %v13402_v20 = vpop.f32.mrb[9].mxu0 }
 0x667   : > { %v1717_v21 = vpop.f32.mrb[10].mxu0 }
 0x668   : > { %v1737_v22 = vpack.c.bf16 %v1717_v21, %v1714_v18  ;;  %v13403_v23 = vpop.f32.mrb[11].mxu0 }
 0x66a   : > { %v1744_v24 = vsel %vm1203_vm1, %v1737_v22, 0 }
 0x66b   : > { %13413 = vmatpush3.bf16.xpose.msra.mxu1 %v1744_v24 }
 0x66c   : > { %13414 = vmatprep.subr.bf16.mxu1 %v14478_v31 }
 0x66d   : > { %v1722_v25 = vpop.f32.mrb[12].mxu0 }
 0x66e   : > { %v13406_v27 = vpop.f32.mrb[13].mxu0 }
 0x66f   : > { %v1725_v29 = vpop.f32.mrb[14].mxu0 }
 0x670   : > { %v1738_v30 = vpack.c.bf16 %v1725_v29, %v1722_v25  ;;  %v13407_v32 = vpop.f32.mrb[15].mxu0  ;;  %v14157_v29 = vld [vmem:[%s16630_s22] sm:$0xff]  }
 0x672   : > { %v1747_v33 = vsel %vm1203_vm1, %v1738_v30, 0  ;;  %1811 = vrot.lane.b32.xlu1 %v1738_v30, %s16549_s16  ;;  %v14158_v30 = vld [vmem:[%s16630_s22 + $0x8] sm:$0xff]   ;;  %s16651_s22 = smov 16  }
 0x673   : > { %13415 = vmatpush3.bf16.xpose.msra.mxu1 %v1747_v33 }
 0x674   : > { %13416 = vmatprep.subr.bf16.mxu1 %v14478_v31 }
 0x675   : > { %v1730_v34 = vpop.f32.mrb[16].mxu0 }
 0x676   : > { %v1739_v35 = vpack.c.bf16 %v1730_v34, %v1730_v34  ;;  %v13410_v36 = vpop.f32.mrb[17].mxu0 }
 0x677   : > { %v1733_v37 = vpop.f32.mrb[18].mxu0  ;;  %v14873_v36 = vsub.s32 7, %v14719_v41 }
 0x678   : > { %v13411_v38 = vpop.f32.mrb[19].mxu0  ;;  %v1750_v19 = vsel %vm1203_vm1, %v1739_v35, 0 }
 0x679   : > { %v1952_v39 = vrot.slane %v14782_v28, %v14873_v36 }
 0x67b   : > { %13417 = vmatpush3.bf16.xpose.msra.mxu1 %v1750_v19 }
 0x67c   : > { %13432 = vmatprep.subr.bf16.mxu1 %v14478_v31 }
 0x682   : > { %13419 = vmatmul.mubr.msk.bf16.vlgmr.msra.gmra.mrb[12].mxu1 %vm1203_vm1, %v1736_v40 }
 0x683   : > { %13436 = vmatprep.mubr.msk.bf16.mxu1 %vm14479_vm2, %v14478_v31  ;;  %13433 = vmatpush3.bf16.msra.mxu1 %v14155_v59 }
 0x684   : > { %13434 = vmatprep.subr.bf16.mxu1 %v14478_v31 }
 0x687   : > { %13435 = vmatpush3.bf16.msra.mxu1 %v14156_v2 }
 0x688   : > { %13448 = vmatprep.subr.bf16.mxu1 %v14478_v31 }
 0x6e4   : > { %v1812_v55 = vpop.permute.xlu1 %1811 }
 0x755   : > { %v1786_v43 = vpop.f32.mrb[12].mxu1 }
 0x756   : > { %v1792_v42 = vmul.f32 0.17677669, %v1786_v43  ;;  %v13420_v45 = vpop.f32.mrb[13].mxu1 }
 0x757   : > { %v1789_v26 = vpop.f32.mrb[14].mxu1  ;;  %v14160_v45 = vld [vmem:[%s16631_s23 + $0x8] sm:$0xff]  }
 0x758   : > { %v13421_v46 = vpop.f32.mrb[15].mxu1  ;;  %v1794_v48 = vsel %vm1793_vm6, %v1792_v42, -inf  ;;  %v14161_v26 = vld [vmem:[%s16631_s23 + $0x10] sm:$0xff]  }
 0x759   : > { %1795 = vmax.xlane.f32.xlu0 %v1794_v48  ;;  %v14163_v46 = vld [vmem:[%s16631_s23 + $0x20] sm:$0xff]   ;;  %v14164_v48 = vld [vmem:[%s16631_s23 + $0x28] sm:$0xff]  }
 0x76f   : > { %1809 = vrot.lane.b32.xlu0 %v1737_v22, %s16549_s16 }
 0x7e6   : > { %v1796_v49 = vpop.xlane.xlu0 %1795 }
 0x7e7   : > { %v1797_v50 = vsub.f32 %v1792_v42, %v1796_v49  ;;  %v14165_v49 = vld [vmem:[%s16631_s23 + $0x30] sm:$0xff]  }
 0x7e9   : > { %v1798_v52 = vmul.f32 1.442695, %v1797_v50  ;;  %v14166_v50 = vld [vmem:[%s16631_s23 + $0x38] sm:$0xff]  }
 0x7ea   : > { %v1810_v54 = vpop.permute.xlu0 %1809 }
 0x7eb   : > { %14267 = vpow2.f32 %v1798_v52  ;;  %13423 = vmatpush3.bf16.msra.mxu0 %v1810_v54  ;;  %v12788_v52 = vld [vmem:[%s16632_s26] ss:$0 sm:$0xff]  ;;  %s16551_s26 = smov 120  }
 0x7ec   : > { %13424 = vmatprep.subr.bf16.mxu0 %v14478_v31 }
 0x7ef   : > { %13425 = vmatpush3.bf16.msra.mxu0 %v1812_v55 }
 0x7f0   : > { %13426 = vmatprep.subr.bf16.mxu0 %v14478_v31 }
 0x7f5   : > { %v14268_v57 = vpop.eup %14267 }
 0x7f6   : > { %v1800_v58 = vsel %vm1793_vm6, %v14268_v57, 0.0 }
 0x7f7   : > { %1801 = vadd.xlane.f32.xlu1 %v1800_v58 }
 0x808   : > { %1813 = vrot.lane.b32.xlu1 %v1739_v35, %s16549_s16  ;;  %v14870_v35 = vsub.s32 6, %v14719_v41  ;;  %s16556_s16 = smov 104  }
 0x80a   : > { %v1947_v37 = vrot.slane %v14782_v28, %v14870_v35  ;;  %v14162_v28 = vld [vmem:[%s16631_s23 + $0x18] sm:$0xff]  }
 0x884   : > { %v1802_v60 = vpop.xlane.xlu1 %1801 }
 0x885   : > { %14269 = vrcp.f32 %v1802_v60 }
 0x888   : > { %v1814_v61 = vpop.permute.xlu1 %1813 }
 0x889   : > { %v1823_v62 = vsel %vm1821_vm7, %v1814_v61, 0 }
 0x88a   : > { %13427 = vmatpush3.bf16.msra.mxu0 %v1823_v62 }
 0x88b   : > { %13440 = vmatprep.subr.bf16.mxu0 %v14478_v31 }
 0x88f   : > { %v14270_v63 = vpop.eup %14269 }
 0x890   : > { %v1804_v0 = vmul.f32 %v14270_v63, %v14268_v57 }
 0x892   : > { %v1805_v1 = vpack.c.bf16 %v1804_v0, %v1804_v0 }
 0x894   : > { %13429 = vmatmul.mubr.msk.bf16.vlgmr.msra.gmra.mrb[20].mxu0 %vm1817_vm8, %v1805_v1 }
 0x895   : > { %13444 = vmatprep.mubr.msk.bf16.mxu0 %vm14479_vm2, %v14478_v31  ;;  %13441 = vmatpush3.bf16.msra.mxu0 %v14157_v29  ;;  %v14167_v29 = vld [vmem:[%s16633_s2] sm:$0xff]  }
 0x896   : > { %13442 = vmatprep.subr.bf16.mxu0 %v14478_v31 }
 0x899   : > { %13443 = vmatpush3.bf16.msra.mxu0 %v14158_v30  ;;  %v14168_v30 = vld [vmem:[%s16633_s2 + $0x8] sm:$0xff]  }
 0x89a   : > { %13468 = vmatprep.subr.bf16.mxu0 %v14478_v31 }
 0x967   : > { %v1859_v3 = vpop.f32.mrb[20].mxu0 }
 0x968   : > { %v1865_v4 = vpack.c.bf16 %v1859_v3, %v1859_v3  ;;  %v13430_v6 = vpop.f32.mrb[21].mxu0 }
 0x969   : > { %v1862_v5 = vpop.f32.mrb[22].mxu0 }
 0x96a   : > { %v13431_v7 = vpop.f32.mrb[23].mxu0  ;;  %13437 = vmatmul.mubr.msk.bf16.vlgmr.msra.gmra.mrb[16].mxu1 %vm1203_vm1, %v1865_v4  ;;  %v1472_v5 = vld [vmem:[%s16619_s6 + $0x8] sm:$0x3]  ;;  %s16558_s6 = smov 100  }
 0x96b   : > { %13464 = vmatprep.mubr.msk.bf16.mxu1 %vm14479_vm2, %v14478_v31  ;;  %v2029_v7 = vrot.slane %v1472_v5, %v14722_v44 }
 0xa3d   : > { %v1919_v12 = vpop.f32.mrb[16].mxu1 }
 0xa3e   : > { %v1920_v13 = vadd.f32 %v1919_v12, %v1869_v10  ;;  %v13438_v15 = vpop.f32.mrb[17].mxu1  ;;  %v2121_v10 = vrot.slane %v1472_v5, %v14727_v47 }
 0xa3f   : > { %v1922_v16 = vpop.f32.mrb[18].mxu1 }
 0xa40   : > { %v1929_v17 = vmul.f32 %v1928_v11, %v1920_v13  ;;  %v13439_v18 = vpop.f32.mrb[19].mxu1 }
 0xa42   : > { %v14857_v20 = vadd.f32 %v1929_v17, %v14753_v53  ;;  %v14159_v53 = vld [vmem:[%s16631_s23] sm:$0xff]   ;;  %s16652_s23 = smov 28  }
 0xa43   : > { %13449 = vmatpush3.bf16.msra.mxu1 %v14159_v53 }
 0xa44   : > { %v1931_v21 = vsel %vm1506_vm5, %v14857_v20, 0.0  ;;  %13450 = vmatprep.subr.bf16.mxu1 %v14478_v31 }
 0xa45   : > { %1932 = vadd.xlane.f32.xlu1 %v1931_v21 }
 0xa47   : > { %13451 = vmatpush3.bf16.msra.mxu1 %v14160_v45 }
 0xa48   : > { %13452 = vmatprep.subr.bf16.mxu1 %v14478_v31 }
 0xa4b   : > { %13453 = vmatpush3.bf16.msra.mxu1 %v14161_v26 }
 0xa4c   : > { %13454 = vmatprep.subr.bf16.mxu1 %v14478_v31 }
 0xa4f   : > { %13455 = vmatpush3.bf16.msra.mxu1 %v14162_v28 }
 0xa50   : > { %13456 = vmatprep.subr.bf16.mxu1 %v14478_v31 }
 0xa53   : > { %13457 = vmatpush3.bf16.msra.mxu1 %v14163_v46  ;;  %v14170_v46 = vld [vmem:[%s16635_s10 + $0x8] sm:$0xff]  }
 0xa54   : > { %13458 = vmatprep.subr.bf16.mxu1 %v14478_v31 }
 0xa57   : > { %13459 = vmatpush3.bf16.msra.mxu1 %v14164_v48 }
 0xa58   : > { %13460 = vmatprep.subr.bf16.mxu1 %v14478_v31 }
 0xa5b   : > { %13461 = vmatpush3.bf16.msra.mxu1 %v14165_v49 }
 0xa5c   : > { %13462 = vmatprep.subr.bf16.mxu1 %v14478_v31 }
 0xa5f   : > { %13463 = vmatpush3.bf16.msra.mxu1 %v14166_v50 }
 0xa60   : > { %13496 = vmatprep.subr.bf16.mxu1 %v14478_v31 }
 0xad2   : > { %v1933_v22 = vpop.xlane.xlu1 %1932 }
 0xad3   : > { %v1934_v23 = vmul.f32 0.03125, %v1933_v22 }
 0xad5   : > { %v1935_v24 = vsub.f32 %v14857_v20, %v1934_v23 }
 0xad7   : > { %v1936_v25 = vmul.f32 %v1935_v24, %v1935_v24 }
 0xad9   : > { %v1937_v27 = vsel %vm1506_vm5, %v1936_v25, 0.0 }
 0xada   : > { %1938 = vadd.xlane.f32.xlu0 %v1937_v27 }
 0xb67   : > { %v1939_v32 = vpop.xlane.xlu0 %1938 }
 0xb68   : > { %v1940_v33 = vmul.f32 0.03125, %v1939_v32 }
 0xb6a   : > { %v1941_v34 = vadd.f32 1e-05, %v1940_v33  ;;  %v2124_v33 = vld [vmem:[%s16634_s7] sm:$0xff] }
 0xb6b   : > { %v2190_v28 = vrot.slane %v2124_v33, %v14801_v56 }
 0xb6c   : > { %14271 = vrsqrt.f32 %v1941_v34  ;;  %v2175_v34 = vrot.slane %v2124_v33, %v14722_v44 }
 0xb76   : > { %v14272_v38 = vpop.eup %14271 }
 0xb77   : > { %v1943_v19 = vmul.f32 %v14272_v38, %v1935_v24 }
 0xb79   : > { %v1948_v40 = vmul.f32 %v1947_v37, %v1943_v19  ;;  %v2180_v19 = vrot.slane %v2124_v33, %v14727_v47 }
 0xb7b   : > { %v1953_v43 = vadd.f32 %v1952_v39, %v1948_v40  ;;  %v2185_v40 = vrot.slane %v2124_v33, %v14796_v51 }
 0xb7d   : > { %v1954_v42 = vpack.c.bf16 %v1953_v43, %v1953_v43 }
 0xb7f   : > { %13445 = vmatmul.mubr.msk.bf16.vlgmr.msra.gmra.mrb[24].mxu0 %vm1203_vm1, %v1954_v42  ;;  %v14169_v42 = vld [vmem:[%s16635_s10] sm:$0xff]  }
 0xb80   : > { %13472 = vmatprep.mubr.msk.bf16.mxu0 %vm14479_vm2, %v14478_v31  ;;  %13469 = vmatpush3.bf16.msra.mxu0 %v14167_v29 }
 0xb81   : > { %13470 = vmatprep.subr.bf16.mxu0 %v14478_v31 }
 0xb84   : > { %13471 = vmatpush3.bf16.msra.mxu0 %v14168_v30 }
 0xb85   : > { %13476 = vmatprep.subr.bf16.mxu0 %v14478_v31 }
 0xc52   : > { %v2010_v54 = vpop.f32.mrb[24].mxu0 }
 0xc53   : > { %v2011_v55 = vadd.f32 %v12788_v52, %v2010_v54  ;;  %v13446_v57 = vpop.f32.mrb[25].mxu0 }
 0xc54   : > { %v2013_v58 = vpop.f32.mrb[26].mxu0 }
 0xc55   : > { %v2017_v59 = vmul.f32 0.044715, %v2011_v55  ;;  %v13447_v60 = vpop.f32.mrb[27].mxu0  ;;  %v2016_v2 = vmul.f32 0.5, %v2011_v55 }
 0xc57   : > { %v2018_v61 = vmul.f32 %v2017_v59, %v2011_v55 }
 0xc59   : > { %v2019_v62 = vmul.f32 %v2018_v61, %v2011_v55 }
 0xc5b   : > { %v2020_v63 = vadd.f32 %v2019_v62, %v2011_v55 }
 0xc5d   : > { %v2021_v0 = vmul.f32 0.7978846, %v2020_v63 }
 0xc5f   : > { %14273 = vtanh.f32 %v2021_v0 }
 0xc69   : > { %v14274_v1 = vpop.eup %14273 }
 0xc6a   : > { %v2023_v3 = vadd.f32 1.0, %v14274_v1 }
 0xc6c   : > { %v2024_v4 = vmul.f32 %v2023_v3, %v2016_v2 }
 0xc6e   : > { %v2025_v6 = vpack.c.bf16 %v2024_v4, %v2024_v4  ;;  %v14489_v4 = vmov 1934713408  }
 0xc70   : > { %13465 = vmatmul.mubr.bf16.vlgmr.msra.gmra.mrb[20].mxu1 %v2025_v6  ;;  %v2361_v6 = vunpack.c.l.s4 %v14489_v4 }
 0xc71   : > { %13498 = vmatprep.mubr.msk.bf16.mxu1 %vm14479_vm2, %v14478_v31 }
 0xd43   : > { %v2112_v11 = vpop.f32.mrb[20].mxu1 }
 0xd44   : > { %v2113_v12 = vadd.f32 %v2112_v11, %v2029_v7  ;;  %v13466_v13 = vpop.f32.mrb[21].mxu1 }
 0xd45   : > { %v2115_v15 = vpop.f32.mrb[22].mxu1  ;;  %v2362_v13 = vunpack.c.0.s8 %v2361_v6 }
 0xd46   : > { %v2122_v16 = vmul.f32 %v2121_v10, %v2113_v12  ;;  %v13467_v17 = vpop.f32.mrb[23].mxu1 }
 0xd48   : > { %v14903_v18 = vadd.f32 %v2122_v16, %v14857_v20 }
 0xd4a   : > { %v2159_v21 = vsel %vm1506_vm5, %v14903_v18, 0.0 }
 0xd4b   : > { %2160 = vadd.xlane.f32.xlu0 %v2159_v21 }
 0xdd8   : > { %v2161_v22 = vpop.xlane.xlu0 %2160 }
 0xdd9   : > { %v2162_v23 = vmul.f32 0.03125, %v2161_v22 }
 0xddb   : > { %v2163_v24 = vsub.f32 %v14903_v18, %v2162_v23  ;;  %v14974_v23 = vsub.s32 %v2362_v13, %v14719_v41 }
 0xddd   : > { %v2164_v25 = vmul.f32 %v2163_v24, %v2163_v24 }
 0xddf   : > { %v2165_v27 = vsel %vm1506_vm5, %v2164_v25, 0.0 }
 0xde0   : > { %2166 = vadd.xlane.f32.xlu0 %v2165_v27 }
 0xe6d   : > { %v2167_v20 = vpop.xlane.xlu0 %2166 }
 0xe6e   : > { %v2168_v53 = vmul.f32 0.03125, %v2167_v20 }
 0xe70   : > { %v2169_v32 = vadd.f32 1e-05, %v2168_v53 }
 0xe72   : > { %14275 = vrsqrt.f32 %v2169_v32 }
 0xe7c   : > { %v14276_v37 = vpop.eup %14275 }
 0xe7d   : > { %v2171_v38 = vmul.f32 %v14276_v37, %v2163_v24 }
 0xe7f   : > { %v2176_v39 = vmul.f32 %v2175_v34, %v2171_v38  ;;  %v2186_v26 = vmul.f32 %v2185_v40, %v2171_v38 }
 0xe81   : > { %v2181_v43 = vadd.f32 %v2180_v19, %v2176_v39  ;;  %v2191_v48 = vadd.f32 %v2190_v28, %v2186_v26 }
 0xe83   : > { %v2192_v45 = vpack.c.bf16 %v2181_v43, %v2181_v43  ;;  %v2248_v49 = vpack.c.bf16 %v2191_v48, %v2191_v48 }
 0xe85   : > { %13473 = vmatmul.mubr.msk.bf16.vlgmr.msra.gmra.mrb[28].mxu0 %vm1203_vm1, %v2192_v45 }
 0xe86   : > { %13477 = vmatpush3.bf16.msra.mxu0 %v14169_v42  ;;  %13480 = vmatprep.mubr.msk.bf16.mxu0 %vm14479_vm2, %v14478_v31 }
 0xe87   : > { %13478 = vmatprep.subr.bf16.mxu0 %v14478_v31 }
 0xe8a   : > { %13479 = vmatpush3.bf16.msra.mxu0 %v14170_v46 }
 0xe8b   : > { %13484 = vmatprep.subr.bf16.mxu0 %v14478_v31 }
 0xe8d   : > { %13481 = vmatmul.mubr.msk.bf16.vlgmr.msra.gmra.mrb[32].mxu0 %vm1203_vm1, %v2248_v49 }
 0xe8e   : > { %13486 = vmatprep.mubr.msk.bf16.mxu0 %vm14479_vm2, %v14478_v31 }
 0xf58   : > { %v2242_v50 = vpop.f32.mrb[28].mxu0 }
 0xf59   : > { %v13474_v52 = vpop.f32.mrb[29].mxu0  ;;  %v14939_v61 = vadd.f32 %v2242_v50, %v14821_v14  ;;  %v14488_v14 = vmov 1983009808  }
 0xf5a   : > { %v2245_v54 = vpop.f32.mrb[30].mxu0  ;;  %v2328_v0 = vunpack.c.l.s4 %v14488_v14  ;;  %v14490_v14 = vmov 0  }
 0xf5b   : > { %v13475_v55 = vpop.f32.mrb[31].mxu0 }
 0xf5c   : > { %v2329_v3 = vunpack.c.0.s8 %v2328_v0 }
 0xf5e   : > { %v14962_v10 = vsub.s32 %v2329_v3, %v14719_v41 }
 0xf60   : > { %v14928_v57 = vpop.f32.mrb[32].mxu0 }
 0xf61   : > { %2398 = vrot.lane.b32.xlu0 %v14928_v57, %s16551_s26  ;;  %2395 = vrot.lane.b32.xlu1 %v14928_v57, %s16554_s0  ;;  %v13482_v58 = vpop.f32.mrb[33].mxu0  ;;  %s16560_s26 = smov 112  }
 0xf62   : > { %v2301_v59 = vpop.f32.mrb[34].mxu0 }
 0xf63   : > { %v13483_v60 = vpop.f32.mrb[35].mxu0 }
 0xf65   : > { %2410 = vrot.lane.b32.xlu0 %v14928_v57, %s16556_s16  ;;  %2401 = vrot.lane.b32.xlu1 %v14928_v57, %s16564_s3 }
 0xf69   : > { %2305 = vrot.lane.b32.xlu0 %v14939_v61, %s16554_s0  ;;  %2404 = vrot.lane.b32.xlu1 %v14928_v57, %s16560_s26  ;;  %s16636_s0 = smov 120  }
 0xf6d   : > { %2407 = vrot.lane.b32.xlu1 %v14928_v57, %s16562_s5 }
 0xf71   : > { %2413 = vrot.lane.b32.xlu1 %v14928_v57, %s16558_s6 }
 0xfd3   : > { %v14949_v62 = vpop.permute.xlu1 %2395  ;;  %v14953_v1 = vpop.permute.xlu0 %2398 }
 0xfd4   : > { %v2416_v11 = vcombine.low %v14928_v57, %v14953_v1 }
 0xfd6   : > { %v2423_v21 = vrot.slane %v2416_v11, %v14962_v10 }
 0xfd7   : > { %v14951_v63 = vpop.permute.xlu1 %2401  ;;  %v14966_v12 = vpop.permute.xlu0 %2410 }
 0xfd8   : > { %v2424_v5 = vcombine.low %v14949_v62, %v14951_v63 }
 0xfda   : > { %v2431_v15 = vrot.slane %v2424_v5, %v14962_v10 }
 0xfdb   : > { %v14955_v2 = vpop.permute.xlu1 %2404  ;;  %v2306_v45 = vpop.permute.xlu0 %2305 }
 0xfdc   : > { %v2432_v16 = vcombine.low %v14955_v2, %v14966_v12  ;;  %v2448_v27 = vcombine.low %v2423_v21, %v2431_v15  ;;  %v2449_v30 = vcombine.high %v2423_v21, %v2431_v15 }
 0xfde   : > { %v2439_v24 = vrot.slane %v2432_v16, %v14962_v10  ;;  %v2456_v53 = vrot.slane %v2448_v27, %v14974_v23  ;;  %v2463_v38 = vrot.slane %v2449_v30, %v14974_v23 }
 0xfdf   : > { %v14959_v7 = vpop.permute.xlu1 %2407 }
 0xfe3   : > { %v2414_v17 = vpop.permute.xlu1 %2413 }
 0xfe4   : > { %v2440_v22 = vcombine.low %v14959_v7, %v2414_v17 }
 0xfe6   : > { %v2447_v25 = vrot.slane %v2440_v22, %v14962_v10 }
 0xfe8   : > { %v2464_v29 = vcombine.low %v2439_v24, %v2447_v25  ;;  %v2465_v20 = vcombine.high %v2439_v24, %v2447_v25 }
 0xfea   : > { %v2472_v32 = vrot.slane %v2464_v29, %v14974_v23  ;;  %v2479_v33 = vrot.slane %v2465_v20, %v14974_v23 }
 0xfec   : > { %v2481_v34 = vcombine.high %v2456_v53, %v2472_v32  ;;  %v2480_v37 = vcombine.low %v2456_v53, %v2472_v32  ;;  %v2482_v39 = vcombine.low %v2463_v38, %v2479_v33  ;;  %v2483_v43 = vcombine.high %v2463_v38, %v2479_v33 }
 0xfee   : > { %v2577_v41 = vpack.c.bf16 %v2481_v34, %v2481_v34  ;;  %v2576_v19 = vpack.c.bf16 %v2480_v37, %v2480_v37  ;;  %v2578_v40 = vpack.c.bf16 %v2482_v39, %v2482_v39  ;;  %v2579_v42 = vpack.c.bf16 %v2483_v43, %v2483_v43 }
 0xff0   : > { %2688 = vxpose.xlu1.c.b16.start.end [1/1] (short) (narrow) %v2577_v41, 16  ;;  %2672 = vxpose.xlu0.c.b16.start.end [1/1] (short) (narrow) %v2576_v19, 16 }
 0xff4   : > { %2308 = vrot.lane.b32.xlu1 %v14939_v61, %s16636_s0  ;;  %2704 = vxpose.xlu0.c.b16.start.end [1/1] (short) (narrow) %v2578_v40, 16 }
 0xff8   : > { %2311 = vrot.lane.b32.xlu1 %v14939_v61, %s16564_s3  ;;  %2720 = vxpose.xlu0.c.b16.start.end [1/1] (short) (narrow) %v2579_v42, 16  ;;  %s16566_s3 = smov 12  }
 0xffc   : > { %2314 = vrot.lane.b32.xlu1 %v14939_v61, %s16560_s26  ;;  %s16570_s26 = smov 8  }
0x1000   : > { %2320 = vrot.lane.b32.xlu1 %v14939_v61, %s16556_s16  ;;  %s16637_s16 = smov 96  }
0x1001   : > { %2317 = vrot.lane.b32.xlu0 %v14939_v61, %s16562_s5  ;;  %s16568_s5 = smov 4  }
0x1005   : > { %2323 = vrot.lane.b32.xlu0 %v14939_v61, %s16558_s6  ;;  %s16638_s6 = sld [smem:[#allocation23_spill]] }
0x1056   : > { %v2680_v26 = vpop.trf.xlu0  ;;  %v2696_v48 = vpop.trf.xlu1 }
0x105a   : > { %v2712_v28 = vpop.trf.xlu0 }
0x105b   : > { %v2736_v46 = vcombine.low %v2680_v26, %v2712_v28 }
0x105d   : > { %v2743_v50 = vrot.slane %v2736_v46, %v14974_v23 }
0x105e   : > { %v2728_v49 = vpop.trf.xlu0 }
0x105f   : > { %v2745_v52 = vcombine.low %v2696_v48, %v2728_v49  ;;  %v2758_v58 = vshrl.u32 %v2743_v50, 16  ;;  %v2744_v3 = vcombine.high %v2743_v50, %v14490_v14 }
0x1061   : > { %v2752_v54 = vrot.slane %v2745_v52, %v14974_v23  ;;  %v2766_v5 = vshrl.u32 %v2744_v3, 16 }
0x1063   : > { %v2756_v55 = vpack.i.b16 %v2752_v54, %v2743_v50  ;;  %v2759_v59 = vshrl.u32 %v2752_v54, 16  ;;  %v2753_v0 = vcombine.high %v2752_v54, %v14490_v14 }
0x1065   : > { %2770 = vxpose.xlu1.c.b16.start.end [1/1] (short) (narrow) %v2756_v55, 16  ;;  %v2760_v60 = vpack.i.b16 %v2759_v59, %v2758_v58  ;;  %v2764_v4 = vpack.i.b16 %v2753_v0, %v2744_v3  ;;  %v2767_v6 = vshrl.u32 %v2753_v0, 16 }
0x1067   : > { %2786 = vxpose.xlu0.c.b16.start.end [1/1] (short) (narrow) %v2760_v60, 16  ;;  %v2768_v11 = vpack.i.b16 %v2767_v6, %v2766_v5 }
0x1069   : > { %2484 = vrot.lane.b32.xlu1 %v14928_v57, %s16637_s16  ;;  %v2309_v57 = vpop.permute.xlu1 %2308 }
0x106a   : > { %v2326_v24 = vcombine.low %v14939_v61, %v2309_v57 }
0x106b   : > { %2802 = vxpose.xlu0.c.b16.start.end [1/1] (short) (narrow) %v2764_v4, 16 }
0x106d   : > { %2488 = vrot.lane.b32.xlu1 %v14953_v1, %s16637_s16  ;;  %v2312_v1 = vpop.permute.xlu1 %2311 }
0x106e   : > { %v2334_v22 = vcombine.low %v2306_v45, %v2312_v1 }
0x106f   : > { %2818 = vxpose.xlu0.c.b16.start.end [1/1] (short) (narrow) %v2768_v11, 16 }
0x1071   : > { %2490 = vrot.lane.b32.xlu1 %v14951_v63, %s16637_s16  ;;  %v2315_v15 = vpop.permute.xlu1 %2314 }
0x1073   : > { %v2318_v13 = vpop.permute.xlu0 %2317 }
0x1075   : > { %2492 = vrot.lane.b32.xlu1 %v14955_v2, %s16637_s16  ;;  %v2321_v63 = vpop.permute.xlu1 %2320 }
0x1076   : > { %v2342_v2 = vcombine.low %v2315_v15, %v2321_v63 }
0x1077   : > { %v2324_v16 = vpop.permute.xlu0 %2323 }
0x1078   : > { %2486 = vrot.lane.b32.xlu0 %v14949_v62, %s16637_s16  ;;  %v2350_v21 = vcombine.low %v2318_v13, %v2324_v16  ;;  %v2349_v25 = vrot.slane %v2342_v2, %v14962_v10 }
0x1079   : > { %2496 = vrot.lane.b32.xlu1 %v14966_v12, %s16637_s16  ;;  %v2341_v12 = vrot.slane %v2334_v22, %v14962_v10 }
0x107a   : > { %v2357_v62 = vrot.slane %v2350_v21, %v14962_v10 }
0x107c   : > { %2494 = vrot.lane.b32.xlu0 %v14959_v7, %s16637_s16  ;;  %v2333_v7 = vrot.slane %v2326_v24, %v14962_v10  ;;  %v2375_v27 = vcombine.high %v2349_v25, %v2357_v62 }
0x107e   : > { %v2358_v29 = vcombine.low %v2333_v7, %v2341_v12  ;;  %v2359_v30 = vcombine.high %v2333_v7, %v2341_v12  ;;  %v2389_v53 = vrot.slane %v2375_v27, %v14974_v23 }
0x1080   : > { %2498 = vrot.lane.b32.xlu0 %v2414_v17, %s16637_s16  ;;  %v2374_v17 = vcombine.low %v2349_v25, %v2357_v62  ;;  %v2366_v32 = vrot.slane %v2358_v29, %v14974_v23  ;;  %v2373_v61 = vrot.slane %v2359_v30, %v14974_v23 }
0x1082   : > { %v2382_v20 = vrot.slane %v2374_v17, %v14974_v23  ;;  %v2392_v37 = vcombine.low %v2373_v61, %v2389_v53  ;;  %v2393_v38 = vcombine.high %v2373_v61, %v2389_v53 }
0x1084   : > { %v2390_v33 = vcombine.low %v2366_v32, %v2382_v20  ;;  %v2391_v34 = vcombine.high %v2366_v32, %v2382_v20  ;;  %v2588_v19 = vpack.c.bf16 %v2392_v37, %v2392_v37  ;;  %v2622_v40 = vpack.c.bf16 %v2393_v38, %v2393_v38 }
0x1086   : > { %v2580_v41 = vpack.c.bf16 %v2390_v33, %v2390_v33  ;;  %v2614_v39 = vpack.c.bf16 %v2391_v34, %v2391_v34  ;;  %v2595_v28 = vrot.slane %v2588_v19, %v14962_v10  ;;  %v2629_v48 = vrot.slane %v2622_v40, %v14962_v10 }
0x1088   : > { %v2587_v26 = vrot.slane %v2580_v41, %v14962_v10  ;;  %v2621_v46 = vrot.slane %v2614_v39, %v14962_v10 }
0x108a   : > { %v2596_v54 = vcombine.low %v2587_v26, %v2595_v28  ;;  %v2630_v55 = vcombine.low %v2621_v46, %v2629_v48  ;;  %v2597_v20 = vcombine.high %v2587_v26, %v2595_v28  ;;  %v2631_v53 = vcombine.high %v2621_v46, %v2629_v48 }
0x108c   : > { %v2604_v6 = vrot.slane %v2596_v54, %v14974_v23  ;;  %v2638_v5 = vrot.slane %v2630_v55, %v14974_v23  ;;  %v2611_v40 = vrot.slane %v2597_v20, %v14974_v23 }
0x108e   : > { %v15042_v2 = vcombine.high %v2604_v6, %v14490_v14  ;;  %v15045_v24 = vcombine.high %v2638_v5, %v14490_v14  ;;  %v2650_v29 = vpack.i.b16 %v2638_v5, %v2604_v6  ;;  %v2651_v37 = vshrl.u32 %v2604_v6, 16 }
0x108f   : > { %v2652_v41 = vshrl.u32 %v2638_v5, 16  ;;  %v2613_v6 = vcombine.high %v2611_v40, %v14490_v14 }
0x1090   : > { %v2656_v61 = vpack.i.b16 %v15045_v24, %v15042_v2  ;;  %v2657_v55 = vshrl.u32 %v15042_v2, 16 }
0x1091   : > { %v2653_v28 = vpack.i.b16 %v2652_v41, %v2651_v37 }
0x10cb   : > { %v2778_v42 = vpop.trf.xlu1 }
0x10cc   : > { %v2840_v45 = vrot.slane %v2778_v42, %v14962_v10 }
0x10cd   : > { %v2794_v43 = vpop.trf.xlu0 }
0x10ce   : > { %v2872_v59 = vrot.slane %v2794_v43, %v14962_v10  ;;  %v2645_v43 = vrot.slane %v2631_v53, %v14974_v23 }
0x10d0   : > { %v2647_v5 = vcombine.high %v2645_v43, %v14490_v14 }
0x10d1   : > { %v2810_v49 = vpop.trf.xlu0 }
0x10d2   : > { %v2847_v50 = vrot.slane %v2810_v49, %v14962_v10 }
0x10d4   : > { %v2848_v52 = vcombine.low %v2840_v45, %v2847_v50  ;;  %v2849_v11 = vcombine.high %v2840_v45, %v2847_v50  ;;  %v2662_v50 = vpack.i.b16 %v2645_v43, %v2611_v40 }
0x10d5   : > { %v2826_v58 = vpop.trf.xlu0 }
0x10d6   : > { %v2879_v60 = vrot.slane %v2826_v58, %v14962_v10  ;;  %v2856_v0 = vrot.slane %v2848_v52, %v14974_v23  ;;  %v2863_v62 = vrot.slane %v2849_v11, %v14974_v23  ;;  %v2658_v58 = vshrl.u32 %v15045_v24, 16 }
0x10d8   : > { %v2880_v3 = vcombine.low %v2872_v59, %v2879_v60  ;;  %v2881_v4 = vcombine.high %v2872_v59, %v2879_v60  ;;  %v2864_v13 = vcombine.high %v2856_v0, %v14490_v14  ;;  %v2901_v15 = vshrl.u32 %v2856_v0, 16 }
0x10d9   : > { %v2865_v45 = vcombine.high %v2863_v62, %v14490_v14  ;;  %v2913_v59 = vshrl.u32 %v2863_v62, 16 }
0x10da   : > { %v2888_v57 = vrot.slane %v2880_v3, %v14974_v23  ;;  %v15038_v16 = vrot.slane %v2881_v4, %v14974_v23  ;;  %v2907_v19 = vshrl.u32 %v2864_v13, 16 }
0x10db   : > { %v15034_v1 = vpop.permute.xlu1 %2484 }
0x10dc   : > { %v2900_v63 = vpack.i.b16 %v2888_v57, %v2856_v0  ;;  %v2896_v21 = vcombine.high %v2888_v57, %v14490_v14  ;;  %v2902_v22 = vshrl.u32 %v2888_v57, 16  ;;  %v2912_v30 = vpack.i.b16 %v15038_v16, %v2863_v62 }
0x10dd   : > { %v2897_v39 = vcombine.high %v15038_v16, %v14490_v14  ;;  %v2914_v52 = vshrl.u32 %v15038_v16, 16  ;;  %v2659_v57 = vpack.i.b16 %v2658_v58, %v2657_v55  ;;  %v2664_v62 = vshrl.u32 %v2645_v43, 16 }
0x10de   : > { %v2927_v12 = vsel %vm1821_vm7, %v2900_v63, 0  ;;  %v2906_v25 = vpack.i.b16 %v2896_v21, %v2864_v13  ;;  %v2903_v7 = vpack.i.b16 %v2902_v22, %v2901_v15  ;;  %v2908_v33 = vshrl.u32 %v2896_v21, 16 }
0x10df   : > { %v15049_v17 = vpop.permute.xlu1 %2488  ;;  %13485 = vmatpush3.bf16.msra.mxu0 %v2927_v12  ;;  %v3111_v38 = vsel %vm1821_vm7, %v2912_v30, 0  ;;  %v2918_v46 = vpack.i.b16 %v2897_v39, %v2865_v45  ;;  %v2915_v4 = vpack.i.b16 %v2914_v52, %v2913_v59  ;;  %v2668_v21 = vpack.i.b16 %v2647_v5, %v2613_v6 }
0x10e0   : > { %v3019_v27 = vsel %vm1821_vm7, %v2906_v25, 0  ;;  %13490 = vmatprep.subr.bf16.mxu0 %v14478_v31  ;;  %v2973_v32 = vsel %vm1821_vm7, %v2903_v7, 0  ;;  %v2909_v42 = vpack.i.b16 %v2908_v33, %v2907_v19  ;;  %v2508_v11 = vcombine.low %v15034_v1, %v15049_v17 }
0x10e1   : > { %13497 = vmatpush3.bf16.msra.mxu1 %v3019_v27  ;;  %v3203_v54 = vsel %vm1821_vm7, %v2918_v46, 0  ;;  %v3157_v16 = vsel %vm1821_vm7, %v2915_v4, 0  ;;  %v2920_v22 = vshrl.u32 %v2897_v39, 16  ;;  %v2663_v1 = vshrl.u32 %v2611_v40, 16 }
0x10e2   : > { %13487 = vmatmul.mubr.msk.bf16.vlgmr.msra.gmra.mrb[36].mxu0 %vm2922_vm9, %v2650_v29  ;;  %13508 = vmatprep.subr.bf16.mxu1 %v14478_v31  ;;  %v3065_v48 = vsel %vm1821_vm7, %v2909_v42, 0  ;;  %v2515_v2 = vrot.slane %v2508_v11, %v14962_v10  ;;  %v2919_v12 = vshrl.u32 %v2865_v45, 16  ;;  %v2669_v19 = vshrl.u32 %v2613_v6, 16 }
0x10e3   : > { %v2491_v34 = vpop.permute.xlu1 %2490  ;;  %13491 = vmatpush3.bf16.msra.mxu0 %v2973_v32  ;;  %13492 = vmatprep.mubr.msk.bf16.mxu0 %vm14479_vm2, %v14478_v31  ;;  %v2665_v53 = vpack.i.b16 %v2664_v62, %v2663_v1  ;;  %v2670_v39 = vshrl.u32 %v2647_v5, 16 }
0x10e4   : > { %13499 = vmatmul.mubr.msk.bf16.vlgmr.msra.gmra.mrb[24].mxu1 %vm2922_vm9, %v2656_v61  ;;  %13502 = vmatprep.subr.bf16.mxu0 %v14478_v31  ;;  %v2921_v29 = vpack.i.b16 %v2920_v22, %v2919_v12 }
0x10e5   : > { %13509 = vmatpush3.bf16.msra.mxu1 %v3111_v38  ;;  %13510 = vmatprep.mubr.msk.bf16.mxu1 %vm14479_vm2, %v14478_v31  ;;  %v2671_v45 = vpack.i.b16 %v2670_v39, %v2669_v19 }
0x10e6   : > { %13520 = vmatprep.subr.bf16.mxu1 %v14478_v31 }
0x10e7   : > { %v2493_v26 = vpop.permute.xlu1 %2492 }
0x10ea   : > { %13493 = vmatmul.mubr.msk.bf16.vlgmr.msra.gmra.mrb[40].mxu0 %vm2922_vm9, %v2653_v28  ;;  %v2487_v49 = vpop.permute.xlu0 %2486 }
0x10eb   : > { %13503 = vmatpush3.bf16.msra.mxu0 %v3065_v48  ;;  %13504 = vmatprep.mubr.msk.bf16.mxu0 %vm14479_vm2, %v14478_v31  ;;  %v2516_v60 = vcombine.low %v2487_v49, %v2491_v34  ;;  %v2497_v0 = vpop.permute.xlu1 %2496  ;;  %v3249_v34 = vsel %vm1821_vm7, %v2921_v29, 0 }
0x10ec   : > { %13511 = vmatmul.mubr.msk.bf16.vlgmr.msra.gmra.mrb[28].mxu1 %vm2922_vm9, %v2662_v50  ;;  %13514 = vmatprep.subr.bf16.mxu0 %v14478_v31  ;;  %v2524_v15 = vcombine.low %v2493_v26, %v2497_v0 }
0x10ed   : > { %13521 = vmatpush3.bf16.msra.mxu1 %v3203_v54  ;;  %13522 = vmatprep.mubr.msk.bf16.mxu1 %vm14479_vm2, %v14478_v31  ;;  %v2523_v13 = vrot.slane %v2516_v60, %v14962_v10 }
0x10ee   : > { %v2495_v3 = vpop.permute.xlu0 %2494  ;;  %13532 = vmatprep.subr.bf16.mxu1 %v14478_v31  ;;  %v2531_v7 = vrot.slane %v2524_v15, %v14962_v10 }
0x10ef   : > { %v2540_v25 = vcombine.low %v2515_v2, %v2523_v13  ;;  %v2541_v27 = vcombine.high %v2515_v2, %v2523_v13 }
0x10f1   : > { %v2548_v32 = vrot.slane %v2540_v25, %v14974_v23  ;;  %v2555_v37 = vrot.slane %v2541_v27, %v14974_v23 }
0x10f2   : > { %13505 = vmatmul.mubr.msk.bf16.vlgmr.msra.gmra.mrb[44].mxu0 %vm2922_vm9, %v2659_v57  ;;  %v2499_v63 = vpop.permute.xlu0 %2498 }
0x10f3   : > { %13515 = vmatpush3.bf16.msra.mxu0 %v3157_v16  ;;  %v2532_v24 = vcombine.low %v2495_v3, %v2499_v63  ;;  %13516 = vmatprep.mubr.msk.bf16.mxu0 %vm14479_vm2, %v14478_v31 }
0x10f4   : > { %13523 = vmatmul.mubr.msk.bf16.vlgmr.msra.gmra.mrb[32].mxu1 %vm2922_vm9, %v2668_v21  ;;  %13526 = vmatprep.subr.bf16.mxu0 %v14478_v31 }
0x10f5   : > { %v2539_v17 = vrot.slane %v2532_v24, %v14962_v10  ;;  %13534 = vmatprep.mubr.msk.bf16.mxu1 %vm14479_vm2, %v14478_v31 }
0x10f7   : > { %v2556_v30 = vcombine.low %v2531_v7, %v2539_v17  ;;  %v2557_v20 = vcombine.high %v2531_v7, %v2539_v17 }
0x10f9   : > { %v2564_v61 = vrot.slane %v2556_v30, %v14974_v23  ;;  %v2571_v33 = vrot.slane %v2557_v20, %v14974_v23 }
0x10fa   : > { %13517 = vmatmul.mubr.msk.bf16.vlgmr.msra.gmra.mrb[48].mxu0 %vm2922_vm9, %v2665_v53 }
0x10fb   : > { %13527 = vmatpush3.bf16.msra.mxu0 %v3249_v34  ;;  %v2572_v38 = vcombine.low %v2548_v32, %v2564_v61  ;;  %13528 = vmatprep.mubr.msk.bf16.mxu0 %vm14479_vm2, %v14478_v31  ;;  %v2573_v41 = vcombine.high %v2548_v32, %v2564_v61  ;;  %v2575_v40 = vcombine.high %v2555_v37, %v2571_v33 }
0x10fc   : > { %13538 = vmatprep.subr.bf16.mxu0 %v14478_v31  ;;  %v2574_v42 = vcombine.low %v2555_v37, %v2571_v33 }
0x10fd   : > { %v3396_v43 = vpack.c.bf16 %v2572_v38, %v2572_v38  ;;  %v3397_v34 = vpack.c.bf16 %v2573_v41, %v2573_v41  ;;  %v3399_v38 = vpack.c.bf16 %v2575_v40, %v2575_v40 }
0x10fe   : > { %v3398_v26 = vpack.c.bf16 %v2574_v42, %v2574_v42 }
0x10ff   : > { %3400 = vxpose.xlu0.c.b16.start.end [1/1] (short) (narrow) %v3396_v43, 16 }
0x1102   : > { %13529 = vmatmul.mubr.msk.bf16.vlgmr.msra.gmra.mrb[52].mxu0 %vm2922_vm9, %v2671_v45 }
0x1103   : > { %3432 = vxpose.xlu0.c.b16.start.end [1/1] (short) (narrow) %v3398_v26, 16  ;;  %13540 = vmatprep.mubr.msk.bf16.mxu0 %vm14479_vm2, %v14478_v31 }
0x11b5   : > { %v2963_v28 = vpop.f32.mrb[36].mxu0 }
0x11b6   : > { %v15113_v46 = vmul.f32 0.5, %v2963_v28  ;;  %v13488_v48 = vpop.f32.mrb[37].mxu0  ;;  %v3408_v28 = vpop.trf.xlu0 }
0x11b7   : > { %v2966_v49 = vpop.f32.mrb[38].mxu0  ;;  %v3055_v50 = vpop.f32.mrb[24].mxu1 }
0x11b8   : > { %v15115_v52 = vmul.f32 0.5, %v3055_v50  ;;  %v13489_v54 = vpop.f32.mrb[39].mxu0  ;;  %v13500_v55 = vpop.f32.mrb[25].mxu1  ;;  %v3300_v58 = vsel %vm3299_vm10, %v15113_v46, -inf }
0x11b9   : > { %v3058_v59 = vpop.f32.mrb[26].mxu1  ;;  %3301 = vmax.xlane.f32.xlu1 %v3300_v58 }
0x11ba   : > { %v13501_v60 = vpop.f32.mrb[27].mxu1  ;;  %v3306_v0 = vsel %vm3299_vm10, %v15115_v52, -inf  ;;  %v3440_v40 = vpop.trf.xlu0 }
0x11bb   : > { %v3464_v54 = vcombine.low %v3408_v28, %v3440_v40 }
0x11bd   : > { %3307 = vmax.xlane.f32.xlu1 %v3306_v0  ;;  %v3009_v3 = vpop.f32.mrb[40].mxu0  ;;  %v3471_v60 = vrot.slane %v3464_v54, %v14974_v23 }
0x11be   : > { %v3292_v4 = vmul.f32 0.5, %v3009_v3  ;;  %v13494_v6 = vpop.f32.mrb[41].mxu0 }
0x11bf   : > { %v3012_v5 = vpop.f32.mrb[42].mxu0  ;;  %v3147_v11 = vpop.f32.mrb[28].mxu1  ;;  %v3472_v40 = vcombine.high %v3471_v60, %v14490_v14 }
0x11c0   : > { %v13495_v57 = vpop.f32.mrb[43].mxu0  ;;  %v13512_v13 = vpop.f32.mrb[29].mxu1  ;;  %v3303_v15 = vsel %vm3299_vm10, %v3292_v4, -inf  ;;  %v3295_v37 = vmul.f32 0.5, %v3147_v11 }
0x11c1   : > { %v3150_v16 = vpop.f32.mrb[30].mxu1  ;;  %3304 = vmax.xlane.f32.xlu0 %v3303_v15  ;;  %v3486_v13 = vshrl.u32 %v3471_v60, 16 }
0x11c2   : > { %v13513_v63 = vpop.f32.mrb[31].mxu1  ;;  %v3312_v39 = vsel %vm3299_vm10, %v3295_v37, -inf }
0x11c5   : > { %v3101_v21 = vpop.f32.mrb[44].mxu0 }
0x11c6   : > { %v3294_v22 = vmul.f32 0.5, %v3101_v21  ;;  %v13506_v2 = vpop.f32.mrb[45].mxu0 }
0x11c7   : > { %v3104_v24 = vpop.f32.mrb[46].mxu0  ;;  %v3239_v1 = vpop.f32.mrb[32].mxu1 }
0x11c8   : > { %v13507_v62 = vpop.f32.mrb[47].mxu0  ;;  %v13524_v12 = vpop.f32.mrb[33].mxu1  ;;  %v3309_v25 = vsel %vm3299_vm10, %v3294_v22, -inf  ;;  %v3297_v19 = vmul.f32 0.5, %v3239_v1 }
0x11c9   : > { %v3242_v7 = vpop.f32.mrb[34].mxu1  ;;  %3310 = vmax.xlane.f32.xlu0 %v3309_v25 }
0x11ca   : > { %v13525_v17 = vpop.f32.mrb[35].mxu1  ;;  %v3318_v43 = vsel %vm3299_vm10, %v3297_v19, -inf }
0x11cd   : > { %v3193_v27 = vpop.f32.mrb[48].mxu0 }
0x11ce   : > { %v13518_v29 = vpop.f32.mrb[49].mxu0  ;;  %v3296_v42 = vmul.f32 0.5, %v3193_v27 }
0x11cf   : > { %v3196_v30 = vpop.f32.mrb[50].mxu0 }
0x11d0   : > { %v13519_v20 = vpop.f32.mrb[51].mxu0  ;;  %v3315_v26 = vsel %vm3299_vm10, %v3296_v42, -inf }
0x11d5   : > { %v3285_v53 = vpop.f32.mrb[52].mxu0 }
0x11d6   : > { %v13530_v32 = vpop.f32.mrb[53].mxu0  ;;  %v15125_v45 = vmul.f32 0.5, %v3285_v53 }
0x11d7   : > { %v3288_v61 = vpop.f32.mrb[54].mxu0 }
0x11d8   : > { %v13531_v33 = vpop.f32.mrb[55].mxu0  ;;  %v3321_v41 = vsel %vm3299_vm10, %v15125_v45, -inf }
0x11ea   : > { %3416 = vxpose.xlu1.c.b16.start.end [1/1] (short) (narrow) %v3397_v34, 16 }
0x11f6   : > { %3448 = vxpose.xlu0.c.b16.start.end [1/1] (short) (narrow) %v3399_v38, 16 }
0x11f7   : > { %3313 = vmax.xlane.f32.xlu1 %v3312_v39 }
0x11fb   : > { %3319 = vmax.xlane.f32.xlu1 %v3318_v43 }
0x1203   : > { %3316 = vmax.xlane.f32.xlu0 %v3315_v26 }
0x1207   : > { %3322 = vmax.xlane.f32.xlu0 %v3321_v41 }
0x1246   : > { %v3302_v48 = vpop.xlane.xlu1 %3301 }
0x1247   : > { %v3324_v58 = vsub.f32 %v15113_v46, %v3302_v48 }
0x1249   : > { %v3332_v5 = vmul.f32 1.442695, %v3324_v58 }
0x124a   : > { %v3308_v50 = vpop.xlane.xlu1 %3307 }
0x124b   : > { %v3326_v11 = vsub.f32 %v15115_v52, %v3308_v50  ;;  %14277 = vpow2.f32 %v3332_v5  ;;  %v3494_v50 = vshrl.u32 %v3472_v40, 16 }
0x124d   : > { %v3336_v2 = vmul.f32 1.442695, %v3326_v11 }
0x124e   : > { %v3305_v49 = vpop.xlane.xlu0 %3304 }
0x124f   : > { %v3325_v0 = vsub.f32 %v3292_v4, %v3305_v49 }
0x1250   : > { %v3424_v59 = vpop.trf.xlu1 }
0x1251   : > { %v3334_v15 = vmul.f32 1.442695, %v3325_v0 }
0x1253   : > { %14279 = vpow2.f32 %v3334_v15 }
0x1254   : > { %14281 = vpow2.f32 %v3336_v2 }
0x1255   : > { %v14278_v4 = vpop.eup %14277 }
0x1256   : > { %v3311_v55 = vpop.xlane.xlu0 %3310  ;;  %v3348_v52 = vsel %vm3299_vm10, %v14278_v4, 0.0 }
0x1257   : > { %v3327_v16 = vsub.f32 %v3294_v22, %v3311_v55 }
0x1259   : > { %v3338_v24 = vmul.f32 1.442695, %v3327_v16 }
0x125b   : > { %14283 = vpow2.f32 %v3338_v24 }
0x125c   : > { %v3456_v3 = vpop.trf.xlu0 }
0x125d   : > { %v3473_v6 = vcombine.low %v3424_v59, %v3456_v3  ;;  %v14280_v1 = vpop.eup %14279 }
0x125e   : > { %v15135_v62 = vpop.eup %14281  ;;  %v3351_v22 = vsel %vm3299_vm10, %v14280_v1, 0.0 }
0x125f   : > { %v3480_v57 = vrot.slane %v3473_v6, %v14974_v23  ;;  %v3354_v25 = vsel %vm3299_vm10, %v15135_v62, 0.0 }
0x1261   : > { %v3484_v63 = vpack.i.b16 %v3480_v57, %v3471_v60  ;;  %v3487_v21 = vshrl.u32 %v3480_v57, 16  ;;  %v3481_v48 = vcombine.high %v3480_v57, %v14490_v14 }
0x1263   : > { %3498 = vxpose.xlu1.c.b16.start.end [1/1] (short) (narrow) %v3484_v63, 16  ;;  %v3488_v46 = vpack.i.b16 %v3487_v21, %v3486_v13  ;;  %v3492_v49 = vpack.i.b16 %v3481_v48, %v3472_v40  ;;  %v3495_v54 = vshrl.u32 %v3481_v48, 16 }
0x1265   : > { %3514 = vxpose.xlu0.c.b16.start.end [1/1] (short) (narrow) %v3488_v46, 16  ;;  %v15138_v12 = vpop.eup %14283  ;;  %v3496_v55 = vpack.i.b16 %v3495_v54, %v3494_v50 }
0x1266   : > { %v3357_v7 = vsel %vm3299_vm10, %v15138_v12, 0.0 }
0x1270   : > { %3349 = vadd.xlane.f32.xlu1 %v3348_v52 }
0x1272   : > { %3352 = vadd.xlane.f32.xlu0 %v3351_v22 }
0x1274   : > { %3355 = vadd.xlane.f32.xlu1 %v3354_v25 }
0x1276   : > { %3358 = vadd.xlane.f32.xlu0 %v3357_v7 }
0x1284   : > { %v3314_v17 = vpop.xlane.xlu1 %3313 }
0x1285   : > { %v3328_v27 = vsub.f32 %v3295_v37, %v3314_v17 }
0x1287   : > { %v3340_v29 = vmul.f32 1.442695, %v3328_v27 }
0x1288   : > { %v3320_v30 = vpop.xlane.xlu1 %3319 }
0x1289   : > { %14285 = vpow2.f32 %v3340_v29  ;;  %v3330_v20 = vsub.f32 %v3297_v19, %v3320_v30 }
0x128b   : > { %v3344_v53 = vmul.f32 1.442695, %v3330_v20 }
0x128d   : > { %14287 = vpow2.f32 %v3344_v53 }
0x1290   : > { %v3317_v32 = vpop.xlane.xlu0 %3316 }
0x1291   : > { %v3329_v61 = vsub.f32 %v3296_v42, %v3317_v32 }
0x1293   : > { %v15144_v33 = vpop.eup %14285  ;;  %v3342_v34 = vmul.f32 1.442695, %v3329_v61 }
0x1294   : > { %v3323_v38 = vpop.xlane.xlu0 %3322  ;;  %v3360_v39 = vsel %vm3299_vm10, %v15144_v33, 0.0 }
0x1295   : > { %14289 = vpow2.f32 %v3342_v34  ;;  %v3331_v43 = vsub.f32 %v15125_v45, %v3323_v38  ;;  %3361 = vadd.xlane.f32.xlu1 %v3360_v39 }
0x1297   : > { %v15149_v37 = vpop.eup %14287  ;;  %v3346_v26 = vmul.f32 1.442695, %v3331_v43 }
0x1298   : > { %v3366_v19 = vsel %vm3299_vm10, %v15149_v37, 0.0 }
0x1299   : > { %14291 = vpow2.f32 %v3346_v26  ;;  %3367 = vadd.xlane.f32.xlu1 %v3366_v19 }
0x129f   : > { %v15153_v42 = vpop.eup %14289 }
0x12a0   : > { %v3363_v41 = vsel %vm3299_vm10, %v15153_v42, 0.0 }
0x12a1   : > { %3364 = vadd.xlane.f32.xlu0 %v3363_v41 }
0x12a3   : > { %v15157_v28 = vpop.eup %14291 }
0x12a4   : > { %v3369_v45 = vsel %vm3299_vm10, %v15157_v28, 0.0 }
0x12a5   : > { %3370 = vadd.xlane.f32.xlu0 %v3369_v45 }
0x12c6   : > { %3530 = vxpose.xlu1.c.b16.start.end [1/1] (short) (narrow) %v3492_v49, 16 }
0x12c9   : > { %v3506_v58 = vpop.trf.xlu1 }
0x12ca   : > { %v3568_v22 = vrot.slane %v3506_v58, %v14962_v10 }
0x12cb   : > { %v3522_v59 = vpop.trf.xlu0 }
0x12cc   : > { %v3600_v29 = vrot.slane %v3522_v59, %v14962_v10 }
0x12d2   : > { %3546 = vxpose.xlu0.c.b16.start.end [1/1] (short) (narrow) %v3496_v55, 16 }
0x12fd   : > { %v3350_v0 = vpop.xlane.xlu1 %3349 }
0x12fe   : > { %14293 = vrcp.f32 %v3350_v0 }
0x12ff   : > { %v3353_v3 = vpop.xlane.xlu0 %3352 }
0x1300   : > { %14295 = vrcp.f32 %v3353_v3 }
0x1301   : > { %v3356_v63 = vpop.xlane.xlu1 %3355 }
0x1302   : > { %14297 = vrcp.f32 %v3356_v63 }
0x1303   : > { %v3359_v2 = vpop.xlane.xlu0 %3358 }
0x1304   : > { %14299 = vrcp.f32 %v3359_v2 }
0x1308   : > { %v14294_v6 = vpop.eup %14293 }
0x1309   : > { %v3380_v5 = vmul.f32 %v14294_v6, %v14278_v4 }
0x130a   : > { %v14296_v11 = vpop.eup %14295 }
0x130b   : > { %v3388_v13 = vpack.c.bf16 %v3380_v5, %v3380_v5  ;;  %v3381_v15 = vmul.f32 %v14296_v11, %v14280_v1 }
0x130c   : > { %v14298_v25 = vpop.eup %14297 }
0x130d   : > { %v3654_v60 = vsel %vm2922_vm9, %v3388_v13, 0  ;;  %v3389_v57 = vpack.c.bf16 %v3381_v15, %v3381_v15  ;;  %v3382_v20 = vmul.f32 %v14298_v25, %v15135_v62 }
0x130e   : > { %13533 = vmatpush3.bf16.xpose.msra.mxu1 %v3654_v60  ;;  %v14300_v17 = vpop.eup %14299 }
0x130f   : > { %v3700_v16 = vsel %vm2922_vm9, %v3389_v57, 0  ;;  %13544 = vmatprep.subr.bf16.mxu1 %v14478_v31  ;;  %v3383_v61 = vmul.f32 %v14300_v17, %v15138_v12  ;;  %v3390_v38 = vpack.c.bf16 %v3382_v20, %v3382_v20 }
0x1310   : > { %13539 = vmatpush3.bf16.xpose.msra.mxu0 %v3700_v16 }
0x1311   : > { %13550 = vmatprep.subr.bf16.mxu0 %v14478_v31  ;;  %v3391_v41 = vpack.c.bf16 %v3383_v61, %v3383_v61  ;;  %v3746_v62 = vsel %vm2922_vm9, %v3390_v38, 0 }
0x1313   : > { %v3792_v50 = vsel %vm2922_vm9, %v3391_v41, 0 }
0x1322   : > { %v3362_v21 = vpop.xlane.xlu1 %3361 }
0x1323   : > { %14301 = vrcp.f32 %v3362_v21 }
0x1326   : > { %v3368_v46 = vpop.xlane.xlu1 %3367 }
0x132c   : > { %v3538_v4 = vpop.trf.xlu1 }
0x132d   : > { %v3575_v1 = vrot.slane %v3538_v4, %v14962_v10  ;;  %v14302_v39 = vpop.eup %14301 }
0x132e   : > { %v3365_v24 = vpop.xlane.xlu0 %3364  ;;  %v3384_v12 = vmul.f32 %v14302_v39, %v15144_v33 }
0x132f   : > { %14303 = vrcp.f32 %v3365_v24  ;;  %v3576_v7 = vcombine.low %v3568_v22, %v3575_v1  ;;  %v3577_v0 = vcombine.high %v3568_v22, %v3575_v1 }
0x1330   : > { %14305 = vrcp.f32 %v3368_v46  ;;  %v3392_v58 = vpack.c.bf16 %v3384_v12, %v3384_v12 }
0x1331   : > { %v3584_v53 = vrot.slane %v3576_v7, %v14974_v23  ;;  %v3591_v57 = vrot.slane %v3577_v0, %v14974_v23 }
0x1332   : > { %v3371_v52 = vpop.xlane.xlu0 %3370 }
0x1333   : > { %14307 = vrcp.f32 %v3371_v52  ;;  %v3629_v43 = vshrl.u32 %v3584_v53, 16  ;;  %v3592_v49 = vcombine.high %v3584_v53, %v14490_v14  ;;  %v3641_v2 = vshrl.u32 %v3591_v57, 16 }
0x1335   : > { %v3635_v3 = vshrl.u32 %v3592_v49, 16 }
0x1338   : > { %v3554_v27 = vpop.trf.xlu0 }
0x1339   : > { %v3607_v30 = vrot.slane %v3554_v27, %v14962_v10  ;;  %v14304_v45 = vpop.eup %14303 }
0x133a   : > { %v3385_v54 = vmul.f32 %v14304_v45, %v15153_v42  ;;  %v14306_v59 = vpop.eup %14305  ;;  %v3838_v42 = vsel %vm2922_vm9, %v3392_v58, 0 }
0x133b   : > { %v3608_v32 = vcombine.low %v3600_v29, %v3607_v30  ;;  %v3609_v55 = vcombine.high %v3600_v29, %v3607_v30  ;;  %v3386_v60 = vmul.f32 %v14306_v59, %v15149_v37 }
0x133c   : > { %v3393_v5 = vpack.c.bf16 %v3385_v54, %v3385_v54 }
0x133d   : > { %v3616_v34 = vrot.slane %v3608_v32, %v14974_v23  ;;  %v14308_v11 = vpop.eup %14307  ;;  %v3623_v13 = vrot.slane %v3609_v55, %v14974_v23  ;;  %v3394_v37 = vpack.c.bf16 %v3386_v60, %v3386_v60 }
0x133e   : > { %v3884_v16 = vsel %vm2922_vm9, %v3393_v5, 0  ;;  %v3387_v63 = vmul.f32 %v14308_v11, %v15157_v28  ;;  %v3593_v28 = vcombine.high %v3591_v57, %v14490_v14 }
0x133f   : > { %v3628_v26 = vpack.i.b16 %v3616_v34, %v3584_v53  ;;  %v3630_v19 = vshrl.u32 %v3616_v34, 16  ;;  %v3624_v40 = vcombine.high %v3616_v34, %v14490_v14  ;;  %v3642_v21 = vshrl.u32 %v3623_v13, 16 }
0x1340   : > { %v3640_v46 = vpack.i.b16 %v3623_v13, %v3591_v57  ;;  %v3395_v24 = vpack.c.bf16 %v3387_v63, %v3387_v63  ;;  %v3625_v4 = vcombine.high %v3623_v13, %v14490_v14  ;;  %v3930_v1 = vsel %vm2922_vm9, %v3394_v37, 0 }
0x1341   : > { %13535 = vmatmul.mubr.msk.bf16.vlgmr.msra.gmra.mrb[36].mxu1 %vm2922_vm9, %v3628_v26  ;;  %v3631_v48 = vpack.i.b16 %v3630_v19, %v3629_v43  ;;  %v3636_v33 = vshrl.u32 %v3624_v40, 16  ;;  %v3634_v6 = vpack.i.b16 %v3624_v40, %v3592_v49  ;;  %v3643_v52 = vpack.i.b16 %v3642_v21, %v3641_v2 }
0x1342   : > { %13545 = vmatpush3.bf16.xpose.msra.mxu1 %v3746_v62  ;;  %13546 = vmatprep.mubr.msk.bf16.mxu1 %vm14479_vm2, %v14478_v31  ;;  %v3976_v22 = vsel %vm2922_vm9, %v3395_v24, 0  ;;  %v3648_v25 = vshrl.u32 %v3625_v4, 16  ;;  %v3647_v7 = vshrl.u32 %v3593_v28, 16  ;;  %v3646_v17 = vpack.i.b16 %v3625_v4, %v3593_v28 }
0x1343   : > { %13541 = vmatmul.mubr.msk.bf16.vlgmr.msra.gmra.mrb[56].mxu0 %vm2922_vm9, %v3631_v48  ;;  %13556 = vmatprep.subr.bf16.mxu1 %v14478_v31  ;;  %v3637_v15 = vpack.i.b16 %v3636_v33, %v3635_v3 }
0x1344   : > { %13551 = vmatpush3.bf16.xpose.msra.mxu0 %v3792_v50  ;;  %13552 = vmatprep.mubr.msk.bf16.mxu0 %vm14479_vm2, %v14478_v31  ;;  %v3649_v27 = vpack.i.b16 %v3648_v25, %v3647_v7 }
0x1345   : > { %13562 = vmatprep.subr.bf16.mxu0 %v14478_v31 }
0x1349   : > { %13547 = vmatmul.mubr.msk.bf16.vlgmr.msra.gmra.mrb[40].mxu1 %vm2922_vm9, %v3634_v6 }
0x134a   : > { %13557 = vmatpush3.bf16.xpose.msra.mxu1 %v3838_v42  ;;  %13558 = vmatprep.mubr.msk.bf16.mxu1 %vm14479_vm2, %v14478_v31 }
0x134b   : > { %13553 = vmatmul.mubr.msk.bf16.vlgmr.msra.gmra.mrb[60].mxu0 %vm2922_vm9, %v3637_v15  ;;  %13568 = vmatprep.subr.bf16.mxu1 %v14478_v31 }
0x134c   : > { %13563 = vmatpush3.bf16.xpose.msra.mxu0 %v3884_v16  ;;  %13564 = vmatprep.mubr.msk.bf16.mxu0 %vm14479_vm2, %v14478_v31 }
0x134d   : > { %13574 = vmatprep.subr.bf16.mxu0 %v14478_v31 }
0x1351   : > { %13559 = vmatmul.mubr.msk.bf16.vlgmr.msra.gmra.mrb[44].mxu1 %vm2922_vm9, %v3640_v46 }
0x1352   : > { %13569 = vmatpush3.bf16.xpose.msra.mxu1 %v3930_v1  ;;  %13570 = vmatprep.mubr.msk.bf16.mxu1 %vm14479_vm2, %v14478_v31 }
0x1353   : > { %13565 = vmatmul.mubr.msk.bf16.vlgmr.msra.gmra.mrb[64].mxu0 %vm2922_vm9, %v3643_v52  ;;  %13580 = vmatprep.subr.bf16.mxu1 %v14478_v31 }
0x1354   : > { %13575 = vmatpush3.bf16.xpose.msra.mxu0 %v3976_v22  ;;  %13576 = vmatprep.mubr.msk.bf16.mxu0 %vm14479_vm2, %v14478_v31 }
0x1355   : > { %13588 = vmatprep.subr.bf16.mxu0 %v14478_v31 }
0x1359   : > { %13571 = vmatmul.mubr.msk.bf16.vlgmr.msra.gmra.mrb[48].mxu1 %vm2922_vm9, %v3646_v17 }
0x135a   : > { %13584 = vmatprep.mubr.msk.bf16.mxu1 %vm14479_vm2, %v14478_v31 }
0x135b   : > { %13577 = vmatmul.mubr.msk.bf16.vlgmr.msra.gmra.mrb[68].mxu0 %vm2922_vm9, %v3649_v27 }
0x135c   : > { %13592 = vmatprep.mubr.msk.bf16.mxu0 %vm14479_vm2, %v14478_v31 }
0x1414   : > { %v3690_v29 = vpop.f32.mrb[36].mxu1 }
0x1415   : > { %4018 = vxpose.xlu1.b32.start.end [1/1] (short) (narrow) %v3690_v29, 8  ;;  %v13536_v30 = vpop.f32.mrb[37].mxu1 }
0x1416   : > { %v3693_v20 = vpop.f32.mrb[38].mxu1  ;;  %v3736_v53 = vpop.f32.mrb[56].mxu0 }
0x1417   : > { %v13537_v32 = vpop.f32.mrb[39].mxu1  ;;  %4050 = vxpose.xlu0.b32.start.end [1/1] (short) (narrow) %v3736_v53, 8  ;;  %v13542_v61 = vpop.f32.mrb[57].mxu0 }
0x1418   : > { %v3739_v34 = vpop.f32.mrb[58].mxu0 }
0x1419   : > { %v13543_v38 = vpop.f32.mrb[59].mxu0 }
0x141c   : > { %v3782_v39 = vpop.f32.mrb[40].mxu1 }
0x141d   : > { %v13548_v43 = vpop.f32.mrb[41].mxu1  ;;  %4082 = vxpose.xlu0.b32.start.end [1/1] (short) (narrow) %v3782_v39, 8 }
0x141e   : > { %v3785_v26 = vpop.f32.mrb[42].mxu1  ;;  %v3828_v19 = vpop.f32.mrb[60].mxu0 }
0x141f   : > { %v13549_v41 = vpop.f32.mrb[43].mxu1  ;;  %4114 = vxpose.xlu1.b32.start.end [1/1] (short) (narrow) %v3828_v19, 8  ;;  %v13554_v45 = vpop.f32.mrb[61].mxu0 }
0x1420   : > { %v3831_v40 = vpop.f32.mrb[62].mxu0 }
0x1421   : > { %v13555_v62 = vpop.f32.mrb[63].mxu0 }
0x1422   : > { %v14171_v62 = vld [vmem:[%s16638_s6] sm:$0xff]  }
0x1423   : > { %13581 = vmatpush3.bf16.msra.mxu1 %v14171_v62 }
0x1424   : > { %v3874_v48 = vpop.f32.mrb[44].mxu1  ;;  %13582 = vmatprep.subr.bf16.mxu1 %v14478_v31 }
0x1425   : > { %v13560_v12 = vpop.f32.mrb[45].mxu1  ;;  %4146 = vxpose.xlu0.b32.start.end [1/1] (short) (narrow) %v3874_v48, 8 }
0x1426   : > { %v3877_v49 = vpop.f32.mrb[46].mxu1  ;;  %v3920_v50 = vpop.f32.mrb[64].mxu0 }
0x1427   : > { %v13561_v54 = vpop.f32.mrb[47].mxu1  ;;  %4178 = vxpose.xlu1.b32.start.end [1/1] (short) (narrow) %v3920_v50, 8  ;;  %v13566_v55 = vpop.f32.mrb[65].mxu0 }
0x1428   : > { %v3923_v33 = vpop.f32.mrb[66].mxu0 }
0x1429   : > { %v13567_v58 = vpop.f32.mrb[67].mxu0  ;;  %v14172_v33 = vld [vmem:[%s16638_s6 + $0x8] sm:$0xff]  }
0x142a   : > { %13583 = vmatpush3.bf16.msra.mxu1 %v14172_v33 }
0x142b   : > { %13596 = vmatprep.subr.bf16.mxu1 %v14478_v31 }
0x142c   : > { %v3966_v59 = vpop.f32.mrb[48].mxu1 }
0x142d   : > { %v13572_v0 = vpop.f32.mrb[49].mxu1  ;;  %4210 = vxpose.xlu0.b32.start.end [1/1] (short) (narrow) %v3966_v59, 8 }
0x142e   : > { %v3969_v3 = vpop.f32.mrb[50].mxu1  ;;  %v4012_v6 = vpop.f32.mrb[68].mxu0 }
0x142f   : > { %v13573_v5 = vpop.f32.mrb[51].mxu1  ;;  %4242 = vxpose.xlu1.b32.start.end [1/1] (short) (narrow) %v4012_v6, 8  ;;  %v13578_v11 = vpop.f32.mrb[69].mxu0 }
0x1430   : > { %v4015_v13 = vpop.f32.mrb[70].mxu0 }
0x1431   : > { %v13579_v42 = vpop.f32.mrb[71].mxu0 }
0x1495   : > { %v4034_v60 = vpop.trf.xlu1 }
0x1497   : > { %v4066_v15 = vpop.trf.xlu0 }
0x149d   : > { %v4098_v57 = vpop.trf.xlu0 }
0x149e   : > { %v4274_v16 = vcombine.low %v4034_v60, %v4098_v57 }
0x149f   : > { %v4130_v63 = vpop.trf.xlu1 }
0x14a0   : > { %v4281_v21 = vrot.slane %v4274_v16, %v14962_v10  ;;  %v4282_v37 = vcombine.low %v4066_v15, %v4130_v63 }
0x14a2   : > { %v4289_v2 = vrot.slane %v4282_v37, %v14962_v10 }
0x14a4   : > { %v4306_v46 = vcombine.low %v4281_v21, %v4289_v2  ;;  %v4307_v24 = vcombine.high %v4281_v21, %v4289_v2 }
0x14a5   : > { %v4162_v52 = vpop.trf.xlu0 }
0x14a6   : > { %v4314_v4 = vrot.slane %v4306_v46, %v14974_v23  ;;  %v4321_v1 = vrot.slane %v4307_v24, %v14974_v23 }
0x14a7   : > { %v4194_v25 = vpop.trf.xlu1 }
0x14a8   : > { %v12822_v28 = vcombine.low %v4314_v4, %v4321_v1  ;;  %v12824_v22 = vcombine.high %v4314_v4, %v4321_v1  ;;  %v14431_v4 = vld [vmem:[%s16634_s7] sm:$0xff] }
0x14a9   : > { %v4454_v1 = vrot.slane %v14431_v4, %v14847_v8  ;;  %v4537_v62 = vrot.slane %v14431_v4, %v14873_v36 }
0x14aa   : > { %v4350_v7 = vrot.slane %v12822_v28, %v14962_v10  ;;  %v4366_v17 = vrot.slane %v12824_v22, %v14962_v10 }
0x14ac   : > { %v4375_v27 = vcombine.high %v4350_v7, %v4366_v17  ;;  %v4374_v29 = vcombine.low %v4350_v7, %v4366_v17 }
0x14ad   : > { %v4226_v30 = vpop.trf.xlu0 }
0x14ae   : > { %v4290_v20 = vcombine.low %v4162_v52, %v4226_v30  ;;  %v4389_v53 = vrot.slane %v4375_v27, %v14974_v23  ;;  %v4382_v32 = vrot.slane %v4374_v29, %v14974_v23  ;;  %v4513_v52 = vrot.slane %v14431_v4, %v14850_v9 }
0x14af   : > { %v4258_v61 = vpop.trf.xlu1 }
0x14b0   : > { %v4298_v34 = vcombine.low %v4194_v25, %v4258_v61  ;;  %4415 = vrot.lane.b32.xlu1 %v4389_v53, %s16570_s26  ;;  %v4406_v38 = vcombine.high %v4382_v32, %v14478_v31  ;;  %v4407_v39 = vcombine.high %v4389_v53, %v14478_v31  ;;  %v4297_v43 = vrot.slane %v4290_v20, %v14962_v10  ;;  %s16574_s26 = smov 20  }
0x14b2   : > { %v4305_v26 = vrot.slane %v4298_v34, %v14962_v10  ;;  %4411 = vrot.lane.b32.xlu0 %v4406_v38, %s16568_s5  ;;  %s16578_s5 = smov 16  }
0x14b4   : > { %v4322_v19 = vcombine.low %v4297_v43, %v4305_v26  ;;  %v4323_v41 = vcombine.high %v4297_v43, %v4305_v26  ;;  %4419 = vrot.lane.b32.xlu1 %v4407_v39, %s16566_s3  ;;  %s16572_s3 = smov 24  }
0x14b6   : > { %v4330_v45 = vrot.slane %v4322_v19, %v14974_v23  ;;  %v4337_v40 = vrot.slane %v4323_v41, %v14974_v23  ;;  %v4532_v41 = vrot.slane %v14431_v4, %v14870_v35  ;;  %v2125_v4 = vld [vmem:[%s16634_s7 + $0x8] sm:$0x3] }
0x14b8   : > { %v12823_v48 = vcombine.low %v4330_v45, %v4337_v40  ;;  %v12825_v12 = vcombine.high %v4330_v45, %v4337_v40 }
0x14ba   : > { %v4357_v49 = vrot.slane %v12823_v48, %v14962_v10  ;;  %v4373_v50 = vrot.slane %v12825_v12, %v14962_v10 }
0x14bc   : > { %v4391_v54 = vcombine.high %v4357_v49, %v4373_v50  ;;  %v4390_v55 = vcombine.low %v4357_v49, %v4373_v50 }
0x14be   : > { %v4405_v58 = vrot.slane %v4391_v54, %v14974_v23  ;;  %v4398_v59 = vrot.slane %v4390_v55, %v14974_v23 }
0x14c0   : > { %4431 = vrot.lane.b32.xlu0 %v4405_v58, %s16572_s3  ;;  %4423 = vrot.lane.b32.xlu1 %v4398_v59, %s16578_s5  ;;  %v4408_v0 = vcombine.high %v4398_v59, %v14478_v31  ;;  %v4409_v3 = vcombine.high %v4405_v58, %v14478_v31  ;;  %s16639_s3 = sld [smem:[#allocation24_spill]]  ;;  %s16642_s5 = smov 124  }
0x14c4   : > { %4427 = vrot.lane.b32.xlu1 %v4408_v0, %s16574_s26  ;;  %s16640_s26 = sld [smem:[#allocation26_spill]] }
0x14c6   : > { %v14173_v38 = vld [vmem:[%s16639_s3] sm:$0xff]   ;;  %v14174_v39 = vld [vmem:[%s16639_s3 + $0x8] sm:$0xff]  }
0x14c7   : > { %13589 = vmatpush3.bf16.msra.mxu0 %v14173_v38 }
0x14c8   : > { %4435 = vrot.lane.b32.xlu1 %v4409_v3, %s16576_s8  ;;  %13590 = vmatprep.subr.bf16.mxu0 %v14478_v31  ;;  %s16641_s8 = sld [smem:[#allocation25_spill]] }
0x14ca   : > { %v14176_v50 = vld [vmem:[%s16640_s26 + $0x8] sm:$0xff]   ;;  %v14177_v54 = vld [vmem:[%s16640_s26 + $0x10] sm:$0xff]   ;;  %v14178_v55 = vld [vmem:[%s16640_s26 + $0x18] sm:$0xff]  }
0x14cb   : > { %13591 = vmatpush3.bf16.msra.mxu0 %v14174_v39  ;;  %v14179_v33 = vld [vmem:[%s16640_s26 + $0x20] sm:$0xff]   ;;  %v14180_v58 = vld [vmem:[%s16640_s26 + $0x28] sm:$0xff]   ;;  %v14181_v59 = vld [vmem:[%s16640_s26 + $0x30] sm:$0xff]  }
0x14cc   : > { %13616 = vmatprep.subr.bf16.mxu0 %v14478_v31  ;;  %v14182_v0 = vld [vmem:[%s16640_s26 + $0x38] sm:$0xff]   ;;  %v14183_v39 = vld [vmem:[%s16633_s2 + $0x10] sm:$0xff]  }
0x14ce   : > { %v12829_v3 = vld [vmem:[%s16641_s8] ss:$0 sm:$0xff] }
0x1522   : > { %v4416_v6 = vpop.permute.xlu1 %4415 }
0x1524   : > { %v4412_v5 = vpop.permute.xlu0 %4411 }
0x1525   : > { %v4438_v13 = vsel %vm2922_vm9, %v4382_v32, %v4412_v5 }
0x1526   : > { %v4420_v11 = vpop.permute.xlu1 %4419  ;;  %v4440_v42 = vsel %vm4439_vm11, %v4438_v13, %v4416_v6 }
0x1527   : > { %v4442_v60 = vsel %vm4441_vm12, %v4440_v42, %v4420_v11 }
0x1532   : > { %v4424_v15 = vpop.permute.xlu1 %4423  ;;  %v4432_v21 = vpop.permute.xlu0 %4431 }
0x1533   : > { %v4443_v57 = vsel %vm1144_vm4, %v4442_v60, %v4424_v15 }
0x1536   : > { %v4428_v16 = vpop.permute.xlu1 %4427 }
0x1537   : > { %v4445_v63 = vsel %vm4444_vm13, %v4443_v57, %v4428_v16 }
0x1538   : > { %v4447_v37 = vsel %vm4446_vm14, %v4445_v63, %v4432_v21 }
0x153a   : > { %v4436_v2 = vpop.permute.xlu1 %4435 }
0x153b   : > { %v4449_v46 = vsel %vm4448_vm15, %v4447_v37, %v4436_v2 }
0x153c   : > { %v4450_v24 = vpack.c.bf16 %v4449_v46, %v4449_v46 }
0x153e   : > { %13585 = vmatmul.mubr.msk.bf16.vlgmr.msra.gmra.mrb[52].mxu1 %vm1203_vm1, %v4450_v24 }
0x153f   : > { %13612 = vmatprep.mubr.msk.bf16.mxu1 %vm14479_vm2, %v14478_v31 }
0x1611   : > { %v4504_v28 = vpop.f32.mrb[52].mxu1 }
0x1612   : > { %v4505_v22 = vadd.f32 %v4504_v28, %v4454_v1  ;;  %v13586_v25 = vpop.f32.mrb[53].mxu1  ;;  %v4614_v1 = vrot.slane %v2125_v4, %v14722_v44 }
0x1613   : > { %v4507_v7 = vpop.f32.mrb[54].mxu1 }
0x1614   : > { %v4514_v17 = vmul.f32 %v4513_v52, %v4505_v22  ;;  %v13587_v27 = vpop.f32.mrb[55].mxu1  ;;  %v4706_v52 = vrot.slane %v2125_v4, %v14727_v47 }
0x1616   : > { %v15266_v29 = vadd.f32 %v4514_v17, %v14903_v18  ;;  %v14175_v18 = vld [vmem:[%s16640_s26] sm:$0xff]  }
0x1617   : > { %13597 = vmatpush3.bf16.msra.mxu1 %v14175_v18  ;;  %v14184_v18 = vld [vmem:[%s16633_s2 + $0x18] sm:$0xff]  }
0x1618   : > { %v4516_v30 = vsel %vm1506_vm5, %v15266_v29, 0.0  ;;  %13598 = vmatprep.subr.bf16.mxu1 %v14478_v31 }
0x1619   : > { %4517 = vadd.xlane.f32.xlu0 %v4516_v30 }
0x161b   : > { %13599 = vmatpush3.bf16.msra.mxu1 %v14176_v50  ;;  %v14185_v50 = vld [vmem:[%s16635_s10 + $0x10] sm:$0xff]  }
0x161c   : > { %13600 = vmatprep.subr.bf16.mxu1 %v14478_v31 }
0x161f   : > { %13601 = vmatpush3.bf16.msra.mxu1 %v14177_v54 }
0x1620   : > { %13602 = vmatprep.subr.bf16.mxu1 %v14478_v31 }
0x1623   : > { %13603 = vmatpush3.bf16.msra.mxu1 %v14178_v55 }
0x1624   : > { %13604 = vmatprep.subr.bf16.mxu1 %v14478_v31 }
0x1627   : > { %13605 = vmatpush3.bf16.msra.mxu1 %v14179_v33 }
0x1628   : > { %13606 = vmatprep.subr.bf16.mxu1 %v14478_v31 }
0x162b   : > { %13607 = vmatpush3.bf16.msra.mxu1 %v14180_v58  ;;  %v14186_v58 = vld [vmem:[%s16635_s10 + $0x18] sm:$0xff]  }
0x162c   : > { %13608 = vmatprep.subr.bf16.mxu1 %v14478_v31 }
0x162f   : > { %13609 = vmatpush3.bf16.msra.mxu1 %v14181_v59 }
0x1630   : > { %13610 = vmatprep.subr.bf16.mxu1 %v14478_v31 }
0x1633   : > { %13611 = vmatpush3.bf16.msra.mxu1 %v14182_v0 }
0x1634   : > { %13644 = vmatprep.subr.bf16.mxu1 %v14478_v31 }
0x16a6   : > { %v4518_v20 = vpop.xlane.xlu0 %4517 }
0x16a7   : > { %v4519_v53 = vmul.f32 0.03125, %v4518_v20 }
0x16a9   : > { %v4520_v32 = vsub.f32 %v15266_v29, %v4519_v53 }
0x16ab   : > { %v4521_v61 = vmul.f32 %v4520_v32, %v4520_v32 }
0x16ad   : > { %v4522_v34 = vsel %vm1506_vm5, %v4521_v61, 0.0 }
0x16ae   : > { %4523 = vadd.xlane.f32.xlu1 %v4522_v34 }
0x173b   : > { %v4524_v43 = vpop.xlane.xlu1 %4523 }
0x173c   : > { %v4525_v26 = vmul.f32 0.03125, %v4524_v43 }
0x173e   : > { %v4526_v19 = vadd.f32 1e-05, %v4525_v26 }
0x1740   : > { %14309 = vrsqrt.f32 %v4526_v19  ;;  %v12841_v19 = vld [vmem:[%s16634_s7 + $0x10] sm:$0xff] }
0x1741   : > { %v4782_v33 = vrot.slane %v12841_v19, %v14801_v56 }
0x174a   : > { %v14310_v45 = vpop.eup %14309 }
0x174b   : > { %v4528_v40 = vmul.f32 %v14310_v45, %v4520_v32 }
0x174d   : > { %v4533_v48 = vmul.f32 %v4532_v41, %v4528_v40  ;;  %v4767_v41 = vrot.slane %v12841_v19, %v14722_v44 }
0x174f   : > { %v4538_v12 = vadd.f32 %v4537_v62, %v4533_v48  ;;  %v4772_v62 = vrot.slane %v12841_v19, %v14727_v47 }
0x1751   : > { %v4539_v49 = vpack.c.bf16 %v4538_v12, %v4538_v12  ;;  %v4777_v12 = vrot.slane %v12841_v19, %v14796_v51 }
0x1753   : > { %13593 = vmatmul.mubr.msk.bf16.vlgmr.msra.gmra.mrb[72].mxu0 %vm1203_vm1, %v4539_v49 }
0x1754   : > { %13620 = vmatprep.mubr.msk.bf16.mxu0 %vm14479_vm2, %v14478_v31  ;;  %13617 = vmatpush3.bf16.msra.mxu0 %v14183_v39 }
0x1755   : > { %13618 = vmatprep.subr.bf16.mxu0 %v14478_v31 }
0x1758   : > { %13619 = vmatpush3.bf16.msra.mxu0 %v14184_v18 }
0x1759   : > { %13624 = vmatprep.subr.bf16.mxu0 %v14478_v31 }
0x1826   : > { %v4595_v6 = vpop.f32.mrb[72].mxu0 }
0x1827   : > { %v4596_v5 = vadd.f32 %v12829_v3, %v4595_v6  ;;  %v13594_v11 = vpop.f32.mrb[73].mxu0 }
0x1828   : > { %v4598_v13 = vpop.f32.mrb[74].mxu0 }
0x1829   : > { %v4602_v42 = vmul.f32 0.044715, %v4596_v5  ;;  %v13595_v15 = vpop.f32.mrb[75].mxu0  ;;  %v4601_v37 = vmul.f32 0.5, %v4596_v5 }
0x182b   : > { %v4603_v60 = vmul.f32 %v4602_v42, %v4596_v5 }
0x182d   : > { %v4604_v57 = vmul.f32 %v4603_v60, %v4596_v5 }
0x182f   : > { %v4605_v16 = vadd.f32 %v4604_v57, %v4596_v5  ;;  %v14432_v57 = vld [vmem:[%s16628_s15] sm:$0xf] }
0x1831   : > { %v4606_v63 = vmul.f32 0.7978846, %v4605_v16 }
0x1833   : > { %14311 = vtanh.f32 %v4606_v63 }
0x183d   : > { %v14312_v21 = vpop.eup %14311 }
0x183e   : > { %v4608_v2 = vadd.f32 1.0, %v14312_v21 }
0x1840   : > { %v4609_v46 = vmul.f32 %v4608_v2, %v4601_v37 }
0x1842   : > { %v4610_v24 = vpack.c.bf16 %v4609_v46, %v4609_v46 }
0x1844   : > { %13613 = vmatmul.mubr.bf16.vlgmr.msra.gmra.mrb[56].mxu1 %v4610_v24 }
0x1845   : > { %13646 = vmatprep.mubr.msk.bf16.mxu1 %vm14479_vm2, %v14478_v31 }
0x1917   : > { %v4697_v28 = vpop.f32.mrb[56].mxu1 }
0x1918   : > { %v4698_v22 = vadd.f32 %v4697_v28, %v4614_v1  ;;  %v13614_v25 = vpop.f32.mrb[57].mxu1 }
0x1919   : > { %v4700_v7 = vpop.f32.mrb[58].mxu1 }
0x191a   : > { %v4707_v17 = vmul.f32 %v4706_v52, %v4698_v22  ;;  %v13615_v27 = vpop.f32.mrb[59].mxu1 }
0x191c   : > { %v15304_v30 = vadd.f32 %v4707_v17, %v15266_v29 }
0x191e   : > { %v4751_v20 = vsel %vm1506_vm5, %v15304_v30, 0.0 }
0x191f   : > { %4752 = vadd.xlane.f32.xlu0 %v4751_v20 }
0x19ac   : > { %v4753_v53 = vpop.xlane.xlu0 %4752 }
0x19ad   : > { %v4754_v32 = vmul.f32 0.03125, %v4753_v53 }
0x19af   : > { %v4755_v61 = vsub.f32 %v15304_v30, %v4754_v32 }
0x19b1   : > { %v4756_v34 = vmul.f32 %v4755_v61, %v4755_v61 }
0x19b3   : > { %v4757_v38 = vsel %vm1506_vm5, %v4756_v34, 0.0 }
0x19b4   : > { %4758 = vadd.xlane.f32.xlu0 %v4757_v38 }
0x1a41   : > { %v4759_v29 = vpop.xlane.xlu0 %4758 }
0x1a42   : > { %v4760_v43 = vmul.f32 0.03125, %v4759_v29 }
0x1a44   : > { %v4761_v26 = vadd.f32 1e-05, %v4760_v43 }
0x1a46   : > { %14313 = vrsqrt.f32 %v4761_v26 }
0x1a50   : > { %v14314_v45 = vpop.eup %14313 }
0x1a51   : > { %v4763_v40 = vmul.f32 %v14314_v45, %v4755_v61 }
0x1a53   : > { %v4768_v48 = vmul.f32 %v4767_v41, %v4763_v40  ;;  %v4778_v55 = vmul.f32 %v4777_v12, %v4763_v40 }
0x1a55   : > { %v4773_v49 = vadd.f32 %v4772_v62, %v4768_v48  ;;  %v4783_v59 = vadd.f32 %v4782_v33, %v4778_v55 }
0x1a57   : > { %v4784_v54 = vpack.c.bf16 %v4773_v49, %v4773_v49  ;;  %v4840_v0 = vpack.c.bf16 %v4783_v59, %v4783_v59 }
0x1a59   : > { %13621 = vmatmul.mubr.msk.bf16.vlgmr.msra.gmra.mrb[76].mxu0 %vm1203_vm1, %v4784_v54 }
0x1a5a   : > { %13625 = vmatpush3.bf16.msra.mxu0 %v14185_v50  ;;  %13628 = vmatprep.mubr.msk.bf16.mxu0 %vm14479_vm2, %v14478_v31 }
0x1a5b   : > { %13626 = vmatprep.subr.bf16.mxu0 %v14478_v31 }
0x1a5e   : > { %13627 = vmatpush3.bf16.msra.mxu0 %v14186_v58 }
0x1a5f   : > { %13632 = vmatprep.subr.bf16.mxu0 %v14478_v31 }
0x1a61   : > { %13629 = vmatmul.mubr.msk.bf16.vlgmr.msra.gmra.mrb[80].mxu0 %vm1203_vm1, %v4840_v0 }
0x1a62   : > { %13634 = vmatprep.mubr.msk.bf16.mxu0 %vm14479_vm2, %v14478_v31 }
0x1b2c   : > { %v4834_v3 = vpop.f32.mrb[76].mxu0 }
0x1b2d   : > { %v13622_v6 = vpop.f32.mrb[77].mxu0  ;;  %v15346_v16 = vadd.f32 %v14432_v57, %v4834_v3 }
0x1b2e   : > { %v4837_v5 = vpop.f32.mrb[78].mxu0 }
0x1b2f   : > { %v13623_v11 = vpop.f32.mrb[79].mxu0 }
0x1b34   : > { %v15329_v13 = vpop.f32.mrb[80].mxu0 }
0x1b35   : > { %4990 = vrot.lane.b32.xlu1 %v15329_v13, %s16636_s0  ;;  %4987 = vrot.lane.b32.xlu0 %v15329_v13, %s16642_s5  ;;  %v13630_v42 = vpop.f32.mrb[81].mxu0 }
0x1b36   : > { %v4893_v15 = vpop.f32.mrb[82].mxu0 }
0x1b37   : > { %v13631_v60 = vpop.f32.mrb[83].mxu0 }
0x1b39   : > { %4993 = vrot.lane.b32.xlu1 %v15329_v13, %s16643_s9  ;;  %4999 = vrot.lane.b32.xlu0 %v15329_v13, %s16644_s11 }
0x1b3d   : > { %4996 = vrot.lane.b32.xlu1 %v15329_v13, %s16645_s12  ;;  %5005 = vrot.lane.b32.xlu0 %v15329_v13, %s16646_s14 }
0x1b41   : > { %5002 = vrot.lane.b32.xlu1 %v15329_v13, %s16647_s17 }
0x1b45   : > { %4897 = vrot.lane.b32.xlu1 %v15346_v16, %s16642_s5 }
0x1ba7   : > { %v15350_v63 = vpop.permute.xlu1 %4990  ;;  %v4988_v21 = vpop.permute.xlu0 %4987 }
0x1ba8   : > { %v5008_v1 = vcombine.low %v15329_v13, %v15350_v63 }
0x1baa   : > { %v5015_v25 = vrot.slane %v5008_v1, %v14962_v10 }
0x1bab   : > { %v15352_v37 = vpop.permute.xlu1 %4993  ;;  %v15354_v2 = vpop.permute.xlu0 %4999 }
0x1bac   : > { %v5016_v46 = vcombine.low %v4988_v21, %v15352_v37 }
0x1bae   : > { %v5023_v52 = vrot.slane %v5016_v46, %v14962_v10 }
0x1baf   : > { %v15357_v24 = vpop.permute.xlu1 %4996  ;;  %v15359_v4 = vpop.permute.xlu0 %5005 }
0x1bb0   : > { %v5032_v28 = vcombine.low %v15354_v2, %v15359_v4  ;;  %v5040_v17 = vcombine.low %v5015_v25, %v5023_v52  ;;  %v5041_v53 = vcombine.high %v5015_v25, %v5023_v52 }
0x1bb2   : > { %v5039_v27 = vrot.slane %v5032_v28, %v14962_v10  ;;  %v5048_v34 = vrot.slane %v5040_v17, %v14974_v23  ;;  %v5055_v43 = vrot.slane %v5041_v53, %v14974_v23 }
0x1bb3   : > { %v5003_v22 = vpop.permute.xlu1 %5002 }
0x1bb4   : > { %v5024_v7 = vcombine.low %v15357_v24, %v5003_v22 }
0x1bb6   : > { %v5031_v20 = vrot.slane %v5024_v7, %v14962_v10 }
0x1bb7   : > { %v4898_v48 = vpop.permute.xlu1 %4897 }
0x1bb8   : > { %v5056_v32 = vcombine.low %v5031_v20, %v5039_v27  ;;  %v5057_v61 = vcombine.high %v5031_v20, %v5039_v27 }
0x1bba   : > { %v5064_v38 = vrot.slane %v5056_v32, %v14974_v23  ;;  %v5071_v39 = vrot.slane %v5057_v61, %v14974_v23 }
0x1bbc   : > { %v5073_v18 = vcombine.high %v5048_v34, %v5064_v38  ;;  %v5072_v29 = vcombine.low %v5048_v34, %v5064_v38  ;;  %v5074_v41 = vcombine.low %v5055_v43, %v5071_v39  ;;  %v5075_v40 = vcombine.high %v5055_v43, %v5071_v39 }
0x1bbe   : > { %v5169_v26 = vpack.c.bf16 %v5073_v18, %v5073_v18  ;;  %v5168_v19 = vpack.c.bf16 %v5072_v29, %v5072_v29  ;;  %v5170_v45 = vpack.c.bf16 %v5074_v41, %v5074_v41  ;;  %v5171_v62 = vpack.c.bf16 %v5075_v40, %v5075_v40 }
0x1bc0   : > { %5280 = vxpose.xlu0.c.b16.start.end [1/1] (short) (narrow) %v5169_v26, 16  ;;  %5264 = vxpose.xlu1.c.b16.start.end [1/1] (short) (narrow) %v5168_v19, 16 }
0x1bc4   : > { %5296 = vxpose.xlu0.c.b16.start.end [1/1] (short) (narrow) %v5170_v45, 16  ;;  %4903 = vrot.lane.b32.xlu1 %v15346_v16, %s16643_s9 }
0x1bc8   : > { %5312 = vxpose.xlu0.c.b16.start.end [1/1] (short) (narrow) %v5171_v62, 16  ;;  %4906 = vrot.lane.b32.xlu1 %v15346_v16, %s16645_s12 }
0x1bcc   : > { %4909 = vrot.lane.b32.xlu1 %v15346_v16, %s16644_s11 }
0x1bd0   : > { %4915 = vrot.lane.b32.xlu1 %v15346_v16, %s16646_s14 }
0x1bd1   : > { %4900 = vrot.lane.b32.xlu0 %v15346_v16, %s16636_s0 }
0x1bd5   : > { %4912 = vrot.lane.b32.xlu0 %v15346_v16, %s16647_s17 }
0x1c26   : > { %v5288_v12 = vpop.trf.xlu0  ;;  %v5272_v49 = vpop.trf.xlu1 }
0x1c2a   : > { %v5304_v50 = vpop.trf.xlu0 }
0x1c2b   : > { %v5328_v54 = vcombine.low %v5272_v49, %v5304_v50 }
0x1c2d   : > { %v5335_v33 = vrot.slane %v5328_v54, %v14974_v23 }
0x1c2e   : > { %v5320_v55 = vpop.trf.xlu0 }
0x1c2f   : > { %v5337_v58 = vcombine.low %v5288_v12, %v5320_v55  ;;  %v5350_v0 = vshrl.u32 %v5335_v33, 16  ;;  %v5336_v42 = vcombine.high %v5335_v33, %v14490_v14 }
0x1c31   : > { %v5344_v59 = vrot.slane %v5337_v58, %v14974_v23  ;;  %v5358_v57 = vshrl.u32 %v5336_v42, 16 }
0x1c33   : > { %v5351_v3 = vshrl.u32 %v5344_v59, 16  ;;  %v5348_v6 = vpack.i.b16 %v5344_v59, %v5335_v33  ;;  %v5345_v5 = vcombine.high %v5344_v59, %v14490_v14 }
0x1c35   : > { %5362 = vxpose.xlu0.c.b16.start.end [1/1] (short) (narrow) %v5348_v6, 16  ;;  %v5352_v11 = vpack.i.b16 %v5351_v3, %v5350_v0  ;;  %v5356_v15 = vpack.i.b16 %v5345_v5, %v5336_v42  ;;  %v5359_v60 = vshrl.u32 %v5345_v5, 16 }
0x1c37   : > { %5378 = vxpose.xlu1.c.b16.start.end [1/1] (short) (narrow) %v5352_v11, 16  ;;  %v5360_v46 = vpack.i.b16 %v5359_v60, %v5358_v57 }
0x1c39   : > { %5394 = vxpose.xlu0.c.b16.start.end [1/1] (short) (narrow) %v5356_v15, 16 }
0x1c3b   : > { %5078 = vrot.lane.b32.xlu1 %v4988_v21, %s16637_s16  ;;  %v4904_v21 = vpop.permute.xlu1 %4903 }
0x1c3c   : > { %v4926_v17 = vcombine.low %v4898_v48, %v4904_v21 }
0x1c3d   : > { %5410 = vxpose.xlu0.c.b16.start.end [1/1] (short) (narrow) %v5360_v46, 16 }
0x1c3f   : > { %5080 = vrot.lane.b32.xlu1 %v15350_v63, %s16637_s16  ;;  %v4907_v1 = vpop.permute.xlu1 %4906 }
0x1c43   : > { %5082 = vrot.lane.b32.xlu1 %v15352_v37, %s16637_s16  ;;  %v4901_v63 = vpop.permute.xlu0 %4900  ;;  %v4910_v52 = vpop.permute.xlu1 %4909 }
0x1c46   : > { %5076 = vrot.lane.b32.xlu0 %v15329_v13, %s16637_s16  ;;  %v4918_v13 = vcombine.low %v15346_v16, %v4901_v63 }
0x1c47   : > { %5086 = vrot.lane.b32.xlu1 %v15354_v2, %s16637_s16  ;;  %v4913_v28 = vpop.permute.xlu0 %4912  ;;  %v4916_v37 = vpop.permute.xlu1 %4915 }
0x1c48   : > { %v4934_v25 = vcombine.low %v4907_v1, %v4913_v28  ;;  %v4942_v7 = vcombine.low %v4910_v52, %v4916_v37  ;;  %v4925_v27 = vrot.slane %v4918_v13, %v14962_v10 }
0x1c4a   : > { %5084 = vrot.lane.b32.xlu0 %v15357_v24, %s16637_s16  ;;  %v4941_v2 = vrot.slane %v4934_v25, %v14962_v10  ;;  %v4949_v24 = vrot.slane %v4942_v7, %v14962_v10 }
0x1c4b   : > { %5090 = vrot.lane.b32.xlu1 %v15359_v4, %s16637_s16  ;;  %v4933_v4 = vrot.slane %v4926_v17, %v14962_v10 }
0x1c4c   : > { %v4967_v20 = vcombine.high %v4941_v2, %v4949_v24 }
0x1c4d   : > { %v4950_v53 = vcombine.low %v4925_v27, %v4933_v4  ;;  %v4951_v32 = vcombine.high %v4925_v27, %v4933_v4 }
0x1c4e   : > { %5088 = vrot.lane.b32.xlu0 %v5003_v22, %s16637_s16  ;;  %v4966_v22 = vcombine.low %v4941_v2, %v4949_v24  ;;  %v4981_v34 = vrot.slane %v4967_v20, %v14974_v23 }
0x1c4f   : > { %v4958_v38 = vrot.slane %v4950_v53, %v14974_v23  ;;  %v4965_v16 = vrot.slane %v4951_v32, %v14974_v23 }
0x1c50   : > { %v4974_v61 = vrot.slane %v4966_v22, %v14974_v23 }
0x1c51   : > { %v4984_v29 = vcombine.low %v4965_v16, %v4981_v34  ;;  %v4985_v43 = vcombine.high %v4965_v16, %v4981_v34 }
0x1c52   : > { %v4982_v39 = vcombine.low %v4958_v38, %v4974_v61  ;;  %v4983_v18 = vcombine.high %v4958_v38, %v4974_v61 }
0x1c53   : > { %v5180_v19 = vpack.c.bf16 %v4984_v29, %v4984_v29  ;;  %v5214_v45 = vpack.c.bf16 %v4985_v43, %v4985_v43 }
0x1c54   : > { %v5172_v26 = vpack.c.bf16 %v4982_v39, %v4982_v39  ;;  %v5206_v41 = vpack.c.bf16 %v4983_v18, %v4983_v18 }
0x1c55   : > { %v5187_v48 = vrot.slane %v5180_v19, %v14962_v10  ;;  %v5221_v49 = vrot.slane %v5214_v45, %v14962_v10 }
0x1c56   : > { %v5179_v62 = vrot.slane %v5172_v26, %v14962_v10  ;;  %v5213_v12 = vrot.slane %v5206_v41, %v14962_v10 }
0x1c58   : > { %v5188_v0 = vcombine.low %v5179_v62, %v5187_v48  ;;  %v5222_v3 = vcombine.low %v5213_v12, %v5221_v49  ;;  %v5189_v32 = vcombine.high %v5179_v62, %v5187_v48  ;;  %v5223_v61 = vcombine.high %v5213_v12, %v5221_v49 }
0x1c5a   : > { %v5196_v60 = vrot.slane %v5188_v0, %v14974_v23  ;;  %v5230_v57 = vrot.slane %v5222_v3, %v14974_v23  ;;  %v5203_v41 = vrot.slane %v5189_v32, %v14974_v23  ;;  %v5237_v45 = vrot.slane %v5223_v61, %v14974_v23 }
0x1c5c   : > { %v15431_v7 = vcombine.high %v5196_v60, %v14490_v14  ;;  %v15434_v13 = vcombine.high %v5230_v57, %v14490_v14  ;;  %v5242_v20 = vpack.i.b16 %v5230_v57, %v5196_v60  ;;  %v5243_v18 = vshrl.u32 %v5196_v60, 16 }
0x1c5d   : > { %v5244_v43 = vshrl.u32 %v5230_v57, 16 }
0x1c5e   : > { %v5248_v38 = vpack.i.b16 %v15434_v13, %v15431_v7 }
0x1c5f   : > { %v5245_v12 = vpack.i.b16 %v5244_v43, %v5243_v18 }
0x1c9b   : > { %v5370_v40 = vpop.trf.xlu0 }
0x1c9c   : > { %v5432_v55 = vrot.slane %v5370_v40, %v14962_v10 }
0x1c9d   : > { %v5386_v54 = vpop.trf.xlu1 }
0x1c9e   : > { %v5464_v59 = vrot.slane %v5386_v54, %v14962_v10 }
0x1c9f   : > { %v5402_v50 = vpop.trf.xlu0 }
0x1ca0   : > { %v5439_v33 = vrot.slane %v5402_v50, %v14962_v10 }
0x1ca2   : > { %v5440_v58 = vcombine.low %v5432_v55, %v5439_v33  ;;  %v5441_v46 = vcombine.high %v5432_v55, %v5439_v33  ;;  %v5254_v33 = vpack.i.b16 %v5237_v45, %v5203_v41 }
0x1ca3   : > { %v5418_v6 = vpop.trf.xlu0 }
0x1ca4   : > { %v5471_v5 = vrot.slane %v5418_v6, %v14962_v10  ;;  %v5448_v11 = vrot.slane %v5440_v58, %v14974_v23  ;;  %v5455_v17 = vrot.slane %v5441_v46, %v14974_v23  ;;  %v5249_v6 = vshrl.u32 %v15431_v7, 16 }
0x1ca5   : > { %v5205_v46 = vcombine.high %v5203_v41, %v14490_v14 }
0x1ca6   : > { %v5472_v42 = vcombine.low %v5464_v59, %v5471_v5  ;;  %v5473_v15 = vcombine.high %v5464_v59, %v5471_v5  ;;  %v5456_v1 = vcombine.high %v5448_v11, %v14490_v14  ;;  %v5493_v63 = vshrl.u32 %v5448_v11, 16 }
0x1ca7   : > { %v5457_v62 = vcombine.high %v5455_v17, %v14490_v14  ;;  %v5250_v5 = vshrl.u32 %v15434_v13, 16 }
0x1ca8   : > { %v5480_v21 = vrot.slane %v5472_v42, %v14974_v23  ;;  %v15427_v52 = vrot.slane %v5473_v15, %v14974_v23  ;;  %v5499_v26 = vshrl.u32 %v5456_v1, 16 }
0x1caa   : > { %v5492_v28 = vpack.i.b16 %v5480_v21, %v5448_v11  ;;  %v5488_v37 = vcombine.high %v5480_v21, %v14490_v14  ;;  %v5494_v25 = vshrl.u32 %v5480_v21, 16  ;;  %v5504_v53 = vpack.i.b16 %v15427_v52, %v5455_v17 }
0x1cab   : > { %v5489_v19 = vcombine.high %v15427_v52, %v14490_v14  ;;  %v5506_v58 = vshrl.u32 %v15427_v52, 16  ;;  %v5505_v11 = vshrl.u32 %v5455_v17, 16  ;;  %v5239_v21 = vcombine.high %v5237_v45, %v14490_v14 }
0x1cac   : > { %v5518_v2 = vsel %vm1821_vm7, %v5492_v28, 0  ;;  %v5498_v24 = vpack.i.b16 %v5488_v37, %v5456_v1  ;;  %v5495_v27 = vpack.i.b16 %v5494_v25, %v5493_v63  ;;  %v5500_v16 = vshrl.u32 %v5488_v37, 16 }
0x1cad   : > { %13633 = vmatpush3.bf16.msra.mxu0 %v5518_v2  ;;  %v5079_v4 = vpop.permute.xlu1 %5078  ;;  %v5702_v29 = vsel %vm1821_vm7, %v5504_v53, 0  ;;  %v5510_v49 = vpack.i.b16 %v5489_v19, %v5457_v62  ;;  %v5507_v57 = vpack.i.b16 %v5506_v58, %v5505_v11  ;;  %v5251_v52 = vpack.i.b16 %v5250_v5, %v5249_v6 }
0x1cae   : > { %v5610_v22 = vsel %vm1821_vm7, %v5498_v24, 0  ;;  %13638 = vmatprep.subr.bf16.mxu0 %v14478_v31  ;;  %v5564_v34 = vsel %vm1821_vm7, %v5495_v27, 0  ;;  %v5501_v40 = vpack.i.b16 %v5500_v16, %v5499_v26  ;;  %v5260_v7 = vpack.i.b16 %v5239_v21, %v5205_v46 }
0x1caf   : > { %13645 = vmatpush3.bf16.msra.mxu1 %v5610_v22  ;;  %v5794_v3 = vsel %vm1821_vm7, %v5510_v49, 0  ;;  %v5748_v25 = vsel %vm1821_vm7, %v5507_v57, 0  ;;  %v5512_v13 = vshrl.u32 %v5489_v19, 16  ;;  %v5255_v2 = vshrl.u32 %v5203_v41, 16 }
0x1cb0   : > { %13635 = vmatmul.mubr.msk.bf16.vlgmr.msra.gmra.mrb[84].mxu0 %vm2922_vm9, %v5242_v20  ;;  %13656 = vmatprep.subr.bf16.mxu1 %v14478_v31  ;;  %v5656_v55 = vsel %vm1821_vm7, %v5501_v40, 0  ;;  %v5256_v24 = vshrl.u32 %v5237_v45, 16  ;;  %v5511_v27 = vshrl.u32 %v5457_v62, 16  ;;  %v5261_v41 = vshrl.u32 %v5205_v46, 16 }
0x1cb1   : > { %13639 = vmatpush3.bf16.msra.mxu0 %v5564_v34  ;;  %v5081_v39 = vpop.permute.xlu1 %5080  ;;  %13640 = vmatprep.mubr.msk.bf16.mxu0 %vm14479_vm2, %v14478_v31  ;;  %v5262_v45 = vshrl.u32 %v5239_v21, 16 }
0x1cb2   : > { %13647 = vmatmul.mubr.msk.bf16.vlgmr.msra.gmra.mrb[60].mxu1 %vm2922_vm9, %v5248_v38  ;;  %13650 = vmatprep.subr.bf16.mxu0 %v14478_v31  ;;  %v5513_v53 = vpack.i.b16 %v5512_v13, %v5511_v27  ;;  %v5257_v34 = vpack.i.b16 %v5256_v24, %v5255_v2 }
0x1cb3   : > { %13657 = vmatpush3.bf16.msra.mxu1 %v5702_v29  ;;  %13658 = vmatprep.mubr.msk.bf16.mxu1 %vm14479_vm2, %v14478_v31 }
0x1cb4   : > { %13668 = vmatprep.subr.bf16.mxu1 %v14478_v31  ;;  %v5840_v29 = vsel %vm1821_vm7, %v5513_v53, 0 }
0x1cb5   : > { %v5083_v48 = vpop.permute.xlu1 %5082 }
0x1cb6   : > { %v5108_v50 = vcombine.low %v5079_v4, %v5083_v48  ;;  %v5263_v48 = vpack.i.b16 %v5262_v45, %v5261_v41 }
0x1cb8   : > { %v5077_v54 = vpop.permute.xlu0 %5076  ;;  %13641 = vmatmul.mubr.msk.bf16.vlgmr.msra.gmra.mrb[88].mxu0 %vm2922_vm9, %v5245_v12  ;;  %v5115_v42 = vrot.slane %v5108_v50, %v14962_v10 }
0x1cb9   : > { %v5100_v59 = vcombine.low %v5077_v54, %v5081_v39  ;;  %13651 = vmatpush3.bf16.msra.mxu0 %v5656_v55  ;;  %v5087_v0 = vpop.permute.xlu1 %5086  ;;  %13652 = vmatprep.mubr.msk.bf16.mxu0 %vm14479_vm2, %v14478_v31 }
0x1cba   : > { %13659 = vmatmul.mubr.msk.bf16.vlgmr.msra.gmra.mrb[64].mxu1 %vm2922_vm9, %v5254_v33  ;;  %13662 = vmatprep.subr.bf16.mxu0 %v14478_v31 }
0x1cbb   : > { %v5107_v15 = vrot.slane %v5100_v59, %v14962_v10  ;;  %13669 = vmatpush3.bf16.msra.mxu1 %v5794_v3  ;;  %13670 = vmatprep.mubr.msk.bf16.mxu1 %vm14479_vm2, %v14478_v31 }
0x1cbc   : > { %v5085_v60 = vpop.permute.xlu0 %5084  ;;  %13680 = vmatprep.subr.bf16.mxu1 %v14478_v31 }
0x1cbd   : > { %v5133_v1 = vcombine.high %v5107_v15, %v5115_v42  ;;  %v5091_v63 = vpop.permute.xlu1 %5090  ;;  %v5132_v4 = vcombine.low %v5107_v15, %v5115_v42 }
0x1cbe   : > { %v5124_v28 = vcombine.low %v5087_v0, %v5091_v63 }
0x1cbf   : > { %v5140_v38 = vrot.slane %v5132_v4, %v14974_v23  ;;  %v5147_v16 = vrot.slane %v5133_v1, %v14974_v23 }
0x1cc0   : > { %v5089_v37 = vpop.permute.xlu0 %5088  ;;  %13653 = vmatmul.mubr.msk.bf16.vlgmr.msra.gmra.mrb[92].mxu0 %vm2922_vm9, %v5251_v52  ;;  %v5131_v22 = vrot.slane %v5124_v28, %v14962_v10 }
0x1cc1   : > { %v5116_v17 = vcombine.low %v5085_v60, %v5089_v37  ;;  %13663 = vmatpush3.bf16.msra.mxu0 %v5748_v25  ;;  %13664 = vmatprep.mubr.msk.bf16.mxu0 %vm14479_vm2, %v14478_v31 }
0x1cc2   : > { %13671 = vmatmul.mubr.msk.bf16.vlgmr.msra.gmra.mrb[68].mxu1 %vm2922_vm9, %v5260_v7  ;;  %13674 = vmatprep.subr.bf16.mxu0 %v14478_v31 }
0x1cc3   : > { %v5123_v20 = vrot.slane %v5116_v17, %v14962_v10  ;;  %13682 = vmatprep.mubr.msk.bf16.mxu1 %vm14479_vm2, %v14478_v31 }
0x1cc5   : > { %v5148_v32 = vcombine.low %v5123_v20, %v5131_v22  ;;  %v5149_v61 = vcombine.high %v5123_v20, %v5131_v22 }
0x1cc7   : > { %v5156_v39 = vrot.slane %v5148_v32, %v14974_v23  ;;  %v5163_v18 = vrot.slane %v5149_v61, %v14974_v23 }
0x1cc8   : > { %13665 = vmatmul.mubr.msk.bf16.vlgmr.msra.gmra.mrb[96].mxu0 %vm2922_vm9, %v5257_v34 }
0x1cc9   : > { %13675 = vmatpush3.bf16.msra.mxu0 %v5840_v29  ;;  %v5164_v43 = vcombine.low %v5140_v38, %v5156_v39  ;;  %13676 = vmatprep.mubr.msk.bf16.mxu0 %vm14479_vm2, %v14478_v31  ;;  %v5166_v26 = vcombine.low %v5147_v16, %v5163_v18  ;;  %v5167_v19 = vcombine.high %v5147_v16, %v5163_v18 }
0x1cca   : > { %v5165_v40 = vcombine.high %v5140_v38, %v5156_v39  ;;  %13686 = vmatprep.subr.bf16.mxu0 %v14478_v31 }
0x1ccb   : > { %v5986_v62 = vpack.c.bf16 %v5164_v43, %v5164_v43  ;;  %v5988_v29 = vpack.c.bf16 %v5166_v26, %v5166_v26  ;;  %v5989_v43 = vpack.c.bf16 %v5167_v19, %v5167_v19 }
0x1ccc   : > { %v5987_v41 = vpack.c.bf16 %v5165_v40, %v5165_v40 }
0x1ccd   : > { %5990 = vxpose.xlu0.c.b16.start.end [1/1] (short) (narrow) %v5986_v62, 16 }
0x1cd0   : > { %13677 = vmatmul.mubr.msk.bf16.vlgmr.msra.gmra.mrb[100].mxu0 %vm2922_vm9, %v5263_v48 }
0x1cd1   : > { %13688 = vmatprep.mubr.msk.bf16.mxu0 %vm14479_vm2, %v14478_v31 }
0x1d33   : > { %v5998_v19 = vpop.trf.xlu0 }
0x1d83   : > { %v5554_v12 = vpop.f32.mrb[84].mxu0 }
0x1d84   : > { %v15498_v49 = vmul.f32 0.5, %v5554_v12  ;;  %v13636_v50 = vpop.f32.mrb[85].mxu0 }
0x1d85   : > { %v5557_v54 = vpop.f32.mrb[86].mxu0  ;;  %v5646_v55 = vpop.f32.mrb[60].mxu1 }
0x1d86   : > { %v15500_v33 = vmul.f32 0.5, %v5646_v55  ;;  %v13637_v58 = vpop.f32.mrb[87].mxu0  ;;  %v13648_v59 = vpop.f32.mrb[61].mxu1  ;;  %v5890_v0 = vsel %vm3299_vm10, %v15498_v49, -inf }
0x1d87   : > { %v5649_v3 = vpop.f32.mrb[62].mxu1  ;;  %5891 = vmax.xlane.f32.xlu0 %v5890_v0 }
0x1d88   : > { %v13649_v6 = vpop.f32.mrb[63].mxu1  ;;  %v5896_v5 = vsel %vm3299_vm10, %v15500_v33, -inf }
0x1d8b   : > { %5897 = vmax.xlane.f32.xlu0 %v5896_v5  ;;  %v5600_v11 = vpop.f32.mrb[88].mxu0 }
0x1d8c   : > { %v15506_v42 = vmul.f32 0.5, %v5600_v11  ;;  %v13642_v15 = vpop.f32.mrb[89].mxu0 }
0x1d8d   : > { %v5603_v60 = vpop.f32.mrb[90].mxu0  ;;  %v5738_v57 = vpop.f32.mrb[64].mxu1 }
0x1d8e   : > { %v15508_v46 = vmul.f32 0.5, %v5738_v57  ;;  %v13643_v21 = vpop.f32.mrb[91].mxu0  ;;  %v13660_v1 = vpop.f32.mrb[65].mxu1  ;;  %v5893_v63 = vsel %vm3299_vm10, %v15506_v42, -inf }
0x1d8f   : > { %v5741_v52 = vpop.f32.mrb[66].mxu1  ;;  %5894 = vmax.xlane.f32.xlu1 %v5893_v63 }
0x1d90   : > { %v13661_v28 = vpop.f32.mrb[67].mxu1  ;;  %v5902_v37 = vsel %vm3299_vm10, %v15508_v46, -inf }
0x1d91   : > { %5903 = vmax.xlane.f32.xlu0 %v5902_v37 }
0x1d93   : > { %v5692_v25 = vpop.f32.mrb[92].mxu0 }
0x1d94   : > { %v15514_v7 = vmul.f32 0.5, %v5692_v25  ;;  %v13654_v13 = vpop.f32.mrb[93].mxu0 }
0x1d95   : > { %v5695_v17 = vpop.f32.mrb[94].mxu0  ;;  %v5830_v2 = vpop.f32.mrb[68].mxu1 }
0x1d96   : > { %v13655_v24 = vpop.f32.mrb[95].mxu0  ;;  %v13672_v27 = vpop.f32.mrb[69].mxu1  ;;  %v5899_v4 = vsel %vm3299_vm10, %v15514_v7, -inf  ;;  %v15518_v45 = vmul.f32 0.5, %v5830_v2 }
0x1d97   : > { %v5833_v22 = vpop.f32.mrb[70].mxu1  ;;  %5900 = vmax.xlane.f32.xlu1 %v5899_v4 }
0x1d98   : > { %v13673_v20 = vpop.f32.mrb[71].mxu1  ;;  %v5908_v48 = vsel %vm3299_vm10, %v15518_v45, -inf }
0x1d9b   : > { %v5784_v53 = vpop.f32.mrb[96].mxu0 }
0x1d9c   : > { %v13666_v32 = vpop.f32.mrb[97].mxu0  ;;  %v15520_v62 = vmul.f32 0.5, %v5784_v53 }
0x1d9d   : > { %v5787_v61 = vpop.f32.mrb[98].mxu0 }
0x1d9e   : > { %v13667_v34 = vpop.f32.mrb[99].mxu0  ;;  %v5905_v50 = vsel %vm3299_vm10, %v15520_v62, -inf }
0x1da3   : > { %v5876_v38 = vpop.f32.mrb[100].mxu0 }
0x1da4   : > { %v13678_v16 = vpop.f32.mrb[101].mxu0  ;;  %v15524_v12 = vmul.f32 0.5, %v5876_v38 }
0x1da5   : > { %v5879_v39 = vpop.f32.mrb[102].mxu0 }
0x1da6   : > { %v13679_v18 = vpop.f32.mrb[103].mxu0  ;;  %v5911_v26 = vsel %vm3299_vm10, %v15524_v12, -inf }
0x1dbe   : > { %6022 = vxpose.xlu0.c.b16.start.end [1/1] (short) (narrow) %v5988_v29, 16 }
0x1dc2   : > { %6038 = vxpose.xlu0.c.b16.start.end [1/1] (short) (narrow) %v5989_v43, 16 }
0x1dc4   : > { %6006 = vxpose.xlu1.c.b16.start.end [1/1] (short) (narrow) %v5987_v41, 16 }
0x1dcf   : > { %5909 = vmax.xlane.f32.xlu0 %v5908_v48 }
0x1dd1   : > { %5906 = vmax.xlane.f32.xlu1 %v5905_v50 }
0x1dd5   : > { %5912 = vmax.xlane.f32.xlu1 %v5911_v26 }
0x1e14   : > { %v5892_v40 = vpop.xlane.xlu0 %5891 }
0x1e15   : > { %v5914_v6 = vsub.f32 %v15498_v49, %v5892_v40 }
0x1e17   : > { %v5922_v1 = vmul.f32 1.442695, %v5914_v6 }
0x1e18   : > { %v5898_v54 = vpop.xlane.xlu0 %5897 }
0x1e19   : > { %v5916_v63 = vsub.f32 %v15500_v33, %v5898_v54  ;;  %14315 = vpow2.f32 %v5922_v1 }
0x1e1b   : > { %v5926_v2 = vmul.f32 1.442695, %v5916_v63 }
0x1e1c   : > { %v5895_v58 = vpop.xlane.xlu1 %5894 }
0x1e1d   : > { %v5915_v15 = vsub.f32 %v15506_v42, %v5895_v58 }
0x1e1e   : > { %v5904_v55 = vpop.xlane.xlu0 %5903 }
0x1e1f   : > { %v5924_v37 = vmul.f32 1.442695, %v5915_v15  ;;  %v5918_v24 = vsub.f32 %v15508_v46, %v5904_v55 }
0x1e21   : > { %14317 = vpow2.f32 %v5924_v37 }
0x1e22   : > { %14319 = vpow2.f32 %v5926_v2 }
0x1e23   : > { %v14316_v53 = vpop.eup %14315 }
0x1e24   : > { %v6030_v59 = vpop.trf.xlu0  ;;  %v5901_v3 = vpop.xlane.xlu1 %5900  ;;  %v5938_v61 = vsel %vm3299_vm10, %v14316_v53, 0.0 }
0x1e25   : > { %v6054_v0 = vcombine.low %v5998_v19, %v6030_v59  ;;  %v5917_v25 = vsub.f32 %v15514_v7, %v5901_v3  ;;  %v5930_v7 = vmul.f32 1.442695, %v5918_v24 }
0x1e27   : > { %v6061_v11 = vrot.slane %v6054_v0, %v14974_v23  ;;  %v5928_v22 = vmul.f32 1.442695, %v5917_v25 }
0x1e28   : > { %v6046_v5 = vpop.trf.xlu0 }
0x1e29   : > { %v15534_v57 = vcombine.high %v6061_v11, %v14490_v14  ;;  %v6076_v52 = vshrl.u32 %v6061_v11, 16  ;;  %14321 = vpow2.f32 %v5928_v22 }
0x1e2a   : > { %v6014_v60 = vpop.trf.xlu1  ;;  %14323 = vpow2.f32 %v5930_v7 }
0x1e2b   : > { %v6063_v21 = vcombine.low %v6014_v60, %v6046_v5  ;;  %v6084_v42 = vshrl.u32 %v15534_v57, 16  ;;  %v14318_v32 = vpop.eup %14317 }
0x1e2c   : > { %v15544_v34 = vpop.eup %14319  ;;  %v5941_v46 = vsel %vm3299_vm10, %v14318_v32, 0.0 }
0x1e2d   : > { %v6070_v28 = vrot.slane %v6063_v21, %v14974_v23  ;;  %v5944_v16 = vsel %vm3299_vm10, %v15544_v34, 0.0 }
0x1e2f   : > { %v6071_v49 = vcombine.high %v6070_v28, %v14490_v14  ;;  %v6077_v13 = vshrl.u32 %v6070_v28, 16  ;;  %v6074_v17 = vpack.i.b16 %v6070_v28, %v6061_v11 }
0x1e31   : > { %6088 = vxpose.xlu0.c.b16.start.end [1/1] (short) (narrow) %v6074_v17, 16  ;;  %v6078_v27 = vpack.i.b16 %v6077_v13, %v6076_v52  ;;  %v6082_v33 = vpack.i.b16 %v6071_v49, %v15534_v57  ;;  %v6085_v4 = vshrl.u32 %v6071_v49, 16 }
0x1e33   : > { %6104 = vxpose.xlu1.c.b16.start.end [1/1] (short) (narrow) %v6078_v27, 16  ;;  %v6086_v20 = vpack.i.b16 %v6085_v4, %v6084_v42  ;;  %v15547_v38 = vpop.eup %14321 }
0x1e34   : > { %v15551_v39 = vpop.eup %14323  ;;  %v5947_v18 = vsel %vm3299_vm10, %v15547_v38, 0.0 }
0x1e35   : > { %v5950_v29 = vsel %vm3299_vm10, %v15551_v39, 0.0 }
0x1e3e   : > { %5939 = vadd.xlane.f32.xlu0 %v5938_v61 }
0x1e40   : > { %5942 = vadd.xlane.f32.xlu1 %v5941_v46 }
0x1e42   : > { %5945 = vadd.xlane.f32.xlu0 %v5944_v16 }
0x1e44   : > { %5948 = vadd.xlane.f32.xlu1 %v5947_v18 }
0x1e46   : > { %5951 = vadd.xlane.f32.xlu0 %v5950_v29 }
0x1e5c   : > { %v5910_v43 = vpop.xlane.xlu0 %5909 }
0x1e5d   : > { %v5920_v41 = vsub.f32 %v15518_v45, %v5910_v43 }
0x1e5e   : > { %v5907_v48 = vpop.xlane.xlu1 %5906 }
0x1e5f   : > { %v5934_v50 = vmul.f32 1.442695, %v5920_v41  ;;  %v5919_v26 = vsub.f32 %v15520_v62, %v5907_v48 }
0x1e61   : > { %14325 = vpow2.f32 %v5934_v50  ;;  %v5932_v19 = vmul.f32 1.442695, %v5919_v26 }
0x1e62   : > { %v5913_v40 = vpop.xlane.xlu1 %5912 }
0x1e63   : > { %14327 = vpow2.f32 %v5932_v19  ;;  %v5921_v54 = vsub.f32 %v15524_v12, %v5913_v40 }
0x1e65   : > { %v5936_v55 = vmul.f32 1.442695, %v5921_v54 }
0x1e67   : > { %14329 = vpow2.f32 %v5936_v55 }
0x1e6b   : > { %v15560_v58 = vpop.eup %14325 }
0x1e6c   : > { %v5956_v59 = vsel %vm3299_vm10, %v15560_v58, 0.0 }
0x1e6d   : > { %v15564_v0 = vpop.eup %14327  ;;  %5957 = vadd.xlane.f32.xlu0 %v5956_v59 }
0x1e6e   : > { %v5953_v45 = vsel %vm3299_vm10, %v15564_v0, 0.0 }
0x1e6f   : > { %5954 = vadd.xlane.f32.xlu1 %v5953_v45 }
0x1e71   : > { %v15568_v62 = vpop.eup %14329 }
0x1e72   : > { %v5959_v3 = vsel %vm3299_vm10, %v15568_v62, 0.0 }
0x1e73   : > { %5960 = vadd.xlane.f32.xlu1 %v5959_v3 }
0x1e97   : > { %v6096_v12 = vpop.trf.xlu0 }
0x1e98   : > { %v6158_v27 = vrot.slane %v6096_v12, %v14962_v10 }
0x1e99   : > { %v6112_v6 = vpop.trf.xlu1 }
0x1e9a   : > { %6120 = vxpose.xlu0.c.b16.start.end [1/1] (short) (narrow) %v6082_v33, 16  ;;  %v6190_v7 = vrot.slane %v6112_v6, %v14962_v10 }
0x1ea0   : > { %6136 = vxpose.xlu1.c.b16.start.end [1/1] (short) (narrow) %v6086_v20, 16 }
0x1ecb   : > { %v5940_v5 = vpop.xlane.xlu0 %5939 }
0x1ecc   : > { %14331 = vrcp.f32 %v5940_v5 }
0x1ecd   : > { %v5943_v11 = vpop.xlane.xlu1 %5942 }
0x1ece   : > { %14333 = vrcp.f32 %v5943_v11 }
0x1ecf   : > { %v5946_v37 = vpop.xlane.xlu0 %5945 }
0x1ed0   : > { %14335 = vrcp.f32 %v5946_v37 }
0x1ed1   : > { %v5949_v25 = vpop.xlane.xlu1 %5948 }
0x1ed2   : > { %14337 = vrcp.f32 %v5949_v25 }
0x1ed3   : > { %v5952_v49 = vpop.xlane.xlu0 %5951 }
0x1ed4   : > { %14339 = vrcp.f32 %v5952_v49 }
0x1ed6   : > { %v14332_v15 = vpop.eup %14331 }
0x1ed7   : > { %v5970_v60 = vmul.f32 %v14332_v15, %v14316_v53 }
0x1ed8   : > { %v14334_v57 = vpop.eup %14333 }
0x1ed9   : > { %v5978_v21 = vpack.c.bf16 %v5970_v60, %v5970_v60  ;;  %v5971_v1 = vmul.f32 %v14334_v57, %v14318_v32 }
0x1eda   : > { %v14336_v33 = vpop.eup %14335 }
0x1edb   : > { %v6244_v63 = vsel %vm2922_vm9, %v5978_v21, 0  ;;  %v5979_v52 = vpack.c.bf16 %v5971_v1, %v5971_v1  ;;  %v5972_v32 = vmul.f32 %v14336_v33, %v15544_v34 }
0x1edc   : > { %13681 = vmatpush3.bf16.xpose.msra.mxu1 %v6244_v63  ;;  %v14338_v20 = vpop.eup %14337 }
0x1edd   : > { %v6290_v28 = vsel %vm2922_vm9, %v5979_v52, 0  ;;  %13692 = vmatprep.subr.bf16.mxu1 %v14478_v31  ;;  %v5973_v16 = vmul.f32 %v14338_v20, %v15547_v38  ;;  %v5980_v29 = vpack.c.bf16 %v5972_v32, %v5972_v32 }
0x1ede   : > { %13687 = vmatpush3.bf16.xpose.msra.mxu0 %v6290_v28  ;;  %v14340_v43 = vpop.eup %14339 }
0x1edf   : > { %13698 = vmatprep.subr.bf16.mxu0 %v14478_v31  ;;  %v5981_v26 = vpack.c.bf16 %v5973_v16, %v5973_v16  ;;  %v6336_v34 = vsel %vm2922_vm9, %v5980_v29, 0  ;;  %v5974_v38 = vmul.f32 %v14340_v43, %v15551_v39 }
0x1ee1   : > { %v6382_v59 = vsel %vm2922_vm9, %v5981_v26, 0  ;;  %v5982_v12 = vpack.c.bf16 %v5974_v38, %v5974_v38 }
0x1efa   : > { %v5958_v13 = vpop.xlane.xlu0 %5957 }
0x1efc   : > { %v5955_v17 = vpop.xlane.xlu1 %5954 }
0x1efd   : > { %14341 = vrcp.f32 %v5955_v17 }
0x1efe   : > { %14343 = vrcp.f32 %v5958_v13 }
0x1f00   : > { %v6128_v42 = vpop.trf.xlu0  ;;  %v5961_v24 = vpop.xlane.xlu1 %5960 }
0x1f01   : > { %v6165_v2 = vrot.slane %v6128_v42, %v14962_v10  ;;  %14345 = vrcp.f32 %v5961_v24 }
0x1f03   : > { %v6166_v4 = vcombine.low %v6158_v27, %v6165_v2  ;;  %v6167_v5 = vcombine.high %v6158_v27, %v6165_v2 }
0x1f05   : > { %v6174_v61 = vrot.slane %v6166_v4, %v14974_v23  ;;  %v6181_v52 = vrot.slane %v6167_v5, %v14974_v23 }
0x1f06   : > { %v6144_v22 = vpop.trf.xlu1 }
0x1f07   : > { %v6197_v53 = vrot.slane %v6144_v22, %v14962_v10  ;;  %v6219_v41 = vshrl.u32 %v6174_v61, 16  ;;  %v14342_v19 = vpop.eup %14341  ;;  %v6182_v55 = vcombine.high %v6174_v61, %v14490_v14  ;;  %v6231_v49 = vshrl.u32 %v6181_v52, 16 }
0x1f08   : > { %v5975_v45 = vmul.f32 %v14342_v19, %v15564_v0  ;;  %v14344_v6 = vpop.eup %14343  ;;  %v6428_v0 = vsel %vm2922_vm9, %v5982_v12, 0 }
0x1f09   : > { %v6198_v46 = vcombine.low %v6190_v7, %v6197_v53  ;;  %v6199_v3 = vcombine.high %v6190_v7, %v6197_v53  ;;  %v6225_v11 = vshrl.u32 %v6182_v55, 16  ;;  %v5976_v63 = vmul.f32 %v14344_v6, %v15560_v58 }
0x1f0a   : > { %v5983_v60 = vpack.c.bf16 %v5975_v45, %v5975_v45 }
0x1f0b   : > { %v6206_v18 = vrot.slane %v6198_v46, %v14974_v23  ;;  %v14346_v57 = vpop.eup %14345  ;;  %v6213_v21 = vrot.slane %v6199_v3, %v14974_v23  ;;  %v5984_v58 = vpack.c.bf16 %v5976_v63, %v5976_v63 }
0x1f0c   : > { %v6474_v28 = vsel %vm2922_vm9, %v5983_v60, 0  ;;  %v5977_v37 = vmul.f32 %v14346_v57, %v15568_v62  ;;  %v6183_v62 = vcombine.high %v6181_v52, %v14490_v14 }
0x1f0d   : > { %v6218_v48 = vpack.i.b16 %v6206_v18, %v6174_v61  ;;  %v6220_v50 = vshrl.u32 %v6206_v18, 16  ;;  %v6214_v40 = vcombine.high %v6206_v18, %v14490_v14  ;;  %v6232_v25 = vshrl.u32 %v6213_v21, 16 }
0x1f0e   : > { %v6230_v13 = vpack.i.b16 %v6213_v21, %v6181_v52  ;;  %v5985_v17 = vpack.c.bf16 %v5977_v37, %v5977_v37  ;;  %v6215_v42 = vcombine.high %v6213_v21, %v14490_v14  ;;  %v6520_v2 = vsel %vm2922_vm9, %v5984_v58, 0 }
0x1f0f   : > { %13683 = vmatmul.mubr.msk.bf16.vlgmr.msra.gmra.mrb[72].mxu1 %vm2922_vm9, %v6218_v48  ;;  %v6221_v54 = vpack.i.b16 %v6220_v50, %v6219_v41  ;;  %v6226_v39 = vshrl.u32 %v6214_v40, 16  ;;  %v6224_v15 = vpack.i.b16 %v6214_v40, %v6182_v55  ;;  %v6233_v24 = vpack.i.b16 %v6232_v25, %v6231_v49 }
0x1f10   : > { %13693 = vmatpush3.bf16.xpose.msra.mxu1 %v6336_v34  ;;  %13694 = vmatprep.mubr.msk.bf16.mxu1 %vm14479_vm2, %v14478_v31  ;;  %v6566_v27 = vsel %vm2922_vm9, %v5985_v17, 0  ;;  %v6238_v33 = vshrl.u32 %v6215_v42, 16  ;;  %v6237_v4 = vshrl.u32 %v6183_v62, 16  ;;  %v6236_v22 = vpack.i.b16 %v6215_v42, %v6183_v62 }
0x1f11   : > { %13689 = vmatmul.mubr.msk.bf16.vlgmr.msra.gmra.mrb[104].mxu0 %vm2922_vm9, %v6221_v54  ;;  %13704 = vmatprep.subr.bf16.mxu1 %v14478_v31  ;;  %v6227_v1 = vpack.i.b16 %v6226_v39, %v6225_v11 }
0x1f12   : > { %13699 = vmatpush3.bf16.xpose.msra.mxu0 %v6382_v59  ;;  %13700 = vmatprep.mubr.msk.bf16.mxu0 %vm14479_vm2, %v14478_v31  ;;  %v6239_v20 = vpack.i.b16 %v6238_v33, %v6237_v4 }
0x1f13   : > { %13710 = vmatprep.subr.bf16.mxu0 %v14478_v31 }
0x1f17   : > { %13695 = vmatmul.mubr.msk.bf16.vlgmr.msra.gmra.mrb[76].mxu1 %vm2922_vm9, %v6224_v15 }
0x1f18   : > { %13705 = vmatpush3.bf16.xpose.msra.mxu1 %v6428_v0  ;;  %13706 = vmatprep.mubr.msk.bf16.mxu1 %vm14479_vm2, %v14478_v31 }
0x1f19   : > { %13701 = vmatmul.mubr.msk.bf16.vlgmr.msra.gmra.mrb[108].mxu0 %vm2922_vm9, %v6227_v1  ;;  %13716 = vmatprep.subr.bf16.mxu1 %v14478_v31 }
0x1f1a   : > { %13711 = vmatpush3.bf16.xpose.msra.mxu0 %v6474_v28  ;;  %13712 = vmatprep.mubr.msk.bf16.mxu0 %vm14479_vm2, %v14478_v31 }
0x1f1b   : > { %13722 = vmatprep.subr.bf16.mxu0 %v14478_v31 }
0x1f1f   : > { %13707 = vmatmul.mubr.msk.bf16.vlgmr.msra.gmra.mrb[80].mxu1 %vm2922_vm9, %v6230_v13 }
0x1f20   : > { %13717 = vmatpush3.bf16.xpose.msra.mxu1 %v6520_v2  ;;  %13718 = vmatprep.mubr.msk.bf16.mxu1 %vm14479_vm2, %v14478_v31 }
0x1f21   : > { %13713 = vmatmul.mubr.msk.bf16.vlgmr.msra.gmra.mrb[112].mxu0 %vm2922_vm9, %v6233_v24  ;;  %13728 = vmatprep.subr.bf16.mxu1 %v14478_v31 }
0x1f22   : > { %13723 = vmatpush3.bf16.xpose.msra.mxu0 %v6566_v27  ;;  %13724 = vmatprep.mubr.msk.bf16.mxu0 %vm14479_vm2, %v14478_v31 }
0x1f23   : > { %13736 = vmatprep.subr.bf16.mxu0 %v14478_v31 }
0x1f27   : > { %13719 = vmatmul.mubr.msk.bf16.vlgmr.msra.gmra.mrb[84].mxu1 %vm2922_vm9, %v6236_v22 }
0x1f28   : > { %13732 = vmatprep.mubr.msk.bf16.mxu1 %vm14479_vm2, %v14478_v31 }
0x1f29   : > { %13725 = vmatmul.mubr.msk.bf16.vlgmr.msra.gmra.mrb[116].mxu0 %vm2922_vm9, %v6239_v20 }
0x1f2a   : > { %13740 = vmatprep.mubr.msk.bf16.mxu0 %vm14479_vm2, %v14478_v31 }
0x1fe2   : > { %v6280_v7 = vpop.f32.mrb[72].mxu1 }
0x1fe3   : > { %6608 = vxpose.xlu0.b32.start.end [1/1] (short) (narrow) %v6280_v7, 8  ;;  %v13684_v53 = vpop.f32.mrb[73].mxu1 }
0x1fe4   : > { %v6283_v32 = vpop.f32.mrb[74].mxu1  ;;  %v6326_v61 = vpop.f32.mrb[104].mxu0 }
0x1fe5   : > { %v13685_v46 = vpop.f32.mrb[75].mxu1  ;;  %6640 = vxpose.xlu1.b32.start.end [1/1] (short) (narrow) %v6326_v61, 8  ;;  %v13690_v16 = vpop.f32.mrb[105].mxu0 }
0x1fe6   : > { %v6329_v18 = vpop.f32.mrb[106].mxu0 }
0x1fe7   : > { %v13691_v29 = vpop.f32.mrb[107].mxu0 }
0x1fea   : > { %v6372_v43 = vpop.f32.mrb[76].mxu1 }
0x1feb   : > { %6672 = vxpose.xlu0.b32.start.end [1/1] (short) (narrow) %v6372_v43, 8  ;;  %v13696_v41 = vpop.f32.mrb[77].mxu1 }
0x1fec   : > { %v6375_v48 = vpop.f32.mrb[78].mxu1  ;;  %v6418_v50 = vpop.f32.mrb[108].mxu0 }
0x1fed   : > { %v13697_v26 = vpop.f32.mrb[79].mxu1  ;;  %v13702_v19 = vpop.f32.mrb[109].mxu0 }
0x1fee   : > { %v6421_v40 = vpop.f32.mrb[110].mxu0 }
0x1fef   : > { %6704 = vxpose.xlu0.b32.start.end [1/1] (short) (narrow) %v6418_v50, 8  ;;  %v13703_v34 = vpop.f32.mrb[111].mxu0 }
0x1ff0   : > { %v14187_v34 = vld [vmem:[%s16638_s6 + $0x10] sm:$0xff]  }
0x1ff1   : > { %13729 = vmatpush3.bf16.msra.mxu1 %v14187_v34 }
0x1ff2   : > { %v6464_v54 = vpop.f32.mrb[80].mxu1  ;;  %13730 = vmatprep.subr.bf16.mxu1 %v14478_v31 }
0x1ff3   : > { %v13708_v38 = vpop.f32.mrb[81].mxu1  ;;  %6736 = vxpose.xlu1.b32.start.end [1/1] (short) (narrow) %v6464_v54, 8 }
0x1ff4   : > { %v6467_v55 = vpop.f32.mrb[82].mxu1  ;;  %v6510_v59 = vpop.f32.mrb[112].mxu0 }
0x1ff5   : > { %v13709_v45 = vpop.f32.mrb[83].mxu1  ;;  %6768 = vxpose.xlu0.b32.start.end [1/1] (short) (narrow) %v6510_v59, 8  ;;  %v13714_v3 = vpop.f32.mrb[113].mxu0 }
0x1ff6   : > { %v6513_v39 = vpop.f32.mrb[114].mxu0 }
0x1ff7   : > { %v13715_v12 = vpop.f32.mrb[115].mxu0  ;;  %v14188_v39 = vld [vmem:[%s16638_s6 + $0x18] sm:$0xff]  }
0x1ff8   : > { %13731 = vmatpush3.bf16.msra.mxu1 %v14188_v39  ;;  %v14195_v39 = vld [vmem:[%s16640_s26 + $0x60] sm:$0xff]  }
0x1ff9   : > { %13744 = vmatprep.subr.bf16.mxu1 %v14478_v31 }
0x1ffa   : > { %v6556_v6 = vpop.f32.mrb[84].mxu1 }
0x1ffb   : > { %v13720_v5 = vpop.f32.mrb[85].mxu1  ;;  %6800 = vxpose.xlu1.b32.start.end [1/1] (short) (narrow) %v6556_v6, 8 }
0x1ffc   : > { %v6559_v11 = vpop.f32.mrb[86].mxu1  ;;  %v6602_v15 = vpop.f32.mrb[116].mxu0 }
0x1ffd   : > { %v13721_v60 = vpop.f32.mrb[87].mxu1  ;;  %6832 = vxpose.xlu0.b32.start.end [1/1] (short) (narrow) %v6602_v15, 8  ;;  %v13726_v57 = vpop.f32.mrb[117].mxu0 }
0x1ffe   : > { %v6605_v21 = vpop.f32.mrb[118].mxu0 }
0x1fff   : > { %v13727_v0 = vpop.f32.mrb[119].mxu0 }
0x2063   : > { %v6624_v1 = vpop.trf.xlu0 }
0x2065   : > { %v6656_v52 = vpop.trf.xlu1 }
0x206b   : > { %v6688_v63 = vpop.trf.xlu0 }
0x206c   : > { %v6864_v28 = vcombine.low %v6624_v1, %v6688_v63 }
0x206e   : > { %v6871_v58 = vrot.slane %v6864_v28, %v14962_v10 }
0x206f   : > { %v6720_v37 = vpop.trf.xlu0 }
0x2070   : > { %v6872_v25 = vcombine.low %v6656_v52, %v6720_v37 }
0x2072   : > { %v6879_v49 = vrot.slane %v6872_v25, %v14962_v10 }
0x2073   : > { %v6752_v42 = vpop.trf.xlu1 }
0x2074   : > { %v6896_v13 = vcombine.low %v6871_v58, %v6879_v49  ;;  %v6897_v17 = vcombine.high %v6871_v58, %v6879_v49 }
0x2075   : > { %v6784_v62 = vpop.trf.xlu0 }
0x2076   : > { %v6904_v2 = vrot.slane %v6896_v13, %v14974_v23  ;;  %v6911_v24 = vrot.slane %v6897_v17, %v14974_v23 }
0x2078   : > { %v12898_v27 = vcombine.low %v6904_v2, %v6911_v24  ;;  %v12900_v33 = vcombine.high %v6904_v2, %v6911_v24 }
0x207a   : > { %v6940_v4 = vrot.slane %v12898_v27, %v14962_v10  ;;  %v6956_v22 = vrot.slane %v12900_v33, %v14962_v10 }
0x207b   : > { %v6816_v20 = vpop.trf.xlu1 }
0x207c   : > { %v6880_v7 = vcombine.low %v6752_v42, %v6816_v20  ;;  %v6965_v53 = vcombine.high %v6940_v4, %v6956_v22  ;;  %v6964_v32 = vcombine.low %v6940_v4, %v6956_v22  ;;  %v14433_v42 = vld [vmem:[%s16634_s7 + $0x10] sm:$0xff] }
0x207d   : > { %v6848_v61 = vpop.trf.xlu0  ;;  %v7039_v2 = vrot.slane %v14433_v42, %v14847_v8  ;;  %v7098_v24 = vrot.slane %v14433_v42, %v14850_v9  ;;  %v7122_v34 = vrot.slane %v14433_v42, %v14873_v36 }
0x207e   : > { %v6888_v46 = vcombine.low %v6784_v62, %v6848_v61  ;;  %v6979_v16 = vrot.slane %v6965_v53, %v14974_v23  ;;  %v6972_v18 = vrot.slane %v6964_v32, %v14974_v23  ;;  %v6887_v29 = vrot.slane %v6880_v7, %v14962_v10 }
0x2080   : > { %v6895_v43 = vrot.slane %v6888_v46, %v14962_v10  ;;  %7005 = vrot.lane.b32.xlu0 %v6979_v16, %s16648_s18  ;;  %v6996_v41 = vcombine.high %v6972_v18, %v14478_v31  ;;  %v6997_v40 = vcombine.high %v6979_v16, %v14478_v31 }
0x2082   : > { %v6912_v48 = vcombine.low %v6887_v29, %v6895_v43  ;;  %v6913_v50 = vcombine.high %v6887_v29, %v6895_v43  ;;  %7001 = vrot.lane.b32.xlu1 %v6996_v41, %s16649_s19  ;;  %v14189_v29 = vld [vmem:[%s16639_s3 + $0x10] sm:$0xff]   ;;  %v14190_v43 = vld [vmem:[%s16639_s3 + $0x18] sm:$0xff]  }
0x2083   : > { %13737 = vmatpush3.bf16.msra.mxu0 %v14189_v29 }
0x2084   : > { %v6920_v26 = vrot.slane %v6912_v48, %v14974_v23  ;;  %v6927_v19 = vrot.slane %v6913_v50, %v14974_v23  ;;  %13738 = vmatprep.subr.bf16.mxu0 %v14478_v31 }
0x2086   : > { %v12899_v54 = vcombine.low %v6920_v26, %v6927_v19  ;;  %v12901_v38 = vcombine.high %v6920_v26, %v6927_v19  ;;  %7009 = vrot.lane.b32.xlu1 %v6997_v40, %s16650_s21  ;;  %v7117_v26 = vrot.slane %v14433_v42, %v14870_v35  ;;  %v12842_v42 = vld [vmem:[%s16634_s7 + $0x18] sm:$0x3] }
0x2087   : > { %13739 = vmatpush3.bf16.msra.mxu0 %v14190_v43  ;;  %v14199_v43 = vld [vmem:[%s16633_s2 + $0x20] sm:$0xff]  }
0x2088   : > { %v6947_v55 = vrot.slane %v12899_v54, %v14962_v10  ;;  %v6963_v59 = vrot.slane %v12901_v38, %v14962_v10  ;;  %13764 = vmatprep.subr.bf16.mxu0 %v14478_v31 }
0x208a   : > { %v6980_v45 = vcombine.low %v6947_v55, %v6963_v59  ;;  %v6981_v3 = vcombine.high %v6947_v55, %v6963_v59  ;;  %v14192_v59 = vld [vmem:[%s16640_s26 + $0x48] sm:$0xff]  }
0x208c   : > { %v6988_v12 = vrot.slane %v6980_v45, %v14974_v23  ;;  %v6995_v6 = vrot.slane %v6981_v3, %v14974_v23  ;;  %v14193_v45 = vld [vmem:[%s16640_s26 + $0x50] sm:$0xff]   ;;  %v14194_v3 = vld [vmem:[%s16640_s26 + $0x58] sm:$0xff]  }
0x208e   : > { %7013 = vrot.lane.b32.xlu1 %v6988_v12, %s16651_s22  ;;  %v6999_v5 = vcombine.high %v6995_v6, %v14478_v31  ;;  %v6998_v11 = vcombine.high %v6988_v12, %v14478_v31  ;;  %v14196_v12 = vld [vmem:[%s16640_s26 + $0x68] sm:$0xff]  }
0x2090   : > { %7025 = vrot.lane.b32.xlu0 %v6999_v5, %s16652_s23  ;;  %v14198_v5 = vld [vmem:[%s16640_s26 + $0x78] sm:$0xff]  }
0x2092   : > { %7017 = vrot.lane.b32.xlu1 %v6998_v11, %s16653_s24  ;;  %v12905_v11 = vld [vmem:[%s16641_s8 + $0x1] ss:$0 sm:$0xff] }
0x2096   : > { %7021 = vrot.lane.b32.xlu1 %v6995_v6, %s16654_s25  ;;  %v14197_v6 = vld [vmem:[%s16640_s26 + $0x70] sm:$0xff]  }
0x20f2   : > { %v7006_v0 = vpop.permute.xlu0 %7005 }
0x20f4   : > { %v7002_v15 = vpop.permute.xlu1 %7001 }
0x20f5   : > { %v7028_v21 = vsel %vm2922_vm9, %v6972_v18, %v7002_v15 }
0x20f6   : > { %v7029_v63 = vsel %vm4439_vm11, %v7028_v21, %v7006_v0 }
0x20f8   : > { %v7010_v60 = vpop.permute.xlu1 %7009 }
0x20f9   : > { %v7030_v52 = vsel %vm4441_vm12, %v7029_v63, %v7010_v60 }
0x2100   : > { %v7014_v57 = vpop.permute.xlu1 %7013 }
0x2101   : > { %v7031_v28 = vsel %vm1144_vm4, %v7030_v52, %v7014_v57 }
0x2102   : > { %v7026_v58 = vpop.permute.xlu0 %7025 }
0x2104   : > { %v7018_v1 = vpop.permute.xlu1 %7017 }
0x2105   : > { %v7032_v37 = vsel %vm4444_vm13, %v7031_v28, %v7018_v1 }
0x2108   : > { %v7022_v25 = vpop.permute.xlu1 %7021 }
0x2109   : > { %v7033_v49 = vsel %vm4446_vm14, %v7032_v37, %v7022_v25 }
0x210a   : > { %v7034_v13 = vsel %vm4448_vm15, %v7033_v49, %v7026_v58 }
0x210b   : > { %v7035_v17 = vpack.c.bf16 %v7034_v13, %v7034_v13 }
0x210d   : > { %13733 = vmatmul.mubr.msk.bf16.vlgmr.msra.gmra.mrb[88].mxu1 %vm1203_vm1, %v7035_v17 }
0x210e   : > { %13760 = vmatprep.mubr.msk.bf16.mxu1 %vm14479_vm2, %v14478_v31 }
0x21e0   : > { %v7089_v62 = vpop.f32.mrb[88].mxu1 }
0x21e1   : > { %v7090_v27 = vadd.f32 %v7089_v62, %v7039_v2  ;;  %v13734_v33 = vpop.f32.mrb[89].mxu1  ;;  %v7199_v2 = vrot.slane %v12842_v42, %v14722_v44 }
0x21e2   : > { %v7092_v4 = vpop.f32.mrb[90].mxu1 }
0x21e3   : > { %v7099_v22 = vmul.f32 %v7098_v24, %v7090_v27  ;;  %v13735_v20 = vpop.f32.mrb[91].mxu1  ;;  %v7291_v24 = vrot.slane %v12842_v42, %v14727_v47 }
0x21e5   : > { %v15675_v7 = vadd.f32 %v7099_v22, %v15304_v30  ;;  %v14191_v30 = vld [vmem:[%s16640_s26 + $0x40] sm:$0xff]  }
0x21e6   : > { %13745 = vmatpush3.bf16.msra.mxu1 %v14191_v30  ;;  %v14200_v30 = vld [vmem:[%s16633_s2 + $0x28] sm:$0xff]  }
0x21e7   : > { %v7101_v53 = vsel %vm1506_vm5, %v15675_v7, 0.0  ;;  %13746 = vmatprep.subr.bf16.mxu1 %v14478_v31 }
0x21e8   : > { %7102 = vadd.xlane.f32.xlu1 %v7101_v53 }
0x21ea   : > { %13747 = vmatpush3.bf16.msra.mxu1 %v14192_v59  ;;  %v14201_v59 = vld [vmem:[%s16635_s10 + $0x20] sm:$0xff]  }
0x21eb   : > { %13748 = vmatprep.subr.bf16.mxu1 %v14478_v31 }
0x21ee   : > { %13749 = vmatpush3.bf16.msra.mxu1 %v14193_v45 }
0x21ef   : > { %13750 = vmatprep.subr.bf16.mxu1 %v14478_v31 }
0x21f2   : > { %13751 = vmatpush3.bf16.msra.mxu1 %v14194_v3 }
0x21f3   : > { %13752 = vmatprep.subr.bf16.mxu1 %v14478_v31 }
0x21f6   : > { %13753 = vmatpush3.bf16.msra.mxu1 %v14195_v39 }
0x21f7   : > { %13754 = vmatprep.subr.bf16.mxu1 %v14478_v31 }
0x21fa   : > { %13755 = vmatpush3.bf16.msra.mxu1 %v14196_v12  ;;  %v14202_v12 = vld [vmem:[%s16635_s10 + $0x28] sm:$0xff]  }
0x21fb   : > { %13756 = vmatprep.subr.bf16.mxu1 %v14478_v31 }
0x21fe   : > { %13757 = vmatpush3.bf16.msra.mxu1 %v14197_v6 }
0x21ff   : > { %13758 = vmatprep.subr.bf16.mxu1 %v14478_v31 }
0x2202   : > { %13759 = vmatpush3.bf16.msra.mxu1 %v14198_v5 }
0x2203   : > { %13792 = vmatprep.subr.bf16.mxu1 %v14478_v31 }
0x2275   : > { %v7103_v32 = vpop.xlane.xlu1 %7102 }
0x2276   : > { %v7104_v61 = vmul.f32 0.03125, %v7103_v32 }
0x2278   : > { %v7105_v46 = vsub.f32 %v15675_v7, %v7104_v61 }
0x227a   : > { %v7106_v16 = vmul.f32 %v7105_v46, %v7105_v46 }
0x227c   : > { %v7107_v18 = vsel %vm1506_vm5, %v7106_v16, 0.0 }
0x227d   : > { %7108 = vadd.xlane.f32.xlu0 %v7107_v18 }
0x230a   : > { %v7109_v41 = vpop.xlane.xlu0 %7108 }
0x230b   : > { %v7110_v48 = vmul.f32 0.03125, %v7109_v41 }
0x230d   : > { %v7111_v50 = vadd.f32 1e-05, %v7110_v48 }
0x230f   : > { %14347 = vrsqrt.f32 %v7111_v50  ;;  %v12917_v50 = vld [vmem:[%s16634_s7 + $0x20] sm:$0xff] }
0x2310   : > { %v7367_v39 = vrot.slane %v12917_v50, %v14801_v56 }
0x2319   : > { %v14348_v19 = vpop.eup %14347 }
0x231a   : > { %v7113_v40 = vmul.f32 %v14348_v19, %v7105_v46 }
0x231c   : > { %v7118_v54 = vmul.f32 %v7117_v26, %v7113_v40  ;;  %v7352_v26 = vrot.slane %v12917_v50, %v14722_v44 }
0x231e   : > { %v7123_v38 = vadd.f32 %v7122_v34, %v7118_v54  ;;  %v7357_v34 = vrot.slane %v12917_v50, %v14727_v47 }
0x2320   : > { %v7124_v55 = vpack.c.bf16 %v7123_v38, %v7123_v38  ;;  %v7362_v38 = vrot.slane %v12917_v50, %v14796_v51 }
0x2322   : > { %13741 = vmatmul.mubr.msk.bf16.vlgmr.msra.gmra.mrb[120].mxu0 %vm1203_vm1, %v7124_v55 }
0x2323   : > { %13768 = vmatprep.mubr.msk.bf16.mxu0 %vm14479_vm2, %v14478_v31  ;;  %13765 = vmatpush3.bf16.msra.mxu0 %v14199_v43 }
0x2324   : > { %13766 = vmatprep.subr.bf16.mxu0 %v14478_v31 }
0x2327   : > { %13767 = vmatpush3.bf16.msra.mxu0 %v14200_v30 }
0x2328   : > { %13772 = vmatprep.subr.bf16.mxu0 %v14478_v31 }
0x23f5   : > { %v7180_v15 = vpop.f32.mrb[120].mxu0 }
0x23f6   : > { %v7181_v60 = vadd.f32 %v12905_v11, %v7180_v15  ;;  %v13742_v57 = vpop.f32.mrb[121].mxu0 }
0x23f7   : > { %v7183_v21 = vpop.f32.mrb[122].mxu0 }
0x23f8   : > { %v7187_v0 = vmul.f32 0.044715, %v7181_v60  ;;  %v13743_v1 = vpop.f32.mrb[123].mxu0  ;;  %v7186_v58 = vmul.f32 0.5, %v7181_v60 }
0x23fa   : > { %v7188_v63 = vmul.f32 %v7187_v0, %v7181_v60 }
0x23fc   : > { %v7189_v52 = vmul.f32 %v7188_v63, %v7181_v60 }
0x23fe   : > { %v7190_v28 = vadd.f32 %v7189_v52, %v7181_v60  ;;  %v14434_v52 = vld [vmem:[%s16628_s15] sm:$0xf] }
0x2400   : > { %v7191_v37 = vmul.f32 0.7978846, %v7190_v28 }
0x2402   : > { %14349 = vtanh.f32 %v7191_v37 }
0x240c   : > { %v14350_v25 = vpop.eup %14349 }
0x240d   : > { %v7193_v49 = vadd.f32 1.0, %v14350_v25 }
0x240f   : > { %v7194_v13 = vmul.f32 %v7193_v49, %v7186_v58 }
0x2411   : > { %v7195_v17 = vpack.c.bf16 %v7194_v13, %v7194_v13 }
0x2413   : > { %13761 = vmatmul.mubr.bf16.vlgmr.msra.gmra.mrb[92].mxu1 %v7195_v17 }
0x2414   : > { %13794 = vmatprep.mubr.msk.bf16.mxu1 %vm14479_vm2, %v14478_v31 }
0x24e6   : > { %v7282_v62 = vpop.f32.mrb[92].mxu1 }
0x24e7   : > { %v7283_v27 = vadd.f32 %v7282_v62, %v7199_v2  ;;  %v13762_v33 = vpop.f32.mrb[93].mxu1 }
0x24e8   : > { %v7285_v4 = vpop.f32.mrb[94].mxu1 }
0x24e9   : > { %v7292_v22 = vmul.f32 %v7291_v24, %v7283_v27  ;;  %v13763_v20 = vpop.f32.mrb[95].mxu1 }
0x24eb   : > { %v15713_v53 = vadd.f32 %v7292_v22, %v15675_v7 }
0x24ed   : > { %v7336_v32 = vsel %vm1506_vm5, %v15713_v53, 0.0 }
0x24ee   : > { %7337 = vadd.xlane.f32.xlu0 %v7336_v32 }
0x257b   : > { %v7338_v61 = vpop.xlane.xlu0 %7337 }
0x257c   : > { %v7339_v46 = vmul.f32 0.03125, %v7338_v61 }
0x257e   : > { %v7340_v16 = vsub.f32 %v15713_v53, %v7339_v46 }
0x2580   : > { %v7341_v18 = vmul.f32 %v7340_v16, %v7340_v16 }
0x2582   : > { %v7342_v29 = vsel %vm1506_vm5, %v7341_v18, 0.0 }
0x2583   : > { %7343 = vadd.xlane.f32.xlu0 %v7342_v29 }
0x2610   : > { %v7344_v7 = vpop.xlane.xlu0 %7343 }
0x2611   : > { %v7345_v41 = vmul.f32 0.03125, %v7344_v7 }
0x2613   : > { %v7346_v48 = vadd.f32 1e-05, %v7345_v41 }
0x2615   : > { %14351 = vrsqrt.f32 %v7346_v48 }
0x261f   : > { %v14352_v19 = vpop.eup %14351 }
0x2620   : > { %v7348_v40 = vmul.f32 %v14352_v19, %v7340_v16 }
0x2622   : > { %v7353_v54 = vmul.f32 %v7352_v26, %v7348_v40  ;;  %v7363_v3 = vmul.f32 %v7362_v38, %v7348_v40 }
0x2624   : > { %v7358_v55 = vadd.f32 %v7357_v34, %v7353_v54  ;;  %v7368_v6 = vadd.f32 %v7367_v39, %v7363_v3 }
0x2626   : > { %v7369_v45 = vpack.c.bf16 %v7358_v55, %v7358_v55  ;;  %v7425_v5 = vpack.c.bf16 %v7368_v6, %v7368_v6 }
0x2628   : > { %13769 = vmatmul.mubr.msk.bf16.vlgmr.msra.gmra.mrb[124].mxu0 %vm1203_vm1, %v7369_v45 }
0x2629   : > { %13773 = vmatpush3.bf16.msra.mxu0 %v14201_v59  ;;  %13776 = vmatprep.mubr.msk.bf16.mxu0 %vm14479_vm2, %v14478_v31 }
0x262a   : > { %13774 = vmatprep.subr.bf16.mxu0 %v14478_v31 }
0x262d   : > { %13775 = vmatpush3.bf16.msra.mxu0 %v14202_v12 }
0x262e   : > { %13780 = vmatprep.subr.bf16.mxu0 %v14478_v31 }
0x2630   : > { %13777 = vmatmul.mubr.msk.bf16.vlgmr.msra.gmra.mrb[128].mxu0 %vm1203_vm1, %v7425_v5 }
0x2631   : > { %13782 = vmatprep.mubr.msk.bf16.mxu0 %vm14479_vm2, %v14478_v31 }
0x26fb   : > { %v7419_v11 = vpop.f32.mrb[124].mxu0 }
0x26fc   : > { %v13770_v15 = vpop.f32.mrb[125].mxu0  ;;  %v15749_v28 = vadd.f32 %v14434_v52, %v7419_v11 }
0x26fd   : > { %v7422_v60 = vpop.f32.mrb[126].mxu0 }
0x26fe   : > { %v13771_v57 = vpop.f32.mrb[127].mxu0 }
0x2703   : > { %v15738_v21 = vpop.f32.mrb[128].mxu0 }
0x2704   : > { %7575 = vrot.lane.b32.xlu0 %v15738_v21, %s16636_s0  ;;  %7572 = vrot.lane.b32.xlu1 %v15738_v21, %s16642_s5  ;;  %v13778_v0 = vpop.f32.mrb[129].mxu0 }
0x2705   : > { %v7478_v1 = vpop.f32.mrb[130].mxu0 }
0x2706   : > { %v13779_v63 = vpop.f32.mrb[131].mxu0 }
0x2708   : > { %7587 = vrot.lane.b32.xlu0 %v15738_v21, %s16647_s17  ;;  %7578 = vrot.lane.b32.xlu1 %v15738_v21, %s16643_s9 }
0x270c   : > { %7482 = vrot.lane.b32.xlu0 %v15749_v28, %s16642_s5  ;;  %7581 = vrot.lane.b32.xlu1 %v15738_v21, %s16645_s12 }
0x2710   : > { %7584 = vrot.lane.b32.xlu1 %v15738_v21, %s16644_s11 }
0x2714   : > { %7590 = vrot.lane.b32.xlu1 %v15738_v21, %s16646_s14 }
0x2776   : > { %v15759_v37 = vpop.permute.xlu1 %7572  ;;  %v7576_v58 = vpop.permute.xlu0 %7575 }
0x2777   : > { %v7593_v42 = vcombine.low %v15738_v21, %v7576_v58 }
0x2779   : > { %v7600_v33 = vrot.slane %v7593_v42, %v14962_v10 }
0x277a   : > { %v15761_v25 = vpop.permute.xlu1 %7578  ;;  %v7588_v2 = vpop.permute.xlu0 %7587 }
0x277b   : > { %v7601_v13 = vcombine.low %v15759_v37, %v15761_v25 }
0x277d   : > { %v7608_v24 = vrot.slane %v7601_v13, %v14962_v10 }
0x277e   : > { %v15763_v49 = vpop.permute.xlu1 %7581  ;;  %v7483_v54 = vpop.permute.xlu0 %7482 }
0x277f   : > { %v7609_v62 = vcombine.low %v15763_v49, %v7588_v2  ;;  %v7625_v22 = vcombine.low %v7600_v33, %v7608_v24  ;;  %v7626_v61 = vcombine.high %v7600_v33, %v7608_v24 }
0x2781   : > { %v7616_v20 = vrot.slane %v7609_v62, %v14962_v10  ;;  %v7633_v18 = vrot.slane %v7625_v22, %v14974_v23  ;;  %v7640_v41 = vrot.slane %v7626_v61, %v14974_v23 }
0x2782   : > { %v15767_v17 = vpop.permute.xlu1 %7584 }
0x2786   : > { %v7591_v27 = vpop.permute.xlu1 %7590 }
0x2787   : > { %v7617_v4 = vcombine.low %v15767_v17, %v7591_v27 }
0x2789   : > { %v7624_v32 = vrot.slane %v7617_v4, %v14962_v10 }
0x278b   : > { %v7641_v46 = vcombine.low %v7616_v20, %v7624_v32  ;;  %v7642_v16 = vcombine.high %v7616_v20, %v7624_v32 }
0x278d   : > { %v7649_v29 = vrot.slane %v7641_v46, %v14974_v23  ;;  %v7656_v43 = vrot.slane %v7642_v16, %v14974_v23 }
0x278f   : > { %v7658_v30 = vcombine.high %v7633_v18, %v7649_v29  ;;  %v7657_v7 = vcombine.low %v7633_v18, %v7649_v29  ;;  %v7659_v26 = vcombine.low %v7640_v41, %v7656_v43  ;;  %v7660_v40 = vcombine.high %v7640_v41, %v7656_v43 }
0x2791   : > { %v7754_v48 = vpack.c.bf16 %v7658_v30, %v7658_v30  ;;  %v7753_v50 = vpack.c.bf16 %v7657_v7, %v7657_v7  ;;  %v7755_v19 = vpack.c.bf16 %v7659_v26, %v7659_v26  ;;  %v7756_v34 = vpack.c.bf16 %v7660_v40, %v7660_v40 }
0x2793   : > { %7865 = vxpose.xlu1.c.b16.start.end [1/1] (short) (narrow) %v7754_v48, 16  ;;  %7849 = vxpose.xlu0.c.b16.start.end [1/1] (short) (narrow) %v7753_v50, 16 }
0x2797   : > { %7485 = vrot.lane.b32.xlu1 %v15749_v28, %s16636_s0  ;;  %7881 = vxpose.xlu0.c.b16.start.end [1/1] (short) (narrow) %v7755_v19, 16 }
0x279b   : > { %7488 = vrot.lane.b32.xlu1 %v15749_v28, %s16643_s9  ;;  %7897 = vxpose.xlu0.c.b16.start.end [1/1] (short) (narrow) %v7756_v34, 16 }
0x279f   : > { %7491 = vrot.lane.b32.xlu1 %v15749_v28, %s16645_s12 }
0x27a3   : > { %7497 = vrot.lane.b32.xlu1 %v15749_v28, %s16647_s17 }
0x27a4   : > { %7494 = vrot.lane.b32.xlu0 %v15749_v28, %s16644_s11 }
0x27a8   : > { %7500 = vrot.lane.b32.xlu0 %v15749_v28, %s16646_s14 }
0x27f9   : > { %v7857_v38 = vpop.trf.xlu0  ;;  %v7873_v45 = vpop.trf.xlu1 }
0x27fd   : > { %v7889_v55 = vpop.trf.xlu0 }
0x27fe   : > { %v7913_v59 = vcombine.low %v7857_v38, %v7889_v55 }
0x2800   : > { %v7920_v39 = vrot.slane %v7913_v59, %v14974_v23 }
0x2801   : > { %v7905_v3 = vpop.trf.xlu0 }
0x2802   : > { %v7922_v12 = vcombine.low %v7873_v45, %v7905_v3  ;;  %v7935_v5 = vshrl.u32 %v7920_v39, 16  ;;  %v7921_v0 = vcombine.high %v7920_v39, %v14490_v14 }
0x2804   : > { %v7929_v6 = vrot.slane %v7922_v12, %v14974_v23  ;;  %v7943_v52 = vshrl.u32 %v7921_v0, 16 }
0x2806   : > { %v7936_v11 = vshrl.u32 %v7929_v6, 16  ;;  %v7933_v15 = vpack.i.b16 %v7929_v6, %v7920_v39  ;;  %v7930_v57 = vcombine.high %v7929_v6, %v14490_v14 }
0x2808   : > { %7947 = vxpose.xlu1.c.b16.start.end [1/1] (short) (narrow) %v7933_v15, 16  ;;  %v7937_v60 = vpack.i.b16 %v7936_v11, %v7935_v5  ;;  %v7941_v1 = vpack.i.b16 %v7930_v57, %v7921_v0  ;;  %v7944_v63 = vshrl.u32 %v7930_v57, 16 }
0x280a   : > { %7963 = vxpose.xlu0.c.b16.start.end [1/1] (short) (narrow) %v7937_v60, 16  ;;  %v7945_v13 = vpack.i.b16 %v7944_v63, %v7943_v52 }
0x280c   : > { %7661 = vrot.lane.b32.xlu1 %v15738_v21, %s16637_s16  ;;  %v7486_v21 = vpop.permute.xlu1 %7485 }
0x280e   : > { %7979 = vxpose.xlu0.c.b16.start.end [1/1] (short) (narrow) %v7941_v1, 16 }
0x2810   : > { %7665 = vrot.lane.b32.xlu1 %v7576_v58, %s16637_s16  ;;  %v7489_v58 = vpop.permute.xlu1 %7488 }
0x2811   : > { %v7511_v4 = vcombine.low %v7483_v54, %v7489_v58 }
0x2812   : > { %7995 = vxpose.xlu0.c.b16.start.end [1/1] (short) (narrow) %v7945_v13, 16 }
0x2814   : > { %7667 = vrot.lane.b32.xlu1 %v15761_v25, %s16637_s16  ;;  %v7492_v24 = vpop.permute.xlu1 %7491 }
0x2816   : > { %v7495_v42 = vpop.permute.xlu0 %7494 }
0x2818   : > { %7669 = vrot.lane.b32.xlu1 %v15763_v49, %s16637_s16  ;;  %v7498_v33 = vpop.permute.xlu1 %7497  ;;  %v7503_v49 = vcombine.low %v15749_v28, %v7486_v21 }
0x2819   : > { %v7519_v22 = vcombine.low %v7492_v24, %v7498_v33 }
0x281a   : > { %v7501_v62 = vpop.permute.xlu0 %7500 }
0x281b   : > { %7663 = vrot.lane.b32.xlu0 %v15759_v37, %s16637_s16  ;;  %v7527_v25 = vcombine.low %v7495_v42, %v7501_v62  ;;  %v7526_v20 = vrot.slane %v7519_v22, %v14962_v10 }
0x281c   : > { %7673 = vrot.lane.b32.xlu1 %v7588_v2, %s16637_s16  ;;  %v7518_v2 = vrot.slane %v7511_v4, %v14962_v10 }
0x281d   : > { %v7534_v37 = vrot.slane %v7527_v25, %v14962_v10 }
0x281f   : > { %7671 = vrot.lane.b32.xlu0 %v15767_v17, %s16637_s16  ;;  %v7510_v17 = vrot.slane %v7503_v49, %v14962_v10  ;;  %v7552_v32 = vcombine.high %v7526_v20, %v7534_v37 }
0x2821   : > { %v7535_v61 = vcombine.low %v7510_v17, %v7518_v2  ;;  %v7536_v46 = vcombine.high %v7510_v17, %v7518_v2  ;;  %v7566_v18 = vrot.slane %v7552_v32, %v14974_v23 }
0x2823   : > { %7675 = vrot.lane.b32.xlu0 %v7591_v27, %s16637_s16  ;;  %v7551_v27 = vcombine.low %v7526_v20, %v7534_v37  ;;  %v7543_v29 = vrot.slane %v7535_v61, %v14974_v23  ;;  %v7550_v28 = vrot.slane %v7536_v46, %v14974_v23 }
0x2825   : > { %v7559_v16 = vrot.slane %v7551_v27, %v14974_v23  ;;  %v7569_v7 = vcombine.low %v7550_v28, %v7566_v18  ;;  %v7570_v41 = vcombine.high %v7550_v28, %v7566_v18 }
0x2827   : > { %v7567_v43 = vcombine.low %v7543_v29, %v7559_v16  ;;  %v7568_v30 = vcombine.high %v7543_v29, %v7559_v16  ;;  %v7765_v50 = vpack.c.bf16 %v7569_v7, %v7569_v7  ;;  %v7799_v19 = vpack.c.bf16 %v7570_v41, %v7570_v41 }
0x2829   : > { %v7757_v48 = vpack.c.bf16 %v7567_v43, %v7567_v43  ;;  %v7791_v26 = vpack.c.bf16 %v7568_v30, %v7568_v30  ;;  %v7772_v55 = vrot.slane %v7765_v50, %v14962_v10  ;;  %v7806_v45 = vrot.slane %v7799_v19, %v14962_v10 }
0x282b   : > { %v7764_v38 = vrot.slane %v7757_v48, %v14962_v10  ;;  %v7798_v59 = vrot.slane %v7791_v26, %v14962_v10 }
0x282d   : > { %v7773_v6 = vcombine.low %v7764_v38, %v7772_v55  ;;  %v7807_v5 = vcombine.low %v7798_v59, %v7806_v45  ;;  %v7774_v16 = vcombine.high %v7764_v38, %v7772_v55  ;;  %v7808_v18 = vcombine.high %v7798_v59, %v7806_v45 }
0x282f   : > { %v7781_v63 = vrot.slane %v7773_v6, %v14974_v23  ;;  %v7815_v52 = vrot.slane %v7807_v5, %v14974_v23  ;;  %v7788_v19 = vrot.slane %v7774_v16, %v14974_v23 }
0x2831   : > { %v15838_v22 = vcombine.high %v7781_v63, %v14490_v14  ;;  %v15841_v49 = vcombine.high %v7815_v52, %v14490_v14  ;;  %v7827_v61 = vpack.i.b16 %v7815_v52, %v7781_v63  ;;  %v7828_v7 = vshrl.u32 %v7781_v63, 16 }
0x2832   : > { %v7829_v48 = vshrl.u32 %v7815_v52, 16  ;;  %v7790_v63 = vcombine.high %v7788_v19, %v14490_v14 }
0x2833   : > { %v7833_v28 = vpack.i.b16 %v15841_v49, %v15838_v22  ;;  %v7834_v5 = vshrl.u32 %v15838_v22, 16 }
0x2834   : > { %v7830_v55 = vpack.i.b16 %v7829_v48, %v7828_v7 }
0x286e   : > { %v7955_v34 = vpop.trf.xlu1 }
0x286f   : > { %v8017_v54 = vrot.slane %v7955_v34, %v14962_v10 }
0x2870   : > { %v7971_v40 = vpop.trf.xlu0 }
0x2871   : > { %v8049_v15 = vrot.slane %v7971_v40, %v14962_v10  ;;  %v7822_v40 = vrot.slane %v7808_v18, %v14974_v23 }
0x2873   : > { %v7824_v52 = vcombine.high %v7822_v40, %v14490_v14 }
0x2874   : > { %v7987_v3 = vpop.trf.xlu0 }
0x2875   : > { %v8024_v39 = vrot.slane %v7987_v3, %v14962_v10 }
0x2877   : > { %v8025_v12 = vcombine.low %v8017_v54, %v8024_v39  ;;  %v8026_v13 = vcombine.high %v8017_v54, %v8024_v39  ;;  %v7839_v39 = vpack.i.b16 %v7822_v40, %v7788_v19 }
0x2878   : > { %v8003_v11 = vpop.trf.xlu0 }
0x2879   : > { %v8056_v60 = vrot.slane %v8003_v11, %v14962_v10  ;;  %v8033_v57 = vrot.slane %v8025_v12, %v14974_v23  ;;  %v8040_v37 = vrot.slane %v8026_v13, %v14974_v23  ;;  %v7835_v11 = vshrl.u32 %v15841_v49, 16 }
0x287b   : > { %v8057_v0 = vcombine.low %v8049_v15, %v8056_v60  ;;  %v8058_v1 = vcombine.high %v8049_v15, %v8056_v60  ;;  %v8041_v42 = vcombine.high %v8033_v57, %v14490_v14  ;;  %v8078_v24 = vshrl.u32 %v8033_v57, 16 }
0x287c   : > { %v8042_v54 = vcombine.high %v8040_v37, %v14490_v14  ;;  %v8090_v15 = vshrl.u32 %v8040_v37, 16 }
0x287d   : > { %v8065_v21 = vrot.slane %v8057_v0, %v14974_v23  ;;  %v15834_v62 = vrot.slane %v8058_v1, %v14974_v23  ;;  %v8084_v50 = vshrl.u32 %v8041_v42, 16 }
0x287e   : > { %v15830_v58 = vpop.permute.xlu1 %7661 }
0x287f   : > { %v8077_v33 = vpack.i.b16 %v8065_v21, %v8033_v57  ;;  %v8073_v25 = vcombine.high %v8065_v21, %v14490_v14  ;;  %v8079_v4 = vshrl.u32 %v8065_v21, 16  ;;  %v8089_v46 = vpack.i.b16 %v15834_v62, %v8040_v37 }
0x2880   : > { %v8074_v26 = vcombine.high %v15834_v62, %v14490_v14  ;;  %v8091_v12 = vshrl.u32 %v15834_v62, 16  ;;  %v7836_v21 = vpack.i.b16 %v7835_v11, %v7834_v5  ;;  %v7841_v37 = vshrl.u32 %v7822_v40, 16 }
0x2881   : > { %v8103_v2 = vsel %vm1821_vm7, %v8077_v33, 0  ;;  %v8083_v20 = vpack.i.b16 %v8073_v25, %v8041_v42  ;;  %v8080_v17 = vpack.i.b16 %v8079_v4, %v8078_v24  ;;  %v8085_v43 = vshrl.u32 %v8073_v25, 16 }
0x2882   : > { %v15845_v27 = vpop.permute.xlu1 %7665  ;;  %13781 = vmatpush3.bf16.msra.mxu0 %v8103_v2  ;;  %v8287_v41 = vsel %vm1821_vm7, %v8089_v46, 0  ;;  %v8095_v59 = vpack.i.b16 %v8074_v26, %v8042_v54  ;;  %v8092_v1 = vpack.i.b16 %v8091_v12, %v8090_v15  ;;  %v7845_v25 = vpack.i.b16 %v7824_v52, %v7790_v63 }
0x2883   : > { %v8195_v32 = vsel %vm1821_vm7, %v8083_v20, 0  ;;  %13786 = vmatprep.subr.bf16.mxu0 %v14478_v31  ;;  %v8149_v29 = vsel %vm1821_vm7, %v8080_v17, 0  ;;  %v8086_v34 = vpack.i.b16 %v8085_v43, %v8084_v50  ;;  %v7685_v13 = vcombine.low %v15830_v58, %v15845_v27 }
0x2884   : > { %13793 = vmatpush3.bf16.msra.mxu1 %v8195_v32  ;;  %v8379_v6 = vsel %vm1821_vm7, %v8095_v59, 0  ;;  %v8333_v62 = vsel %vm1821_vm7, %v8092_v1, 0  ;;  %v8097_v4 = vshrl.u32 %v8074_v26, 16  ;;  %v7840_v58 = vshrl.u32 %v7788_v19, 16 }
0x2885   : > { %13783 = vmatmul.mubr.msk.bf16.vlgmr.msra.gmra.mrb[132].mxu0 %vm2922_vm9, %v7827_v61  ;;  %13804 = vmatprep.subr.bf16.mxu1 %v14478_v31  ;;  %v8241_v45 = vsel %vm1821_vm7, %v8086_v34, 0  ;;  %v7692_v22 = vrot.slane %v7685_v13, %v14962_v10  ;;  %v8096_v2 = vshrl.u32 %v8042_v54, 16  ;;  %v7846_v50 = vshrl.u32 %v7790_v63, 16 }
0x2886   : > { %v7668_v30 = vpop.permute.xlu1 %7667  ;;  %13787 = vmatpush3.bf16.msra.mxu0 %v8149_v29  ;;  %13788 = vmatprep.mubr.msk.bf16.mxu0 %vm14479_vm2, %v14478_v31  ;;  %v7842_v18 = vpack.i.b16 %v7841_v37, %v7840_v58  ;;  %v7847_v26 = vshrl.u32 %v7824_v52, 16 }
0x2887   : > { %13795 = vmatmul.mubr.msk.bf16.vlgmr.msra.gmra.mrb[96].mxu1 %vm2922_vm9, %v7833_v28  ;;  %13798 = vmatprep.subr.bf16.mxu0 %v14478_v31  ;;  %v8098_v61 = vpack.i.b16 %v8097_v4, %v8096_v2 }
0x2888   : > { %13805 = vmatpush3.bf16.msra.mxu1 %v8287_v41  ;;  %13806 = vmatprep.mubr.msk.bf16.mxu1 %vm14479_vm2, %v14478_v31  ;;  %v7848_v54 = vpack.i.b16 %v7847_v26, %v7846_v50 }
0x2889   : > { %13816 = vmatprep.subr.bf16.mxu1 %v14478_v31 }
0x288a   : > { %v7670_v38 = vpop.permute.xlu1 %7669 }
0x288d   : > { %13789 = vmatmul.mubr.msk.bf16.vlgmr.msra.gmra.mrb[136].mxu0 %vm2922_vm9, %v7830_v55  ;;  %v7664_v3 = vpop.permute.xlu0 %7663 }
0x288e   : > { %13799 = vmatpush3.bf16.msra.mxu0 %v8241_v45  ;;  %13800 = vmatprep.mubr.msk.bf16.mxu0 %vm14479_vm2, %v14478_v31  ;;  %v7693_v60 = vcombine.low %v7664_v3, %v7668_v30  ;;  %v7674_v57 = vpop.permute.xlu1 %7673  ;;  %v8425_v30 = vsel %vm1821_vm7, %v8098_v61, 0 }
0x288f   : > { %13807 = vmatmul.mubr.msk.bf16.vlgmr.msra.gmra.mrb[100].mxu1 %vm2922_vm9, %v7839_v39  ;;  %13810 = vmatprep.subr.bf16.mxu0 %v14478_v31  ;;  %v7701_v24 = vcombine.low %v7670_v38, %v7674_v57 }
0x2890   : > { %13817 = vmatpush3.bf16.msra.mxu1 %v8379_v6  ;;  %13818 = vmatprep.mubr.msk.bf16.mxu1 %vm14479_vm2, %v14478_v31  ;;  %v7700_v42 = vrot.slane %v7693_v60, %v14962_v10 }
0x2891   : > { %v7672_v0 = vpop.permute.xlu0 %7671  ;;  %13828 = vmatprep.subr.bf16.mxu1 %v14478_v31  ;;  %v7708_v17 = vrot.slane %v7701_v24, %v14962_v10 }
0x2892   : > { %v7717_v20 = vcombine.low %v7692_v22, %v7700_v42  ;;  %v7718_v32 = vcombine.high %v7692_v22, %v7700_v42 }
0x2894   : > { %v7725_v29 = vrot.slane %v7717_v20, %v14974_v23  ;;  %v7732_v7 = vrot.slane %v7718_v32, %v14974_v23 }
0x2895   : > { %13801 = vmatmul.mubr.msk.bf16.vlgmr.msra.gmra.mrb[140].mxu0 %vm2922_vm9, %v7836_v21  ;;  %v7676_v33 = vpop.permute.xlu0 %7675 }
0x2896   : > { %13811 = vmatpush3.bf16.msra.mxu0 %v8333_v62  ;;  %v7709_v49 = vcombine.low %v7672_v0, %v7676_v33  ;;  %13812 = vmatprep.mubr.msk.bf16.mxu0 %vm14479_vm2, %v14478_v31 }
0x2897   : > { %13819 = vmatmul.mubr.msk.bf16.vlgmr.msra.gmra.mrb[104].mxu1 %vm2922_vm9, %v7845_v25  ;;  %13822 = vmatprep.subr.bf16.mxu0 %v14478_v31 }
0x2898   : > { %v7716_v27 = vrot.slane %v7709_v49, %v14962_v10  ;;  %13830 = vmatprep.mubr.msk.bf16.mxu1 %vm14479_vm2, %v14478_v31 }
0x289a   : > { %v7733_v46 = vcombine.low %v7708_v17, %v7716_v27  ;;  %v7734_v16 = vcombine.high %v7708_v17, %v7716_v27 }
0x289c   : > { %v7741_v28 = vrot.slane %v7733_v46, %v14974_v23  ;;  %v7748_v43 = vrot.slane %v7734_v16, %v14974_v23 }
0x289d   : > { %13813 = vmatmul.mubr.msk.bf16.vlgmr.msra.gmra.mrb[144].mxu0 %vm2922_vm9, %v7842_v18 }
0x289e   : > { %13823 = vmatpush3.bf16.msra.mxu0 %v8425_v30  ;;  %v7749_v41 = vcombine.low %v7725_v29, %v7741_v28  ;;  %13824 = vmatprep.mubr.msk.bf16.mxu0 %vm14479_vm2, %v14478_v31  ;;  %v7750_v48 = vcombine.high %v7725_v29, %v7741_v28  ;;  %v7752_v19 = vcombine.high %v7732_v7, %v7748_v43 }
0x289f   : > { %13834 = vmatprep.subr.bf16.mxu0 %v14478_v31  ;;  %v7751_v34 = vcombine.low %v7732_v7, %v7748_v43 }
0x28a0   : > { %v8571_v40 = vpack.c.bf16 %v7749_v41, %v7749_v41  ;;  %v8572_v30 = vpack.c.bf16 %v7750_v48, %v7750_v48  ;;  %v8574_v41 = vpack.c.bf16 %v7752_v19, %v7752_v19 }
0x28a1   : > { %v8573_v38 = vpack.c.bf16 %v7751_v34, %v7751_v34 }
0x28a2   : > { %8575 = vxpose.xlu0.c.b16.start.end [1/1] (short) (narrow) %v8571_v40, 16 }
0x28a5   : > { %13825 = vmatmul.mubr.msk.bf16.vlgmr.msra.gmra.mrb[148].mxu0 %vm2922_vm9, %v7848_v54 }
0x28a6   : > { %8607 = vxpose.xlu0.c.b16.start.end [1/1] (short) (narrow) %v8573_v38, 16  ;;  %13836 = vmatprep.mubr.msk.bf16.mxu0 %vm14479_vm2, %v14478_v31 }
0x2958   : > { %v8139_v55 = vpop.f32.mrb[132].mxu0 }
0x2959   : > { %v15909_v59 = vmul.f32 0.5, %v8139_v55  ;;  %v13784_v45 = vpop.f32.mrb[133].mxu0  ;;  %v8583_v55 = vpop.trf.xlu0 }
0x295a   : > { %v8142_v3 = vpop.f32.mrb[134].mxu0  ;;  %v8231_v39 = vpop.f32.mrb[96].mxu1 }
0x295b   : > { %v15911_v12 = vmul.f32 0.5, %v8231_v39  ;;  %v13785_v6 = vpop.f32.mrb[135].mxu0  ;;  %v13796_v5 = vpop.f32.mrb[97].mxu1  ;;  %v8475_v11 = vsel %vm3299_vm10, %v15909_v59, -inf }
0x295c   : > { %v8234_v15 = vpop.f32.mrb[98].mxu1  ;;  %8476 = vmax.xlane.f32.xlu1 %v8475_v11 }
0x295d   : > { %v13797_v60 = vpop.f32.mrb[99].mxu1  ;;  %v8481_v57 = vsel %vm3299_vm10, %v15911_v12, -inf  ;;  %v8615_v19 = vpop.trf.xlu0 }
0x295e   : > { %v8639_v6 = vcombine.low %v8583_v55, %v8615_v19 }
0x2960   : > { %8482 = vmax.xlane.f32.xlu1 %v8481_v57  ;;  %v8185_v0 = vpop.f32.mrb[136].mxu0  ;;  %v8646_v60 = vrot.slane %v8639_v6, %v14974_v23 }
0x2961   : > { %v8468_v1 = vmul.f32 0.5, %v8185_v0  ;;  %v13790_v63 = vpop.f32.mrb[137].mxu0 }
0x2962   : > { %v8188_v52 = vpop.f32.mrb[138].mxu0  ;;  %v8323_v13 = vpop.f32.mrb[100].mxu1  ;;  %v8647_v19 = vcombine.high %v8646_v60, %v14490_v14 }
0x2963   : > { %v13791_v21 = vpop.f32.mrb[139].mxu0  ;;  %v13808_v42 = vpop.f32.mrb[101].mxu1  ;;  %v8478_v24 = vsel %vm3299_vm10, %v8468_v1, -inf  ;;  %v8471_v7 = vmul.f32 0.5, %v8323_v13 }
0x2964   : > { %v8326_v62 = vpop.f32.mrb[102].mxu1  ;;  %8479 = vmax.xlane.f32.xlu0 %v8478_v24  ;;  %v8661_v21 = vshrl.u32 %v8646_v60, 16 }
0x2965   : > { %v13809_v33 = vpop.f32.mrb[103].mxu1  ;;  %v8487_v26 = vsel %vm3299_vm10, %v8471_v7, -inf }
0x2968   : > { %v8277_v25 = vpop.f32.mrb[140].mxu0 }
0x2969   : > { %v8470_v4 = vmul.f32 0.5, %v8277_v25  ;;  %v13802_v22 = vpop.f32.mrb[141].mxu0 }
0x296a   : > { %v8280_v49 = vpop.f32.mrb[142].mxu0  ;;  %v8415_v58 = vpop.f32.mrb[104].mxu1 }
0x296b   : > { %v13803_v37 = vpop.f32.mrb[143].mxu0  ;;  %v13820_v2 = vpop.f32.mrb[105].mxu1  ;;  %v8484_v20 = vsel %vm3299_vm10, %v8470_v4, -inf  ;;  %v8473_v50 = vmul.f32 0.5, %v8415_v58 }
0x296c   : > { %v8418_v17 = vpop.f32.mrb[106].mxu1  ;;  %8485 = vmax.xlane.f32.xlu0 %v8484_v20 }
0x296d   : > { %v13821_v27 = vpop.f32.mrb[107].mxu1  ;;  %v8493_v40 = vsel %vm3299_vm10, %v8473_v50, -inf }
0x2970   : > { %v8369_v32 = vpop.f32.mrb[144].mxu0 }
0x2971   : > { %v13814_v61 = vpop.f32.mrb[145].mxu0  ;;  %v8472_v34 = vmul.f32 0.5, %v8369_v32 }
0x2972   : > { %v8372_v46 = vpop.f32.mrb[146].mxu0 }
0x2973   : > { %v13815_v16 = vpop.f32.mrb[147].mxu0  ;;  %v8490_v38 = vsel %vm3299_vm10, %v8472_v34, -inf }
0x2978   : > { %v8461_v18 = vpop.f32.mrb[148].mxu0 }
0x2979   : > { %v13826_v29 = vpop.f32.mrb[149].mxu0  ;;  %v15921_v54 = vmul.f32 0.5, %v8461_v18 }
0x297a   : > { %v8464_v28 = vpop.f32.mrb[150].mxu0 }
0x297b   : > { %v13827_v43 = vpop.f32.mrb[151].mxu0  ;;  %v8496_v48 = vsel %vm3299_vm10, %v15921_v54, -inf }
0x298d   : > { %8591 = vxpose.xlu1.c.b16.start.end [1/1] (short) (narrow) %v8572_v30, 16 }
0x2999   : > { %8623 = vxpose.xlu0.c.b16.start.end [1/1] (short) (narrow) %v8574_v41, 16 }
0x299a   : > { %8488 = vmax.xlane.f32.xlu1 %v8487_v26 }
0x299e   : > { %8494 = vmax.xlane.f32.xlu1 %v8493_v40 }
0x29a6   : > { %8491 = vmax.xlane.f32.xlu0 %v8490_v38 }
0x29aa   : > { %8497 = vmax.xlane.f32.xlu0 %v8496_v48 }
0x29e9   : > { %v8477_v45 = vpop.xlane.xlu1 %8476 }
0x29ea   : > { %v8499_v11 = vsub.f32 %v15909_v59, %v8477_v45 }
0x29ec   : > { %v8507_v52 = vmul.f32 1.442695, %v8499_v11 }
0x29ed   : > { %v8483_v39 = vpop.xlane.xlu1 %8482 }
0x29ee   : > { %v8501_v13 = vsub.f32 %v15911_v12, %v8483_v39  ;;  %14353 = vpow2.f32 %v8507_v52  ;;  %v8669_v39 = vshrl.u32 %v8647_v19, 16 }
0x29f0   : > { %v8511_v22 = vmul.f32 1.442695, %v8501_v13 }
0x29f1   : > { %v8480_v3 = vpop.xlane.xlu0 %8479 }
0x29f2   : > { %v8500_v57 = vsub.f32 %v8468_v1, %v8480_v3 }
0x29f3   : > { %v8599_v15 = vpop.trf.xlu1 }
0x29f4   : > { %v8509_v24 = vmul.f32 1.442695, %v8500_v57 }
0x29f6   : > { %14355 = vpow2.f32 %v8509_v24 }
0x29f7   : > { %14357 = vpow2.f32 %v8511_v22 }
0x29f8   : > { %v14354_v1 = vpop.eup %14353 }
0x29f9   : > { %v8486_v5 = vpop.xlane.xlu0 %8485  ;;  %v8523_v12 = vsel %vm3299_vm10, %v14354_v1, 0.0 }
0x29fa   : > { %v8502_v62 = vsub.f32 %v8470_v4, %v8486_v5 }
0x29fc   : > { %v8513_v49 = vmul.f32 1.442695, %v8502_v62 }
0x29fe   : > { %14359 = vpow2.f32 %v8513_v49 }
0x29ff   : > { %v8631_v0 = vpop.trf.xlu0 }
0x2a00   : > { %v8648_v63 = vcombine.low %v8599_v15, %v8631_v0  ;;  %v14356_v58 = vpop.eup %14355 }
0x2a01   : > { %v15931_v37 = vpop.eup %14357  ;;  %v8526_v4 = vsel %vm3299_vm10, %v14356_v58, 0.0 }
0x2a02   : > { %v8655_v42 = vrot.slane %v8648_v63, %v14974_v23  ;;  %v8529_v20 = vsel %vm3299_vm10, %v15931_v37, 0.0 }
0x2a04   : > { %v8662_v33 = vshrl.u32 %v8655_v42, 16  ;;  %v8659_v25 = vpack.i.b16 %v8655_v42, %v8646_v60  ;;  %v8656_v45 = vcombine.high %v8655_v42, %v14490_v14 }
0x2a06   : > { %8673 = vxpose.xlu1.c.b16.start.end [1/1] (short) (narrow) %v8659_v25, 16  ;;  %v8663_v59 = vpack.i.b16 %v8662_v33, %v8661_v21  ;;  %v8667_v3 = vpack.i.b16 %v8656_v45, %v8647_v19  ;;  %v8670_v6 = vshrl.u32 %v8656_v45, 16 }
0x2a08   : > { %8689 = vxpose.xlu0.c.b16.start.end [1/1] (short) (narrow) %v8663_v59, 16  ;;  %v15934_v2 = vpop.eup %14359  ;;  %v8671_v5 = vpack.i.b16 %v8670_v6, %v8669_v39 }
0x2a09   : > { %v8532_v17 = vsel %vm3299_vm10, %v15934_v2, 0.0 }
0x2a13   : > { %8524 = vadd.xlane.f32.xlu1 %v8523_v12 }
0x2a15   : > { %8527 = vadd.xlane.f32.xlu0 %v8526_v4 }
0x2a17   : > { %8530 = vadd.xlane.f32.xlu1 %v8529_v20 }
0x2a19   : > { %8533 = vadd.xlane.f32.xlu0 %v8532_v17 }
0x2a27   : > { %v8489_v27 = vpop.xlane.xlu1 %8488 }
0x2a28   : > { %v8503_v32 = vsub.f32 %v8471_v7, %v8489_v27 }
0x2a2a   : > { %v8515_v61 = vmul.f32 1.442695, %v8503_v32 }
0x2a2b   : > { %v8495_v46 = vpop.xlane.xlu1 %8494 }
0x2a2c   : > { %14361 = vpow2.f32 %v8515_v61  ;;  %v8505_v16 = vsub.f32 %v8473_v50, %v8495_v46 }
0x2a2e   : > { %v8519_v18 = vmul.f32 1.442695, %v8505_v16 }
0x2a30   : > { %14363 = vpow2.f32 %v8519_v18 }
0x2a33   : > { %v8492_v29 = vpop.xlane.xlu0 %8491 }
0x2a34   : > { %v8504_v28 = vsub.f32 %v8472_v34, %v8492_v29 }
0x2a36   : > { %v15940_v43 = vpop.eup %14361  ;;  %v8517_v30 = vmul.f32 1.442695, %v8504_v28 }
0x2a37   : > { %v8498_v41 = vpop.xlane.xlu0 %8497  ;;  %v8535_v26 = vsel %vm3299_vm10, %v15940_v43, 0.0 }
0x2a38   : > { %14365 = vpow2.f32 %v8517_v30  ;;  %v8506_v40 = vsub.f32 %v15921_v54, %v8498_v41  ;;  %8536 = vadd.xlane.f32.xlu1 %v8535_v26 }
0x2a3a   : > { %v15945_v7 = vpop.eup %14363  ;;  %v8521_v38 = vmul.f32 1.442695, %v8506_v40 }
0x2a3b   : > { %v8541_v50 = vsel %vm3299_vm10, %v15945_v7, 0.0 }
0x2a3c   : > { %14367 = vpow2.f32 %v8521_v38  ;;  %8542 = vadd.xlane.f32.xlu1 %v8541_v50 }
0x2a42   : > { %v15949_v34 = vpop.eup %14365 }
0x2a43   : > { %v8538_v48 = vsel %vm3299_vm10, %v15949_v34, 0.0 }
0x2a44   : > { %8539 = vadd.xlane.f32.xlu0 %v8538_v48 }
0x2a46   : > { %v15953_v55 = vpop.eup %14367 }
0x2a47   : > { %v8544_v54 = vsel %vm3299_vm10, %v15953_v55, 0.0 }
0x2a48   : > { %8545 = vadd.xlane.f32.xlu0 %v8544_v54 }
0x2a69   : > { %8705 = vxpose.xlu1.c.b16.start.end [1/1] (short) (narrow) %v8667_v3, 16 }
0x2a6c   : > { %v8681_v11 = vpop.trf.xlu1 }
0x2a6d   : > { %v8743_v4 = vrot.slane %v8681_v11, %v14962_v10 }
0x2a6e   : > { %v8697_v15 = vpop.trf.xlu0 }
0x2a6f   : > { %v8775_v61 = vrot.slane %v8697_v15, %v14962_v10 }
0x2a75   : > { %8721 = vxpose.xlu0.c.b16.start.end [1/1] (short) (narrow) %v8671_v5, 16 }
0x2aa0   : > { %v8525_v57 = vpop.xlane.xlu1 %8524 }
0x2aa1   : > { %14369 = vrcp.f32 %v8525_v57 }
0x2aa2   : > { %v8528_v0 = vpop.xlane.xlu0 %8527 }
0x2aa3   : > { %14371 = vrcp.f32 %v8528_v0 }
0x2aa4   : > { %v8531_v33 = vpop.xlane.xlu1 %8530 }
0x2aa5   : > { %14373 = vrcp.f32 %v8531_v33 }
0x2aa6   : > { %v8534_v22 = vpop.xlane.xlu0 %8533 }
0x2aa7   : > { %14375 = vrcp.f32 %v8534_v22 }
0x2aab   : > { %v14370_v63 = vpop.eup %14369 }
0x2aac   : > { %v8555_v52 = vmul.f32 %v14370_v63, %v14354_v1 }
0x2aad   : > { %v14372_v13 = vpop.eup %14371 }
0x2aae   : > { %v8563_v21 = vpack.c.bf16 %v8555_v52, %v8555_v52  ;;  %v8556_v24 = vmul.f32 %v14372_v13, %v14356_v58 }
0x2aaf   : > { %v14374_v20 = vpop.eup %14373 }
0x2ab0   : > { %v8829_v60 = vsel %vm2922_vm9, %v8563_v21, 0  ;;  %v8564_v42 = vpack.c.bf16 %v8556_v24, %v8556_v24  ;;  %v8557_v16 = vmul.f32 %v14374_v20, %v15931_v37 }
0x2ab1   : > { %13829 = vmatpush3.bf16.xpose.msra.mxu1 %v8829_v60  ;;  %v14376_v27 = vpop.eup %14375 }
0x2ab2   : > { %v8875_v62 = vsel %vm2922_vm9, %v8564_v42, 0  ;;  %13840 = vmatprep.subr.bf16.mxu1 %v14478_v31  ;;  %v8558_v28 = vmul.f32 %v14376_v27, %v15934_v2  ;;  %v8565_v41 = vpack.c.bf16 %v8557_v16, %v8557_v16 }
0x2ab3   : > { %13835 = vmatpush3.bf16.xpose.msra.mxu0 %v8875_v62 }
0x2ab4   : > { %13846 = vmatprep.subr.bf16.mxu0 %v14478_v31  ;;  %v8566_v48 = vpack.c.bf16 %v8558_v28, %v8558_v28  ;;  %v8921_v37 = vsel %vm2922_vm9, %v8565_v41, 0 }
0x2ab6   : > { %v8967_v39 = vsel %vm2922_vm9, %v8566_v48, 0 }
0x2ac5   : > { %v8537_v25 = vpop.xlane.xlu1 %8536 }
0x2ac6   : > { %14377 = vrcp.f32 %v8537_v25 }
0x2ac9   : > { %v8543_v59 = vpop.xlane.xlu1 %8542 }
0x2acf   : > { %v8713_v1 = vpop.trf.xlu1 }
0x2ad0   : > { %v8750_v58 = vrot.slane %v8713_v1, %v14962_v10  ;;  %v14378_v26 = vpop.eup %14377 }
0x2ad1   : > { %v8540_v49 = vpop.xlane.xlu0 %8539  ;;  %v8559_v2 = vmul.f32 %v14378_v26, %v15940_v43 }
0x2ad2   : > { %14379 = vrcp.f32 %v8540_v49  ;;  %v8751_v17 = vcombine.low %v8743_v4, %v8750_v58  ;;  %v8752_v57 = vcombine.high %v8743_v4, %v8750_v58 }
0x2ad3   : > { %14381 = vrcp.f32 %v8543_v59  ;;  %v8567_v11 = vpack.c.bf16 %v8559_v2, %v8559_v2 }
0x2ad4   : > { %v8759_v18 = vrot.slane %v8751_v17, %v14974_v23  ;;  %v8766_v42 = vrot.slane %v8752_v57, %v14974_v23 }
0x2ad5   : > { %v8546_v12 = vpop.xlane.xlu0 %8545 }
0x2ad6   : > { %14383 = vrcp.f32 %v8546_v12  ;;  %v8804_v40 = vshrl.u32 %v8759_v18, 16  ;;  %v8767_v3 = vcombine.high %v8759_v18, %v14490_v14  ;;  %v8816_v22 = vshrl.u32 %v8766_v42, 16 }
0x2ad8   : > { %v8810_v0 = vshrl.u32 %v8767_v3, 16 }
0x2adb   : > { %v8729_v32 = vpop.trf.xlu0 }
0x2adc   : > { %v8782_v46 = vrot.slane %v8729_v32, %v14962_v10  ;;  %v14380_v54 = vpop.eup %14379 }
0x2add   : > { %v8560_v6 = vmul.f32 %v14380_v54, %v15949_v34  ;;  %v14382_v15 = vpop.eup %14381  ;;  %v9013_v34 = vsel %vm2922_vm9, %v8567_v11, 0 }
0x2ade   : > { %v8783_v29 = vcombine.low %v8775_v61, %v8782_v46  ;;  %v8784_v5 = vcombine.high %v8775_v61, %v8782_v46  ;;  %v8561_v60 = vmul.f32 %v14382_v15, %v15945_v7 }
0x2adf   : > { %v8568_v52 = vpack.c.bf16 %v8560_v6, %v8560_v6 }
0x2ae0   : > { %v8791_v30 = vrot.slane %v8783_v29, %v14974_v23  ;;  %v14384_v13 = vpop.eup %14383  ;;  %v8798_v21 = vrot.slane %v8784_v5, %v14974_v23  ;;  %v8569_v7 = vpack.c.bf16 %v8561_v60, %v8561_v60 }
0x2ae1   : > { %v9059_v62 = vsel %vm2922_vm9, %v8568_v52, 0  ;;  %v8562_v33 = vmul.f32 %v14384_v13, %v15953_v55  ;;  %v8768_v55 = vcombine.high %v8766_v42, %v14490_v14 }
0x2ae2   : > { %v8803_v38 = vpack.i.b16 %v8791_v30, %v8759_v18  ;;  %v8805_v50 = vshrl.u32 %v8791_v30, 16  ;;  %v8799_v19 = vcombine.high %v8791_v30, %v14490_v14  ;;  %v8817_v25 = vshrl.u32 %v8798_v21, 16 }
0x2ae3   : > { %v8815_v59 = vpack.i.b16 %v8798_v21, %v8766_v42  ;;  %v8570_v49 = vpack.c.bf16 %v8562_v33, %v8562_v33  ;;  %v8800_v1 = vcombine.high %v8798_v21, %v14490_v14  ;;  %v9105_v12 = vsel %vm2922_vm9, %v8569_v7, 0 }
0x2ae4   : > { %v8806_v45 = vpack.i.b16 %v8805_v50, %v8804_v40  ;;  %13831 = vmatmul.mubr.msk.bf16.vlgmr.msra.gmra.mrb[108].mxu1 %vm2922_vm9, %v8803_v38  ;;  %v8811_v43 = vshrl.u32 %v8799_v19, 16  ;;  %v8809_v63 = vpack.i.b16 %v8799_v19, %v8767_v3  ;;  %v8818_v58 = vpack.i.b16 %v8817_v25, %v8816_v22 }
0x2ae5   : > { %13841 = vmatpush3.bf16.xpose.msra.mxu1 %v8921_v37  ;;  %13842 = vmatprep.mubr.msk.bf16.mxu1 %vm14479_vm2, %v14478_v31  ;;  %v9151_v4 = vsel %vm2922_vm9, %v8570_v49, 0  ;;  %v8823_v20 = vshrl.u32 %v8800_v1, 16  ;;  %v8822_v17 = vshrl.u32 %v8768_v55, 16  ;;  %v8821_v27 = vpack.i.b16 %v8800_v1, %v8768_v55 }
0x2ae6   : > { %13837 = vmatmul.mubr.msk.bf16.vlgmr.msra.gmra.mrb[152].mxu0 %vm2922_vm9, %v8806_v45  ;;  %13852 = vmatprep.subr.bf16.mxu1 %v14478_v31  ;;  %v8812_v24 = vpack.i.b16 %v8811_v43, %v8810_v0 }
0x2ae7   : > { %13847 = vmatpush3.bf16.xpose.msra.mxu0 %v8967_v39  ;;  %13848 = vmatprep.mubr.msk.bf16.mxu0 %vm14479_vm2, %v14478_v31  ;;  %v8824_v32 = vpack.i.b16 %v8823_v20, %v8822_v17 }
0x2ae8   : > { %13858 = vmatprep.subr.bf16.mxu0 %v14478_v31 }
0x2aec   : > { %13843 = vmatmul.mubr.msk.bf16.vlgmr.msra.gmra.mrb[112].mxu1 %vm2922_vm9, %v8809_v63 }
0x2aed   : > { %13853 = vmatpush3.bf16.xpose.msra.mxu1 %v9013_v34  ;;  %13854 = vmatprep.mubr.msk.bf16.mxu1 %vm14479_vm2, %v14478_v31 }
0x2aee   : > { %13849 = vmatmul.mubr.msk.bf16.vlgmr.msra.gmra.mrb[156].mxu0 %vm2922_vm9, %v8812_v24  ;;  %13864 = vmatprep.subr.bf16.mxu1 %v14478_v31 }
0x2aef   : > { %13859 = vmatpush3.bf16.xpose.msra.mxu0 %v9059_v62  ;;  %13860 = vmatprep.mubr.msk.bf16.mxu0 %vm14479_vm2, %v14478_v31 }
0x2af0   : > { %13870 = vmatprep.subr.bf16.mxu0 %v14478_v31 }
0x2af4   : > { %13855 = vmatmul.mubr.msk.bf16.vlgmr.msra.gmra.mrb[116].mxu1 %vm2922_vm9, %v8815_v59 }
0x2af5   : > { %13865 = vmatpush3.bf16.xpose.msra.mxu1 %v9105_v12  ;;  %13866 = vmatprep.mubr.msk.bf16.mxu1 %vm14479_vm2, %v14478_v31 }
0x2af6   : > { %13861 = vmatmul.mubr.msk.bf16.vlgmr.msra.gmra.mrb[160].mxu0 %vm2922_vm9, %v8818_v58  ;;  %13876 = vmatprep.subr.bf16.mxu1 %v14478_v31 }
0x2af7   : > { %13871 = vmatpush3.bf16.xpose.msra.mxu0 %v9151_v4  ;;  %13872 = vmatprep.mubr.msk.bf16.mxu0 %vm14479_vm2, %v14478_v31 }
0x2af8   : > { %13884 = vmatprep.subr.bf16.mxu0 %v14478_v31 }
0x2afc   : > { %13867 = vmatmul.mubr.msk.bf16.vlgmr.msra.gmra.mrb[120].mxu1 %vm2922_vm9, %v8821_v27 }
0x2afd   : > { %13880 = vmatprep.mubr.msk.bf16.mxu1 %vm14479_vm2, %v14478_v31 }
0x2afe   : > { %13873 = vmatmul.mubr.msk.bf16.vlgmr.msra.gmra.mrb[164].mxu0 %vm2922_vm9, %v8824_v32 }
0x2aff   : > { %13888 = vmatprep.mubr.msk.bf16.mxu0 %vm14479_vm2, %v14478_v31 }
0x2bb7   : > { %v8865_v61 = vpop.f32.mrb[108].mxu1 }
0x2bb8   : > { %9193 = vxpose.xlu1.b32.start.end [1/1] (short) (narrow) %v8865_v61, 8  ;;  %v13832_v46 = vpop.f32.mrb[109].mxu1 }
0x2bb9   : > { %v8868_v16 = vpop.f32.mrb[110].mxu1  ;;  %v8911_v18 = vpop.f32.mrb[152].mxu0 }
0x2bba   : > { %v13833_v29 = vpop.f32.mrb[111].mxu1  ;;  %9225 = vxpose.xlu0.b32.start.end [1/1] (short) (narrow) %v8911_v18, 8  ;;  %v13838_v28 = vpop.f32.mrb[153].mxu0 }
0x2bbb   : > { %v8914_v30 = vpop.f32.mrb[154].mxu0 }
0x2bbc   : > { %v13839_v41 = vpop.f32.mrb[155].mxu0 }
0x2bbf   : > { %v8957_v26 = vpop.f32.mrb[112].mxu1 }
0x2bc0   : > { %v13844_v40 = vpop.f32.mrb[113].mxu1  ;;  %9257 = vxpose.xlu0.b32.start.end [1/1] (short) (narrow) %v8957_v26, 8 }
0x2bc1   : > { %v8960_v38 = vpop.f32.mrb[114].mxu1  ;;  %v9003_v50 = vpop.f32.mrb[156].mxu0 }
0x2bc2   : > { %v13845_v48 = vpop.f32.mrb[115].mxu1  ;;  %9289 = vxpose.xlu1.b32.start.end [1/1] (short) (narrow) %v9003_v50, 8  ;;  %v13850_v54 = vpop.f32.mrb[157].mxu0 }
0x2bc3   : > { %v9006_v19 = vpop.f32.mrb[158].mxu0 }
0x2bc4   : > { %v13851_v45 = vpop.f32.mrb[159].mxu0 }
0x2bc5   : > { %v14203_v45 = vld [vmem:[%s16638_s6 + $0x20] sm:$0xff]  }
0x2bc6   : > { %13877 = vmatpush3.bf16.msra.mxu1 %v14203_v45 }
0x2bc7   : > { %v9049_v37 = vpop.f32.mrb[116].mxu1  ;;  %13878 = vmatprep.subr.bf16.mxu1 %v14478_v31 }
0x2bc8   : > { %v13856_v2 = vpop.f32.mrb[117].mxu1  ;;  %9321 = vxpose.xlu0.b32.start.end [1/1] (short) (narrow) %v9049_v37, 8 }
0x2bc9   : > { %v9052_v3 = vpop.f32.mrb[118].mxu1  ;;  %v9095_v39 = vpop.f32.mrb[160].mxu0 }
0x2bca   : > { %v13857_v6 = vpop.f32.mrb[119].mxu1  ;;  %9353 = vxpose.xlu1.b32.start.end [1/1] (short) (narrow) %v9095_v39, 8  ;;  %v13862_v5 = vpop.f32.mrb[161].mxu0 }
0x2bcb   : > { %v9098_v43 = vpop.f32.mrb[162].mxu0 }
0x2bcc   : > { %v13863_v11 = vpop.f32.mrb[163].mxu0  ;;  %v14204_v43 = vld [vmem:[%s16638_s6 + $0x28] sm:$0xff]  }
0x2bcd   : > { %13879 = vmatpush3.bf16.msra.mxu1 %v14204_v43  ;;  %v14211_v43 = vld [vmem:[%s16640_s26 + $0xa0] sm:$0xff]  }
0x2bce   : > { %13892 = vmatprep.subr.bf16.mxu1 %v14478_v31 }
0x2bcf   : > { %v9141_v15 = vpop.f32.mrb[120].mxu1 }
0x2bd0   : > { %v13868_v57 = vpop.f32.mrb[121].mxu1  ;;  %9385 = vxpose.xlu0.b32.start.end [1/1] (short) (narrow) %v9141_v15, 8 }
0x2bd1   : > { %v9144_v0 = vpop.f32.mrb[122].mxu1  ;;  %v9187_v63 = vpop.f32.mrb[164].mxu0 }
0x2bd2   : > { %v13869_v52 = vpop.f32.mrb[123].mxu1  ;;  %9417 = vxpose.xlu1.b32.start.end [1/1] (short) (narrow) %v9187_v63, 8  ;;  %v13874_v13 = vpop.f32.mrb[165].mxu0 }
0x2bd3   : > { %v9190_v21 = vpop.f32.mrb[166].mxu0 }
0x2bd4   : > { %v13875_v34 = vpop.f32.mrb[167].mxu0 }
0x2c38   : > { %v9209_v60 = vpop.trf.xlu1 }
0x2c3a   : > { %v9241_v24 = vpop.trf.xlu0 }
0x2c40   : > { %v9273_v42 = vpop.trf.xlu0 }
0x2c41   : > { %v9449_v62 = vcombine.low %v9209_v60, %v9273_v42 }
0x2c42   : > { %v9305_v33 = vpop.trf.xlu1 }
0x2c43   : > { %v9456_v25 = vrot.slane %v9449_v62, %v14962_v10  ;;  %v9457_v7 = vcombine.low %v9241_v24, %v9305_v33 }
0x2c45   : > { %v9464_v22 = vrot.slane %v9457_v7, %v14962_v10 }
0x2c47   : > { %v9481_v59 = vcombine.low %v9456_v25, %v9464_v22  ;;  %v9482_v49 = vcombine.high %v9456_v25, %v9464_v22 }
0x2c48   : > { %v9337_v12 = vpop.trf.xlu0 }
0x2c49   : > { %v9489_v1 = vrot.slane %v9481_v59, %v14974_v23  ;;  %v9496_v58 = vrot.slane %v9482_v49, %v14974_v23 }
0x2c4a   : > { %v9369_v20 = vpop.trf.xlu1 }
0x2c4b   : > { %v12974_v55 = vcombine.low %v9489_v1, %v9496_v58  ;;  %v12976_v4 = vcombine.high %v9489_v1, %v9496_v58  ;;  %v14435_v1 = vld [vmem:[%s16634_s7 + $0x20] sm:$0xff] }
0x2c4c   : > { %v9624_v58 = vrot.slane %v14435_v1, %v14847_v8  ;;  %v9707_v45 = vrot.slane %v14435_v1, %v14873_v36 }
0x2c4d   : > { %v9525_v17 = vrot.slane %v12974_v55, %v14962_v10  ;;  %v9541_v27 = vrot.slane %v12976_v4, %v14962_v10 }
0x2c4f   : > { %v9550_v32 = vcombine.high %v9525_v17, %v9541_v27  ;;  %v9549_v61 = vcombine.low %v9525_v17, %v9541_v27 }
0x2c50   : > { %v9401_v46 = vpop.trf.xlu0 }
0x2c51   : > { %v9465_v16 = vcombine.low %v9337_v12, %v9401_v46  ;;  %v9564_v18 = vrot.slane %v9550_v32, %v14974_v23  ;;  %v9557_v29 = vrot.slane %v9549_v61, %v14974_v23  ;;  %v9683_v12 = vrot.slane %v14435_v1, %v14850_v9 }
0x2c52   : > { %v9433_v28 = vpop.trf.xlu1 }
0x2c53   : > { %v9473_v30 = vcombine.low %v9369_v20, %v9433_v28  ;;  %9590 = vrot.lane.b32.xlu1 %v9564_v18, %s16648_s18  ;;  %v9581_v41 = vcombine.high %v9557_v29, %v14478_v31  ;;  %v9582_v26 = vcombine.high %v9564_v18, %v14478_v31  ;;  %v9472_v40 = vrot.slane %v9465_v16, %v14962_v10 }
0x2c55   : > { %v9480_v38 = vrot.slane %v9473_v30, %v14962_v10  ;;  %9586 = vrot.lane.b32.xlu0 %v9581_v41, %s16649_s19  ;;  %v14205_v41 = vld [vmem:[%s16639_s3 + $0x20] sm:$0xff]  }
0x2c56   : > { %13885 = vmatpush3.bf16.msra.mxu0 %v14205_v41 }
0x2c57   : > { %v9497_v50 = vcombine.low %v9472_v40, %v9480_v38  ;;  %v9498_v48 = vcombine.high %v9472_v40, %v9480_v38  ;;  %9594 = vrot.lane.b32.xlu1 %v9582_v26, %s16650_s21  ;;  %v14206_v26 = vld [vmem:[%s16639_s3 + $0x28] sm:$0xff]   ;;  %13886 = vmatprep.subr.bf16.mxu0 %v14478_v31 }
0x2c59   : > { %v9505_v54 = vrot.slane %v9497_v50, %v14974_v23  ;;  %v9512_v19 = vrot.slane %v9498_v48, %v14974_v23  ;;  %v9702_v48 = vrot.slane %v14435_v1, %v14870_v35  ;;  %v12918_v1 = vld [vmem:[%s16634_s7 + $0x28] sm:$0x3] }
0x2c5a   : > { %13887 = vmatpush3.bf16.msra.mxu0 %v14206_v26  ;;  %v14215_v26 = vld [vmem:[%s16633_s2 + $0x30] sm:$0xff]  }
0x2c5b   : > { %v12975_v37 = vcombine.low %v9505_v54, %v9512_v19  ;;  %v12977_v2 = vcombine.high %v9505_v54, %v9512_v19  ;;  %13912 = vmatprep.subr.bf16.mxu0 %v14478_v31 }
0x2c5d   : > { %v9532_v3 = vrot.slane %v12975_v37, %v14962_v10  ;;  %v9548_v39 = vrot.slane %v12977_v2, %v14962_v10 }
0x2c5f   : > { %v9566_v6 = vcombine.high %v9532_v3, %v9548_v39  ;;  %v9565_v5 = vcombine.low %v9532_v3, %v9548_v39  ;;  %v14208_v39 = vld [vmem:[%s16640_s26 + $0x88] sm:$0xff]  }
0x2c61   : > { %v9580_v11 = vrot.slane %v9566_v6, %v14974_v23  ;;  %v9573_v15 = vrot.slane %v9565_v5, %v14974_v23  ;;  %v14209_v6 = vld [vmem:[%s16640_s26 + $0x90] sm:$0xff]   ;;  %v14210_v5 = vld [vmem:[%s16640_s26 + $0x98] sm:$0xff]  }
0x2c63   : > { %9606 = vrot.lane.b32.xlu0 %v9580_v11, %s16654_s25  ;;  %9598 = vrot.lane.b32.xlu1 %v9573_v15, %s16651_s22  ;;  %v9583_v57 = vcombine.high %v9573_v15, %v14478_v31  ;;  %v9584_v0 = vcombine.high %v9580_v11, %v14478_v31  ;;  %v14212_v11 = vld [vmem:[%s16640_s26 + $0xa8] sm:$0xff]   ;;  %v14213_v15 = vld [vmem:[%s16640_s26 + $0xb0] sm:$0xff]  }
0x2c67   : > { %9602 = vrot.lane.b32.xlu1 %v9583_v57, %s16653_s24  ;;  %v14214_v57 = vld [vmem:[%s16640_s26 + $0xb8] sm:$0xff]  }
0x2c6b   : > { %9610 = vrot.lane.b32.xlu1 %v9584_v0, %s16652_s23  ;;  %v12981_v0 = vld [vmem:[%s16641_s8 + $0x2] ss:$0 sm:$0xff] }
0x2cc5   : > { %v9591_v63 = vpop.permute.xlu1 %9590 }
0x2cc7   : > { %v9587_v52 = vpop.permute.xlu0 %9586 }
0x2cc8   : > { %v9613_v21 = vsel %vm2922_vm9, %v9557_v29, %v9587_v52 }
0x2cc9   : > { %v9595_v13 = vpop.permute.xlu1 %9594  ;;  %v9614_v34 = vsel %vm4439_vm11, %v9613_v21, %v9591_v63 }
0x2cca   : > { %v9615_v60 = vsel %vm4441_vm12, %v9614_v34, %v9595_v13 }
0x2cd5   : > { %v9599_v24 = vpop.permute.xlu1 %9598  ;;  %v9607_v25 = vpop.permute.xlu0 %9606 }
0x2cd6   : > { %v9616_v42 = vsel %vm1144_vm4, %v9615_v60, %v9599_v24 }
0x2cd9   : > { %v9603_v62 = vpop.permute.xlu1 %9602 }
0x2cda   : > { %v9617_v33 = vsel %vm4444_vm13, %v9616_v42, %v9603_v62 }
0x2cdb   : > { %v9618_v7 = vsel %vm4446_vm14, %v9617_v33, %v9607_v25 }
0x2cdd   : > { %v9611_v22 = vpop.permute.xlu1 %9610 }
0x2cde   : > { %v9619_v59 = vsel %vm4448_vm15, %v9618_v7, %v9611_v22 }
0x2cdf   : > { %v9620_v49 = vpack.c.bf16 %v9619_v59, %v9619_v59 }
0x2ce1   : > { %13881 = vmatmul.mubr.msk.bf16.vlgmr.msra.gmra.mrb[124].mxu1 %vm1203_vm1, %v9620_v49 }
0x2ce2   : > { %13908 = vmatprep.mubr.msk.bf16.mxu1 %vm14479_vm2, %v14478_v31 }
0x2db4   : > { %v9674_v55 = vpop.f32.mrb[124].mxu1 }
0x2db5   : > { %v9675_v4 = vadd.f32 %v9674_v55, %v9624_v58  ;;  %v13882_v20 = vpop.f32.mrb[125].mxu1  ;;  %v9784_v58 = vrot.slane %v12918_v1, %v14722_v44 }
0x2db6   : > { %v9677_v17 = vpop.f32.mrb[126].mxu1 }
0x2db7   : > { %v9684_v27 = vmul.f32 %v9683_v12, %v9675_v4  ;;  %v13883_v32 = vpop.f32.mrb[127].mxu1  ;;  %v9876_v12 = vrot.slane %v12918_v1, %v14727_v47 }
0x2db9   : > { %v16062_v61 = vadd.f32 %v9684_v27, %v15713_v53  ;;  %v14207_v53 = vld [vmem:[%s16640_s26 + $0x80] sm:$0xff]  }
0x2dba   : > { %13893 = vmatpush3.bf16.msra.mxu1 %v14207_v53  ;;  %v14216_v53 = vld [vmem:[%s16633_s2 + $0x38] sm:$0xff]  }
0x2dbb   : > { %v9686_v46 = vsel %vm1506_vm5, %v16062_v61, 0.0  ;;  %13894 = vmatprep.subr.bf16.mxu1 %v14478_v31 }
0x2dbc   : > { %9687 = vadd.xlane.f32.xlu0 %v9686_v46 }
0x2dbe   : > { %13895 = vmatpush3.bf16.msra.mxu1 %v14208_v39  ;;  %v14217_v39 = vld [vmem:[%s16635_s10 + $0x30] sm:$0xff]  }
0x2dbf   : > { %13896 = vmatprep.subr.bf16.mxu1 %v14478_v31 }
0x2dc2   : > { %13897 = vmatpush3.bf16.msra.mxu1 %v14209_v6 }
0x2dc3   : > { %13898 = vmatprep.subr.bf16.mxu1 %v14478_v31 }
0x2dc6   : > { %13899 = vmatpush3.bf16.msra.mxu1 %v14210_v5 }
0x2dc7   : > { %13900 = vmatprep.subr.bf16.mxu1 %v14478_v31 }
0x2dca   : > { %13901 = vmatpush3.bf16.msra.mxu1 %v14211_v43 }
0x2dcb   : > { %13902 = vmatprep.subr.bf16.mxu1 %v14478_v31 }
0x2dce   : > { %13903 = vmatpush3.bf16.msra.mxu1 %v14212_v11  ;;  %v14218_v11 = vld [vmem:[%s16635_s10 + $0x38] sm:$0xff]  }
0x2dcf   : > { %13904 = vmatprep.subr.bf16.mxu1 %v14478_v31 }
0x2dd2   : > { %13905 = vmatpush3.bf16.msra.mxu1 %v14213_v15 }
0x2dd3   : > { %13906 = vmatprep.subr.bf16.mxu1 %v14478_v31 }
0x2dd6   : > { %13907 = vmatpush3.bf16.msra.mxu1 %v14214_v57 }
0x2dd7   : > { %13940 = vmatprep.subr.bf16.mxu1 %v14478_v31 }
0x2e49   : > { %v9688_v16 = vpop.xlane.xlu0 %9687 }
0x2e4a   : > { %v9689_v18 = vmul.f32 0.03125, %v9688_v16 }
0x2e4c   : > { %v9690_v29 = vsub.f32 %v16062_v61, %v9689_v18 }
0x2e4e   : > { %v9691_v28 = vmul.f32 %v9690_v29, %v9690_v29 }
0x2e50   : > { %v9692_v30 = vsel %vm1506_vm5, %v9691_v28, 0.0 }
0x2e51   : > { %9693 = vadd.xlane.f32.xlu1 %v9692_v30 }
0x2ede   : > { %v9694_v40 = vpop.xlane.xlu1 %9693 }
0x2edf   : > { %v9695_v38 = vmul.f32 0.03125, %v9694_v40 }
0x2ee1   : > { %v9696_v50 = vadd.f32 1e-05, %v9695_v38 }
0x2ee3   : > { %14385 = vrsqrt.f32 %v9696_v50  ;;  %v12993_v50 = vld [vmem:[%s16634_s7 + $0x30] sm:$0xff] }
0x2ee4   : > { %v9952_v43 = vrot.slane %v12993_v50, %v14801_v56 }
0x2eed   : > { %v14386_v54 = vpop.eup %14385 }
0x2eee   : > { %v9698_v19 = vmul.f32 %v14386_v54, %v9690_v29 }
0x2ef0   : > { %v9703_v37 = vmul.f32 %v9702_v48, %v9698_v19  ;;  %v9937_v48 = vrot.slane %v12993_v50, %v14722_v44 }
0x2ef2   : > { %v9708_v2 = vadd.f32 %v9707_v45, %v9703_v37  ;;  %v9942_v45 = vrot.slane %v12993_v50, %v14727_v47 }
0x2ef4   : > { %v9709_v3 = vpack.c.bf16 %v9708_v2, %v9708_v2  ;;  %v9947_v2 = vrot.slane %v12993_v50, %v14796_v51 }
0x2ef6   : > { %13889 = vmatmul.mubr.msk.bf16.vlgmr.msra.gmra.mrb[168].mxu0 %vm1203_vm1, %v9709_v3 }
0x2ef7   : > { %13916 = vmatprep.mubr.msk.bf16.mxu0 %vm14479_vm2, %v14478_v31  ;;  %13913 = vmatpush3.bf16.msra.mxu0 %v14215_v26 }
0x2ef8   : > { %13914 = vmatprep.subr.bf16.mxu0 %v14478_v31 }
0x2efb   : > { %13915 = vmatpush3.bf16.msra.mxu0 %v14216_v53 }
0x2efc   : > { %13920 = vmatprep.subr.bf16.mxu0 %v14478_v31 }
0x2fc9   : > { %v9765_v63 = vpop.f32.mrb[168].mxu0 }
0x2fca   : > { %v9766_v52 = vadd.f32 %v12981_v0, %v9765_v63  ;;  %v13890_v13 = vpop.f32.mrb[169].mxu0 }
0x2fcb   : > { %v9768_v21 = vpop.f32.mrb[170].mxu0 }
0x2fcc   : > { %v9772_v34 = vmul.f32 0.044715, %v9766_v52  ;;  %v13891_v24 = vpop.f32.mrb[171].mxu0  ;;  %v9771_v7 = vmul.f32 0.5, %v9766_v52 }
0x2fcd   : > { %v14436_v24 = vld [vmem:[%s16628_s15] sm:$0xf] }
0x2fce   : > { %v9773_v60 = vmul.f32 %v9772_v34, %v9766_v52 }
0x2fd0   : > { %v9774_v42 = vmul.f32 %v9773_v60, %v9766_v52 }
0x2fd2   : > { %v9775_v62 = vadd.f32 %v9774_v42, %v9766_v52 }
0x2fd4   : > { %v9776_v33 = vmul.f32 0.7978846, %v9775_v62 }
0x2fd6   : > { %14387 = vtanh.f32 %v9776_v33 }
0x2fe0   : > { %v14388_v25 = vpop.eup %14387 }
0x2fe1   : > { %v9778_v22 = vadd.f32 1.0, %v14388_v25 }
0x2fe3   : > { %v9779_v59 = vmul.f32 %v9778_v22, %v9771_v7 }
0x2fe5   : > { %v9780_v49 = vpack.c.bf16 %v9779_v59, %v9779_v59 }
0x2fe7   : > { %13909 = vmatmul.mubr.bf16.vlgmr.msra.gmra.mrb[128].mxu1 %v9780_v49 }
0x2fe8   : > { %13942 = vmatprep.mubr.msk.bf16.mxu1 %vm14479_vm2, %v14478_v31 }
0x30ba   : > { %v9867_v55 = vpop.f32.mrb[128].mxu1 }
0x30bb   : > { %v9868_v4 = vadd.f32 %v9867_v55, %v9784_v58  ;;  %v13910_v20 = vpop.f32.mrb[129].mxu1 }
0x30bc   : > { %v9870_v17 = vpop.f32.mrb[130].mxu1 }
0x30bd   : > { %v9877_v27 = vmul.f32 %v9876_v12, %v9868_v4  ;;  %v13911_v32 = vpop.f32.mrb[131].mxu1 }
0x30bf   : > { %v16100_v46 = vadd.f32 %v9877_v27, %v16062_v61 }
0x30c1   : > { %v9921_v16 = vsel %vm1506_vm5, %v16100_v46, 0.0 }
0x30c2   : > { %9922 = vadd.xlane.f32.xlu0 %v9921_v16 }
0x314f   : > { %v9923_v18 = vpop.xlane.xlu0 %9922 }
0x3150   : > { %v9924_v29 = vmul.f32 0.03125, %v9923_v18 }
0x3152   : > { %v9925_v28 = vsub.f32 %v16100_v46, %v9924_v29 }
0x3154   : > { %v9926_v30 = vmul.f32 %v9925_v28, %v9925_v28 }
0x3156   : > { %v9927_v41 = vsel %vm1506_vm5, %v9926_v30, 0.0 }
0x3157   : > { %9928 = vadd.xlane.f32.xlu0 %v9927_v41 }
0x31e4   : > { %v9929_v61 = vpop.xlane.xlu0 %9928 }
0x31e5   : > { %v9930_v40 = vmul.f32 0.03125, %v9929_v61 }
0x31e7   : > { %v9931_v38 = vadd.f32 1e-05, %v9930_v40 }
0x31e9   : > { %14389 = vrsqrt.f32 %v9931_v38 }
0x31f3   : > { %v14390_v54 = vpop.eup %14389 }
0x31f4   : > { %v9933_v19 = vmul.f32 %v14390_v54, %v9925_v28 }
0x31f6   : > { %v9938_v37 = vmul.f32 %v9937_v48, %v9933_v19  ;;  %v9948_v5 = vmul.f32 %v9947_v2, %v9933_v19 }
0x31f8   : > { %v9943_v3 = vadd.f32 %v9942_v45, %v9938_v37  ;;  %v9953_v15 = vadd.f32 %v9952_v43, %v9948_v5 }
0x31fa   : > { %v9954_v6 = vpack.c.bf16 %v9943_v3, %v9943_v3  ;;  %v10010_v57 = vpack.c.bf16 %v9953_v15, %v9953_v15 }
0x31fc   : > { %13917 = vmatmul.mubr.msk.bf16.vlgmr.msra.gmra.mrb[172].mxu0 %vm1203_vm1, %v9954_v6 }
0x31fd   : > { %13921 = vmatpush3.bf16.msra.mxu0 %v14217_v39  ;;  %13924 = vmatprep.mubr.msk.bf16.mxu0 %vm14479_vm2, %v14478_v31 }
0x31fe   : > { %13922 = vmatprep.subr.bf16.mxu0 %v14478_v31 }
0x3201   : > { %13923 = vmatpush3.bf16.msra.mxu0 %v14218_v11 }
0x3202   : > { %13928 = vmatprep.subr.bf16.mxu0 %v14478_v31 }
0x3204   : > { %13925 = vmatmul.mubr.msk.bf16.vlgmr.msra.gmra.mrb[176].mxu0 %vm1203_vm1, %v10010_v57 }
0x3205   : > { %13930 = vmatprep.mubr.msk.bf16.mxu0 %vm14479_vm2, %v14478_v31 }
0x32cf   : > { %v10004_v51 = vpop.f32.mrb[172].mxu0 }
0x32d0   : > { %v13918_v56 = vpop.f32.mrb[173].mxu0  ;;  %v16142_v60 = vadd.f32 %v14436_v24, %v10004_v51 }
0x32d1   : > { %v10007_v0 = vpop.f32.mrb[174].mxu0 }
0x32d2   : > { %v13919_v63 = vpop.f32.mrb[175].mxu0 }
0x32d7   : > { %v16125_v52 = vpop.f32.mrb[176].mxu0 }
0x32d8   : > { %10160 = vrot.lane.b32.xlu1 %v16125_v52, %s16636_s0  ;;  %10157 = vrot.lane.b32.xlu0 %v16125_v52, %s16642_s5  ;;  %v13926_v13 = vpop.f32.mrb[177].mxu0 }
0x32d9   : > { %v10063_v21 = vpop.f32.mrb[178].mxu0 }
0x32da   : > { %v13927_v34 = vpop.f32.mrb[179].mxu0 }
0x32dc   : > { %10163 = vrot.lane.b32.xlu1 %v16125_v52, %s16643_s9  ;;  %10169 = vrot.lane.b32.xlu0 %v16125_v52, %s16644_s11 }
0x32e0   : > { %10166 = vrot.lane.b32.xlu1 %v16125_v52, %s16645_s12  ;;  %10175 = vrot.lane.b32.xlu0 %v16125_v52, %s16646_s14 }
0x32e4   : > { %10172 = vrot.lane.b32.xlu1 %v16125_v52, %s16647_s17 }
0x32e8   : > { %10067 = vrot.lane.b32.xlu1 %v16142_v60, %s16642_s5  ;;  %s16655_s5 = sld [smem:[#allocation28_spill]] }
0x334a   : > { %v16146_v42 = vpop.permute.xlu1 %10160  ;;  %v10158_v62 = vpop.permute.xlu0 %10157 }
0x334b   : > { %v10178_v49 = vcombine.low %v16125_v52, %v16146_v42 }
0x334d   : > { %v10185_v55 = vrot.slane %v10178_v49, %v14962_v10 }
0x334e   : > { %v16148_v33 = vpop.permute.xlu1 %10163  ;;  %v16150_v25 = vpop.permute.xlu0 %10169 }
0x334f   : > { %v10186_v7 = vcombine.low %v10158_v62, %v16148_v33 }
0x3351   : > { %v10193_v1 = vrot.slane %v10186_v7, %v14962_v10 }
0x3352   : > { %v16153_v22 = vpop.permute.xlu1 %10166  ;;  %v16155_v59 = vpop.permute.xlu0 %10175 }
0x3353   : > { %v10202_v58 = vcombine.low %v16150_v25, %v16155_v59  ;;  %v10210_v20 = vcombine.low %v10185_v55, %v10193_v1  ;;  %v10211_v32 = vcombine.high %v10185_v55, %v10193_v1 }
0x3355   : > { %v10209_v17 = vrot.slane %v10202_v58, %v14962_v10  ;;  %v10218_v29 = vrot.slane %v10210_v20, %v14974_v23  ;;  %v10225_v53 = vrot.slane %v10211_v32, %v14974_v23 }
0x3356   : > { %v10173_v12 = vpop.permute.xlu1 %10172 }
0x3357   : > { %v10194_v4 = vcombine.low %v16153_v22, %v10173_v12 }
0x3359   : > { %v10201_v27 = vrot.slane %v10194_v4, %v14962_v10 }
0x335a   : > { %v10068_v19 = vpop.permute.xlu1 %10067 }
0x335b   : > { %v10226_v16 = vcombine.low %v10201_v27, %v10209_v17  ;;  %v10227_v18 = vcombine.high %v10201_v27, %v10209_v17 }
0x335d   : > { %v10234_v28 = vrot.slane %v10226_v16, %v14974_v23  ;;  %v10241_v30 = vrot.slane %v10227_v18, %v14974_v23 }
0x335f   : > { %v10243_v41 = vcombine.high %v10218_v29, %v10234_v28  ;;  %v10242_v26 = vcombine.low %v10218_v29, %v10234_v28  ;;  %v10244_v38 = vcombine.low %v10225_v53, %v10241_v30  ;;  %v10245_v48 = vcombine.high %v10225_v53, %v10241_v30 }
0x3361   : > { %v10339_v61 = vpack.c.bf16 %v10243_v41, %v10243_v41  ;;  %v10338_v40 = vpack.c.bf16 %v10242_v26, %v10242_v26  ;;  %v10340_v50 = vpack.c.bf16 %v10244_v38, %v10244_v38  ;;  %v10341_v54 = vpack.c.bf16 %v10245_v48, %v10245_v48 }
0x3363   : > { %10450 = vxpose.xlu0.c.b16.start.end [1/1] (short) (narrow) %v10339_v61, 16  ;;  %10434 = vxpose.xlu1.c.b16.start.end [1/1] (short) (narrow) %v10338_v40, 16 }
0x3367   : > { %10466 = vxpose.xlu0.c.b16.start.end [1/1] (short) (narrow) %v10340_v50, 16  ;;  %10073 = vrot.lane.b32.xlu1 %v16142_v60, %s16643_s9  ;;  %s16656_s9 = sld [smem:[#allocation27_spill]] }
0x336b   : > { %10482 = vxpose.xlu0.c.b16.start.end [1/1] (short) (narrow) %v10341_v54, 16  ;;  %10076 = vrot.lane.b32.xlu1 %v16142_v60, %s16645_s12 }
0x336f   : > { %10079 = vrot.lane.b32.xlu1 %v16142_v60, %s16644_s11 }
0x3373   : > { %10085 = vrot.lane.b32.xlu1 %v16142_v60, %s16646_s14 }
0x3374   : > { %10070 = vrot.lane.b32.xlu0 %v16142_v60, %s16636_s0 }
0x3378   : > { %10082 = vrot.lane.b32.xlu0 %v16142_v60, %s16647_s17  ;;  %s16657_s17 = sshll.u32 %s16659_s1, 2 }
0x33c9   : > { %v10458_v45 = vpop.trf.xlu0  ;;  %v10442_v37 = vpop.trf.xlu1 }
0x33cd   : > { %v10474_v2 = vpop.trf.xlu0 }
0x33ce   : > { %v10498_v3 = vcombine.low %v10442_v37, %v10474_v2 }
0x33d0   : > { %v10505_v6 = vrot.slane %v10498_v3, %v14974_v23 }
0x33d1   : > { %v10490_v39 = vpop.trf.xlu0 }
0x33d2   : > { %v10507_v5 = vcombine.low %v10458_v45, %v10490_v39  ;;  %v10520_v11 = vshrl.u32 %v10505_v6, 16  ;;  %v10506_v0 = vcombine.high %v10505_v6, %v14490_v14 }
0x33d4   : > { %v10514_v43 = vrot.slane %v10507_v5, %v14974_v23  ;;  %v10528_v21 = vshrl.u32 %v10506_v0, 16 }
0x33d6   : > { %v10518_v15 = vpack.i.b16 %v10514_v43, %v10505_v6  ;;  %v10521_v57 = vshrl.u32 %v10514_v43, 16  ;;  %v10515_v51 = vcombine.high %v10514_v43, %v14490_v14 }
0x33d8   : > { %10532 = vxpose.xlu0.c.b16.start.end [1/1] (short) (narrow) %v10518_v15, 16  ;;  %v10522_v56 = vpack.i.b16 %v10521_v57, %v10520_v11  ;;  %v10526_v63 = vpack.i.b16 %v10515_v51, %v10506_v0  ;;  %v10529_v13 = vshrl.u32 %v10515_v51, 16 }
0x33d9   : > { %v10074_v24 = vpop.permute.xlu1 %10073 }
0x33da   : > { %10548 = vxpose.xlu1.c.b16.start.end [1/1] (short) (narrow) %v10522_v56, 16  ;;  %v10530_v34 = vpack.i.b16 %v10529_v13, %v10528_v21  ;;  %v10096_v55 = vcombine.low %v10068_v19, %v10074_v24 }
0x33dc   : > { %10564 = vxpose.xlu0.c.b16.start.end [1/1] (short) (narrow) %v10526_v63, 16 }
0x33de   : > { %10248 = vrot.lane.b32.xlu1 %v10158_v62, %s16637_s16  ;;  %v10077_v62 = vpop.permute.xlu1 %10076 }
0x33e0   : > { %10580 = vxpose.xlu0.c.b16.start.end [1/1] (short) (narrow) %v10530_v34, 16 }
0x33e2   : > { %10250 = vrot.lane.b32.xlu1 %v16146_v42, %s16637_s16  ;;  %v10080_v7 = vpop.permute.xlu1 %10079 }
0x33e6   : > { %10252 = vrot.lane.b32.xlu1 %v16148_v33, %s16637_s16  ;;  %v10071_v42 = vpop.permute.xlu0 %10070  ;;  %v10086_v33 = vpop.permute.xlu1 %10085 }
0x33e7   : > { %v10112_v58 = vcombine.low %v10080_v7, %v10086_v33 }
0x33e9   : > { %10246 = vrot.lane.b32.xlu0 %v16125_v52, %s16637_s16  ;;  %v10088_v52 = vcombine.low %v16142_v60, %v10071_v42 }
0x33ea   : > { %10256 = vrot.lane.b32.xlu1 %v16150_v25, %s16637_s16  ;;  %v10083_v49 = vpop.permute.xlu0 %10082 }
0x33eb   : > { %v10104_v1 = vcombine.low %v10077_v62, %v10083_v49  ;;  %v10095_v4 = vrot.slane %v10088_v52, %v14962_v10 }
0x33ed   : > { %10254 = vrot.lane.b32.xlu0 %v16153_v22, %s16637_s16  ;;  %v10111_v25 = vrot.slane %v10104_v1, %v14962_v10  ;;  %v10119_v22 = vrot.slane %v10112_v58, %v14962_v10 }
0x33ee   : > { %10260 = vrot.lane.b32.xlu1 %v16155_v59, %s16637_s16  ;;  %v10103_v59 = vrot.slane %v10096_v55, %v14962_v10 }
0x33ef   : > { %v10137_v20 = vcombine.high %v10111_v25, %v10119_v22 }
0x33f0   : > { %v10120_v17 = vcombine.low %v10095_v4, %v10103_v59  ;;  %v10121_v27 = vcombine.high %v10095_v4, %v10103_v59 }
0x33f1   : > { %10258 = vrot.lane.b32.xlu0 %v10173_v12, %s16637_s16  ;;  %v10136_v12 = vcombine.low %v10111_v25, %v10119_v22  ;;  %v10151_v16 = vrot.slane %v10137_v20, %v14974_v23 }
0x33f2   : > { %v10128_v18 = vrot.slane %v10120_v17, %v14974_v23  ;;  %v10135_v60 = vrot.slane %v10121_v27, %v14974_v23 }
0x33f3   : > { %v10144_v32 = vrot.slane %v10136_v12, %v14974_v23 }
0x33f4   : > { %v10154_v30 = vcombine.low %v10135_v60, %v10151_v16  ;;  %v10155_v41 = vcombine.high %v10135_v60, %v10151_v16 }
0x33f5   : > { %v10152_v29 = vcombine.low %v10128_v18, %v10144_v32  ;;  %v10153_v28 = vcombine.high %v10128_v18, %v10144_v32 }
0x33f6   : > { %v10350_v53 = vpack.c.bf16 %v10154_v30, %v10154_v30  ;;  %v10384_v40 = vpack.c.bf16 %v10155_v41, %v10155_v41 }
0x33f7   : > { %v10342_v26 = vpack.c.bf16 %v10152_v29, %v10152_v29  ;;  %v10376_v61 = vpack.c.bf16 %v10153_v28, %v10153_v28 }
0x33f8   : > { %v10357_v48 = vrot.slane %v10350_v53, %v14962_v10  ;;  %v10391_v19 = vrot.slane %v10384_v40, %v14962_v10 }
0x33f9   : > { %v10349_v50 = vrot.slane %v10342_v26, %v14962_v10  ;;  %v10383_v54 = vrot.slane %v10376_v61, %v14962_v10 }
0x33fb   : > { %v10358_v5 = vcombine.low %v10349_v50, %v10357_v48  ;;  %v10392_v43 = vcombine.low %v10383_v54, %v10391_v19  ;;  %v10359_v20 = vcombine.high %v10349_v50, %v10357_v48  ;;  %v10393_v17 = vcombine.high %v10383_v54, %v10391_v19 }
0x33fd   : > { %v10366_v0 = vrot.slane %v10358_v5, %v14974_v23  ;;  %v10400_v63 = vrot.slane %v10392_v43, %v14974_v23  ;;  %v10373_v26 = vrot.slane %v10359_v20, %v14974_v23  ;;  %v10407_v53 = vrot.slane %v10393_v17, %v14974_v23 }
0x33ff   : > { %v16227_v33 = vcombine.high %v10366_v0, %v14490_v14  ;;  %v16230_v1 = vcombine.high %v10400_v63, %v14490_v14  ;;  %v10412_v59 = vpack.i.b16 %v10400_v63, %v10366_v0  ;;  %v10413_v60 = vshrl.u32 %v10366_v0, 16 }
0x3400   : > { %v10414_v28 = vshrl.u32 %v10400_v63, 16  ;;  %v10375_v0 = vcombine.high %v10373_v26, %v14490_v14  ;;  %v10409_v63 = vcombine.high %v10407_v53, %v14490_v14 }
0x3401   : > { %v10418_v32 = vpack.i.b16 %v16230_v1, %v16227_v33  ;;  %v10419_v5 = vshrl.u32 %v16227_v33, 16  ;;  %v10420_v43 = vshrl.u32 %v16230_v1, 16  ;;  %v10425_v1 = vshrl.u32 %v10373_v26, 16 }
0x3402   : > { %v10415_v50 = vpack.i.b16 %v10414_v28, %v10413_v60 }
0x343e   : > { %v10540_v38 = vpop.trf.xlu0 }
0x343f   : > { %v10602_v2 = vrot.slane %v10540_v38, %v14962_v10 }
0x3440   : > { %v10556_v37 = vpop.trf.xlu1 }
0x3441   : > { %v10634_v6 = vrot.slane %v10556_v37, %v14962_v10  ;;  %v10424_v37 = vpack.i.b16 %v10407_v53, %v10373_v26 }
0x3442   : > { %v10572_v45 = vpop.trf.xlu0 }
0x3443   : > { %v10609_v3 = vrot.slane %v10572_v45, %v14962_v10 }
0x3445   : > { %v10610_v39 = vcombine.low %v10602_v2, %v10609_v3  ;;  %v10611_v13 = vcombine.high %v10602_v2, %v10609_v3 }
0x3446   : > { %v10588_v11 = vpop.trf.xlu0 }
0x3447   : > { %v10641_v15 = vrot.slane %v10588_v11, %v14962_v10  ;;  %v10618_v57 = vrot.slane %v10610_v39, %v14974_v23  ;;  %v10625_v58 = vrot.slane %v10611_v13, %v14974_v23 }
0x3449   : > { %v10642_v51 = vcombine.low %v10634_v6, %v10641_v15  ;;  %v10643_v56 = vcombine.high %v10634_v6, %v10641_v15  ;;  %v10626_v34 = vcombine.high %v10618_v57, %v14490_v14  ;;  %v10663_v24 = vshrl.u32 %v10618_v57, 16 }
0x344a   : > { %v10627_v40 = vcombine.high %v10625_v58, %v14490_v14  ;;  %v10675_v11 = vshrl.u32 %v10625_v58, 16 }
0x344b   : > { %v10650_v21 = vrot.slane %v10642_v51, %v14974_v23  ;;  %v16223_v62 = vrot.slane %v10643_v56, %v14974_v23  ;;  %v10669_v30 = vshrl.u32 %v10626_v34, 16 }
0x344d   : > { %v10662_v42 = vpack.i.b16 %v10650_v21, %v10618_v57  ;;  %v10658_v7 = vcombine.high %v10650_v21, %v14490_v14  ;;  %v10664_v49 = vshrl.u32 %v10650_v21, 16  ;;  %v10674_v12 = vpack.i.b16 %v16223_v62, %v10625_v58 }
0x344e   : > { %v10659_v41 = vcombine.high %v16223_v62, %v14490_v14  ;;  %v10676_v2 = vshrl.u32 %v16223_v62, 16  ;;  %v10426_v58 = vshrl.u32 %v10407_v53, 16 }
0x344f   : > { %v10688_v52 = vsel %vm1821_vm7, %v10662_v42, 0  ;;  %v10668_v55 = vpack.i.b16 %v10658_v7, %v10626_v34  ;;  %v10665_v25 = vpack.i.b16 %v10664_v49, %v10663_v24  ;;  %v10670_v16 = vshrl.u32 %v10658_v7, 16 }
0x3450   : > { %13929 = vmatpush3.bf16.msra.mxu0 %v10688_v52  ;;  %v10249_v22 = vpop.permute.xlu1 %10248  ;;  %v10872_v29 = vsel %vm1821_vm7, %v10674_v12, 0  ;;  %v10680_v48 = vpack.i.b16 %v10659_v41, %v10627_v40  ;;  %v10677_v56 = vpack.i.b16 %v10676_v2, %v10675_v11  ;;  %v10421_v34 = vpack.i.b16 %v10420_v43, %v10419_v5 }
0x3451   : > { %v10780_v4 = vsel %vm1821_vm7, %v10668_v55, 0  ;;  %13934 = vmatprep.subr.bf16.mxu0 %v14478_v31  ;;  %v10734_v27 = vsel %vm1821_vm7, %v10665_v25, 0  ;;  %v10671_v61 = vpack.i.b16 %v10670_v16, %v10669_v30  ;;  %v10430_v7 = vpack.i.b16 %v10409_v63, %v10375_v0 }
0x3452   : > { %13941 = vmatpush3.bf16.msra.mxu1 %v10780_v4  ;;  %v10964_v6 = vsel %vm1821_vm7, %v10680_v48, 0  ;;  %v10918_v42 = vsel %vm1821_vm7, %v10677_v56, 0  ;;  %v10682_v49 = vshrl.u32 %v10659_v41, 16  ;;  %v10681_v52 = vshrl.u32 %v10627_v40, 16 }
0x3453   : > { %13931 = vmatmul.mubr.msk.bf16.vlgmr.msra.gmra.mrb[180].mxu0 %vm2922_vm9, %v10412_v59  ;;  %13952 = vmatprep.subr.bf16.mxu1 %v14478_v31  ;;  %v10826_v45 = vsel %vm1821_vm7, %v10671_v61, 0  ;;  %v10427_v20 = vpack.i.b16 %v10426_v58, %v10425_v1  ;;  %v10431_v30 = vshrl.u32 %v10375_v0, 16  ;;  %v10432_v41 = vshrl.u32 %v10409_v63, 16 }
0x3454   : > { %13935 = vmatpush3.bf16.msra.mxu0 %v10734_v27  ;;  %v10251_v18 = vpop.permute.xlu1 %10250  ;;  %13936 = vmatprep.mubr.msk.bf16.mxu0 %vm14479_vm2, %v14478_v31  ;;  %v10683_v4 = vpack.i.b16 %v10682_v49, %v10681_v52 }
0x3455   : > { %13943 = vmatmul.mubr.msk.bf16.vlgmr.msra.gmra.mrb[132].mxu1 %vm2922_vm9, %v10418_v32  ;;  %13946 = vmatprep.subr.bf16.mxu0 %v14478_v31  ;;  %v10433_v61 = vpack.i.b16 %v10432_v41, %v10431_v30 }
0x3456   : > { %13953 = vmatpush3.bf16.msra.mxu1 %v10872_v29  ;;  %13954 = vmatprep.mubr.msk.bf16.mxu1 %vm14479_vm2, %v14478_v31 }
0x3457   : > { %13964 = vmatprep.subr.bf16.mxu1 %v14478_v31 }
0x3458   : > { %v10253_v38 = vpop.permute.xlu1 %10252 }
0x3459   : > { %v10278_v54 = vcombine.low %v10249_v22, %v10253_v38 }
0x345b   : > { %v10247_v19 = vpop.permute.xlu0 %10246  ;;  %13937 = vmatmul.mubr.msk.bf16.vlgmr.msra.gmra.mrb[184].mxu0 %vm2922_vm9, %v10415_v50  ;;  %v10285_v15 = vrot.slane %v10278_v54, %v14962_v10 }
0x345c   : > { %v10270_v3 = vcombine.low %v10247_v19, %v10251_v18  ;;  %13947 = vmatpush3.bf16.msra.mxu0 %v10826_v45  ;;  %v10257_v39 = vpop.permute.xlu1 %10256  ;;  %13948 = vmatprep.mubr.msk.bf16.mxu0 %vm14479_vm2, %v14478_v31  ;;  %v11010_v18 = vsel %vm1821_vm7, %v10683_v4, 0 }
0x345d   : > { %13955 = vmatmul.mubr.msk.bf16.vlgmr.msra.gmra.mrb[136].mxu1 %vm2922_vm9, %v10424_v37  ;;  %13958 = vmatprep.subr.bf16.mxu0 %v14478_v31 }
0x345e   : > { %v10277_v57 = vrot.slane %v10270_v3, %v14962_v10  ;;  %13965 = vmatpush3.bf16.msra.mxu1 %v10964_v6  ;;  %13966 = vmatprep.mubr.msk.bf16.mxu1 %vm14479_vm2, %v14478_v31 }
0x345f   : > { %v10255_v51 = vpop.permute.xlu0 %10254  ;;  %13976 = vmatprep.subr.bf16.mxu1 %v14478_v31 }
0x3460   : > { %v10303_v13 = vcombine.high %v10277_v57, %v10285_v15  ;;  %v10261_v21 = vpop.permute.xlu1 %10260  ;;  %v10302_v55 = vcombine.low %v10277_v57, %v10285_v15 }
0x3461   : > { %v10294_v24 = vcombine.low %v10257_v39, %v10261_v21 }
0x3462   : > { %v10310_v17 = vrot.slane %v10302_v55, %v14974_v23  ;;  %v10317_v27 = vrot.slane %v10303_v13, %v14974_v23 }
0x3463   : > { %v10259_v62 = vpop.permute.xlu0 %10258  ;;  %13949 = vmatmul.mubr.msk.bf16.vlgmr.msra.gmra.mrb[188].mxu0 %vm2922_vm9, %v10421_v34  ;;  %v10301_v25 = vrot.slane %v10294_v24, %v14962_v10 }
0x3464   : > { %v10286_v33 = vcombine.low %v10255_v51, %v10259_v62  ;;  %13959 = vmatpush3.bf16.msra.mxu0 %v10918_v42  ;;  %13960 = vmatprep.mubr.msk.bf16.mxu0 %vm14479_vm2, %v14478_v31 }
0x3465   : > { %13967 = vmatmul.mubr.msk.bf16.vlgmr.msra.gmra.mrb[140].mxu1 %vm2922_vm9, %v10430_v7  ;;  %13970 = vmatprep.subr.bf16.mxu0 %v14478_v31 }
0x3466   : > { %v10293_v22 = vrot.slane %v10286_v33, %v14962_v10  ;;  %13978 = vmatprep.mubr.msk.bf16.mxu1 %vm14479_vm2, %v14478_v31 }
0x3468   : > { %v10318_v59 = vcombine.low %v10293_v22, %v10301_v25  ;;  %v10319_v12 = vcombine.high %v10293_v22, %v10301_v25 }
0x346a   : > { %v10326_v32 = vrot.slane %v10318_v59, %v14974_v23  ;;  %v10333_v16 = vrot.slane %v10319_v12, %v14974_v23 }
0x346b   : > { %13961 = vmatmul.mubr.msk.bf16.vlgmr.msra.gmra.mrb[192].mxu0 %vm2922_vm9, %v10427_v20 }
0x346c   : > { %13971 = vmatpush3.bf16.msra.mxu0 %v11010_v18  ;;  %v10334_v60 = vcombine.low %v10310_v17, %v10326_v32  ;;  %13972 = vmatprep.mubr.msk.bf16.mxu0 %vm14479_vm2, %v14478_v31  ;;  %v10336_v29 = vcombine.low %v10317_v27, %v10333_v16  ;;  %v10337_v28 = vcombine.high %v10317_v27, %v10333_v16 }
0x346d   : > { %v10335_v26 = vcombine.high %v10310_v17, %v10326_v32  ;;  %13982 = vmatprep.subr.bf16.mxu0 %v14478_v31 }
0x346e   : > { %v11156_v53 = vpack.c.bf16 %v10334_v60, %v10334_v60  ;;  %v11158_v32 = vpack.c.bf16 %v10336_v29, %v10336_v29  ;;  %v11159_v16 = vpack.c.bf16 %v10337_v28, %v10337_v28 }
0x346f   : > { %v11157_v18 = vpack.c.bf16 %v10335_v26, %v10335_v26 }
0x3470   : > { %11160 = vxpose.xlu0.c.b16.start.end [1/1] (short) (narrow) %v11156_v53, 16 }
0x3473   : > { %13973 = vmatmul.mubr.msk.bf16.vlgmr.msra.gmra.mrb[196].mxu0 %vm2922_vm9, %v10433_v61 }
0x3474   : > { %13984 = vmatprep.mubr.msk.bf16.mxu0 %vm14479_vm2, %v14478_v31 }
0x34d6   : > { %v11168_v28 = vpop.trf.xlu0 }
0x3526   : > { %v10724_v40 = vpop.f32.mrb[180].mxu0 }
0x3527   : > { %v16294_v38 = vmul.f32 0.5, %v10724_v40  ;;  %v13932_v50 = vpop.f32.mrb[181].mxu0 }
0x3528   : > { %v10727_v48 = vpop.f32.mrb[182].mxu0  ;;  %v10816_v54 = vpop.f32.mrb[132].mxu1 }
0x3529   : > { %v16296_v19 = vmul.f32 0.5, %v10816_v54  ;;  %v13933_v45 = vpop.f32.mrb[183].mxu0  ;;  %v13944_v37 = vpop.f32.mrb[133].mxu1  ;;  %v11060_v2 = vsel %vm3299_vm10, %v16294_v38, -inf }
0x352a   : > { %v10819_v3 = vpop.f32.mrb[134].mxu1  ;;  %11061 = vmax.xlane.f32.xlu0 %v11060_v2 }
0x352b   : > { %v13945_v39 = vpop.f32.mrb[135].mxu1  ;;  %v11066_v6 = vsel %vm3299_vm10, %v16296_v19, -inf }
0x352e   : > { %11067 = vmax.xlane.f32.xlu0 %v11066_v6  ;;  %v10770_v5 = vpop.f32.mrb[184].mxu0 }
0x352f   : > { %v16302_v43 = vmul.f32 0.5, %v10770_v5  ;;  %v13938_v11 = vpop.f32.mrb[185].mxu0 }
0x3530   : > { %v10773_v15 = vpop.f32.mrb[186].mxu0  ;;  %v10908_v57 = vpop.f32.mrb[136].mxu1 }
0x3531   : > { %v16304_v51 = vmul.f32 0.5, %v10908_v57  ;;  %v13939_v56 = vpop.f32.mrb[187].mxu0  ;;  %v13956_v0 = vpop.f32.mrb[137].mxu1  ;;  %v11063_v63 = vsel %vm3299_vm10, %v16302_v43, -inf }
0x3532   : > { %v10911_v13 = vpop.f32.mrb[138].mxu1  ;;  %11064 = vmax.xlane.f32.xlu1 %v11063_v63 }
0x3533   : > { %v13957_v21 = vpop.f32.mrb[139].mxu1  ;;  %v11072_v34 = vsel %vm3299_vm10, %v16304_v51, -inf }
0x3534   : > { %11073 = vmax.xlane.f32.xlu0 %v11072_v34 }
0x3536   : > { %v10862_v24 = vpop.f32.mrb[188].mxu0 }
0x3537   : > { %v16310_v62 = vmul.f32 0.5, %v10862_v24  ;;  %v13950_v42 = vpop.f32.mrb[189].mxu0 }
0x3538   : > { %v10865_v7 = vpop.f32.mrb[190].mxu0  ;;  %v11000_v49 = vpop.f32.mrb[140].mxu1 }
0x3539   : > { %v13951_v33 = vpop.f32.mrb[191].mxu0  ;;  %v13968_v1 = vpop.f32.mrb[141].mxu1  ;;  %v11069_v58 = vsel %vm3299_vm10, %v16310_v62, -inf  ;;  %v16314_v60 = vmul.f32 0.5, %v11000_v49 }
0x353a   : > { %v11003_v52 = vpop.f32.mrb[142].mxu1  ;;  %11070 = vmax.xlane.f32.xlu1 %v11069_v58 }
0x353b   : > { %v13969_v55 = vpop.f32.mrb[143].mxu1  ;;  %v11078_v41 = vsel %vm3299_vm10, %v16314_v60, -inf }
0x353e   : > { %v10954_v25 = vpop.f32.mrb[192].mxu0 }
0x353f   : > { %v13962_v22 = vpop.f32.mrb[193].mxu0  ;;  %v16316_v30 = vmul.f32 0.5, %v10954_v25 }
0x3540   : > { %v10957_v4 = vpop.f32.mrb[194].mxu0 }
0x3541   : > { %v13963_v59 = vpop.f32.mrb[195].mxu0  ;;  %v11075_v61 = vsel %vm3299_vm10, %v16316_v30, -inf }
0x3546   : > { %v11046_v12 = vpop.f32.mrb[196].mxu0 }
0x3547   : > { %v13974_v20 = vpop.f32.mrb[197].mxu0  ;;  %v16320_v53 = vmul.f32 0.5, %v11046_v12 }
0x3548   : > { %v11049_v17 = vpop.f32.mrb[198].mxu0 }
0x3549   : > { %v13975_v27 = vpop.f32.mrb[199].mxu0  ;;  %v11081_v29 = vsel %vm3299_vm10, %v16320_v53, -inf }
0x3561   : > { %11192 = vxpose.xlu0.c.b16.start.end [1/1] (short) (narrow) %v11158_v32, 16 }
0x3565   : > { %11208 = vxpose.xlu0.c.b16.start.end [1/1] (short) (narrow) %v11159_v16, 16 }
0x3567   : > { %11176 = vxpose.xlu1.c.b16.start.end [1/1] (short) (narrow) %v11157_v18, 16 }
0x3572   : > { %11079 = vmax.xlane.f32.xlu0 %v11078_v41 }
0x3574   : > { %11076 = vmax.xlane.f32.xlu1 %v11075_v61 }
0x3578   : > { %11082 = vmax.xlane.f32.xlu1 %v11081_v29 }
0x35b7   : > { %v11062_v26 = vpop.xlane.xlu0 %11061 }
0x35b8   : > { %v11084_v2 = vsub.f32 %v16294_v38, %v11062_v26 }
0x35ba   : > { %v11092_v57 = vmul.f32 1.442695, %v11084_v2 }
0x35bb   : > { %v11068_v40 = vpop.xlane.xlu0 %11067 }
0x35bc   : > { %v11086_v56 = vsub.f32 %v16296_v19, %v11068_v40  ;;  %14391 = vpow2.f32 %v11092_v57 }
0x35be   : > { %v11096_v42 = vmul.f32 1.442695, %v11086_v56 }
0x35bf   : > { %v11065_v48 = vpop.xlane.xlu1 %11064 }
0x35c0   : > { %v11085_v6 = vsub.f32 %v16302_v43, %v11065_v48 }
0x35c1   : > { %v11074_v50 = vpop.xlane.xlu0 %11073 }
0x35c2   : > { %v11094_v13 = vmul.f32 1.442695, %v11085_v6  ;;  %v11088_v7 = vsub.f32 %v16304_v51, %v11074_v50 }
0x35c4   : > { %14393 = vpow2.f32 %v11094_v13 }
0x35c5   : > { %14395 = vpow2.f32 %v11096_v42 }
0x35c6   : > { %v14392_v52 = vpop.eup %14391 }
0x35c7   : > { %v11200_v54 = vpop.trf.xlu0  ;;  %v11071_v37 = vpop.xlane.xlu1 %11070  ;;  %v11108_v25 = vsel %vm3299_vm10, %v14392_v52, 0.0 }
0x35c8   : > { %v11224_v45 = vcombine.low %v11168_v28, %v11200_v54  ;;  %v11087_v21 = vsub.f32 %v16310_v62, %v11071_v37  ;;  %v11100_v62 = vmul.f32 1.442695, %v11088_v7 }
0x35ca   : > { %v11231_v39 = vrot.slane %v11224_v45, %v14974_v23  ;;  %v11098_v1 = vmul.f32 1.442695, %v11087_v21 }
0x35cb   : > { %v11216_v3 = vpop.trf.xlu0 }
0x35cc   : > { %v16330_v11 = vcombine.high %v11231_v39, %v14490_v14  ;;  %v11246_v0 = vshrl.u32 %v11231_v39, 16  ;;  %14397 = vpow2.f32 %v11098_v1 }
0x35cd   : > { %v11184_v5 = vpop.trf.xlu1  ;;  %14399 = vpow2.f32 %v11100_v62 }
0x35ce   : > { %v11233_v15 = vcombine.low %v11184_v5, %v11216_v3  ;;  %v11254_v38 = vshrl.u32 %v16330_v11, 16  ;;  %v14394_v55 = vpop.eup %14393 }
0x35cf   : > { %v16340_v22 = vpop.eup %14395  ;;  %v11111_v51 = vsel %vm3299_vm10, %v14394_v55, 0.0 }
0x35d0   : > { %v11240_v63 = vrot.slane %v11233_v15, %v14974_v23  ;;  %v11114_v59 = vsel %vm3299_vm10, %v16340_v22, 0.0 }
0x35d2   : > { %v11241_v34 = vcombine.high %v11240_v63, %v14490_v14  ;;  %v11244_v24 = vpack.i.b16 %v11240_v63, %v11231_v39  ;;  %v11247_v43 = vshrl.u32 %v11240_v63, 16 }
0x35d4   : > { %v11255_v49 = vshrl.u32 %v11241_v34, 16  ;;  %11258 = vxpose.xlu0.c.b16.start.end [1/1] (short) (narrow) %v11244_v24, 16  ;;  %v11248_v33 = vpack.i.b16 %v11247_v43, %v11246_v0  ;;  %v11252_v19 = vpack.i.b16 %v11241_v34, %v16330_v11 }
0x35d6   : > { %11274 = vxpose.xlu1.c.b16.start.end [1/1] (short) (narrow) %v11248_v33, 16  ;;  %v11256_v58 = vpack.i.b16 %v11255_v49, %v11254_v38  ;;  %v16343_v4 = vpop.eup %14397 }
0x35d7   : > { %v16347_v12 = vpop.eup %14399  ;;  %v11117_v20 = vsel %vm3299_vm10, %v16343_v4, 0.0 }
0x35d8   : > { %v11120_v17 = vsel %vm3299_vm10, %v16347_v12, 0.0 }
0x35e1   : > { %11109 = vadd.xlane.f32.xlu0 %v11108_v25 }
0x35e3   : > { %11112 = vadd.xlane.f32.xlu1 %v11111_v51 }
0x35e5   : > { %11115 = vadd.xlane.f32.xlu0 %v11114_v59 }
0x35e7   : > { %11118 = vadd.xlane.f32.xlu1 %v11117_v20 }
0x35e9   : > { %11121 = vadd.xlane.f32.xlu0 %v11120_v17 }
0x35ff   : > { %v11080_v27 = vpop.xlane.xlu0 %11079 }
0x3600   : > { %v11090_v32 = vsub.f32 %v16314_v60, %v11080_v27 }
0x3601   : > { %v11077_v16 = vpop.xlane.xlu1 %11076 }
0x3602   : > { %v11104_v18 = vmul.f32 1.442695, %v11090_v32  ;;  %v11089_v41 = vsub.f32 %v16316_v30, %v11077_v16 }
0x3604   : > { %14401 = vpow2.f32 %v11104_v18  ;;  %v11102_v61 = vmul.f32 1.442695, %v11089_v41 }
0x3605   : > { %v11083_v29 = vpop.xlane.xlu1 %11082 }
0x3606   : > { %14403 = vpow2.f32 %v11102_v61  ;;  %v11091_v28 = vsub.f32 %v16320_v53, %v11083_v29 }
0x3608   : > { %v11106_v26 = vmul.f32 1.442695, %v11091_v28 }
0x360a   : > { %14405 = vpow2.f32 %v11106_v26 }
0x360e   : > { %v16356_v40 = vpop.eup %14401 }
0x360f   : > { %v11126_v50 = vsel %vm3299_vm10, %v16356_v40, 0.0 }
0x3610   : > { %v16360_v48 = vpop.eup %14403  ;;  %11127 = vadd.xlane.f32.xlu0 %v11126_v50 }
0x3611   : > { %v11123_v60 = vsel %vm3299_vm10, %v16360_v48, 0.0 }
0x3612   : > { %11124 = vadd.xlane.f32.xlu1 %v11123_v60 }
0x3614   : > { %v16364_v30 = vpop.eup %14405 }
0x3615   : > { %v11129_v54 = vsel %vm3299_vm10, %v16364_v30, 0.0 }
0x3616   : > { %11130 = vadd.xlane.f32.xlu1 %v11129_v54 }
0x363a   : > { %v11266_v53 = vpop.trf.xlu0 }
0x363b   : > { %v11328_v42 = vrot.slane %v11266_v53, %v14962_v10 }
0x363c   : > { %v11282_v45 = vpop.trf.xlu1 }
0x363d   : > { %11290 = vxpose.xlu0.c.b16.start.end [1/1] (short) (narrow) %v11252_v19, 16  ;;  %v11360_v1 = vrot.slane %v11282_v45, %v14962_v10 }
0x3643   : > { %11306 = vxpose.xlu1.c.b16.start.end [1/1] (short) (narrow) %v11256_v58, 16 }
0x366e   : > { %v11110_v37 = vpop.xlane.xlu0 %11109 }
0x366f   : > { %14407 = vrcp.f32 %v11110_v37 }
0x3670   : > { %v11113_v2 = vpop.xlane.xlu1 %11112 }
0x3671   : > { %14409 = vrcp.f32 %v11113_v2 }
0x3672   : > { %v11116_v0 = vpop.xlane.xlu0 %11115 }
0x3673   : > { %14411 = vrcp.f32 %v11116_v0 }
0x3674   : > { %v11119_v63 = vpop.xlane.xlu1 %11118 }
0x3675   : > { %14413 = vrcp.f32 %v11119_v63 }
0x3676   : > { %v11122_v13 = vpop.xlane.xlu0 %11121 }
0x3677   : > { %14415 = vrcp.f32 %v11122_v13 }
0x3679   : > { %v14408_v3 = vpop.eup %14407 }
0x367a   : > { %v11140_v39 = vmul.f32 %v14408_v3, %v14392_v52 }
0x367b   : > { %v14410_v6 = vpop.eup %14409 }
0x367c   : > { %v11148_v5 = vpack.c.bf16 %v11140_v39, %v11140_v39  ;;  %v11141_v11 = vmul.f32 %v14410_v6, %v14394_v55 }
0x367d   : > { %v14412_v7 = vpop.eup %14411 }
0x367e   : > { %v11414_v15 = vsel %vm2922_vm9, %v11148_v5, 0  ;;  %v11149_v57 = vpack.c.bf16 %v11141_v11, %v11141_v11  ;;  %v11142_v62 = vmul.f32 %v14412_v7, %v16340_v22 }
0x367f   : > { %13977 = vmatpush3.bf16.xpose.msra.mxu1 %v11414_v15  ;;  %v14414_v19 = vpop.eup %14413 }
0x3680   : > { %v11460_v56 = vsel %vm2922_vm9, %v11149_v57, 0  ;;  %13988 = vmatprep.subr.bf16.mxu1 %v14478_v31  ;;  %v11143_v25 = vmul.f32 %v14414_v19, %v16343_v4  ;;  %v11150_v59 = vpack.c.bf16 %v11142_v62, %v11142_v62 }
0x3681   : > { %13983 = vmatpush3.bf16.xpose.msra.mxu0 %v11460_v56  ;;  %v14416_v20 = vpop.eup %14415 }
0x3682   : > { %13994 = vmatprep.subr.bf16.mxu0 %v14478_v31  ;;  %v11151_v16 = vpack.c.bf16 %v11143_v25, %v11143_v25  ;;  %v11506_v22 = vsel %vm2922_vm9, %v11150_v59, 0  ;;  %v11144_v4 = vmul.f32 %v14416_v20, %v16347_v12 }
0x3684   : > { %v11552_v28 = vsel %vm2922_vm9, %v11151_v16, 0  ;;  %v11152_v60 = vpack.c.bf16 %v11144_v4, %v11144_v4 }
0x369d   : > { %v11128_v21 = vpop.xlane.xlu0 %11127 }
0x369f   : > { %v11125_v38 = vpop.xlane.xlu1 %11124 }
0x36a0   : > { %14417 = vrcp.f32 %v11125_v38 }
0x36a1   : > { %14419 = vrcp.f32 %v11128_v21 }
0x36a3   : > { %v11298_v34 = vpop.trf.xlu0  ;;  %v11131_v43 = vpop.xlane.xlu1 %11130 }
0x36a4   : > { %v11335_v24 = vrot.slane %v11298_v34, %v14962_v10  ;;  %14421 = vrcp.f32 %v11131_v43 }
0x36a6   : > { %v11336_v49 = vcombine.low %v11328_v42, %v11335_v24  ;;  %v11337_v53 = vcombine.high %v11328_v42, %v11335_v24 }
0x36a8   : > { %v11344_v52 = vrot.slane %v11336_v49, %v14974_v23  ;;  %v11351_v11 = vrot.slane %v11337_v53, %v14974_v23 }
0x36a9   : > { %v11314_v33 = vpop.trf.xlu1 }
0x36aa   : > { %v11367_v58 = vrot.slane %v11314_v33, %v14962_v10  ;;  %v11389_v17 = vshrl.u32 %v11344_v52, 16  ;;  %v14418_v18 = vpop.eup %14417  ;;  %v11352_v29 = vcombine.high %v11344_v52, %v14490_v14  ;;  %v11401_v0 = vshrl.u32 %v11351_v11, 16 }
0x36ab   : > { %v11145_v26 = vmul.f32 %v14418_v18, %v16360_v48  ;;  %v14420_v54 = vpop.eup %14419  ;;  %v11598_v48 = vsel %vm2922_vm9, %v11152_v60, 0 }
0x36ac   : > { %v11368_v55 = vcombine.low %v11360_v1, %v11367_v58  ;;  %v11369_v50 = vcombine.high %v11360_v1, %v11367_v58  ;;  %v11395_v45 = vshrl.u32 %v11352_v29, 16  ;;  %v11146_v5 = vmul.f32 %v14420_v54, %v16356_v40 }
0x36ad   : > { %v11153_v2 = vpack.c.bf16 %v11145_v26, %v11145_v26 }
0x36ae   : > { %v11376_v51 = vrot.slane %v11368_v55, %v14974_v23  ;;  %v14422_v3 = vpop.eup %14421  ;;  %v11383_v39 = vrot.slane %v11369_v50, %v14974_v23  ;;  %v11154_v40 = vpack.c.bf16 %v11146_v5, %v11146_v5 }
0x36af   : > { %v11644_v15 = vsel %vm2922_vm9, %v11153_v2, 0  ;;  %v11147_v57 = vmul.f32 %v14422_v3, %v16364_v30  ;;  %v11353_v30 = vcombine.high %v11351_v11, %v14490_v14 }
0x36b0   : > { %v11388_v27 = vpack.i.b16 %v11376_v51, %v11344_v52  ;;  %v11390_v32 = vshrl.u32 %v11376_v51, 16  ;;  %v11384_v41 = vcombine.high %v11376_v51, %v14490_v14  ;;  %v11402_v56 = vshrl.u32 %v11383_v39, 16 }
0x36b1   : > { %v11400_v63 = vpack.i.b16 %v11383_v39, %v11351_v11  ;;  %v11155_v13 = vpack.c.bf16 %v11147_v57, %v11147_v57  ;;  %v11385_v21 = vcombine.high %v11383_v39, %v14490_v14  ;;  %v11690_v34 = vsel %vm2922_vm9, %v11154_v40, 0 }
0x36b2   : > { %v11391_v61 = vpack.i.b16 %v11390_v32, %v11389_v17  ;;  %13979 = vmatmul.mubr.msk.bf16.vlgmr.msra.gmra.mrb[144].mxu1 %vm2922_vm9, %v11388_v27  ;;  %v11396_v12 = vshrl.u32 %v11384_v41, 16  ;;  %v11394_v37 = vpack.i.b16 %v11384_v41, %v11352_v29  ;;  %v11403_v38 = vpack.i.b16 %v11402_v56, %v11401_v0 }
0x36b3   : > { %13989 = vmatpush3.bf16.xpose.msra.mxu1 %v11506_v22  ;;  %13990 = vmatprep.mubr.msk.bf16.mxu1 %vm14479_vm2, %v14478_v31  ;;  %v11736_v24 = vsel %vm2922_vm9, %v11155_v13, 0  ;;  %v11408_v43 = vshrl.u32 %v11385_v21, 16  ;;  %v11407_v42 = vshrl.u32 %v11353_v30, 16  ;;  %v11406_v7 = vpack.i.b16 %v11385_v21, %v11353_v30 }
0x36b4   : > { %13985 = vmatmul.mubr.msk.bf16.vlgmr.msra.gmra.mrb[200].mxu0 %vm2922_vm9, %v11391_v61  ;;  %14000 = vmatprep.subr.bf16.mxu1 %v14478_v31  ;;  %v11397_v6 = vpack.i.b16 %v11396_v12, %v11395_v45 }
0x36b5   : > { %13995 = vmatpush3.bf16.xpose.msra.mxu0 %v11552_v28  ;;  %13996 = vmatprep.mubr.msk.bf16.mxu0 %vm14479_vm2, %v14478_v31  ;;  %v11409_v49 = vpack.i.b16 %v11408_v43, %v11407_v42 }
0x36b6   : > { %14006 = vmatprep.subr.bf16.mxu0 %v14478_v31 }
0x36ba   : > { %13991 = vmatmul.mubr.msk.bf16.vlgmr.msra.gmra.mrb[148].mxu1 %vm2922_vm9, %v11394_v37 }
0x36bb   : > { %14001 = vmatpush3.bf16.xpose.msra.mxu1 %v11598_v48  ;;  %14002 = vmatprep.mubr.msk.bf16.mxu1 %vm14479_vm2, %v14478_v31 }
0x36bc   : > { %13997 = vmatmul.mubr.msk.bf16.vlgmr.msra.gmra.mrb[204].mxu0 %vm2922_vm9, %v11397_v6  ;;  %14012 = vmatprep.subr.bf16.mxu1 %v14478_v31 }
0x36bd   : > { %14007 = vmatpush3.bf16.xpose.msra.mxu0 %v11644_v15  ;;  %14008 = vmatprep.mubr.msk.bf16.mxu0 %vm14479_vm2, %v14478_v31 }
0x36be   : > { %14018 = vmatprep.subr.bf16.mxu0 %v14478_v31 }
0x36c2   : > { %14003 = vmatmul.mubr.msk.bf16.vlgmr.msra.gmra.mrb[152].mxu1 %vm2922_vm9, %v11400_v63 }
0x36c3   : > { %14013 = vmatpush3.bf16.xpose.msra.mxu1 %v11690_v34  ;;  %14014 = vmatprep.mubr.msk.bf16.mxu1 %vm14479_vm2, %v14478_v31 }
0x36c4   : > { %14009 = vmatmul.mubr.msk.bf16.vlgmr.msra.gmra.mrb[208].mxu0 %vm2922_vm9, %v11403_v38  ;;  %14024 = vmatprep.subr.bf16.mxu1 %v14478_v31 }
0x36c5   : > { %14019 = vmatpush3.bf16.xpose.msra.mxu0 %v11736_v24  ;;  %14020 = vmatprep.mubr.msk.bf16.mxu0 %vm14479_vm2, %v14478_v31 }
0x36c6   : > { %14032 = vmatprep.subr.bf16.mxu0 %v14478_v31 }
0x36ca   : > { %14015 = vmatmul.mubr.msk.bf16.vlgmr.msra.gmra.mrb[156].mxu1 %vm2922_vm9, %v11406_v7 }
0x36cb   : > { %14028 = vmatprep.mubr.msk.bf16.mxu1 %vm14479_vm2, %v14478_v31 }
0x36cc   : > { %14021 = vmatmul.mubr.msk.bf16.vlgmr.msra.gmra.mrb[212].mxu0 %vm2922_vm9, %v11409_v49 }
0x36cd   : > { %14036 = vmatprep.mubr.msk.bf16.mxu0 %vm14479_vm2, %v14478_v31 }
0x3785   : > { %v11450_v14 = vpop.f32.mrb[144].mxu1 }
0x3786   : > { %11778 = vxpose.xlu0.b32.start.end [1/1] (short) (narrow) %v11450_v14, 8  ;;  %v13980_v33 = vpop.f32.mrb[145].mxu1 }
0x3787   : > { %v11453_v19 = vpop.f32.mrb[146].mxu1  ;;  %v11496_v1 = vpop.f32.mrb[200].mxu0 }
0x3788   : > { %v13981_v58 = vpop.f32.mrb[147].mxu1  ;;  %11810 = vxpose.xlu1.b32.start.end [1/1] (short) (narrow) %v11496_v1, 8  ;;  %v13986_v62 = vpop.f32.mrb[201].mxu0 }
0x3789   : > { %v11499_v52 = vpop.f32.mrb[202].mxu0 }
0x378a   : > { %v13987_v55 = vpop.f32.mrb[203].mxu0 }
0x378d   : > { %v11542_v25 = vpop.f32.mrb[148].mxu1 }
0x378e   : > { %11842 = vxpose.xlu0.b32.start.end [1/1] (short) (narrow) %v11542_v25, 8  ;;  %v13992_v51 = vpop.f32.mrb[149].mxu1 }
0x378f   : > { %v11545_v59 = vpop.f32.mrb[150].mxu1  ;;  %v11588_v20 = vpop.f32.mrb[204].mxu0 }
0x3790   : > { %v13993_v17 = vpop.f32.mrb[151].mxu1  ;;  %v13998_v27 = vpop.f32.mrb[205].mxu0 }
0x3791   : > { %v11591_v32 = vpop.f32.mrb[206].mxu0  ;;  %v14219_v17 = vld [vmem:[%s16638_s6 + $0x30] sm:$0xff]  }
0x3792   : > { %11874 = vxpose.xlu0.b32.start.end [1/1] (short) (narrow) %v11588_v20, 8  ;;  %v13999_v16 = vpop.f32.mrb[207].mxu0  ;;  %14025 = vmatpush3.bf16.msra.mxu1 %v14219_v17  ;;  %v14229_v17 = vld [vmem:[%s16640_s26 + $0xf0] sm:$0xff]  }
0x3793   : > { %14026 = vmatprep.subr.bf16.mxu1 %v14478_v31 }
0x3795   : > { %v11634_v18 = vpop.f32.mrb[152].mxu1 }
0x3796   : > { %v14004_v41 = vpop.f32.mrb[153].mxu1  ;;  %11906 = vxpose.xlu1.b32.start.end [1/1] (short) (narrow) %v11634_v18, 8 }
0x3797   : > { %v11637_v61 = vpop.f32.mrb[154].mxu1  ;;  %v11680_v22 = vpop.f32.mrb[208].mxu0 }
0x3798   : > { %v14005_v4 = vpop.f32.mrb[155].mxu1  ;;  %11938 = vxpose.xlu0.b32.start.end [1/1] (short) (narrow) %v11680_v22, 8  ;;  %v14010_v29 = vpop.f32.mrb[209].mxu0  ;;  %v14220_v22 = vld [vmem:[%s16638_s6 + $0x38] sm:$0xff]  }
0x3799   : > { %v11683_v28 = vpop.f32.mrb[210].mxu0  ;;  %14027 = vmatpush3.bf16.msra.mxu1 %v14220_v22 }
0x379a   : > { %v14011_v26 = vpop.f32.mrb[211].mxu0  ;;  %14040 = vmatprep.subr.bf16.mxu1 %v14478_v31 }
0x379d   : > { %v11726_v50 = vpop.f32.mrb[156].mxu1 }
0x379e   : > { %v14016_v12 = vpop.f32.mrb[157].mxu1  ;;  %11970 = vxpose.xlu1.b32.start.end [1/1] (short) (narrow) %v11726_v50, 8 }
0x379f   : > { %v11729_v60 = vpop.f32.mrb[158].mxu1  ;;  %v11772_v54 = vpop.f32.mrb[212].mxu0 }
0x37a0   : > { %v14017_v53 = vpop.f32.mrb[159].mxu1  ;;  %12002 = vxpose.xlu0.b32.start.end [1/1] (short) (narrow) %v11772_v54, 8  ;;  %v14022_v45 = vpop.f32.mrb[213].mxu0 }
0x37a1   : > { %v11775_v37 = vpop.f32.mrb[214].mxu0 }
0x37a2   : > { %v14023_v2 = vpop.f32.mrb[215].mxu0 }
0x3806   : > { %v11794_v3 = vpop.trf.xlu0 }
0x3808   : > { %v11826_v48 = vpop.trf.xlu1 }
0x380e   : > { %v11858_v39 = vpop.trf.xlu0 }
0x380f   : > { %v12034_v6 = vcombine.low %v11794_v3, %v11858_v39 }
0x3811   : > { %v12041_v15 = vrot.slane %v12034_v6, %v14962_v10 }
0x3812   : > { %v11890_v5 = vpop.trf.xlu0 }
0x3813   : > { %v12042_v11 = vcombine.low %v11826_v48, %v11890_v5 }
0x3815   : > { %v12049_v57 = vrot.slane %v12042_v11, %v14962_v10  ;;  %v14437_v11 = vld [vmem:[%s16634_s7 + $0x30] sm:$0xff] }
0x3816   : > { %v11922_v0 = vpop.trf.xlu1 }
0x3817   : > { %v12066_v56 = vcombine.low %v12041_v15, %v12049_v57  ;;  %v12067_v40 = vcombine.high %v12041_v15, %v12049_v57  ;;  %v12209_v15 = vrot.slane %v14437_v11, %v14847_v8  ;;  %v12268_v57 = vrot.slane %v14437_v11, %v14850_v9 }
0x3818   : > { %v11954_v21 = vpop.trf.xlu0 }
0x3819   : > { %v12074_v63 = vrot.slane %v12066_v56, %v14974_v23  ;;  %v12081_v13 = vrot.slane %v12067_v40, %v14974_v23 }
0x381b   : > { %v13050_v38 = vcombine.low %v12074_v63, %v12081_v13  ;;  %v13052_v34 = vcombine.high %v12074_v63, %v12081_v13 }
0x381d   : > { %v12110_v30 = vrot.slane %v13050_v38, %v14962_v10  ;;  %v12126_v24 = vrot.slane %v13052_v34, %v14962_v10 }
0x381e   : > { %v11986_v43 = vpop.trf.xlu1 }
0x381f   : > { %v12050_v42 = vcombine.low %v11922_v0, %v11986_v43  ;;  %v12135_v7 = vcombine.high %v12110_v30, %v12126_v24  ;;  %v12134_v49 = vcombine.low %v12110_v30, %v12126_v24 }
0x3820   : > { %v12018_v14 = vpop.trf.xlu0 }
0x3821   : > { %v12058_v33 = vcombine.low %v11954_v21, %v12018_v14  ;;  %v12149_v19 = vrot.slane %v12135_v7, %v14974_v23  ;;  %v12142_v1 = vrot.slane %v12134_v49, %v14974_v23  ;;  %v12057_v58 = vrot.slane %v12050_v42, %v14962_v10  ;;  %v14221_v42 = vld [vmem:[%s16639_s3 + $0x30] sm:$0xff]   ;;  %v14222_v7 = vld [vmem:[%s16639_s3 + $0x38] sm:$0xff]  }
0x3822   : > { %14033 = vmatpush3.bf16.msra.mxu0 %v14221_v42 }
0x3823   : > { %v12065_v62 = vrot.slane %v12058_v33, %v14962_v10  ;;  %12175 = vrot.lane.b32.xlu0 %v12149_v19, %s16648_s18  ;;  %v12166_v52 = vcombine.high %v12142_v1, %v14478_v31  ;;  %v12167_v20 = vcombine.high %v12149_v19, %v14478_v31  ;;  %14034 = vmatprep.subr.bf16.mxu0 %v14478_v31 }
0x3824   : > { %v12287_v19 = vrot.slane %v14437_v11, %v14870_v35  ;;  %v14225_v35 = vld [vmem:[%s16640_s26 + $0xd0] sm:$0xff]  }
0x3825   : > { %v12082_v55 = vcombine.low %v12057_v58, %v12065_v62  ;;  %v12083_v25 = vcombine.high %v12057_v58, %v12065_v62  ;;  %12171 = vrot.lane.b32.xlu1 %v12166_v52, %s16649_s19  ;;  %v12292_v62 = vrot.slane %v14437_v11, %v14873_v36  ;;  %v14227_v36 = vld [vmem:[%s16640_s26 + $0xe0] sm:$0xff]  }
0x3826   : > { %14035 = vmatpush3.bf16.msra.mxu0 %v14222_v7 }
0x3827   : > { %v12090_v51 = vrot.slane %v12082_v55, %v14974_v23  ;;  %v12097_v59 = vrot.slane %v12083_v25, %v14974_v23  ;;  %14060 = vmatprep.subr.bf16.mxu0 %v14478_v31 }
0x3829   : > { %v13051_v27 = vcombine.low %v12090_v51, %v12097_v59  ;;  %v13053_v32 = vcombine.high %v12090_v51, %v12097_v59  ;;  %12179 = vrot.lane.b32.xlu1 %v12167_v20, %s16650_s21  ;;  %v14224_v51 = vld [vmem:[%s16640_s26 + $0xc8] sm:$0xff]   ;;  %v14226_v59 = vld [vmem:[%s16640_s26 + $0xd8] sm:$0xff]   ;;  %s1001_s21 = scalar_lea.vmem %s14666_s27, %s16657_s17 }
0x382a   : > { %v14228_v20 = vld [vmem:[%s16640_s26 + $0xe8] sm:$0xff]  }
0x382b   : > { %v12117_v16 = vrot.slane %v13051_v27, %v14962_v10  ;;  %v12133_v18 = vrot.slane %v13053_v32, %v14962_v10  ;;  %v14230_v27 = vld [vmem:[%s16640_s26 + $0xf8] sm:$0xff]   ;;  %v13057_v32 = vld [vmem:[%s16641_s8 + $0x3] ss:$0 sm:$0xff] }
0x382d   : > { %v12150_v41 = vcombine.low %v12117_v16, %v12133_v18  ;;  %v12151_v61 = vcombine.high %v12117_v16, %v12133_v18 }
0x382f   : > { %v12158_v4 = vrot.slane %v12150_v41, %v14974_v23  ;;  %v12165_v29 = vrot.slane %v12151_v61, %v14974_v23 }
0x3831   : > { %12183 = vrot.lane.b32.xlu1 %v12158_v4, %s16651_s22  ;;  %v12169_v28 = vcombine.high %v12165_v29, %v14478_v31  ;;  %v12168_v10 = vcombine.high %v12158_v4, %v14478_v31 }
0x3833   : > { %12195 = vrot.lane.b32.xlu0 %v12169_v28, %s16652_s23 }
0x3835   : > { %12187 = vrot.lane.b32.xlu1 %v12168_v10, %s16653_s24 }
0x3839   : > { %12191 = vrot.lane.b32.xlu1 %v12165_v29, %s16654_s25 }
0x3895   : > { %v12176_v60 = vpop.permute.xlu0 %12175 }
0x3897   : > { %v12172_v26 = vpop.permute.xlu1 %12171 }
0x3898   : > { %v12198_v23 = vsel %vm2922_vm9, %v12142_v1, %v12172_v26 }
0x3899   : > { %v12199_v53 = vsel %vm4439_vm11, %v12198_v23, %v12176_v60 }
0x389b   : > { %v12180_v50 = vpop.permute.xlu1 %12179 }
0x389c   : > { %v12200_v45 = vsel %vm4441_vm12, %v12199_v53, %v12180_v50  ;;  %v12994_v53 = vld [vmem:[%s16634_s7 + $0x38] sm:$0x3] }
0x38a3   : > { %v12184_v12 = vpop.permute.xlu1 %12183 }
0x38a4   : > { %v12201_v37 = vsel %vm1144_vm4, %v12200_v45, %v12184_v12  ;;  %v12369_v45 = vrot.slane %v12994_v53, %v14722_v44 }
0x38a5   : > { %v12196_v39 = vpop.permute.xlu0 %12195 }
0x38a7   : > { %v12188_v54 = vpop.permute.xlu1 %12187 }
0x38a8   : > { %v12202_v2 = vsel %vm4444_vm13, %v12201_v37, %v12188_v54  ;;  %v12461_v37 = vrot.slane %v12994_v53, %v14727_v47 }
0x38ab   : > { %v12192_v3 = vpop.permute.xlu1 %12191 }
0x38ac   : > { %v12203_v48 = vsel %vm4446_vm14, %v12202_v2, %v12192_v3 }
0x38ad   : > { %v12204_v6 = vsel %vm4448_vm15, %v12203_v48, %v12196_v39 }
0x38ae   : > { %v12205_v5 = vpack.c.bf16 %v12204_v6, %v12204_v6 }
0x38b0   : > { %14029 = vmatmul.mubr.msk.bf16.vlgmr.msra.gmra.mrb[160].mxu1 %vm1203_vm1, %v12205_v5 }
0x38b1   : > { %14056 = vmatprep.mubr.msk.bf16.mxu1 %vm14479_vm2, %v14478_v31 }
0x3983   : > { %v12259_v56 = vpop.f32.mrb[160].mxu1 }
0x3984   : > { %v12260_v40 = vadd.f32 %v12259_v56, %v12209_v15  ;;  %v14030_v0 = vpop.f32.mrb[161].mxu1 }
0x3985   : > { %v12262_v63 = vpop.f32.mrb[162].mxu1 }
0x3986   : > { %v12269_v13 = vmul.f32 %v12268_v57, %v12260_v40  ;;  %v14031_v21 = vpop.f32.mrb[163].mxu1 }
0x3987   : > { %v14232_v21 = vld [vmem:[%s16655_s5 + $0x8] sm:$0xff]  }
0x3988   : > { %v16471_v38 = vadd.f32 %v12269_v13, %v16100_v46  ;;  %v14223_v46 = vld [vmem:[%s16640_s26 + $0xc0] sm:$0xff]  }
0x3989   : > { %14041 = vmatpush3.bf16.msra.mxu1 %v14223_v46  ;;  %v14231_v13 = vld [vmem:[%s16655_s5] sm:$0xff]  }
0x398a   : > { %v12271_v34 = vsel %vm1506_vm5, %v16471_v38, 0.0  ;;  %14042 = vmatprep.subr.bf16.mxu1 %v14478_v31 }
0x398b   : > { %12272 = vadd.xlane.f32.xlu1 %v12271_v34 }
0x398d   : > { %14043 = vmatpush3.bf16.msra.mxu1 %v14224_v51 }
0x398e   : > { %14044 = vmatprep.subr.bf16.mxu1 %v14478_v31 }
0x3991   : > { %14045 = vmatpush3.bf16.msra.mxu1 %v14225_v35 }
0x3992   : > { %14046 = vmatprep.subr.bf16.mxu1 %v14478_v31 }
0x3995   : > { %14047 = vmatpush3.bf16.msra.mxu1 %v14226_v59 }
0x3996   : > { %14048 = vmatprep.subr.bf16.mxu1 %v14478_v31 }
0x3999   : > { %14049 = vmatpush3.bf16.msra.mxu1 %v14227_v36 }
0x399a   : > { %14050 = vmatprep.subr.bf16.mxu1 %v14478_v31 }
0x399d   : > { %14051 = vmatpush3.bf16.msra.mxu1 %v14228_v20 }
0x399e   : > { %14052 = vmatprep.subr.bf16.mxu1 %v14478_v31 }
0x39a1   : > { %14053 = vmatpush3.bf16.msra.mxu1 %v14229_v17 }
0x39a2   : > { %14054 = vmatprep.subr.bf16.mxu1 %v14478_v31 }
0x39a5   : > { %14055 = vmatpush3.bf16.msra.mxu1 %v14230_v27 }
0x3a18   : > { %v12273_v30 = vpop.xlane.xlu1 %12272 }
0x3a19   : > { %v12274_v8 = vmul.f32 0.03125, %v12273_v30 }
0x3a1b   : > { %v12275_v9 = vsub.f32 %v16471_v38, %v12274_v8  ;;  %v12464_v8 = vld [vmem:[%s16656_s9] sm:$0x3] }
0x3a1c   : > { %v12500_v42 = vrot.slane %v12464_v8, %v14727_v47  ;;  %v14236_v47 = vld [vmem:[%s14656_s13 + $0x18] sm:$0xff]  }
0x3a1d   : > { %v12276_v24 = vmul.f32 %v12275_v9, %v12275_v9 }
0x3a1f   : > { %v12277_v43 = vsel %vm1506_vm5, %v12276_v24, 0.0 }
0x3a20   : > { %12278 = vadd.xlane.f32.xlu0 %v12277_v43 }
0x3aad   : > { %v12279_v49 = vpop.xlane.xlu0 %12278 }
0x3aae   : > { %v12280_v14 = vmul.f32 0.03125, %v12279_v49 }
0x3ab0   : > { %v12281_v33 = vadd.f32 1e-05, %v12280_v14  ;;  %v14233_v14 = vld [vmem:[%s14656_s13] sm:$0xff]  }
0x3ab2   : > { %14423 = vrsqrt.f32 %v12281_v33  ;;  %v14234_v33 = vld [vmem:[%s14656_s13 + $0x8] sm:$0xff]  }
0x3abc   : > { %v14424_v1 = vpop.eup %14423 }
0x3abd   : > { %v12283_v58 = vmul.f32 %v14424_v1, %v12275_v9  ;;  %v12495_v9 = vrot.slane %v12464_v8, %v14722_v44  ;;  %v14235_v44 = vld [vmem:[%s14656_s13 + $0x10] sm:$0xff]  }
0x3abf   : > { %v12288_v52 = vmul.f32 %v12287_v19, %v12283_v58  ;;  %v13069_v19 = vld [vmem:[%s14651_s4] ss:$0 sm:$0xff] }
0x3ac1   : > { %v12293_v55 = vadd.f32 %v12292_v62, %v12288_v52 }
0x3ac3   : > { %v12294_v25 = vpack.c.bf16 %v12293_v55, %v12293_v55 }
0x3ac5   : > { %14037 = vmatmul.mubr.msk.bf16.vlgmr.msra.gmra.mrb[216].mxu0 %vm1203_vm1, %v12294_v25 }
0x3ac6   : > { %14064 = vmatprep.mubr.msk.bf16.mxu0 %vm14479_vm2, %v14478_v31  ;;  %14061 = vmatpush3.bf16.msra.mxu0 %v14231_v13 }
0x3ac7   : > { %14062 = vmatprep.subr.bf16.mxu0 %v14478_v31 }
0x3aca   : > { %14063 = vmatpush3.bf16.msra.mxu0 %v14232_v21 }
0x3acb   : > { %14068 = vmatprep.subr.bf16.mxu0 %v14478_v31 }
0x3b98   : > { %v12350_v16 = vpop.f32.mrb[216].mxu0 }
0x3b99   : > { %v12351_v18 = vadd.f32 %v13057_v32, %v12350_v16  ;;  %v14038_v41 = vpop.f32.mrb[217].mxu0  ;;  %v13073_v16 = vld [vmem:[%s14661_s20] ss:$0 sm:$0xff] }
0x3b9a   : > { %v12353_v61 = vpop.f32.mrb[218].mxu0 }
0x3b9b   : > { %v12357_v22 = vmul.f32 0.044715, %v12351_v18  ;;  %v14039_v4 = vpop.f32.mrb[219].mxu0  ;;  %v12356_v12 = vmul.f32 0.5, %v12351_v18 }
0x3b9d   : > { %v12358_v29 = vmul.f32 %v12357_v22, %v12351_v18 }
0x3b9f   : > { %v12359_v28 = vmul.f32 %v12358_v29, %v12351_v18 }
0x3ba1   : > { %v12360_v10 = vadd.f32 %v12359_v28, %v12351_v18 }
0x3ba3   : > { %v12361_v26 = vmul.f32 0.7978846, %v12360_v10 }
0x3ba5   : > { %14425 = vtanh.f32 %v12361_v26 }
0x3baf   : > { %v14426_v50 = vpop.eup %14425 }
0x3bb0   : > { %v12363_v23 = vadd.f32 1.0, %v14426_v50 }
0x3bb2   : > { %v12364_v60 = vmul.f32 %v12363_v23, %v12356_v12 }
0x3bb4   : > { %v12365_v54 = vpack.c.bf16 %v12364_v60, %v12364_v60 }
0x3bb6   : > { %14057 = vmatmul.mubr.bf16.vlgmr.msra.gmra.mrb[164].mxu1 %v12365_v54 }
0x3c89   : > { %v12452_v2 = vpop.f32.mrb[164].mxu1 }
0x3c8a   : > { %v12453_v3 = vadd.f32 %v12452_v2, %v12369_v45  ;;  %v14058_v39 = vpop.f32.mrb[165].mxu1 }
0x3c8b   : > { %v12455_v48 = vpop.f32.mrb[166].mxu1 }
0x3c8c   : > { %v12462_v6 = vmul.f32 %v12461_v37, %v12453_v3  ;;  %v14059_v5 = vpop.f32.mrb[167].mxu1 }
0x3c8e   : > { %v12463_v11 = vadd.f32 %v12462_v6, %v16471_v38 }
0x3c90   : > { %v12479_v15 = vsel %vm1506_vm5, %v12463_v11, 0.0 }
0x3c91   : > { %12480 = vadd.xlane.f32.xlu0 %v12479_v15 }
0x3d1e   : > { %v12481_v57 = vpop.xlane.xlu0 %12480 }
0x3d1f   : > { %v12482_v56 = vmul.f32 0.03125, %v12481_v57 }
0x3d21   : > { %v12483_v40 = vsub.f32 %v12463_v11, %v12482_v56 }
0x3d23   : > { %v12484_v0 = vmul.f32 %v12483_v40, %v12483_v40 }
0x3d25   : > { %v12485_v63 = vsel %vm1506_vm5, %v12484_v0, 0.0 }
0x3d26   : > { %12486 = vadd.xlane.f32.xlu0 %v12485_v63 }
0x3db3   : > { %v12487_v38 = vpop.xlane.xlu0 %12486 }
0x3db4   : > { %v12488_v34 = vmul.f32 0.03125, %v12487_v38 }
0x3db6   : > { %v12489_v30 = vadd.f32 1e-05, %v12488_v34 }
0x3db8   : > { %14427 = vrsqrt.f32 %v12489_v30 }
0x3dc2   : > { %v14428_v24 = vpop.eup %14427 }
0x3dc3   : > { %v12491_v43 = vmul.f32 %v14428_v24, %v12483_v40 }
0x3dc5   : > { %v12496_v7 = vmul.f32 %v12495_v9, %v12491_v43 }
0x3dc7   : > { %v12501_v46 = vadd.f32 %v12500_v42, %v12496_v7 }
0x3dc9   : > { %v12502_v49 = vpack.c.bf16 %v12501_v46, %v12501_v46 }
0x3dcb   : > { %14065 = vmatmul.mubr.msk.bf16.vlgmr.msra.gmra.mrb[220].mxu0 %vm1203_vm1, %v12502_v49 }
0x3dcc   : > { %14076 = vmatprep.mubr.msk.bf16.mxu0 %vm14479_vm2, %v14478_v31  ;;  %14069 = vmatpush3.bf16.msra.mxu0 %v14233_v14 }
0x3dcd   : > { %14070 = vmatprep.subr.bf16.mxu0 %v14478_v31 }
0x3dd0   : > { %14071 = vmatpush3.bf16.msra.mxu0 %v14234_v33 }
0x3dd1   : > { %14072 = vmatprep.subr.bf16.mxu0 %v14478_v31 }
0x3dd4   : > { %14073 = vmatpush3.bf16.msra.mxu0 %v14235_v44 }
0x3dd5   : > { %14074 = vmatprep.subr.bf16.mxu0 %v14478_v31 }
0x3dd8   : > { %14075 = vmatpush3.bf16.msra.mxu0 %v14236_v47 }
0x3e9e   : > { %v12558_v1 = vpop.f32.mrb[220].mxu0 }
0x3e9f   : > { %v12559_v58 = vadd.f32 %v13069_v19, %v12558_v1  ;;  %v14066_v62 = vpop.f32.mrb[221].mxu0 }
0x3ea0   : > { %v12561_v52 = vpop.f32.mrb[222].mxu0 }
0x3ea1   : > { %v12565_v55 = vmul.f32 0.044715, %v12559_v58  ;;  %v14067_v25 = vpop.f32.mrb[223].mxu0  ;;  %v12564_v17 = vmul.f32 0.5, %v12559_v58 }
0x3ea3   : > { %v12566_v51 = vmul.f32 %v12565_v55, %v12559_v58 }
0x3ea5   : > { %v12567_v35 = vmul.f32 %v12566_v51, %v12559_v58 }
0x3ea7   : > { %v12568_v59 = vadd.f32 %v12567_v35, %v12559_v58 }
0x3ea9   : > { %v12569_v36 = vmul.f32 0.7978846, %v12568_v59 }
0x3eab   : > { %14429 = vtanh.f32 %v12569_v36 }
0x3eb5   : > { %v14430_v20 = vpop.eup %14429 }
0x3eb6   : > { %v12571_v27 = vadd.f32 1.0, %v14430_v20 }
0x3eb8   : > { %v12572_v31 = vmul.f32 %v12571_v27, %v12564_v17 }
0x3eba   : > { %v12573_v32 = vpack.c.bf16 %v12572_v31, %v12572_v31 }
0x3ebc   : > { %14077 = vmatmul.mubr.msk.bf16.vlgmr.msra.gmra.mrb[224].mxu0 %vm1078_vm3, %v12573_v32 }
0x3f8f   : > { %v12641_v18 = vpop.f32.mrb[224].mxu0 }
0x3f90   : > { %v12642_v41 = vadd.f32 %v13073_v16, %v12641_v18  ;;  %v14078_v61 = vpop.f32.mrb[225].mxu0 }
0x3f91   : > { %v12644_v22 = vpop.f32.mrb[226].mxu0 }
0x3f92   : > { %12647 = vst [vmem:[%s1001_s21] sm:$0xf] %v12642_v41  ;;  %v14079_v4 = vpop.f32.mrb[227].mxu0 }
0x3f93 PF: > { %s75_s28 = sadd.s32 1, %s14444_s28  }
0x3f94   : > { %p72_p4 = scmp.ge.s32.totalorder %s75_s28, 4  }
0x3f96   :  { %74 = sbr.rel (!%p72_p4) target bundleno = 67 (0x43), region = 234 }

</bundles_post_ra>
